<compile_context>
chip_gen: v6e
topology: v6e:2x2x1
jax: 0.10.0
libtpu: 0.0.40
codegen_flags: <defaults>
</compile_context>

<pallas_src>
import functools
import math

import jax
import jax.numpy as jnp
from jax import lax
from jax.experimental import pallas as pl
from jax.experimental.pallas import tpu as pltpu

# bf16 MXU operands (v6e/v7x native, full-rate on v5e); accumulation + all gate /
# transcendental math stays f32 (v5e has no bf16 VPU/EUP, and exp() stays f32).
_MXU_DTYPE = jnp.bfloat16

# TODO(synk): for large real model dims, pad MXU contraction dims (2H, str_dim, sem)
# to multiples of 128 once at init for better v6e/v7x MXU fill.


def _dot(a, b):
    return jnp.dot(a.astype(_MXU_DTYPE), b.astype(_MXU_DTYPE),
                   preferred_element_type=jnp.float32)


def _row_block(n, target):
    """Largest multiple-of-8 divisor of n <= target (or n itself) -- keeps the
    (8,128) BlockSpec constraint satisfied when the block dim is sub-minor.
    NOTE: falls back to a single full block if no divisor exists (see review note)."""
    if n <= target:
        return n
    b = (target // 8) * 8
    while b >= 8:
        if n % b == 0:
            return b
        b -= 8
    return n


def _div_block(n, target):
    """Largest divisor of n <= target (used for pure leading/batch block dims)."""
    if n <= target:
        return n
    for b in range(target, 0, -1):
        if n % b == 0:
            return b
    return n


def _batch_block(b, target=16):
    # keep >= 2 grid blocks whenever possible so both v7x TensorCores get work
    if b >= 2:
        target = min(target, max(1, b // 2))
    return _div_block(b, target)


def _vmem_cap():
    try:
        return int(pltpu.get_tpu_info().vmem_capacity_bytes)   # 64 MiB on v7x, 128 on v5e/v6e
    except Exception:
        return 64 << 20                                        # conservative fallback


def _mosaic_params(vmem_est_bytes):
    # Raise the scoped-VMEM limit above the 16/32 MiB defaults, sized from the actual
    # block residency with 2x headroom, capped below physical capacity.
    limit = int(min(max(2 * vmem_est_bytes, 32 << 20), int(_vmem_cap() * 0.85)))
    return pltpu.CompilerParams(dimension_semantics=("parallel",),
                                vmem_limit_bytes=limit)


# -------------------- Bidirectional LSTM layer kernel ----------------------
def _bilstm_kernel(x_ref, wih_ref, b_ref, whhf_ref, whhb_ref, out_ref, gx_ref, *, H):
    T, N, D = x_ref.shape
    G = 4 * H

    # Hoisted input projection for BOTH directions: one big lane-dense MXU matmul
    # (bf16 operands, f32 accumulation) instead of 2*T small ones in the recurrence.
    gx = _dot(x_ref[...].reshape(T * N, D), wih_ref[...]) + b_ref[...]
    gx_ref[...] = gx.reshape(T, N, 2 * G).astype(jnp.bfloat16)   # bf16 scratch: halves VMEM + per-step loads

    # Two independent K=H recurrent weights (no zero-padded block-diagonal matmul).
    whh_f = whhf_ref[...].astype(_MXU_DTYPE)
    whh_b = whhb_ref[...].astype(_MXU_DTYPE)

    def cell(g, c):               # PyTorch nn.LSTM gate order i, f, g, o; gate math in f32
        i = jax.nn.sigmoid(g[:, 0:H])
        f = jax.nn.sigmoid(g[:, H:2 * H])
        u = jnp.tanh(g[:, 2 * H:3 * H])
        o = jax.nn.sigmoid(g[:, 3 * H:4 * H])
        c_new = f * c + i * u
        return o * jnp.tanh(c_new), c_new

    def step(t, carry):
        h_f, c_f, h_b, c_b = carry
        tb = T - 1 - t
        g_f = jnp.dot(h_f.astype(_MXU_DTYPE), whh_f,
                      preferred_element_type=jnp.float32) + gx_ref[t][:, 0:G].astype(jnp.float32)
        g_b = jnp.dot(h_b.astype(_MXU_DTYPE), whh_b,
                      preferred_element_type=jnp.float32) + gx_ref[tb][:, G:2 * G].astype(jnp.float32)
        h_f, c_f = cell(g_f, c_f)
        h_b, c_b = cell(g_b, c_b)
        out_ref[0, t] = h_f        # lane-dense per-direction slabs (no masked half-width
        out_ref[1, tb] = h_b       # stores with a lane offset inside the serial loop)
        return (h_f, c_f, h_b, c_b)

    z = jnp.zeros((N, H), jnp.float32)
    # Full unroll only for short sequences; bounded unroll keeps code size sane for long T.
    lax.fori_loop(0, T, step, (z, z, z, z), unroll=(True if T <= 16 else 8))


def bilstm_layer(xt, p):
    """xt: (T, N, D) time-major -> (T, N, 2H) time-major; fused fwd+bwd time loop."""
    T, N, D = xt.shape
    H = p["whh_f"].shape[0]
    wih_cat = jnp.concatenate([p["wih_f"], p["wih_b"]], axis=1)        # (D, 8H)
    b_cat = jnp.concatenate([p["b_f"], p["b_b"]], axis=1)              # (1, 8H)

    # v7x has only 64 MiB VMEM/TC and 2 TCs -> smaller batch block, >=2 parallel blocks when possible.
    nb = _row_block(N, 64)
    if N // nb < 2 and N >= 16:
        nb = _row_block(N, max(8, ((N // 2) // 8) * 8))

    vmem_est = (2 * T * nb * D * 4                                   # x block (double-buffered)
                + 2 * 4 * (D * 8 * H + 8 * H + 2 * H * 4 * H)        # weights (double-buffered)
                + 2 * 4 * (2 * T * nb * H)                           # out block (double-buffered)
                + 2 * T * nb * 8 * H)                                # gx scratch (bf16)

    out = pl.pallas_call(
        functools.partial(_bilstm_kernel, H=H),
        out_shape=jax.ShapeDtypeStruct((2, T, N, H), jnp.float32),
        grid=(N // nb,),
        in_specs=[pl.BlockSpec((T, nb, D), lambda i: (0, i, 0)),
                  pl.BlockSpec((D, 8 * H), lambda i: (0, 0)),
                  pl.BlockSpec((1, 8 * H), lambda i: (0, 0)),
                  pl.BlockSpec((H, 4 * H), lambda i: (0, 0)),
                  pl.BlockSpec((H, 4 * H), lambda i: (0, 0))],
        out_specs=pl.BlockSpec((2, T, nb, H), lambda i: (0, 0, i, 0)),
        scratch_shapes=[pltpu.VMEM((T, nb, 8 * H), jnp.bfloat16)],
        compiler_params=_mosaic_params(vmem_est),
    )(xt, wih_cat, b_cat, p["whh_f"], p["whh_b"])
    # single lane-dense concat in the wrapper replaces 2*T masked partial stores per block
    return jnp.concatenate([out[0], out[1]], axis=-1)                  # (T, N, 2H)


def bilstm_encoder(x, layers):
    # TODO(synk): packed variable-length sequences (forward_packed / pack_padded_sequence)
    # are not modeled; padding is handled by the downstream masks.
    h = jnp.transpose(x, (1, 0, 2))      # one layout pass per stack, not per layer
    for p in layers:
        h = bilstm_layer(h, p)
    return jnp.transpose(h, (1, 0, 2))


# ------------------------ Structured attention -----------------------------
def _att_scores_kernel(x_ref, m_ref, wcat_ref, bcat_ref, wbi_ref, fij_ref, fi_ref, *, sem, S):
    Bb, T, _ = x_ref.shape
    m = m_ref[...]                                                    # (Bb, T, 1)
    # masked str_v via in-kernel static lane slice (no HBM slice / mask pass)
    sv = (x_ref[...][:, :, sem:sem + S] * m).reshape(Bb * T, S)
    y = _dot(sv, wcat_ref[...]) + bcat_ref[...]                       # fused [w_tp | w_tc | w_fi]
    tp = jnp.tanh(y[:, 0:S])
    tc = jnp.tanh(y[:, S:2 * S])
    fi = y[:, 2 * S:2 * S + 1]
    tpA = _dot(tp, wbi_ref[...])
    # bilinear scores: batched A @ B^T, no transposed operand materialized in HBM
    fij_ref[...] = jnp.einsum("bid,bjd->bij",
                              tpA.reshape(Bb, T, S).astype(_MXU_DTYPE),
                              tc.reshape(Bb, T, S).astype(_MXU_DTYPE),
                              preferred_element_type=jnp.float32)
    fi_ref[...] = jnp.exp(fi).reshape(Bb, T, 1)                       # exp kept in f32


def _att_output_kernel(d0_ref, dx_ref, dxT_ref, x_ref, m_ref, exp_ref, wfz_ref, bfz_ref,
                       out_ref, *, sem):
    Bb, T, _ = dx_ref.shape
    m = m_ref[...]                                                    # (Bb, T, 1)
    sv = x_ref[...][:, :, 0:sem] * m                                  # masked sem_v (in-kernel slice)
    svb = sv.astype(_MXU_DTYPE)
    # pinp = df @ [exparam ; sem_v]   (root column handled via d0 * exparam)
    pinp = d0_ref[...] * exp_ref[...].reshape(1, 1, sem) + jnp.einsum(
        "bij,bjs->bis", dx_ref[...].astype(_MXU_DTYPE), svb,
        preferred_element_type=jnp.float32)
    # cinp = dx^T @ sem_v   (dx^T supplied by the glue so only the standard batched pattern is used)
    cinp = jnp.einsum("bij,bjs->bis", dxT_ref[...].astype(_MXU_DTYPE), svb,
                      preferred_element_type=jnp.float32)
    W = wfz_ref[...]
    # relu([sem_v, pinp, cinp] @ w_fz + b) as three flattened (Bb*T, sem) matmuls (no lane concat)
    y = (_dot(sv.reshape(Bb * T, sem), W[0:sem])
         + _dot(pinp.reshape(Bb * T, sem), W[sem:2 * sem])
         + _dot(cinp.reshape(Bb * T, sem), W[2 * sem:3 * sem])
         + bfz_ref[...])
    y = jnp.maximum(y, 0.0).reshape(Bb, T, sem)
    # fused masked max over the sequence axis: additive -999 matches the PyTorch
    # reference (safe here because y is relu'd >= 0).
    y = y + (m - 1.0) * 999.0
    out_ref[...] = jnp.max(y, axis=1, keepdims=True)


def structured_attention(x, mask, p):
    """Matrix-tree structured attention (Liu & Lapata style) + fused masked max-pool.

    x: (B, T, hidden) raw encoder output (mask applied in-kernel), mask: (B, T).
    Returns (pooled (B, sem) masked-max over T, attention matrix df (B, T, T+1))."""
    B, T, hid = x.shape
    sem = p["exparam"].shape[-1]
    S = p["w_tp"].shape[0]
    mask3 = mask.astype(jnp.float32)[:, :, None]

    w_cat = jnp.concatenate([p["w_tp"], p["w_tc"], p["w_fi"]], axis=1)      # (S, 2S+1)
    b_cat = jnp.concatenate(
        [p["b_tp"], p["b_tc"], jnp.zeros((1,), jnp.float32)]).reshape(1, 2 * S + 1)

    bb = _batch_block(B)
    est_sc = 4 * (2 * bb * T * hid + 2 * bb * T + 2 * S * (2 * S + 1)
                  + 2 * S * S + 2 * bb * T * T + 2 * bb * T) + (2 << 20)
    f_ij, f_i3 = pl.pallas_call(
        functools.partial(_att_scores_kernel, sem=sem, S=S),
        out_shape=(jax.ShapeDtypeStruct((B, T, T), jnp.float32),
                   jax.ShapeDtypeStruct((B, T, 1), jnp.float32)),
        grid=(B // bb,),
        in_specs=[pl.BlockSpec((bb, T, hid), lambda i: (i, 0, 0)),
                  pl.BlockSpec((bb, T, 1), lambda i: (i, 0, 0)),
                  pl.BlockSpec((S, 2 * S + 1), lambda i: (0, 0)),
                  pl.BlockSpec((1, 2 * S + 1), lambda i: (0, 0)),
                  pl.BlockSpec((S, S), lambda i: (0, 0))],
        out_specs=(pl.BlockSpec((bb, T, T), lambda i: (i, 0, 0)),
                   pl.BlockSpec((bb, T, 1), lambda i: (i, 0, 0))),
        compiler_params=_mosaic_params(est_sc),
    )(x, mask3, w_cat, b_cat, p["w_bi"])
    f_i = f_i3[:, :, 0]

    # ---- matrix-tree marginals: plain JAX glue around the matrix inverse ----
    eye = jnp.eye(T, dtype=jnp.float32)
    A = jnp.exp(f_ij) * (1.0 - eye)[None, :, :]                             # f32; zero diagonal
    col_sum = jnp.sum(A, axis=1)
    L = -A + eye[None, :, :] * col_sum[:, None, :]
    L_bar = L.at[:, 0, :].set(f_i)
    # TODO(synk): torch.inverse (matrix-tree partition) has no Pallas primitive; stays in plain JAX.
    LLinv = jnp.linalg.inv(L_bar)

    d0 = f_i * LLinv[:, :, 0]                                               # (B,T)
    diag = jnp.diagonal(LLinv, axis1=-2, axis2=-1)                          # (B,T)
    tmp1 = A * diag[:, None, :]
    tmp2 = A * jnp.transpose(LLinv, (0, 2, 1))
    keep = (jnp.arange(T) != 0).astype(jnp.float32)
    dx = keep[None, None, :] * tmp1 - keep[None, :, None] * tmp2            # (B,T,T) marginals
    df = jnp.concatenate([d0[:, :, None], dx], axis=2)                      # (B,T,T+1)

    est_out = 4 * (2 * bb * T * (1 + 2 * T + hid + 1) + sem + 3 * sem * sem
                   + sem + 2 * bb * sem) + (2 << 20)
    pooled = pl.pallas_call(
        functools.partial(_att_output_kernel, sem=sem),
        out_shape=jax.ShapeDtypeStruct((B, 1, sem), jnp.float32),
        grid=(B // bb,),
        in_specs=[pl.BlockSpec((bb, T, 1), lambda i: (i, 0, 0)),
                  pl.BlockSpec((bb, T, T), lambda i: (i, 0, 0)),
                  pl.BlockSpec((bb, T, T), lambda i: (i, 0, 0)),
                  pl.BlockSpec((bb, T, hid), lambda i: (i, 0, 0)),
                  pl.BlockSpec((bb, T, 1), lambda i: (i, 0, 0)),
                  pl.BlockSpec((1, sem), lambda i: (0, 0)),
                  pl.BlockSpec((3 * sem, sem), lambda i: (0, 0)),
                  pl.BlockSpec((1, sem), lambda i: (0, 0))],
        out_specs=pl.BlockSpec((bb, 1, sem), lambda i: (i, 0, 0)),
        compiler_params=_mosaic_params(est_out),
    )(d0[:, :, None], dx, jnp.transpose(dx, (0, 2, 1)), x, mask3,
      p["exparam"].reshape(1, sem), p["w_fz"], p["b_fz"].reshape(1, sem))
    return pooled[:, 0, :], df


# ------------------------------ Full forward -------------------------------
def model_forward(params, token_idxs, mask_tokens, mask_sents):
    B, S, T = token_idxs.shape
    emb = params["embedding"][token_idxs]                              # (B,S,T,E) glue gather
    # nn.Dropout: inference mode -> identity
    E = emb.shape[-1]
    x = emb.reshape(B * S, T, E)

    enc_sent = bilstm_encoder(x, params["sent_lstm"])                  # (B*S, T, sent_hidden)
    tok_mask = mask_tokens.reshape(B * S, T).astype(jnp.float32)
    # mask multiply + attention + (-999) masked max are all fused into the attention kernels
    sent_repr, sent_att = structured_attention(enc_sent, tok_mask, params["sent_att"])
    sem_dim = sent_repr.shape[-1]
    sent_repr = sent_repr.reshape(B, S, sem_dim)

    enc_doc = bilstm_encoder(sent_repr, params["doc_lstm"])            # (B, S, doc_hidden)
    doc_repr, doc_att = structured_attention(enc_doc, mask_sents.astype(jnp.float32),
                                             params["doc_att"])

    # (B, sem) @ (sem, 5): launch overhead would dominate a kernel -> leave to XLA
    logits = doc_repr @ params["w_out"] + params["b_out"]
    return logits, sent_att, doc_att


# ----------------------------- Parameter init ------------------------------
def _xavier(key, fin, fout):
    lim = math.sqrt(6.0 / (fin + fout))
    return jax.random.uniform(key, (fin, fout), jnp.float32, -lim, lim)


def init_lstm_params(key, input_size, hidden):
    ks = jax.random.split(key, 6)
    s = 1.0 / math.sqrt(hidden)
    u = lambda k, shape: jax.random.uniform(k, shape, jnp.float32, -s, s)
    return {
        "wih_f": u(ks[0], (input_size, 4 * hidden)),
        "whh_f": u(ks[1], (hidden, 4 * hidden)),
        "b_f":   u(ks[2], (1, 4 * hidden)),
        "wih_b": u(ks[3], (input_size, 4 * hidden)),
        "whh_b": u(ks[4], (hidden, 4 * hidden)),
        "b_b":   u(ks[5], (1, 4 * hidden)),
    }


def init_att_params(key, sem_dim, hidden_size):
    str_dim = hidden_size - sem_dim
    ks = jax.random.split(key, 6)
    return {
        "w_tp": _xavier(ks[0], str_dim, str_dim), "b_tp": jnp.zeros((str_dim,), jnp.float32),
        "w_tc": _xavier(ks[1], str_dim, str_dim), "b_tc": jnp.zeros((str_dim,), jnp.float32),
        "w_fi": _xavier(ks[2], str_dim, 1),
        "w_bi": _xavier(ks[3], str_dim, str_dim),
        "exparam": 0.1 * jax.random.normal(ks[4], (1, 1, sem_dim), jnp.float32),
        "w_fz": _xavier(ks[5], 3 * sem_dim, sem_dim), "b_fz": jnp.zeros((sem_dim,), jnp.float32),
    }


def init_params(key, vocab_size, token_emb, sent_hidden, doc_hidden, sem_dim_half,
                sent_num_layers=1, doc_num_layers=1):
    # bidirectional=True => the PyTorch __init__ doubles these dims
    sem_dim = 2 * sem_dim_half
    sent_hidden_size = 2 * sent_hidden
    doc_hidden_size = 2 * doc_hidden
    keys = jax.random.split(key, 6)

    sent_layers, in_size = [], token_emb
    kk = jax.random.split(keys[1], sent_num_layers)
    for l in range(sent_num_layers):
        sent_layers.append(init_lstm_params(kk[l], in_size, sent_hidden_size // 2))
        in_size = sent_hidden_size

    doc_layers, in_size = [], sem_dim
    kk = jax.random.split(keys[2], doc_num_layers)
    for l in range(doc_num_layers):
        doc_layers.append(init_lstm_params(kk[l], in_size, doc_hidden_size // 2))
        in_size = doc_hidden_size

    return {
        "embedding": 0.1 * jax.random.normal(keys[0], (vocab_size, token_emb), jnp.float32),
        "sent_lstm": sent_layers,
        "doc_lstm": doc_layers,
        "sent_att": init_att_params(keys[3], sem_dim, sent_hidden_size),
        "doc_att": init_att_params(keys[4], sem_dim, doc_hidden_size),
        "w_out": _xavier(keys[5], sem_dim, 5),
        "b_out": jnp.zeros((5,), jnp.float32),
    }


if __name__ == "__main__":
    key = jax.random.PRNGKey(0)
    k_param, k_tok = jax.random.split(key)

    B, S, T = 2, 4, 8                      # batch, sentences/doc, tokens/sentence
    vocab_size, token_emb = 50, 32
    sent_hidden, doc_hidden, sem_dim_half = 16, 16, 8   # ctor args (doubled for bidirectional)

    params = init_params(k_param, vocab_size, token_emb, sent_hidden, doc_hidden, sem_dim_half)

    token_idxs = jax.random.randint(k_tok, (B, S, T), 0, vocab_size, dtype=jnp.int32)
    mask_tokens = jnp.ones((B, S, T), jnp.float32)
    mask_sents = jnp.ones((B, S), jnp.float32)

    fwd = jax.jit(model_forward)
    logits, sent_att, doc_att = fwd(params, token_idxs, mask_tokens, mask_sents)
    jax.block_until_ready((logits, sent_att, doc_att))

    assert logits.shape == (B, 5)
    assert sent_att.shape == (B * S, T, T + 1)
    assert doc_att.shape == (B, S, S + 1)
    print("KERNEL_OK")
</pallas_src>

<mosaic_0001>
module attributes {stable_mosaic.version = 11 : i64} {
  func.func @_bilstm_kernel(%arg0: i32, %arg1: memref<8x8x32xf32, #tpu.memory_space<vmem>>, %arg2: memref<32x128xf32, #tpu.memory_space<vmem>>, %arg3: memref<1x128xf32, #tpu.memory_space<vmem>>, %arg4: memref<16x64xf32, #tpu.memory_space<vmem>>, %arg5: memref<16x64xf32, #tpu.memory_space<vmem>>, %arg6: memref<2x8x8x16xf32, #tpu.memory_space<vmem>>, %arg7: memref<8x8x128xbf16, #tpu.memory_space<vmem>>) attributes {dimension_semantics = [#tpu.dimension_semantics<parallel>], iteration_bounds = array<i64: 1>, scalar_prefetch = 0 : i64, scratch_operands = 1 : i64, tpu.core_type = #tpu.core_type<tc>, window_params = [{transform_indices = @transform_0, window_bounds = array<i64: 8, 8, 32>}, {pipeline_mode = #tpu.pipeline_mode<synchronous>, transform_indices = @transform_1, window_bounds = array<i64: 32, 128>}, {pipeline_mode = #tpu.pipeline_mode<synchronous>, transform_indices = @transform_2, window_bounds = array<i64: 1, 128>}, {pipeline_mode = #tpu.pipeline_mode<synchronous>, transform_indices = @transform_3, window_bounds = array<i64: 16, 64>}, {pipeline_mode = #tpu.pipeline_mode<synchronous>, transform_indices = @transform_4, window_bounds = array<i64: 16, 64>}, {transform_indices = @transform_5, window_bounds = array<i64: 2, 8, 8, 16>}]} {
    %c0 = arith.constant 0 : index
    %c0_0 = arith.constant 0 : index
    %c0_1 = arith.constant 0 : index
    %0 = vector.load %arg1[%c0, %c0_0, %c0_1] : memref<8x8x32xf32, #tpu.memory_space<vmem>>, vector<8x8x32xf32>
    %1 = vector.shape_cast %0 : vector<8x8x32xf32> to vector<64x32xf32>
    %c0_2 = arith.constant 0 : index
    %c0_3 = arith.constant 0 : index
    %2 = vector.load %arg2[%c0_2, %c0_3] : memref<32x128xf32, #tpu.memory_space<vmem>>, vector<32x128xf32>
    %3 = arith.truncf %1 : vector<64x32xf32> to vector<64x32xbf16>
    %4 = arith.truncf %2 : vector<32x128xf32> to vector<32x128xbf16>
    %cst = arith.constant dense<0.000000e+00> : vector<64x128xf32>
    %5 = tpu.matmul %3, %4, %cst {dimension_numbers = #tpu.dot_dimension_numbers<[1], [0], [0], [1], [0, 0, 1, 1], [], []>} : vector<64x32xbf16>, vector<32x128xbf16>, vector<64x128xf32> -> vector<64x128xf32>
    %c0_4 = arith.constant 0 : index
    %c0_5 = arith.constant 0 : index
    %6 = vector.load %arg3[%c0_4, %c0_5] : memref<1x128xf32, #tpu.memory_space<vmem>>, vector<1x128xf32>
    %7 = vector.broadcast %6 : vector<1x128xf32> to vector<64x128xf32>
    %8 = arith.addf %5, %7 : vector<64x128xf32>
    %9 = vector.shape_cast %8 : vector<64x128xf32> to vector<8x8x128xf32>
    %10 = arith.truncf %9 : vector<8x8x128xf32> to vector<8x8x128xbf16>
    %c0_6 = arith.constant 0 : index
    %c0_7 = arith.constant 0 : index
    %c0_8 = arith.constant 0 : index
    %11 = vector.load %arg7[%c0_6, %c0_7, %c0_8] : memref<8x8x128xbf16, #tpu.memory_space<vmem>>, vector<8x8x128xbf16>
    tpu.vector_store %arg7[%c0_6, %c0_7, %c0_8], %10 {strides = array<i32>} : memref<8x8x128xbf16, #tpu.memory_space<vmem>>, vector<8x8x128xbf16>,
    %c0_9 = arith.constant 0 : index
    %c0_10 = arith.constant 0 : index
    %12 = vector.load %arg4[%c0_9, %c0_10] : memref<16x64xf32, #tpu.memory_space<vmem>>, vector<16x64xf32>
    %13 = arith.truncf %12 : vector<16x64xf32> to vector<16x64xbf16>
    %c0_11 = arith.constant 0 : index
    %c0_12 = arith.constant 0 : index
    %14 = vector.load %arg5[%c0_11, %c0_12] : memref<16x64xf32, #tpu.memory_space<vmem>>, vector<16x64xf32>
    %15 = arith.truncf %14 : vector<16x64xf32> to vector<16x64xbf16>
    %cst_13 = arith.constant 0.000000e+00 : f32
    %16 = vector.broadcast %cst_13 : f32 to vector<8x16xf32>
    %c0_i32 = arith.constant 0 : i32
    %c7_i32 = arith.constant 7 : i32
    %17 = arith.subi %c7_i32, %c0_i32 : i32
    %18 = arith.truncf %16 : vector<8x16xf32> to vector<8x16xbf16>
    %cst_14 = arith.constant dense<0.000000e+00> : vector<8x64xf32>
    %19 = tpu.matmul %18, %13, %cst_14 {dimension_numbers = #tpu.dot_dimension_numbers<[1], [0], [0], [1], [0, 0, 1, 1], [], []>} : vector<8x16xbf16>, vector<16x64xbf16>, vector<8x64xf32> -> vector<8x64xf32>
    %20 = arith.index_cast %c0_i32 : i32 to index
    %c0_15 = arith.constant 0 : index
    %c0_16 = arith.constant 0 : index
    %21 = vector.load %arg7[%20, %c0_15, %c0_16] : memref<8x8x128xbf16, #tpu.memory_space<vmem>>, vector<1x8x128xbf16>
    %22 = vector.shape_cast %21 : vector<1x8x128xbf16> to vector<8x128xbf16>
    %23 = vector.extract_strided_slice %22 {offsets = [0, 0], sizes = [8, 64], strides = [1, 1]} : vector<8x128xbf16> to vector<8x64xbf16>
    %24 = arith.extf %23 : vector<8x64xbf16> to vector<8x64xf32>
    %25 = arith.addf %19, %24 : vector<8x64xf32>
    %26 = arith.truncf %16 : vector<8x16xf32> to vector<8x16xbf16>
    %cst_17 = arith.constant dense<0.000000e+00> : vector<8x64xf32>
    %27 = tpu.matmul %26, %15, %cst_17 {dimension_numbers = #tpu.dot_dimension_numbers<[1], [0], [0], [1], [0, 0, 1, 1], [], []>} : vector<8x16xbf16>, vector<16x64xbf16>, vector<8x64xf32> -> vector<8x64xf32>
    %28 = arith.index_cast %17 : i32 to index
    %c0_18 = arith.constant 0 : index
    %c0_19 = arith.constant 0 : index
    %29 = vector.load %arg7[%28, %c0_18, %c0_19] : memref<8x8x128xbf16, #tpu.memory_space<vmem>>, vector<1x8x128xbf16>
    %30 = vector.shape_cast %29 : vector<1x8x128xbf16> to vector<8x128xbf16>
    %31 = vector.extract_strided_slice %30 {offsets = [0, 64], sizes = [8, 64], strides = [1, 1]} : vector<8x128xbf16> to vector<8x64xbf16>
    %32 = arith.extf %31 : vector<8x64xbf16> to vector<8x64xf32>
    %33 = arith.addf %27, %32 : vector<8x64xf32>
    %34 = vector.extract_strided_slice %25 {offsets = [0, 0], sizes = [8, 16], strides = [1, 1]} : vector<8x64xf32> to vector<8x16xf32>
    %35 = arith.negf %34 : vector<8x16xf32>
    %36 = math.exp %35 : vector<8x16xf32>
    %cst_20 = arith.constant 1.000000e+00 : f32
    %37 = vector.broadcast %cst_20 : f32 to vector<8x16xf32>
    %38 = arith.addf %37, %36 : vector<8x16xf32>
    %39 = arith.divf %37, %38 : vector<8x16xf32>
    %40 = vector.extract_strided_slice %25 {offsets = [0, 16], sizes = [8, 16], strides = [1, 1]} : vector<8x64xf32> to vector<8x16xf32>
    %41 = arith.negf %40 : vector<8x16xf32>
    %42 = math.exp %41 : vector<8x16xf32>
    %cst_21 = arith.constant 1.000000e+00 : f32
    %43 = vector.broadcast %cst_21 : f32 to vector<8x16xf32>
    %44 = arith.addf %43, %42 : vector<8x16xf32>
    %45 = arith.divf %43, %44 : vector<8x16xf32>
    %46 = vector.extract_strided_slice %25 {offsets = [0, 32], sizes = [8, 16], strides = [1, 1]} : vector<8x64xf32> to vector<8x16xf32>
    %47 = math.tanh %46 : vector<8x16xf32>
    %48 = vector.extract_strided_slice %25 {offsets = [0, 48], sizes = [8, 16], strides = [1, 1]} : vector<8x64xf32> to vector<8x16xf32>
    %49 = arith.negf %48 : vector<8x16xf32>
    %50 = math.exp %49 : vector<8x16xf32>
    %cst_22 = arith.constant 1.000000e+00 : f32
    %51 = vector.broadcast %cst_22 : f32 to vector<8x16xf32>
    %52 = arith.addf %51, %50 : vector<8x16xf32>
    %53 = arith.divf %51, %52 : vector<8x16xf32>
    %54 = arith.mulf %45, %16 : vector<8x16xf32>
    %55 = arith.mulf %39, %47 : vector<8x16xf32>
    %56 = arith.addf %54, %55 : vector<8x16xf32>
    %57 = math.tanh %56 : vector<8x16xf32>
    %58 = arith.mulf %53, %57 : vector<8x16xf32>
    %59 = vector.extract_strided_slice %33 {offsets = [0, 0], sizes = [8, 16], strides = [1, 1]} : vector<8x64xf32> to vector<8x16xf32>
    %60 = arith.negf %59 : vector<8x16xf32>
    %61 = math.exp %60 : vector<8x16xf32>
    %cst_23 = arith.constant 1.000000e+00 : f32
    %62 = vector.broadcast %cst_23 : f32 to vector<8x16xf32>
    %63 = arith.addf %62, %61 : vector<8x16xf32>
    %64 = arith.divf %62, %63 : vector<8x16xf32>
    %65 = vector.extract_strided_slice %33 {offsets = [0, 16], sizes = [8, 16], strides = [1, 1]} : vector<8x64xf32> to vector<8x16xf32>
    %66 = arith.negf %65 : vector<8x16xf32>
    %67 = math.exp %66 : vector<8x16xf32>
    %cst_24 = arith.constant 1.000000e+00 : f32
    %68 = vector.broadcast %cst_24 : f32 to vector<8x16xf32>
    %69 = arith.addf %68, %67 : vector<8x16xf32>
    %70 = arith.divf %68, %69 : vector<8x16xf32>
    %71 = vector.extract_strided_slice %33 {offsets = [0, 32], sizes = [8, 16], strides = [1, 1]} : vector<8x64xf32> to vector<8x16xf32>
    %72 = math.tanh %71 : vector<8x16xf32>
    %73 = vector.extract_strided_slice %33 {offsets = [0, 48], sizes = [8, 16], strides = [1, 1]} : vector<8x64xf32> to vector<8x16xf32>
    %74 = arith.negf %73 : vector<8x16xf32>
    %75 = math.exp %74 : vector<8x16xf32>
    %cst_25 = arith.constant 1.000000e+00 : f32
    %76 = vector.broadcast %cst_25 : f32 to vector<8x16xf32>
    %77 = arith.addf %76, %75 : vector<8x16xf32>
    %78 = arith.divf %76, %77 : vector<8x16xf32>
    %79 = arith.mulf %70, %16 : vector<8x16xf32>
    %80 = arith.mulf %64, %72 : vector<8x16xf32>
    %81 = arith.addf %79, %80 : vector<8x16xf32>
    %82 = math.tanh %81 : vector<8x16xf32>
    %83 = arith.mulf %78, %82 : vector<8x16xf32>
    %c0_26 = arith.constant 0 : index
    %84 = arith.index_cast %c0_i32 : i32 to index
    %c0_27 = arith.constant 0 : index
    %c0_28 = arith.constant 0 : index
    %85 = vector.load %arg6[%c0_26, %84, %c0_27, %c0_28] : memref<2x8x8x16xf32, #tpu.memory_space<vmem>>, vector<1x1x8x16xf32>
    %86 = vector.shape_cast %85 : vector<1x1x8x16xf32> to vector<8x16xf32>
    %87 = vector.shape_cast %58 : vector<8x16xf32> to vector<1x1x8x16xf32>
    tpu.vector_store %arg6[%c0_26, %84, %c0_27, %c0_28], %87 {strides = array<i32>} : memref<2x8x8x16xf32, #tpu.memory_space<vmem>>, vector<1x1x8x16xf32>,
    %c1 = arith.constant 1 : index
    %88 = arith.index_cast %17 : i32 to index
    %c0_29 = arith.constant 0 : index
    %c0_30 = arith.constant 0 : index
    %89 = vector.load %arg6[%c1, %88, %c0_29, %c0_30] : memref<2x8x8x16xf32, #tpu.memory_space<vmem>>, vector<1x1x8x16xf32>
    %90 = vector.shape_cast %89 : vector<1x1x8x16xf32> to vector<8x16xf32>
    %91 = vector.shape_cast %83 : vector<8x16xf32> to vector<1x1x8x16xf32>
    tpu.vector_store %arg6[%c1, %88, %c0_29, %c0_30], %91 {strides = array<i32>} : memref<2x8x8x16xf32, #tpu.memory_space<vmem>>, vector<1x1x8x16xf32>,
    %c1_i32 = arith.constant 1 : i32
    %c7_i32_31 = arith.constant 7 : i32
    %92 = arith.subi %c7_i32_31, %c1_i32 : i32
    %93 = arith.truncf %58 : vector<8x16xf32> to vector<8x16xbf16>
    %cst_32 = arith.constant dense<0.000000e+00> : vector<8x64xf32>
    %94 = tpu.matmul %93, %13, %cst_32 {dimension_numbers = #tpu.dot_dimension_numbers<[1], [0], [0], [1], [0, 0, 1, 1], [], []>} : vector<8x16xbf16>, vector<16x64xbf16>, vector<8x64xf32> -> vector<8x64xf32>
    %95 = arith.index_cast %c1_i32 : i32 to index
    %c0_33 = arith.constant 0 : index
    %c0_34 = arith.constant 0 : index
    %96 = vector.load %arg7[%95, %c0_33, %c0_34] : memref<8x8x128xbf16, #tpu.memory_space<vmem>>, vector<1x8x128xbf16>
    %97 = vector.shape_cast %96 : vector<1x8x128xbf16> to vector<8x128xbf16>
    %98 = vector.extract_strided_slice %97 {offsets = [0, 0], sizes = [8, 64], strides = [1, 1]} : vector<8x128xbf16> to vector<8x64xbf16>
    %99 = arith.extf %98 : vector<8x64xbf16> to vector<8x64xf32>
    %100 = arith.addf %94, %99 : vector<8x64xf32>
    %101 = arith.truncf %83 : vector<8x16xf32> to vector<8x16xbf16>
    %cst_35 = arith.constant dense<0.000000e+00> : vector<8x64xf32>
    %102 = tpu.matmul %101, %15, %cst_35 {dimension_numbers = #tpu.dot_dimension_numbers<[1], [0], [0], [1], [0, 0, 1, 1], [], []>} : vector<8x16xbf16>, vector<16x64xbf16>, vector<8x64xf32> -> vector<8x64xf32>
    %103 = arith.index_cast %92 : i32 to index
    %c0_36 = arith.constant 0 : index
    %c0_37 = arith.constant 0 : index
    %104 = vector.load %arg7[%103, %c0_36, %c0_37] : memref<8x8x128xbf16, #tpu.memory_space<vmem>>, vector<1x8x128xbf16>
    %105 = vector.shape_cast %104 : vector<1x8x128xbf16> to vector<8x128xbf16>
    %106 = vector.extract_strided_slice %105 {offsets = [0, 64], sizes = [8, 64], strides = [1, 1]} : vector<8x128xbf16> to vector<8x64xbf16>
    %107 = arith.extf %106 : vector<8x64xbf16> to vector<8x64xf32>
    %108 = arith.addf %102, %107 : vector<8x64xf32>
    %109 = vector.extract_strided_slice %100 {offsets = [0, 0], sizes = [8, 16], strides = [1, 1]} : vector<8x64xf32> to vector<8x16xf32>
    %110 = arith.negf %109 : vector<8x16xf32>
    %111 = math.exp %110 : vector<8x16xf32>
    %cst_38 = arith.constant 1.000000e+00 : f32
    %112 = vector.broadcast %cst_38 : f32 to vector<8x16xf32>
    %113 = arith.addf %112, %111 : vector<8x16xf32>
    %114 = arith.divf %112, %113 : vector<8x16xf32>
    %115 = vector.extract_strided_slice %100 {offsets = [0, 16], sizes = [8, 16], strides = [1, 1]} : vector<8x64xf32> to vector<8x16xf32>
    %116 = arith.negf %115 : vector<8x16xf32>
    %117 = math.exp %116 : vector<8x16xf32>
    %cst_39 = arith.constant 1.000000e+00 : f32
    %118 = vector.broadcast %cst_39 : f32 to vector<8x16xf32>
    %119 = arith.addf %118, %117 : vector<8x16xf32>
    %120 = arith.divf %118, %119 : vector<8x16xf32>
    %121 = vector.extract_strided_slice %100 {offsets = [0, 32], sizes = [8, 16], strides = [1, 1]} : vector<8x64xf32> to vector<8x16xf32>
    %122 = math.tanh %121 : vector<8x16xf32>
    %123 = vector.extract_strided_slice %100 {offsets = [0, 48], sizes = [8, 16], strides = [1, 1]} : vector<8x64xf32> to vector<8x16xf32>
    %124 = arith.negf %123 : vector<8x16xf32>
    %125 = math.exp %124 : vector<8x16xf32>
    %cst_40 = arith.constant 1.000000e+00 : f32
    %126 = vector.broadcast %cst_40 : f32 to vector<8x16xf32>
    %127 = arith.addf %126, %125 : vector<8x16xf32>
    %128 = arith.divf %126, %127 : vector<8x16xf32>
    %129 = arith.mulf %120, %56 : vector<8x16xf32>
    %130 = arith.mulf %114, %122 : vector<8x16xf32>
    %131 = arith.addf %129, %130 : vector<8x16xf32>
    %132 = math.tanh %131 : vector<8x16xf32>
    %133 = arith.mulf %128, %132 : vector<8x16xf32>
    %134 = vector.extract_strided_slice %108 {offsets = [0, 0], sizes = [8, 16], strides = [1, 1]} : vector<8x64xf32> to vector<8x16xf32>
    %135 = arith.negf %134 : vector<8x16xf32>
    %136 = math.exp %135 : vector<8x16xf32>
    %cst_41 = arith.constant 1.000000e+00 : f32
    %137 = vector.broadcast %cst_41 : f32 to vector<8x16xf32>
    %138 = arith.addf %137, %136 : vector<8x16xf32>
    %139 = arith.divf %137, %138 : vector<8x16xf32>
    %140 = vector.extract_strided_slice %108 {offsets = [0, 16], sizes = [8, 16], strides = [1, 1]} : vector<8x64xf32> to vector<8x16xf32>
    %141 = arith.negf %140 : vector<8x16xf32>
    %142 = math.exp %141 : vector<8x16xf32>
    %cst_42 = arith.constant 1.000000e+00 : f32
    %143 = vector.broadcast %cst_42 : f32 to vector<8x16xf32>
    %144 = arith.addf %143, %142 : vector<8x16xf32>
    %145 = arith.divf %143, %144 : vector<8x16xf32>
    %146 = vector.extract_strided_slice %108 {offsets = [0, 32], sizes = [8, 16], strides = [1, 1]} : vector<8x64xf32> to vector<8x16xf32>
    %147 = math.tanh %146 : vector<8x16xf32>
    %148 = vector.extract_strided_slice %108 {offsets = [0, 48], sizes = [8, 16], strides = [1, 1]} : vector<8x64xf32> to vector<8x16xf32>
    %149 = arith.negf %148 : vector<8x16xf32>
    %150 = math.exp %149 : vector<8x16xf32>
    %cst_43 = arith.constant 1.000000e+00 : f32
    %151 = vector.broadcast %cst_43 : f32 to vector<8x16xf32>
    %152 = arith.addf %151, %150 : vector<8x16xf32>
    %153 = arith.divf %151, %152 : vector<8x16xf32>
    %154 = arith.mulf %145, %81 : vector<8x16xf32>
    %155 = arith.mulf %139, %147 : vector<8x16xf32>
    %156 = arith.addf %154, %155 : vector<8x16xf32>
    %157 = math.tanh %156 : vector<8x16xf32>
    %158 = arith.mulf %153, %157 : vector<8x16xf32>
    %c0_44 = arith.constant 0 : index
    %159 = arith.index_cast %c1_i32 : i32 to index
    %c0_45 = arith.constant 0 : index
    %c0_46 = arith.constant 0 : index
    %160 = vector.load %arg6[%c0_44, %159, %c0_45, %c0_46] : memref<2x8x8x16xf32, #tpu.memory_space<vmem>>, vector<1x1x8x16xf32>
    %161 = vector.shape_cast %160 : vector<1x1x8x16xf32> to vector<8x16xf32>
    %162 = vector.shape_cast %133 : vector<8x16xf32> to vector<1x1x8x16xf32>
    tpu.vector_store %arg6[%c0_44, %159, %c0_45, %c0_46], %162 {strides = array<i32>} : memref<2x8x8x16xf32, #tpu.memory_space<vmem>>, vector<1x1x8x16xf32>,
    %c1_47 = arith.constant 1 : index
    %163 = arith.index_cast %92 : i32 to index
    %c0_48 = arith.constant 0 : index
    %c0_49 = arith.constant 0 : index
    %164 = vector.load %arg6[%c1_47, %163, %c0_48, %c0_49] : memref<2x8x8x16xf32, #tpu.memory_space<vmem>>, vector<1x1x8x16xf32>
    %165 = vector.shape_cast %164 : vector<1x1x8x16xf32> to vector<8x16xf32>
    %166 = vector.shape_cast %158 : vector<8x16xf32> to vector<1x1x8x16xf32>
    tpu.vector_store %arg6[%c1_47, %163, %c0_48, %c0_49], %166 {strides = array<i32>} : memref<2x8x8x16xf32, #tpu.memory_space<vmem>>, vector<1x1x8x16xf32>,
    %c2_i32 = arith.constant 2 : i32
    %c7_i32_50 = arith.constant 7 : i32
    %167 = arith.subi %c7_i32_50, %c2_i32 : i32
    %168 = arith.truncf %133 : vector<8x16xf32> to vector<8x16xbf16>
    %cst_51 = arith.constant dense<0.000000e+00> : vector<8x64xf32>
    %169 = tpu.matmul %168, %13, %cst_51 {dimension_numbers = #tpu.dot_dimension_numbers<[1], [0], [0], [1], [0, 0, 1, 1], [], []>} : vector<8x16xbf16>, vector<16x64xbf16>, vector<8x64xf32> -> vector<8x64xf32>
    %170 = arith.index_cast %c2_i32 : i32 to index
    %c0_52 = arith.constant 0 : index
    %c0_53 = arith.constant 0 : index
    %171 = vector.load %arg7[%170, %c0_52, %c0_53] : memref<8x8x128xbf16, #tpu.memory_space<vmem>>, vector<1x8x128xbf16>
    %172 = vector.shape_cast %171 : vector<1x8x128xbf16> to vector<8x128xbf16>
    %173 = vector.extract_strided_slice %172 {offsets = [0, 0], sizes = [8, 64], strides = [1, 1]} : vector<8x128xbf16> to vector<8x64xbf16>
    %174 = arith.extf %173 : vector<8x64xbf16> to vector<8x64xf32>
    %175 = arith.addf %169, %174 : vector<8x64xf32>
    %176 = arith.truncf %158 : vector<8x16xf32> to vector<8x16xbf16>
    %cst_54 = arith.constant dense<0.000000e+00> : vector<8x64xf32>
    %177 = tpu.matmul %176, %15, %cst_54 {dimension_numbers = #tpu.dot_dimension_numbers<[1], [0], [0], [1], [0, 0, 1, 1], [], []>} : vector<8x16xbf16>, vector<16x64xbf16>, vector<8x64xf32> -> vector<8x64xf32>
    %178 = arith.index_cast %167 : i32 to index
    %c0_55 = arith.constant 0 : index
    %c0_56 = arith.constant 0 : index
    %179 = vector.load %arg7[%178, %c0_55, %c0_56] : memref<8x8x128xbf16, #tpu.memory_space<vmem>>, vector<1x8x128xbf16>
    %180 = vector.shape_cast %179 : vector<1x8x128xbf16> to vector<8x128xbf16>
    %181 = vector.extract_strided_slice %180 {offsets = [0, 64], sizes = [8, 64], strides = [1, 1]} : vector<8x128xbf16> to vector<8x64xbf16>
    %182 = arith.extf %181 : vector<8x64xbf16> to vector<8x64xf32>
    %183 = arith.addf %177, %182 : vector<8x64xf32>
    %184 = vector.extract_strided_slice %175 {offsets = [0, 0], sizes = [8, 16], strides = [1, 1]} : vector<8x64xf32> to vector<8x16xf32>
    %185 = arith.negf %184 : vector<8x16xf32>
    %186 = math.exp %185 : vector<8x16xf32>
    %cst_57 = arith.constant 1.000000e+00 : f32
    %187 = vector.broadcast %cst_57 : f32 to vector<8x16xf32>
    %188 = arith.addf %187, %186 : vector<8x16xf32>
    %189 = arith.divf %187, %188 : vector<8x16xf32>
    %190 = vector.extract_strided_slice %175 {offsets = [0, 16], sizes = [8, 16], strides = [1, 1]} : vector<8x64xf32> to vector<8x16xf32>
    %191 = arith.negf %190 : vector<8x16xf32>
    %192 = math.exp %191 : vector<8x16xf32>
    %cst_58 = arith.constant 1.000000e+00 : f32
    %193 = vector.broadcast %cst_58 : f32 to vector<8x16xf32>
    %194 = arith.addf %193, %192 : vector<8x16xf32>
    %195 = arith.divf %193, %194 : vector<8x16xf32>
    %196 = vector.extract_strided_slice %175 {offsets = [0, 32], sizes = [8, 16], strides = [1, 1]} : vector<8x64xf32> to vector<8x16xf32>
    %197 = math.tanh %196 : vector<8x16xf32>
    %198 = vector.extract_strided_slice %175 {offsets = [0, 48], sizes = [8, 16], strides = [1, 1]} : vector<8x64xf32> to vector<8x16xf32>
    %199 = arith.negf %198 : vector<8x16xf32>
    %200 = math.exp %199 : vector<8x16xf32>
    %cst_59 = arith.constant 1.000000e+00 : f32
    %201 = vector.broadcast %cst_59 : f32 to vector<8x16xf32>
    %202 = arith.addf %201, %200 : vector<8x16xf32>
    %203 = arith.divf %201, %202 : vector<8x16xf32>
    %204 = arith.mulf %195, %131 : vector<8x16xf32>
    %205 = arith.mulf %189, %197 : vector<8x16xf32>
    %206 = arith.addf %204, %205 : vector<8x16xf32>
    %207 = math.tanh %206 : vector<8x16xf32>
    %208 = arith.mulf %203, %207 : vector<8x16xf32>
    %209 = vector.extract_strided_slice %183 {offsets = [0, 0], sizes = [8, 16], strides = [1, 1]} : vector<8x64xf32> to vector<8x16xf32>
    %210 = arith.negf %209 : vector<8x16xf32>
    %211 = math.exp %210 : vector<8x16xf32>
    %cst_60 = arith.constant 1.000000e+00 : f32
    %212 = vector.broadcast %cst_60 : f32 to vector<8x16xf32>
    %213 = arith.addf %212, %211 : vector<8x16xf32>
    %214 = arith.divf %212, %213 : vector<8x16xf32>
    %215 = vector.extract_strided_slice %183 {offsets = [0, 16], sizes = [8, 16], strides = [1, 1]} : vector<8x64xf32> to vector<8x16xf32>
    %216 = arith.negf %215 : vector<8x16xf32>
    %217 = math.exp %216 : vector<8x16xf32>
    %cst_61 = arith.constant 1.000000e+00 : f32
    %218 = vector.broadcast %cst_61 : f32 to vector<8x16xf32>
    %219 = arith.addf %218, %217 : vector<8x16xf32>
    %220 = arith.divf %218, %219 : vector<8x16xf32>
    %221 = vector.extract_strided_slice %183 {offsets = [0, 32], sizes = [8, 16], strides = [1, 1]} : vector<8x64xf32> to vector<8x16xf32>
    %222 = math.tanh %221 : vector<8x16xf32>
    %223 = vector.extract_strided_slice %183 {offsets = [0, 48], sizes = [8, 16], strides = [1, 1]} : vector<8x64xf32> to vector<8x16xf32>
    %224 = arith.negf %223 : vector<8x16xf32>
    %225 = math.exp %224 : vector<8x16xf32>
    %cst_62 = arith.constant 1.000000e+00 : f32
    %226 = vector.broadcast %cst_62 : f32 to vector<8x16xf32>
    %227 = arith.addf %226, %225 : vector<8x16xf32>
    %228 = arith.divf %226, %227 : vector<8x16xf32>
    %229 = arith.mulf %220, %156 : vector<8x16xf32>
    %230 = arith.mulf %214, %222 : vector<8x16xf32>
    %231 = arith.addf %229, %230 : vector<8x16xf32>
    %232 = math.tanh %231 : vector<8x16xf32>
    %233 = arith.mulf %228, %232 : vector<8x16xf32>
    %c0_63 = arith.constant 0 : index
    %234 = arith.index_cast %c2_i32 : i32 to index
    %c0_64 = arith.constant 0 : index
    %c0_65 = arith.constant 0 : index
    %235 = vector.load %arg6[%c0_63, %234, %c0_64, %c0_65] : memref<2x8x8x16xf32, #tpu.memory_space<vmem>>, vector<1x1x8x16xf32>
    %236 = vector.shape_cast %235 : vector<1x1x8x16xf32> to vector<8x16xf32>
    %237 = vector.shape_cast %208 : vector<8x16xf32> to vector<1x1x8x16xf32>
    tpu.vector_store %arg6[%c0_63, %234, %c0_64, %c0_65], %237 {strides = array<i32>} : memref<2x8x8x16xf32, #tpu.memory_space<vmem>>, vector<1x1x8x16xf32>,
    %c1_66 = arith.constant 1 : index
    %238 = arith.index_cast %167 : i32 to index
    %c0_67 = arith.constant 0 : index
    %c0_68 = arith.constant 0 : index
    %239 = vector.load %arg6[%c1_66, %238, %c0_67, %c0_68] : memref<2x8x8x16xf32, #tpu.memory_space<vmem>>, vector<1x1x8x16xf32>
    %240 = vector.shape_cast %239 : vector<1x1x8x16xf32> to vector<8x16xf32>
    %241 = vector.shape_cast %233 : vector<8x16xf32> to vector<1x1x8x16xf32>
    tpu.vector_store %arg6[%c1_66, %238, %c0_67, %c0_68], %241 {strides = array<i32>} : memref<2x8x8x16xf32, #tpu.memory_space<vmem>>, vector<1x1x8x16xf32>,
    %c3_i32 = arith.constant 3 : i32
    %c7_i32_69 = arith.constant 7 : i32
    %242 = arith.subi %c7_i32_69, %c3_i32 : i32
    %243 = arith.truncf %208 : vector<8x16xf32> to vector<8x16xbf16>
    %cst_70 = arith.constant dense<0.000000e+00> : vector<8x64xf32>
    %244 = tpu.matmul %243, %13, %cst_70 {dimension_numbers = #tpu.dot_dimension_numbers<[1], [0], [0], [1], [0, 0, 1, 1], [], []>} : vector<8x16xbf16>, vector<16x64xbf16>, vector<8x64xf32> -> vector<8x64xf32>
    %245 = arith.index_cast %c3_i32 : i32 to index
    %c0_71 = arith.constant 0 : index
    %c0_72 = arith.constant 0 : index
    %246 = vector.load %arg7[%245, %c0_71, %c0_72] : memref<8x8x128xbf16, #tpu.memory_space<vmem>>, vector<1x8x128xbf16>
    %247 = vector.shape_cast %246 : vector<1x8x128xbf16> to vector<8x128xbf16>
    %248 = vector.extract_strided_slice %247 {offsets = [0, 0], sizes = [8, 64], strides = [1, 1]} : vector<8x128xbf16> to vector<8x64xbf16>
    %249 = arith.extf %248 : vector<8x64xbf16> to vector<8x64xf32>
    %250 = arith.addf %244, %249 : vector<8x64xf32>
    %251 = arith.truncf %233 : vector<8x16xf32> to vector<8x16xbf16>
    %cst_73 = arith.constant dense<0.000000e+00> : vector<8x64xf32>
    %252 = tpu.matmul %251, %15, %cst_73 {dimension_numbers = #tpu.dot_dimension_numbers<[1], [0], [0], [1], [0, 0, 1, 1], [], []>} : vector<8x16xbf16>, vector<16x64xbf16>, vector<8x64xf32> -> vector<8x64xf32>
    %253 = arith.index_cast %242 : i32 to index
    %c0_74 = arith.constant 0 : index
    %c0_75 = arith.constant 0 : index
    %254 = vector.load %arg7[%253, %c0_74, %c0_75] : memref<8x8x128xbf16, #tpu.memory_space<vmem>>, vector<1x8x128xbf16>
    %255 = vector.shape_cast %254 : vector<1x8x128xbf16> to vector<8x128xbf16>
    %256 = vector.extract_strided_slice %255 {offsets = [0, 64], sizes = [8, 64], strides = [1, 1]} : vector<8x128xbf16> to vector<8x64xbf16>
    %257 = arith.extf %256 : vector<8x64xbf16> to vector<8x64xf32>
    %258 = arith.addf %252, %257 : vector<8x64xf32>
    %259 = vector.extract_strided_slice %250 {offsets = [0, 0], sizes = [8, 16], strides = [1, 1]} : vector<8x64xf32> to vector<8x16xf32>
    %260 = arith.negf %259 : vector<8x16xf32>
    %261 = math.exp %260 : vector<8x16xf32>
    %cst_76 = arith.constant 1.000000e+00 : f32
    %262 = vector.broadcast %cst_76 : f32 to vector<8x16xf32>
    %263 = arith.addf %262, %261 : vector<8x16xf32>
    %264 = arith.divf %262, %263 : vector<8x16xf32>
    %265 = vector.extract_strided_slice %250 {offsets = [0, 16], sizes = [8, 16], strides = [1, 1]} : vector<8x64xf32> to vector<8x16xf32>
    %266 = arith.negf %265 : vector<8x16xf32>
    %267 = math.exp %266 : vector<8x16xf32>
    %cst_77 = arith.constant 1.000000e+00 : f32
    %268 = vector.broadcast %cst_77 : f32 to vector<8x16xf32>
    %269 = arith.addf %268, %267 : vector<8x16xf32>
    %270 = arith.divf %268, %269 : vector<8x16xf32>
    %271 = vector.extract_strided_slice %250 {offsets = [0, 32], sizes = [8, 16], strides = [1, 1]} : vector<8x64xf32> to vector<8x16xf32>
    %272 = math.tanh %271 : vector<8x16xf32>
    %273 = vector.extract_strided_slice %250 {offsets = [0, 48], sizes = [8, 16], strides = [1, 1]} : vector<8x64xf32> to vector<8x16xf32>
    %274 = arith.negf %273 : vector<8x16xf32>
    %275 = math.exp %274 : vector<8x16xf32>
    %cst_78 = arith.constant 1.000000e+00 : f32
    %276 = vector.broadcast %cst_78 : f32 to vector<8x16xf32>
    %277 = arith.addf %276, %275 : vector<8x16xf32>
    %278 = arith.divf %276, %277 : vector<8x16xf32>
    %279 = arith.mulf %270, %206 : vector<8x16xf32>
    %280 = arith.mulf %264, %272 : vector<8x16xf32>
    %281 = arith.addf %279, %280 : vector<8x16xf32>
    %282 = math.tanh %281 : vector<8x16xf32>
    %283 = arith.mulf %278, %282 : vector<8x16xf32>
    %284 = vector.extract_strided_slice %258 {offsets = [0, 0], sizes = [8, 16], strides = [1, 1]} : vector<8x64xf32> to vector<8x16xf32>
    %285 = arith.negf %284 : vector<8x16xf32>
    %286 = math.exp %285 : vector<8x16xf32>
    %cst_79 = arith.constant 1.000000e+00 : f32
    %287 = vector.broadcast %cst_79 : f32 to vector<8x16xf32>
    %288 = arith.addf %287, %286 : vector<8x16xf32>
    %289 = arith.divf %287, %288 : vector<8x16xf32>
    %290 = vector.extract_strided_slice %258 {offsets = [0, 16], sizes = [8, 16], strides = [1, 1]} : vector<8x64xf32> to vector<8x16xf32>
    %291 = arith.negf %290 : vector<8x16xf32>
    %292 = math.exp %291 : vector<8x16xf32>
    %cst_80 = arith.constant 1.000000e+00 : f32
    %293 = vector.broadcast %cst_80 : f32 to vector<8x16xf32>
    %294 = arith.addf %293, %292 : vector<8x16xf32>
    %295 = arith.divf %293, %294 : vector<8x16xf32>
    %296 = vector.extract_strided_slice %258 {offsets = [0, 32], sizes = [8, 16], strides = [1, 1]} : vector<8x64xf32> to vector<8x16xf32>
    %297 = math.tanh %296 : vector<8x16xf32>
    %298 = vector.extract_strided_slice %258 {offsets = [0, 48], sizes = [8, 16], strides = [1, 1]} : vector<8x64xf32> to vector<8x16xf32>
    %299 = arith.negf %298 : vector<8x16xf32>
    %300 = math.exp %299 : vector<8x16xf32>
    %cst_81 = arith.constant 1.000000e+00 : f32
    %301 = vector.broadcast %cst_81 : f32 to vector<8x16xf32>
    %302 = arith.addf %301, %300 : vector<8x16xf32>
    %303 = arith.divf %301, %302 : vector<8x16xf32>
    %304 = arith.mulf %295, %231 : vector<8x16xf32>
    %305 = arith.mulf %289, %297 : vector<8x16xf32>
    %306 = arith.addf %304, %305 : vector<8x16xf32>
    %307 = math.tanh %306 : vector<8x16xf32>
    %308 = arith.mulf %303, %307 : vector<8x16xf32>
    %c0_82 = arith.constant 0 : index
    %309 = arith.index_cast %c3_i32 : i32 to index
    %c0_83 = arith.constant 0 : index
    %c0_84 = arith.constant 0 : index
    %310 = vector.load %arg6[%c0_82, %309, %c0_83, %c0_84] : memref<2x8x8x16xf32, #tpu.memory_space<vmem>>, vector<1x1x8x16xf32>
    %311 = vector.shape_cast %310 : vector<1x1x8x16xf32> to vector<8x16xf32>
    %312 = vector.shape_cast %283 : vector<8x16xf32> to vector<1x1x8x16xf32>
    tpu.vector_store %arg6[%c0_82, %309, %c0_83, %c0_84], %312 {strides = array<i32>} : memref<2x8x8x16xf32, #tpu.memory_space<vmem>>, vector<1x1x8x16xf32>,
    %c1_85 = arith.constant 1 : index
    %313 = arith.index_cast %242 : i32 to index
    %c0_86 = arith.constant 0 : index
    %c0_87 = arith.constant 0 : index
    %314 = vector.load %arg6[%c1_85, %313, %c0_86, %c0_87] : memref<2x8x8x16xf32, #tpu.memory_space<vmem>>, vector<1x1x8x16xf32>
    %315 = vector.shape_cast %314 : vector<1x1x8x16xf32> to vector<8x16xf32>
    %316 = vector.shape_cast %308 : vector<8x16xf32> to vector<1x1x8x16xf32>
    tpu.vector_store %arg6[%c1_85, %313, %c0_86, %c0_87], %316 {strides = array<i32>} : memref<2x8x8x16xf32, #tpu.memory_space<vmem>>, vector<1x1x8x16xf32>,
    %c4_i32 = arith.constant 4 : i32
    %c7_i32_88 = arith.constant 7 : i32
    %317 = arith.subi %c7_i32_88, %c4_i32 : i32
    %318 = arith.truncf %283 : vector<8x16xf32> to vector<8x16xbf16>
    %cst_89 = arith.constant dense<0.000000e+00> : vector<8x64xf32>
    %319 = tpu.matmul %318, %13, %cst_89 {dimension_numbers = #tpu.dot_dimension_numbers<[1], [0], [0], [1], [0, 0, 1, 1], [], []>} : vector<8x16xbf16>, vector<16x64xbf16>, vector<8x64xf32> -> vector<8x64xf32>
    %320 = arith.index_cast %c4_i32 : i32 to index
    %c0_90 = arith.constant 0 : index
    %c0_91 = arith.constant 0 : index
    %321 = vector.load %arg7[%320, %c0_90, %c0_91] : memref<8x8x128xbf16, #tpu.memory_space<vmem>>, vector<1x8x128xbf16>
    %322 = vector.shape_cast %321 : vector<1x8x128xbf16> to vector<8x128xbf16>
    %323 = vector.extract_strided_slice %322 {offsets = [0, 0], sizes = [8, 64], strides = [1, 1]} : vector<8x128xbf16> to vector<8x64xbf16>
    %324 = arith.extf %323 : vector<8x64xbf16> to vector<8x64xf32>
    %325 = arith.addf %319, %324 : vector<8x64xf32>
    %326 = arith.truncf %308 : vector<8x16xf32> to vector<8x16xbf16>
    %cst_92 = arith.constant dense<0.000000e+00> : vector<8x64xf32>
    %327 = tpu.matmul %326, %15, %cst_92 {dimension_numbers = #tpu.dot_dimension_numbers<[1], [0], [0], [1], [0, 0, 1, 1], [], []>} : vector<8x16xbf16>, vector<16x64xbf16>, vector<8x64xf32> -> vector<8x64xf32>
    %328 = arith.index_cast %317 : i32 to index
    %c0_93 = arith.constant 0 : index
    %c0_94 = arith.constant 0 : index
    %329 = vector.load %arg7[%328, %c0_93, %c0_94] : memref<8x8x128xbf16, #tpu.memory_space<vmem>>, vector<1x8x128xbf16>
    %330 = vector.shape_cast %329 : vector<1x8x128xbf16> to vector<8x128xbf16>
    %331 = vector.extract_strided_slice %330 {offsets = [0, 64], sizes = [8, 64], strides = [1, 1]} : vector<8x128xbf16> to vector<8x64xbf16>
    %332 = arith.extf %331 : vector<8x64xbf16> to vector<8x64xf32>
    %333 = arith.addf %327, %332 : vector<8x64xf32>
    %334 = vector.extract_strided_slice %325 {offsets = [0, 0], sizes = [8, 16], strides = [1, 1]} : vector<8x64xf32> to vector<8x16xf32>
    %335 = arith.negf %334 : vector<8x16xf32>
    %336 = math.exp %335 : vector<8x16xf32>
    %cst_95 = arith.constant 1.000000e+00 : f32
    %337 = vector.broadcast %cst_95 : f32 to vector<8x16xf32>
    %338 = arith.addf %337, %336 : vector<8x16xf32>
    %339 = arith.divf %337, %338 : vector<8x16xf32>
    %340 = vector.extract_strided_slice %325 {offsets = [0, 16], sizes = [8, 16], strides = [1, 1]} : vector<8x64xf32> to vector<8x16xf32>
    %341 = arith.negf %340 : vector<8x16xf32>
    %342 = math.exp %341 : vector<8x16xf32>
    %cst_96 = arith.constant 1.000000e+00 : f32
    %343 = vector.broadcast %cst_96 : f32 to vector<8x16xf32>
    %344 = arith.addf %343, %342 : vector<8x16xf32>
    %345 = arith.divf %343, %344 : vector<8x16xf32>
    %346 = vector.extract_strided_slice %325 {offsets = [0, 32], sizes = [8, 16], strides = [1, 1]} : vector<8x64xf32> to vector<8x16xf32>
    %347 = math.tanh %346 : vector<8x16xf32>
    %348 = vector.extract_strided_slice %325 {offsets = [0, 48], sizes = [8, 16], strides = [1, 1]} : vector<8x64xf32> to vector<8x16xf32>
    %349 = arith.negf %348 : vector<8x16xf32>
    %350 = math.exp %349 : vector<8x16xf32>
    %cst_97 = arith.constant 1.000000e+00 : f32
    %351 = vector.broadcast %cst_97 : f32 to vector<8x16xf32>
    %352 = arith.addf %351, %350 : vector<8x16xf32>
    %353 = arith.divf %351, %352 : vector<8x16xf32>
    %354 = arith.mulf %345, %281 : vector<8x16xf32>
    %355 = arith.mulf %339, %347 : vector<8x16xf32>
    %356 = arith.addf %354, %355 : vector<8x16xf32>
    %357 = math.tanh %356 : vector<8x16xf32>
    %358 = arith.mulf %353, %357 : vector<8x16xf32>
    %359 = vector.extract_strided_slice %333 {offsets = [0, 0], sizes = [8, 16], strides = [1, 1]} : vector<8x64xf32> to vector<8x16xf32>
    %360 = arith.negf %359 : vector<8x16xf32>
    %361 = math.exp %360 : vector<8x16xf32>
    %cst_98 = arith.constant 1.000000e+00 : f32
    %362 = vector.broadcast %cst_98 : f32 to vector<8x16xf32>
    %363 = arith.addf %362, %361 : vector<8x16xf32>
    %364 = arith.divf %362, %363 : vector<8x16xf32>
    %365 = vector.extract_strided_slice %333 {offsets = [0, 16], sizes = [8, 16], strides = [1, 1]} : vector<8x64xf32> to vector<8x16xf32>
    %366 = arith.negf %365 : vector<8x16xf32>
    %367 = math.exp %366 : vector<8x16xf32>
    %cst_99 = arith.constant 1.000000e+00 : f32
    %368 = vector.broadcast %cst_99 : f32 to vector<8x16xf32>
    %369 = arith.addf %368, %367 : vector<8x16xf32>
    %370 = arith.divf %368, %369 : vector<8x16xf32>
    %371 = vector.extract_strided_slice %333 {offsets = [0, 32], sizes = [8, 16], strides = [1, 1]} : vector<8x64xf32> to vector<8x16xf32>
    %372 = math.tanh %371 : vector<8x16xf32>
    %373 = vector.extract_strided_slice %333 {offsets = [0, 48], sizes = [8, 16], strides = [1, 1]} : vector<8x64xf32> to vector<8x16xf32>
    %374 = arith.negf %373 : vector<8x16xf32>
    %375 = math.exp %374 : vector<8x16xf32>
    %cst_100 = arith.constant 1.000000e+00 : f32
    %376 = vector.broadcast %cst_100 : f32 to vector<8x16xf32>
    %377 = arith.addf %376, %375 : vector<8x16xf32>
    %378 = arith.divf %376, %377 : vector<8x16xf32>
    %379 = arith.mulf %370, %306 : vector<8x16xf32>
    %380 = arith.mulf %364, %372 : vector<8x16xf32>
    %381 = arith.addf %379, %380 : vector<8x16xf32>
    %382 = math.tanh %381 : vector<8x16xf32>
    %383 = arith.mulf %378, %382 : vector<8x16xf32>
    %c0_101 = arith.constant 0 : index
    %384 = arith.index_cast %c4_i32 : i32 to index
    %c0_102 = arith.constant 0 : index
    %c0_103 = arith.constant 0 : index
    %385 = vector.load %arg6[%c0_101, %384, %c0_102, %c0_103] : memref<2x8x8x16xf32, #tpu.memory_space<vmem>>, vector<1x1x8x16xf32>
    %386 = vector.shape_cast %385 : vector<1x1x8x16xf32> to vector<8x16xf32>
    %387 = vector.shape_cast %358 : vector<8x16xf32> to vector<1x1x8x16xf32>
    tpu.vector_store %arg6[%c0_101, %384, %c0_102, %c0_103], %387 {strides = array<i32>} : memref<2x8x8x16xf32, #tpu.memory_space<vmem>>, vector<1x1x8x16xf32>,
    %c1_104 = arith.constant 1 : index
    %388 = arith.index_cast %317 : i32 to index
    %c0_105 = arith.constant 0 : index
    %c0_106 = arith.constant 0 : index
    %389 = vector.load %arg6[%c1_104, %388, %c0_105, %c0_106] : memref<2x8x8x16xf32, #tpu.memory_space<vmem>>, vector<1x1x8x16xf32>
    %390 = vector.shape_cast %389 : vector<1x1x8x16xf32> to vector<8x16xf32>
    %391 = vector.shape_cast %383 : vector<8x16xf32> to vector<1x1x8x16xf32>
    tpu.vector_store %arg6[%c1_104, %388, %c0_105, %c0_106], %391 {strides = array<i32>} : memref<2x8x8x16xf32, #tpu.memory_space<vmem>>, vector<1x1x8x16xf32>,
    %c5_i32 = arith.constant 5 : i32
    %c7_i32_107 = arith.constant 7 : i32
    %392 = arith.subi %c7_i32_107, %c5_i32 : i32
    %393 = arith.truncf %358 : vector<8x16xf32> to vector<8x16xbf16>
    %cst_108 = arith.constant dense<0.000000e+00> : vector<8x64xf32>
    %394 = tpu.matmul %393, %13, %cst_108 {dimension_numbers = #tpu.dot_dimension_numbers<[1], [0], [0], [1], [0, 0, 1, 1], [], []>} : vector<8x16xbf16>, vector<16x64xbf16>, vector<8x64xf32> -> vector<8x64xf32>
    %395 = arith.index_cast %c5_i32 : i32 to index
    %c0_109 = arith.constant 0 : index
    %c0_110 = arith.constant 0 : index
    %396 = vector.load %arg7[%395, %c0_109, %c0_110] : memref<8x8x128xbf16, #tpu.memory_space<vmem>>, vector<1x8x128xbf16>
    %397 = vector.shape_cast %396 : vector<1x8x128xbf16> to vector<8x128xbf16>
    %398 = vector.extract_strided_slice %397 {offsets = [0, 0], sizes = [8, 64], strides = [1, 1]} : vector<8x128xbf16> to vector<8x64xbf16>
    %399 = arith.extf %398 : vector<8x64xbf16> to vector<8x64xf32>
    %400 = arith.addf %394, %399 : vector<8x64xf32>
    %401 = arith.truncf %383 : vector<8x16xf32> to vector<8x16xbf16>
    %cst_111 = arith.constant dense<0.000000e+00> : vector<8x64xf32>
    %402 = tpu.matmul %401, %15, %cst_111 {dimension_numbers = #tpu.dot_dimension_numbers<[1], [0], [0], [1], [0, 0, 1, 1], [], []>} : vector<8x16xbf16>, vector<16x64xbf16>, vector<8x64xf32> -> vector<8x64xf32>
    %403 = arith.index_cast %392 : i32 to index
    %c0_112 = arith.constant 0 : index
    %c0_113 = arith.constant 0 : index
    %404 = vector.load %arg7[%403, %c0_112, %c0_113] : memref<8x8x128xbf16, #tpu.memory_space<vmem>>, vector<1x8x128xbf16>
    %405 = vector.shape_cast %404 : vector<1x8x128xbf16> to vector<8x128xbf16>
    %406 = vector.extract_strided_slice %405 {offsets = [0, 64], sizes = [8, 64], strides = [1, 1]} : vector<8x128xbf16> to vector<8x64xbf16>
    %407 = arith.extf %406 : vector<8x64xbf16> to vector<8x64xf32>
    %408 = arith.addf %402, %407 : vector<8x64xf32>
    %409 = vector.extract_strided_slice %400 {offsets = [0, 0], sizes = [8, 16], strides = [1, 1]} : vector<8x64xf32> to vector<8x16xf32>
    %410 = arith.negf %409 : vector<8x16xf32>
    %411 = math.exp %410 : vector<8x16xf32>
    %cst_114 = arith.constant 1.000000e+00 : f32
    %412 = vector.broadcast %cst_114 : f32 to vector<8x16xf32>
    %413 = arith.addf %412, %411 : vector<8x16xf32>
    %414 = arith.divf %412, %413 : vector<8x16xf32>
    %415 = vector.extract_strided_slice %400 {offsets = [0, 16], sizes = [8, 16], strides = [1, 1]} : vector<8x64xf32> to vector<8x16xf32>
    %416 = arith.negf %415 : vector<8x16xf32>
    %417 = math.exp %416 : vector<8x16xf32>
    %cst_115 = arith.constant 1.000000e+00 : f32
    %418 = vector.broadcast %cst_115 : f32 to vector<8x16xf32>
    %419 = arith.addf %418, %417 : vector<8x16xf32>
    %420 = arith.divf %418, %419 : vector<8x16xf32>
    %421 = vector.extract_strided_slice %400 {offsets = [0, 32], sizes = [8, 16], strides = [1, 1]} : vector<8x64xf32> to vector<8x16xf32>
    %422 = math.tanh %421 : vector<8x16xf32>
    %423 = vector.extract_strided_slice %400 {offsets = [0, 48], sizes = [8, 16], strides = [1, 1]} : vector<8x64xf32> to vector<8x16xf32>
    %424 = arith.negf %423 : vector<8x16xf32>
    %425 = math.exp %424 : vector<8x16xf32>
    %cst_116 = arith.constant 1.000000e+00 : f32
    %426 = vector.broadcast %cst_116 : f32 to vector<8x16xf32>
    %427 = arith.addf %426, %425 : vector<8x16xf32>
    %428 = arith.divf %426, %427 : vector<8x16xf32>
    %429 = arith.mulf %420, %356 : vector<8x16xf32>
    %430 = arith.mulf %414, %422 : vector<8x16xf32>
    %431 = arith.addf %429, %430 : vector<8x16xf32>
    %432 = math.tanh %431 : vector<8x16xf32>
    %433 = arith.mulf %428, %432 : vector<8x16xf32>
    %434 = vector.extract_strided_slice %408 {offsets = [0, 0], sizes = [8, 16], strides = [1, 1]} : vector<8x64xf32> to vector<8x16xf32>
    %435 = arith.negf %434 : vector<8x16xf32>
    %436 = math.exp %435 : vector<8x16xf32>
    %cst_117 = arith.constant 1.000000e+00 : f32
    %437 = vector.broadcast %cst_117 : f32 to vector<8x16xf32>
    %438 = arith.addf %437, %436 : vector<8x16xf32>
    %439 = arith.divf %437, %438 : vector<8x16xf32>
    %440 = vector.extract_strided_slice %408 {offsets = [0, 16], sizes = [8, 16], strides = [1, 1]} : vector<8x64xf32> to vector<8x16xf32>
    %441 = arith.negf %440 : vector<8x16xf32>
    %442 = math.exp %441 : vector<8x16xf32>
    %cst_118 = arith.constant 1.000000e+00 : f32
    %443 = vector.broadcast %cst_118 : f32 to vector<8x16xf32>
    %444 = arith.addf %443, %442 : vector<8x16xf32>
    %445 = arith.divf %443, %444 : vector<8x16xf32>
    %446 = vector.extract_strided_slice %408 {offsets = [0, 32], sizes = [8, 16], strides = [1, 1]} : vector<8x64xf32> to vector<8x16xf32>
    %447 = math.tanh %446 : vector<8x16xf32>
    %448 = vector.extract_strided_slice %408 {offsets = [0, 48], sizes = [8, 16], strides = [1, 1]} : vector<8x64xf32> to vector<8x16xf32>
    %449 = arith.negf %448 : vector<8x16xf32>
    %450 = math.exp %449 : vector<8x16xf32>
    %cst_119 = arith.constant 1.000000e+00 : f32
    %451 = vector.broadcast %cst_119 : f32 to vector<8x16xf32>
    %452 = arith.addf %451, %450 : vector<8x16xf32>
    %453 = arith.divf %451, %452 : vector<8x16xf32>
    %454 = arith.mulf %445, %381 : vector<8x16xf32>
    %455 = arith.mulf %439, %447 : vector<8x16xf32>
    %456 = arith.addf %454, %455 : vector<8x16xf32>
    %457 = math.tanh %456 : vector<8x16xf32>
    %458 = arith.mulf %453, %457 : vector<8x16xf32>
    %c0_120 = arith.constant 0 : index
    %459 = arith.index_cast %c5_i32 : i32 to index
    %c0_121 = arith.constant 0 : index
    %c0_122 = arith.constant 0 : index
    %460 = vector.load %arg6[%c0_120, %459, %c0_121, %c0_122] : memref<2x8x8x16xf32, #tpu.memory_space<vmem>>, vector<1x1x8x16xf32>
    %461 = vector.shape_cast %460 : vector<1x1x8x16xf32> to vector<8x16xf32>
    %462 = vector.shape_cast %433 : vector<8x16xf32> to vector<1x1x8x16xf32>
    tpu.vector_store %arg6[%c0_120, %459, %c0_121, %c0_122], %462 {strides = array<i32>} : memref<2x8x8x16xf32, #tpu.memory_space<vmem>>, vector<1x1x8x16xf32>,
    %c1_123 = arith.constant 1 : index
    %463 = arith.index_cast %392 : i32 to index
    %c0_124 = arith.constant 0 : index
    %c0_125 = arith.constant 0 : index
    %464 = vector.load %arg6[%c1_123, %463, %c0_124, %c0_125] : memref<2x8x8x16xf32, #tpu.memory_space<vmem>>, vector<1x1x8x16xf32>
    %465 = vector.shape_cast %464 : vector<1x1x8x16xf32> to vector<8x16xf32>
    %466 = vector.shape_cast %458 : vector<8x16xf32> to vector<1x1x8x16xf32>
    tpu.vector_store %arg6[%c1_123, %463, %c0_124, %c0_125], %466 {strides = array<i32>} : memref<2x8x8x16xf32, #tpu.memory_space<vmem>>, vector<1x1x8x16xf32>,
    %c6_i32 = arith.constant 6 : i32
    %c7_i32_126 = arith.constant 7 : i32
    %467 = arith.subi %c7_i32_126, %c6_i32 : i32
    %468 = arith.truncf %433 : vector<8x16xf32> to vector<8x16xbf16>
    %cst_127 = arith.constant dense<0.000000e+00> : vector<8x64xf32>
    %469 = tpu.matmul %468, %13, %cst_127 {dimension_numbers = #tpu.dot_dimension_numbers<[1], [0], [0], [1], [0, 0, 1, 1], [], []>} : vector<8x16xbf16>, vector<16x64xbf16>, vector<8x64xf32> -> vector<8x64xf32>
    %470 = arith.index_cast %c6_i32 : i32 to index
    %c0_128 = arith.constant 0 : index
    %c0_129 = arith.constant 0 : index
    %471 = vector.load %arg7[%470, %c0_128, %c0_129] : memref<8x8x128xbf16, #tpu.memory_space<vmem>>, vector<1x8x128xbf16>
    %472 = vector.shape_cast %471 : vector<1x8x128xbf16> to vector<8x128xbf16>
    %473 = vector.extract_strided_slice %472 {offsets = [0, 0], sizes = [8, 64], strides = [1, 1]} : vector<8x128xbf16> to vector<8x64xbf16>
    %474 = arith.extf %473 : vector<8x64xbf16> to vector<8x64xf32>
    %475 = arith.addf %469, %474 : vector<8x64xf32>
    %476 = arith.truncf %458 : vector<8x16xf32> to vector<8x16xbf16>
    %cst_130 = arith.constant dense<0.000000e+00> : vector<8x64xf32>
    %477 = tpu.matmul %476, %15, %cst_130 {dimension_numbers = #tpu.dot_dimension_numbers<[1], [0], [0], [1], [0, 0, 1, 1], [], []>} : vector<8x16xbf16>, vector<16x64xbf16>, vector<8x64xf32> -> vector<8x64xf32>
    %478 = arith.index_cast %467 : i32 to index
    %c0_131 = arith.constant 0 : index
    %c0_132 = arith.constant 0 : index
    %479 = vector.load %arg7[%478, %c0_131, %c0_132] : memref<8x8x128xbf16, #tpu.memory_space<vmem>>, vector<1x8x128xbf16>
    %480 = vector.shape_cast %479 : vector<1x8x128xbf16> to vector<8x128xbf16>
    %481 = vector.extract_strided_slice %480 {offsets = [0, 64], sizes = [8, 64], strides = [1, 1]} : vector<8x128xbf16> to vector<8x64xbf16>
    %482 = arith.extf %481 : vector<8x64xbf16> to vector<8x64xf32>
    %483 = arith.addf %477, %482 : vector<8x64xf32>
    %484 = vector.extract_strided_slice %475 {offsets = [0, 0], sizes = [8, 16], strides = [1, 1]} : vector<8x64xf32> to vector<8x16xf32>
    %485 = arith.negf %484 : vector<8x16xf32>
    %486 = math.exp %485 : vector<8x16xf32>
    %cst_133 = arith.constant 1.000000e+00 : f32
    %487 = vector.broadcast %cst_133 : f32 to vector<8x16xf32>
    %488 = arith.addf %487, %486 : vector<8x16xf32>
    %489 = arith.divf %487, %488 : vector<8x16xf32>
    %490 = vector.extract_strided_slice %475 {offsets = [0, 16], sizes = [8, 16], strides = [1, 1]} : vector<8x64xf32> to vector<8x16xf32>
    %491 = arith.negf %490 : vector<8x16xf32>
    %492 = math.exp %491 : vector<8x16xf32>
    %cst_134 = arith.constant 1.000000e+00 : f32
    %493 = vector.broadcast %cst_134 : f32 to vector<8x16xf32>
    %494 = arith.addf %493, %492 : vector<8x16xf32>
    %495 = arith.divf %493, %494 : vector<8x16xf32>
    %496 = vector.extract_strided_slice %475 {offsets = [0, 32], sizes = [8, 16], strides = [1, 1]} : vector<8x64xf32> to vector<8x16xf32>
    %497 = math.tanh %496 : vector<8x16xf32>
    %498 = vector.extract_strided_slice %475 {offsets = [0, 48], sizes = [8, 16], strides = [1, 1]} : vector<8x64xf32> to vector<8x16xf32>
    %499 = arith.negf %498 : vector<8x16xf32>
    %500 = math.exp %499 : vector<8x16xf32>
    %cst_135 = arith.constant 1.000000e+00 : f32
    %501 = vector.broadcast %cst_135 : f32 to vector<8x16xf32>
    %502 = arith.addf %501, %500 : vector<8x16xf32>
    %503 = arith.divf %501, %502 : vector<8x16xf32>
    %504 = arith.mulf %495, %431 : vector<8x16xf32>
    %505 = arith.mulf %489, %497 : vector<8x16xf32>
    %506 = arith.addf %504, %505 : vector<8x16xf32>
    %507 = math.tanh %506 : vector<8x16xf32>
    %508 = arith.mulf %503, %507 : vector<8x16xf32>
    %509 = vector.extract_strided_slice %483 {offsets = [0, 0], sizes = [8, 16], strides = [1, 1]} : vector<8x64xf32> to vector<8x16xf32>
    %510 = arith.negf %509 : vector<8x16xf32>
    %511 = math.exp %510 : vector<8x16xf32>
    %cst_136 = arith.constant 1.000000e+00 : f32
    %512 = vector.broadcast %cst_136 : f32 to vector<8x16xf32>
    %513 = arith.addf %512, %511 : vector<8x16xf32>
    %514 = arith.divf %512, %513 : vector<8x16xf32>
    %515 = vector.extract_strided_slice %483 {offsets = [0, 16], sizes = [8, 16], strides = [1, 1]} : vector<8x64xf32> to vector<8x16xf32>
    %516 = arith.negf %515 : vector<8x16xf32>
    %517 = math.exp %516 : vector<8x16xf32>
    %cst_137 = arith.constant 1.000000e+00 : f32
    %518 = vector.broadcast %cst_137 : f32 to vector<8x16xf32>
    %519 = arith.addf %518, %517 : vector<8x16xf32>
    %520 = arith.divf %518, %519 : vector<8x16xf32>
    %521 = vector.extract_strided_slice %483 {offsets = [0, 32], sizes = [8, 16], strides = [1, 1]} : vector<8x64xf32> to vector<8x16xf32>
    %522 = math.tanh %521 : vector<8x16xf32>
    %523 = vector.extract_strided_slice %483 {offsets = [0, 48], sizes = [8, 16], strides = [1, 1]} : vector<8x64xf32> to vector<8x16xf32>
    %524 = arith.negf %523 : vector<8x16xf32>
    %525 = math.exp %524 : vector<8x16xf32>
    %cst_138 = arith.constant 1.000000e+00 : f32
    %526 = vector.broadcast %cst_138 : f32 to vector<8x16xf32>
    %527 = arith.addf %526, %525 : vector<8x16xf32>
    %528 = arith.divf %526, %527 : vector<8x16xf32>
    %529 = arith.mulf %520, %456 : vector<8x16xf32>
    %530 = arith.mulf %514, %522 : vector<8x16xf32>
    %531 = arith.addf %529, %530 : vector<8x16xf32>
    %532 = math.tanh %531 : vector<8x16xf32>
    %533 = arith.mulf %528, %532 : vector<8x16xf32>
    %c0_139 = arith.constant 0 : index
    %534 = arith.index_cast %c6_i32 : i32 to index
    %c0_140 = arith.constant 0 : index
    %c0_141 = arith.constant 0 : index
    %535 = vector.load %arg6[%c0_139, %534, %c0_140, %c0_141] : memref<2x8x8x16xf32, #tpu.memory_space<vmem>>, vector<1x1x8x16xf32>
    %536 = vector.shape_cast %535 : vector<1x1x8x16xf32> to vector<8x16xf32>
    %537 = vector.shape_cast %508 : vector<8x16xf32> to vector<1x1x8x16xf32>
    tpu.vector_store %arg6[%c0_139, %534, %c0_140, %c0_141], %537 {strides = array<i32>} : memref<2x8x8x16xf32, #tpu.memory_space<vmem>>, vector<1x1x8x16xf32>,
    %c1_142 = arith.constant 1 : index
    %538 = arith.index_cast %467 : i32 to index
    %c0_143 = arith.constant 0 : index
    %c0_144 = arith.constant 0 : index
    %539 = vector.load %arg6[%c1_142, %538, %c0_143, %c0_144] : memref<2x8x8x16xf32, #tpu.memory_space<vmem>>, vector<1x1x8x16xf32>
    %540 = vector.shape_cast %539 : vector<1x1x8x16xf32> to vector<8x16xf32>
    %541 = vector.shape_cast %533 : vector<8x16xf32> to vector<1x1x8x16xf32>
    tpu.vector_store %arg6[%c1_142, %538, %c0_143, %c0_144], %541 {strides = array<i32>} : memref<2x8x8x16xf32, #tpu.memory_space<vmem>>, vector<1x1x8x16xf32>,
    %c7_i32_145 = arith.constant 7 : i32
    %c7_i32_146 = arith.constant 7 : i32
    %542 = arith.subi %c7_i32_146, %c7_i32_145 : i32
    %543 = arith.truncf %508 : vector<8x16xf32> to vector<8x16xbf16>
    %cst_147 = arith.constant dense<0.000000e+00> : vector<8x64xf32>
    %544 = tpu.matmul %543, %13, %cst_147 {dimension_numbers = #tpu.dot_dimension_numbers<[1], [0], [0], [1], [0, 0, 1, 1], [], []>} : vector<8x16xbf16>, vector<16x64xbf16>, vector<8x64xf32> -> vector<8x64xf32>
    %545 = arith.index_cast %c7_i32_145 : i32 to index
    %c0_148 = arith.constant 0 : index
    %c0_149 = arith.constant 0 : index
    %546 = vector.load %arg7[%545, %c0_148, %c0_149] : memref<8x8x128xbf16, #tpu.memory_space<vmem>>, vector<1x8x128xbf16>
    %547 = vector.shape_cast %546 : vector<1x8x128xbf16> to vector<8x128xbf16>
    %548 = vector.extract_strided_slice %547 {offsets = [0, 0], sizes = [8, 64], strides = [1, 1]} : vector<8x128xbf16> to vector<8x64xbf16>
    %549 = arith.extf %548 : vector<8x64xbf16> to vector<8x64xf32>
    %550 = arith.addf %544, %549 : vector<8x64xf32>
    %551 = arith.truncf %533 : vector<8x16xf32> to vector<8x16xbf16>
    %cst_150 = arith.constant dense<0.000000e+00> : vector<8x64xf32>
    %552 = tpu.matmul %551, %15, %cst_150 {dimension_numbers = #tpu.dot_dimension_numbers<[1], [0], [0], [1], [0, 0, 1, 1], [], []>} : vector<8x16xbf16>, vector<16x64xbf16>, vector<8x64xf32> -> vector<8x64xf32>
    %553 = arith.index_cast %542 : i32 to index
    %c0_151 = arith.constant 0 : index
    %c0_152 = arith.constant 0 : index
    %554 = vector.load %arg7[%553, %c0_151, %c0_152] : memref<8x8x128xbf16, #tpu.memory_space<vmem>>, vector<1x8x128xbf16>
    %555 = vector.shape_cast %554 : vector<1x8x128xbf16> to vector<8x128xbf16>
    %556 = vector.extract_strided_slice %555 {offsets = [0, 64], sizes = [8, 64], strides = [1, 1]} : vector<8x128xbf16> to vector<8x64xbf16>
    %557 = arith.extf %556 : vector<8x64xbf16> to vector<8x64xf32>
    %558 = arith.addf %552, %557 : vector<8x64xf32>
    %559 = vector.extract_strided_slice %550 {offsets = [0, 0], sizes = [8, 16], strides = [1, 1]} : vector<8x64xf32> to vector<8x16xf32>
    %560 = arith.negf %559 : vector<8x16xf32>
    %561 = math.exp %560 : vector<8x16xf32>
    %cst_153 = arith.constant 1.000000e+00 : f32
    %562 = vector.broadcast %cst_153 : f32 to vector<8x16xf32>
    %563 = arith.addf %562, %561 : vector<8x16xf32>
    %564 = arith.divf %562, %563 : vector<8x16xf32>
    %565 = vector.extract_strided_slice %550 {offsets = [0, 16], sizes = [8, 16], strides = [1, 1]} : vector<8x64xf32> to vector<8x16xf32>
    %566 = arith.negf %565 : vector<8x16xf32>
    %567 = math.exp %566 : vector<8x16xf32>
    %cst_154 = arith.constant 1.000000e+00 : f32
    %568 = vector.broadcast %cst_154 : f32 to vector<8x16xf32>
    %569 = arith.addf %568, %567 : vector<8x16xf32>
    %570 = arith.divf %568, %569 : vector<8x16xf32>
    %571 = vector.extract_strided_slice %550 {offsets = [0, 32], sizes = [8, 16], strides = [1, 1]} : vector<8x64xf32> to vector<8x16xf32>
    %572 = math.tanh %571 : vector<8x16xf32>
    %573 = vector.extract_strided_slice %550 {offsets = [0, 48], sizes = [8, 16], strides = [1, 1]} : vector<8x64xf32> to vector<8x16xf32>
    %574 = arith.negf %573 : vector<8x16xf32>
    %575 = math.exp %574 : vector<8x16xf32>
    %cst_155 = arith.constant 1.000000e+00 : f32
    %576 = vector.broadcast %cst_155 : f32 to vector<8x16xf32>
    %577 = arith.addf %576, %575 : vector<8x16xf32>
    %578 = arith.divf %576, %577 : vector<8x16xf32>
    %579 = arith.mulf %570, %506 : vector<8x16xf32>
    %580 = arith.mulf %564, %572 : vector<8x16xf32>
    %581 = arith.addf %579, %580 : vector<8x16xf32>
    %582 = math.tanh %581 : vector<8x16xf32>
    %583 = arith.mulf %578, %582 : vector<8x16xf32>
    %584 = vector.extract_strided_slice %558 {offsets = [0, 0], sizes = [8, 16], strides = [1, 1]} : vector<8x64xf32> to vector<8x16xf32>
    %585 = arith.negf %584 : vector<8x16xf32>
    %586 = math.exp %585 : vector<8x16xf32>
    %cst_156 = arith.constant 1.000000e+00 : f32
    %587 = vector.broadcast %cst_156 : f32 to vector<8x16xf32>
    %588 = arith.addf %587, %586 : vector<8x16xf32>
    %589 = arith.divf %587, %588 : vector<8x16xf32>
    %590 = vector.extract_strided_slice %558 {offsets = [0, 16], sizes = [8, 16], strides = [1, 1]} : vector<8x64xf32> to vector<8x16xf32>
    %591 = arith.negf %590 : vector<8x16xf32>
    %592 = math.exp %591 : vector<8x16xf32>
    %cst_157 = arith.constant 1.000000e+00 : f32
    %593 = vector.broadcast %cst_157 : f32 to vector<8x16xf32>
    %594 = arith.addf %593, %592 : vector<8x16xf32>
    %595 = arith.divf %593, %594 : vector<8x16xf32>
    %596 = vector.extract_strided_slice %558 {offsets = [0, 32], sizes = [8, 16], strides = [1, 1]} : vector<8x64xf32> to vector<8x16xf32>
    %597 = math.tanh %596 : vector<8x16xf32>
    %598 = vector.extract_strided_slice %558 {offsets = [0, 48], sizes = [8, 16], strides = [1, 1]} : vector<8x64xf32> to vector<8x16xf32>
    %599 = arith.negf %598 : vector<8x16xf32>
    %600 = math.exp %599 : vector<8x16xf32>
    %cst_158 = arith.constant 1.000000e+00 : f32
    %601 = vector.broadcast %cst_158 : f32 to vector<8x16xf32>
    %602 = arith.addf %601, %600 : vector<8x16xf32>
    %603 = arith.divf %601, %602 : vector<8x16xf32>
    %604 = arith.mulf %595, %531 : vector<8x16xf32>
    %605 = arith.mulf %589, %597 : vector<8x16xf32>
    %606 = arith.addf %604, %605 : vector<8x16xf32>
    %607 = math.tanh %606 : vector<8x16xf32>
    %608 = arith.mulf %603, %607 : vector<8x16xf32>
    %c0_159 = arith.constant 0 : index
    %609 = arith.index_cast %c7_i32_145 : i32 to index
    %c0_160 = arith.constant 0 : index
    %c0_161 = arith.constant 0 : index
    %610 = vector.load %arg6[%c0_159, %609, %c0_160, %c0_161] : memref<2x8x8x16xf32, #tpu.memory_space<vmem>>, vector<1x1x8x16xf32>
    %611 = vector.shape_cast %610 : vector<1x1x8x16xf32> to vector<8x16xf32>
    %612 = vector.shape_cast %583 : vector<8x16xf32> to vector<1x1x8x16xf32>
    tpu.vector_store %arg6[%c0_159, %609, %c0_160, %c0_161], %612 {strides = array<i32>} : memref<2x8x8x16xf32, #tpu.memory_space<vmem>>, vector<1x1x8x16xf32>,
    %c1_162 = arith.constant 1 : index
    %613 = arith.index_cast %542 : i32 to index
    %c0_163 = arith.constant 0 : index
    %c0_164 = arith.constant 0 : index
    %614 = vector.load %arg6[%c1_162, %613, %c0_163, %c0_164] : memref<2x8x8x16xf32, #tpu.memory_space<vmem>>, vector<1x1x8x16xf32>
    %615 = vector.shape_cast %614 : vector<1x1x8x16xf32> to vector<8x16xf32>
    %616 = vector.shape_cast %608 : vector<8x16xf32> to vector<1x1x8x16xf32>
    tpu.vector_store %arg6[%c1_162, %613, %c0_163, %c0_164], %616 {strides = array<i32>} : memref<2x8x8x16xf32, #tpu.memory_space<vmem>>, vector<1x1x8x16xf32>,
    %c8_i32 = arith.constant 8 : i32
    return
  }
  func.func @transform_0(%arg0: i32) -> (i32, i32, i32) {
    %c0_i32 = arith.constant 0 : i32
    %c0_i32_0 = arith.constant 0 : i32
    %c0_i32_1 = arith.constant 0 : i32
    return %c0_i32, %arg0, %c0_i32_0 : i32, i32, i32
  }
  func.func @transform_1(%arg0: i32) -> (i32, i32) {
    %c0_i32 = arith.constant 0 : i32
    %c0_i32_0 = arith.constant 0 : i32
    %c0_i32_1 = arith.constant 0 : i32
    return %c0_i32, %c0_i32_0 : i32, i32
  }
  func.func @transform_2(%arg0: i32) -> (i32, i32) {
    %c0_i32 = arith.constant 0 : i32
    %c0_i32_0 = arith.constant 0 : i32
    %c0_i32_1 = arith.constant 0 : i32
    return %c0_i32, %c0_i32_0 : i32, i32
  }
  func.func @transform_3(%arg0: i32) -> (i32, i32) {
    %c0_i32 = arith.constant 0 : i32
    %c0_i32_0 = arith.constant 0 : i32
    %c0_i32_1 = arith.constant 0 : i32
    return %c0_i32, %c0_i32_0 : i32, i32
  }
  func.func @transform_4(%arg0: i32) -> (i32, i32) {
    %c0_i32 = arith.constant 0 : i32
    %c0_i32_0 = arith.constant 0 : i32
    %c0_i32_1 = arith.constant 0 : i32
    return %c0_i32, %c0_i32_0 : i32, i32
  }
  func.func @transform_5(%arg0: i32) -> (i32, i32, i32, i32) {
    %c0_i32 = arith.constant 0 : i32
    %c0_i32_0 = arith.constant 0 : i32
    %c0_i32_1 = arith.constant 0 : i32
    %c0_i32_2 = arith.constant 0 : i32
    return %c0_i32, %c0_i32_0, %arg0, %c0_i32_1 : i32, i32, i32, i32
  }
}

module attributes {stable_mosaic.version = 11 : i64} {
  func.func @_att_scores_kernel(%arg0: i32, %arg1: memref<4x8x32xf32, #tpu.memory_space<vmem>>, %arg2: memref<4x8x1xf32, #tpu.memory_space<vmem>>, %arg3: memref<16x33xf32, #tpu.memory_space<vmem>>, %arg4: memref<1x33xf32, #tpu.memory_space<vmem>>, %arg5: memref<16x16xf32, #tpu.memory_space<vmem>>, %arg6: memref<4x8x8xf32, #tpu.memory_space<vmem>>, %arg7: memref<4x8x1xf32, #tpu.memory_space<vmem>>) attributes {dimension_semantics = [#tpu.dimension_semantics<parallel>], iteration_bounds = array<i64: 2>, scalar_prefetch = 0 : i64, scratch_operands = 0 : i64, tpu.core_type = #tpu.core_type<tc>, window_params = [{transform_indices = @transform_0, window_bounds = array<i64: 4, 8, 32>}, {transform_indices = @transform_1, window_bounds = array<i64: 4, 8, 1>}, {pipeline_mode = #tpu.pipeline_mode<synchronous>, transform_indices = @transform_2, window_bounds = array<i64: 16, 33>}, {pipeline_mode = #tpu.pipeline_mode<synchronous>, transform_indices = @transform_3, window_bounds = array<i64: 1, 33>}, {pipeline_mode = #tpu.pipeline_mode<synchronous>, transform_indices = @transform_4, window_bounds = array<i64: 16, 16>}, {transform_indices = @transform_5, window_bounds = array<i64: 4, 8, 8>}, {transform_indices = @transform_6, window_bounds = array<i64: 4, 8, 1>}]} {
    %c0 = arith.constant 0 : index
    %c0_0 = arith.constant 0 : index
    %c0_1 = arith.constant 0 : index
    %0 = vector.load %arg2[%c0, %c0_0, %c0_1] : memref<4x8x1xf32, #tpu.memory_space<vmem>>, vector<4x8x1xf32>
    %c0_2 = arith.constant 0 : index
    %c0_3 = arith.constant 0 : index
    %c0_4 = arith.constant 0 : index
    %1 = vector.load %arg1[%c0_2, %c0_3, %c0_4] : memref<4x8x32xf32, #tpu.memory_space<vmem>>, vector<4x8x32xf32>
    %2 = vector.extract_strided_slice %1 {offsets = [0, 0, 16], sizes = [4, 8, 16], strides = [1, 1, 1]} : vector<4x8x32xf32> to vector<4x8x16xf32>
    %3 = vector.broadcast %0 : vector<4x8x1xf32> to vector<4x8x16xf32>
    %4 = arith.mulf %2, %3 : vector<4x8x16xf32>
    %5 = vector.shape_cast %4 : vector<4x8x16xf32> to vector<32x16xf32>
    %c0_5 = arith.constant 0 : index
    %c0_6 = arith.constant 0 : index
    %6 = vector.load %arg3[%c0_5, %c0_6] : memref<16x33xf32, #tpu.memory_space<vmem>>, vector<16x33xf32>
    %7 = arith.truncf %5 : vector<32x16xf32> to vector<32x16xbf16>
    %8 = arith.truncf %6 : vector<16x33xf32> to vector<16x33xbf16>
    %cst = arith.constant dense<0.000000e+00> : vector<32x33xf32>
    %9 = tpu.matmul %7, %8, %cst {dimension_numbers = #tpu.dot_dimension_numbers<[1], [0], [0], [1], [0, 0, 1, 1], [], []>} : vector<32x16xbf16>, vector<16x33xbf16>, vector<32x33xf32> -> vector<32x33xf32>
    %c0_7 = arith.constant 0 : index
    %c0_8 = arith.constant 0 : index
    %10 = vector.load %arg4[%c0_7, %c0_8] : memref<1x33xf32, #tpu.memory_space<vmem>>, vector<1x33xf32>
    %11 = vector.broadcast %10 : vector<1x33xf32> to vector<32x33xf32>
    %12 = arith.addf %9, %11 : vector<32x33xf32>
    %13 = vector.extract_strided_slice %12 {offsets = [0, 0], sizes = [32, 16], strides = [1, 1]} : vector<32x33xf32> to vector<32x16xf32>
    %14 = math.tanh %13 : vector<32x16xf32>
    %15 = vector.extract_strided_slice %12 {offsets = [0, 16], sizes = [32, 16], strides = [1, 1]} : vector<32x33xf32> to vector<32x16xf32>
    %16 = math.tanh %15 : vector<32x16xf32>
    %17 = vector.extract_strided_slice %12 {offsets = [0, 32], sizes = [32, 1], strides = [1, 1]} : vector<32x33xf32> to vector<32x1xf32>
    %c0_9 = arith.constant 0 : index
    %c0_10 = arith.constant 0 : index
    %18 = vector.load %arg5[%c0_9, %c0_10] : memref<16x16xf32, #tpu.memory_space<vmem>>, vector<16x16xf32>
    %19 = arith.truncf %14 : vector<32x16xf32> to vector<32x16xbf16>
    %20 = arith.truncf %18 : vector<16x16xf32> to vector<16x16xbf16>
    %cst_11 = arith.constant dense<0.000000e+00> : vector<32x16xf32>
    %21 = tpu.matmul %19, %20, %cst_11 {dimension_numbers = #tpu.dot_dimension_numbers<[1], [0], [0], [1], [0, 0, 1, 1], [], []>} : vector<32x16xbf16>, vector<16x16xbf16>, vector<32x16xf32> -> vector<32x16xf32>
    %22 = vector.shape_cast %21 : vector<32x16xf32> to vector<4x8x16xf32>
    %23 = arith.truncf %22 : vector<4x8x16xf32> to vector<4x8x16xbf16>
    %24 = vector.shape_cast %16 : vector<32x16xf32> to vector<4x8x16xf32>
    %25 = arith.truncf %24 : vector<4x8x16xf32> to vector<4x8x16xbf16>
    "tpu.trace_start"() <{level = 10 : i32, message = "bid,bjd->bij"}> : () -> ()
    %cst_12 = arith.constant dense<0.000000e+00> : vector<4x8x8xf32>
    %26 = tpu.matmul %23, %25, %cst_12 {dimension_numbers = #tpu.dot_dimension_numbers<[2], [2], [1], [1], [0, 0, 0, 1, 1, 1], [0], [0]>} : vector<4x8x16xbf16>, vector<4x8x16xbf16>, vector<4x8x8xf32> -> vector<4x8x8xf32>
    "tpu.trace_stop"() : () -> ()
    %c0_13 = arith.constant 0 : index
    %c0_14 = arith.constant 0 : index
    %c0_15 = arith.constant 0 : index
    %27 = vector.load %arg6[%c0_13, %c0_14, %c0_15] : memref<4x8x8xf32, #tpu.memory_space<vmem>>, vector<4x8x8xf32>
    tpu.vector_store %arg6[%c0_13, %c0_14, %c0_15], %26 {strides = array<i32>} : memref<4x8x8xf32, #tpu.memory_space<vmem>>, vector<4x8x8xf32>,
    %28 = math.exp %17 : vector<32x1xf32>
    %29 = vector.shape_cast %28 : vector<32x1xf32> to vector<4x8x1xf32>
    %c0_16 = arith.constant 0 : index
    %c0_17 = arith.constant 0 : index
    %c0_18 = arith.constant 0 : index
    %30 = vector.load %arg7[%c0_16, %c0_17, %c0_18] : memref<4x8x1xf32, #tpu.memory_space<vmem>>, vector<4x8x1xf32>
    tpu.vector_store %arg7[%c0_16, %c0_17, %c0_18], %29 {strides = array<i32>} : memref<4x8x1xf32, #tpu.memory_space<vmem>>, vector<4x8x1xf32>,
    return
  }
  func.func @transform_0(%arg0: i32) -> (i32, i32, i32) {
    %c0_i32 = arith.constant 0 : i32
    %c0_i32_0 = arith.constant 0 : i32
    %c0_i32_1 = arith.constant 0 : i32
    return %arg0, %c0_i32, %c0_i32_0 : i32, i32, i32
  }
  func.func @transform_1(%arg0: i32) -> (i32, i32, i32) {
    %c0_i32 = arith.constant 0 : i32
    %c0_i32_0 = arith.constant 0 : i32
    %c0_i32_1 = arith.constant 0 : i32
    return %arg0, %c0_i32, %c0_i32_0 : i32, i32, i32
  }
  func.func @transform_2(%arg0: i32) -> (i32, i32) {
    %c0_i32 = arith.constant 0 : i32
    %c0_i32_0 = arith.constant 0 : i32
    %c0_i32_1 = arith.constant 0 : i32
    return %c0_i32, %c0_i32_0 : i32, i32
  }
  func.func @transform_3(%arg0: i32) -> (i32, i32) {
    %c0_i32 = arith.constant 0 : i32
    %c0_i32_0 = arith.constant 0 : i32
    %c0_i32_1 = arith.constant 0 : i32
    return %c0_i32, %c0_i32_0 : i32, i32
  }
  func.func @transform_4(%arg0: i32) -> (i32, i32) {
    %c0_i32 = arith.constant 0 : i32
    %c0_i32_0 = arith.constant 0 : i32
    %c0_i32_1 = arith.constant 0 : i32
    return %c0_i32, %c0_i32_0 : i32, i32
  }
  func.func @transform_5(%arg0: i32) -> (i32, i32, i32) {
    %c0_i32 = arith.constant 0 : i32
    %c0_i32_0 = arith.constant 0 : i32
    %c0_i32_1 = arith.constant 0 : i32
    return %arg0, %c0_i32, %c0_i32_0 : i32, i32, i32
  }
  func.func @transform_6(%arg0: i32) -> (i32, i32, i32) {
    %c0_i32 = arith.constant 0 : i32
    %c0_i32_0 = arith.constant 0 : i32
    %c0_i32_1 = arith.constant 0 : i32
    return %arg0, %c0_i32, %c0_i32_0 : i32, i32, i32
  }
}

module attributes {stable_mosaic.version = 11 : i64} {
  func.func @_att_scores_kernel(%arg0: i32, %arg1: memref<1x4x32xf32, #tpu.memory_space<vmem>>, %arg2: memref<1x4x1xf32, #tpu.memory_space<vmem>>, %arg3: memref<16x33xf32, #tpu.memory_space<vmem>>, %arg4: memref<1x33xf32, #tpu.memory_space<vmem>>, %arg5: memref<16x16xf32, #tpu.memory_space<vmem>>, %arg6: memref<1x4x4xf32, #tpu.memory_space<vmem>>, %arg7: memref<1x4x1xf32, #tpu.memory_space<vmem>>) attributes {dimension_semantics = [#tpu.dimension_semantics<parallel>], iteration_bounds = array<i64: 2>, scalar_prefetch = 0 : i64, scratch_operands = 0 : i64, tpu.core_type = #tpu.core_type<tc>, window_params = [{transform_indices = @transform_0, window_bounds = array<i64: 1, 4, 32>}, {transform_indices = @transform_1, window_bounds = array<i64: 1, 4, 1>}, {pipeline_mode = #tpu.pipeline_mode<synchronous>, transform_indices = @transform_2, window_bounds = array<i64: 16, 33>}, {pipeline_mode = #tpu.pipeline_mode<synchronous>, transform_indices = @transform_3, window_bounds = array<i64: 1, 33>}, {pipeline_mode = #tpu.pipeline_mode<synchronous>, transform_indices = @transform_4, window_bounds = array<i64: 16, 16>}, {transform_indices = @transform_5, window_bounds = array<i64: 1, 4, 4>}, {transform_indices = @transform_6, window_bounds = array<i64: 1, 4, 1>}]} {
    %c0 = arith.constant 0 : index
    %c0_0 = arith.constant 0 : index
    %c0_1 = arith.constant 0 : index
    %0 = vector.load %arg2[%c0, %c0_0, %c0_1] : memref<1x4x1xf32, #tpu.memory_space<vmem>>, vector<1x4x1xf32>
    %c0_2 = arith.constant 0 : index
    %c0_3 = arith.constant 0 : index
    %c0_4 = arith.constant 0 : index
    %1 = vector.load %arg1[%c0_2, %c0_3, %c0_4] : memref<1x4x32xf32, #tpu.memory_space<vmem>>, vector<1x4x32xf32>
    %2 = vector.extract_strided_slice %1 {offsets = [0, 0, 16], sizes = [1, 4, 16], strides = [1, 1, 1]} : vector<1x4x32xf32> to vector<1x4x16xf32>
    %3 = vector.broadcast %0 : vector<1x4x1xf32> to vector<1x4x16xf32>
    %4 = arith.mulf %2, %3 : vector<1x4x16xf32>
    %5 = vector.shape_cast %4 : vector<1x4x16xf32> to vector<4x16xf32>
    %c0_5 = arith.constant 0 : index
    %c0_6 = arith.constant 0 : index
    %6 = vector.load %arg3[%c0_5, %c0_6] : memref<16x33xf32, #tpu.memory_space<vmem>>, vector<16x33xf32>
    %7 = arith.truncf %5 : vector<4x16xf32> to vector<4x16xbf16>
    %8 = arith.truncf %6 : vector<16x33xf32> to vector<16x33xbf16>
    %cst = arith.constant dense<0.000000e+00> : vector<4x33xf32>
    %9 = tpu.matmul %7, %8, %cst {dimension_numbers = #tpu.dot_dimension_numbers<[1], [0], [0], [1], [0, 0, 1, 1], [], []>} : vector<4x16xbf16>, vector<16x33xbf16>, vector<4x33xf32> -> vector<4x33xf32>
    %c0_7 = arith.constant 0 : index
    %c0_8 = arith.constant 0 : index
    %10 = vector.load %arg4[%c0_7, %c0_8] : memref<1x33xf32, #tpu.memory_space<vmem>>, vector<1x33xf32>
    %11 = vector.broadcast %10 : vector<1x33xf32> to vector<4x33xf32>
    %12 = arith.addf %9, %11 : vector<4x33xf32>
    %13 = vector.extract_strided_slice %12 {offsets = [0, 0], sizes = [4, 16], strides = [1, 1]} : vector<4x33xf32> to vector<4x16xf32>
    %14 = math.tanh %13 : vector<4x16xf32>
    %15 = vector.extract_strided_slice %12 {offsets = [0, 16], sizes = [4, 16], strides = [1, 1]} : vector<4x33xf32> to vector<4x16xf32>
    %16 = math.tanh %15 : vector<4x16xf32>
    %17 = vector.extract_strided_slice %12 {offsets = [0, 32], sizes = [4, 1], strides = [1, 1]} : vector<4x33xf32> to vector<4x1xf32>
    %c0_9 = arith.constant 0 : index
    %c0_10 = arith.constant 0 : index
    %18 = vector.load %arg5[%c0_9, %c0_10] : memref<16x16xf32, #tpu.memory_space<vmem>>, vector<16x16xf32>
    %19 = arith.truncf %14 : vector<4x16xf32> to vector<4x16xbf16>
    %20 = arith.truncf %18 : vector<16x16xf32> to vector<16x16xbf16>
    %cst_11 = arith.constant dense<0.000000e+00> : vector<4x16xf32>
    %21 = tpu.matmul %19, %20, %cst_11 {dimension_numbers = #tpu.dot_dimension_numbers<[1], [0], [0], [1], [0, 0, 1, 1], [], []>} : vector<4x16xbf16>, vector<16x16xbf16>, vector<4x16xf32> -> vector<4x16xf32>
    %22 = vector.shape_cast %21 : vector<4x16xf32> to vector<1x4x16xf32>
    %23 = arith.truncf %22 : vector<1x4x16xf32> to vector<1x4x16xbf16>
    %24 = vector.shape_cast %16 : vector<4x16xf32> to vector<1x4x16xf32>
    %25 = arith.truncf %24 : vector<1x4x16xf32> to vector<1x4x16xbf16>
    "tpu.trace_start"() <{level = 10 : i32, message = "bid,bjd->bij"}> : () -> ()
    %cst_12 = arith.constant dense<0.000000e+00> : vector<1x4x4xf32>
    %26 = tpu.matmul %23, %25, %cst_12 {dimension_numbers = #tpu.dot_dimension_numbers<[2], [2], [1], [1], [0, 0, 0, 1, 1, 1], [0], [0]>} : vector<1x4x16xbf16>, vector<1x4x16xbf16>, vector<1x4x4xf32> -> vector<1x4x4xf32>
    "tpu.trace_stop"() : () -> ()
    %c0_13 = arith.constant 0 : index
    %c0_14 = arith.constant 0 : index
    %c0_15 = arith.constant 0 : index
    %27 = vector.load %arg6[%c0_13, %c0_14, %c0_15] : memref<1x4x4xf32, #tpu.memory_space<vmem>>, vector<1x4x4xf32>
    tpu.vector_store %arg6[%c0_13, %c0_14, %c0_15], %26 {strides = array<i32>} : memref<1x4x4xf32, #tpu.memory_space<vmem>>, vector<1x4x4xf32>,
    %28 = math.exp %17 : vector<4x1xf32>
    %29 = vector.shape_cast %28 : vector<4x1xf32> to vector<1x4x1xf32>
    %c0_16 = arith.constant 0 : index
    %c0_17 = arith.constant 0 : index
    %c0_18 = arith.constant 0 : index
    %30 = vector.load %arg7[%c0_16, %c0_17, %c0_18] : memref<1x4x1xf32, #tpu.memory_space<vmem>>, vector<1x4x1xf32>
    tpu.vector_store %arg7[%c0_16, %c0_17, %c0_18], %29 {strides = array<i32>} : memref<1x4x1xf32, #tpu.memory_space<vmem>>, vector<1x4x1xf32>,
    return
  }
  func.func @transform_0(%arg0: i32) -> (i32, i32, i32) {
    %c0_i32 = arith.constant 0 : i32
    %c0_i32_0 = arith.constant 0 : i32
    %c0_i32_1 = arith.constant 0 : i32
    return %arg0, %c0_i32, %c0_i32_0 : i32, i32, i32
  }
  func.func @transform_1(%arg0: i32) -> (i32, i32, i32) {
    %c0_i32 = arith.constant 0 : i32
    %c0_i32_0 = arith.constant 0 : i32
    %c0_i32_1 = arith.constant 0 : i32
    return %arg0, %c0_i32, %c0_i32_0 : i32, i32, i32
  }
  func.func @transform_2(%arg0: i32) -> (i32, i32) {
    %c0_i32 = arith.constant 0 : i32
    %c0_i32_0 = arith.constant 0 : i32
    %c0_i32_1 = arith.constant 0 : i32
    return %c0_i32, %c0_i32_0 : i32, i32
  }
  func.func @transform_3(%arg0: i32) -> (i32, i32) {
    %c0_i32 = arith.constant 0 : i32
    %c0_i32_0 = arith.constant 0 : i32
    %c0_i32_1 = arith.constant 0 : i32
    return %c0_i32, %c0_i32_0 : i32, i32
  }
  func.func @transform_4(%arg0: i32) -> (i32, i32) {
    %c0_i32 = arith.constant 0 : i32
    %c0_i32_0 = arith.constant 0 : i32
    %c0_i32_1 = arith.constant 0 : i32
    return %c0_i32, %c0_i32_0 : i32, i32
  }
  func.func @transform_5(%arg0: i32) -> (i32, i32, i32) {
    %c0_i32 = arith.constant 0 : i32
    %c0_i32_0 = arith.constant 0 : i32
    %c0_i32_1 = arith.constant 0 : i32
    return %arg0, %c0_i32, %c0_i32_0 : i32, i32, i32
  }
  func.func @transform_6(%arg0: i32) -> (i32, i32, i32) {
    %c0_i32 = arith.constant 0 : i32
    %c0_i32_0 = arith.constant 0 : i32
    %c0_i32_1 = arith.constant 0 : i32
    return %arg0, %c0_i32, %c0_i32_0 : i32, i32, i32
  }
}

module attributes {stable_mosaic.version = 11 : i64} {
  func.func @_att_output_kernel(%arg0: i32, %arg1: memref<4x8x1xf32, #tpu.memory_space<vmem>>, %arg2: memref<4x8x8xf32, #tpu.memory_space<vmem>>, %arg3: memref<4x8x8xf32, #tpu.memory_space<vmem>>, %arg4: memref<4x8x32xf32, #tpu.memory_space<vmem>>, %arg5: memref<4x8x1xf32, #tpu.memory_space<vmem>>, %arg6: memref<1x16xf32, #tpu.memory_space<vmem>>, %arg7: memref<48x16xf32, #tpu.memory_space<vmem>>, %arg8: memref<1x16xf32, #tpu.memory_space<vmem>>, %arg9: memref<4x1x16xf32, #tpu.memory_space<vmem>>) attributes {dimension_semantics = [#tpu.dimension_semantics<parallel>], iteration_bounds = array<i64: 2>, scalar_prefetch = 0 : i64, scratch_operands = 0 : i64, tpu.core_type = #tpu.core_type<tc>, window_params = [{transform_indices = @transform_0, window_bounds = array<i64: 4, 8, 1>}, {transform_indices = @transform_1, window_bounds = array<i64: 4, 8, 8>}, {transform_indices = @transform_2, window_bounds = array<i64: 4, 8, 8>}, {transform_indices = @transform_3, window_bounds = array<i64: 4, 8, 32>}, {transform_indices = @transform_4, window_bounds = array<i64: 4, 8, 1>}, {pipeline_mode = #tpu.pipeline_mode<synchronous>, transform_indices = @transform_5, window_bounds = array<i64: 1, 16>}, {pipeline_mode = #tpu.pipeline_mode<synchronous>, transform_indices = @transform_6, window_bounds = array<i64: 48, 16>}, {pipeline_mode = #tpu.pipeline_mode<synchronous>, transform_indices = @transform_7, window_bounds = array<i64: 1, 16>}, {transform_indices = @transform_8, window_bounds = array<i64: 4, 1, 16>}]} {
    %c0 = arith.constant 0 : index
    %c0_0 = arith.constant 0 : index
    %c0_1 = arith.constant 0 : index
    %0 = vector.load %arg5[%c0, %c0_0, %c0_1] : memref<4x8x1xf32, #tpu.memory_space<vmem>>, vector<4x8x1xf32>
    %c0_2 = arith.constant 0 : index
    %c0_3 = arith.constant 0 : index
    %c0_4 = arith.constant 0 : index
    %1 = vector.load %arg4[%c0_2, %c0_3, %c0_4] : memref<4x8x32xf32, #tpu.memory_space<vmem>>, vector<4x8x32xf32>
    %2 = vector.extract_strided_slice %1 {offsets = [0, 0, 0], sizes = [4, 8, 16], strides = [1, 1, 1]} : vector<4x8x32xf32> to vector<4x8x16xf32>
    %3 = vector.broadcast %0 : vector<4x8x1xf32> to vector<4x8x16xf32>
    %4 = arith.mulf %2, %3 : vector<4x8x16xf32>
    %5 = arith.truncf %4 : vector<4x8x16xf32> to vector<4x8x16xbf16>
    %c0_5 = arith.constant 0 : index
    %c0_6 = arith.constant 0 : index
    %c0_7 = arith.constant 0 : index
    %6 = vector.load %arg1[%c0_5, %c0_6, %c0_7] : memref<4x8x1xf32, #tpu.memory_space<vmem>>, vector<4x8x1xf32>
    %c0_8 = arith.constant 0 : index
    %c0_9 = arith.constant 0 : index
    %7 = vector.load %arg6[%c0_8, %c0_9] : memref<1x16xf32, #tpu.memory_space<vmem>>, vector<1x16xf32>
    %8 = vector.shape_cast %7 : vector<1x16xf32> to vector<1x1x16xf32>
    %9 = vector.broadcast %6 : vector<4x8x1xf32> to vector<4x8x16xf32>
    %10 = vector.broadcast %8 : vector<1x1x16xf32> to vector<4x8x16xf32>
    %11 = arith.mulf %9, %10 : vector<4x8x16xf32>
    %c0_10 = arith.constant 0 : index
    %c0_11 = arith.constant 0 : index
    %c0_12 = arith.constant 0 : index
    %12 = vector.load %arg2[%c0_10, %c0_11, %c0_12] : memref<4x8x8xf32, #tpu.memory_space<vmem>>, vector<4x8x8xf32>
    %13 = arith.truncf %12 : vector<4x8x8xf32> to vector<4x8x8xbf16>
    "tpu.trace_start"() <{level = 10 : i32, message = "bij,bjs->bis"}> : () -> ()
    %cst = arith.constant dense<0.000000e+00> : vector<4x8x16xf32>
    %14 = tpu.matmul %13, %5, %cst {dimension_numbers = #tpu.dot_dimension_numbers<[2], [1], [1], [2], [0, 0, 0, 1, 1, 2], [0], [0]>} : vector<4x8x8xbf16>, vector<4x8x16xbf16>, vector<4x8x16xf32> -> vector<4x8x16xf32>
    "tpu.trace_stop"() : () -> ()
    %15 = arith.addf %11, %14 : vector<4x8x16xf32>
    %c0_13 = arith.constant 0 : index
    %c0_14 = arith.constant 0 : index
    %c0_15 = arith.constant 0 : index
    %16 = vector.load %arg3[%c0_13, %c0_14, %c0_15] : memref<4x8x8xf32, #tpu.memory_space<vmem>>, vector<4x8x8xf32>
    %17 = arith.truncf %16 : vector<4x8x8xf32> to vector<4x8x8xbf16>
    "tpu.trace_start"() <{level = 10 : i32, message = "bij,bjs->bis"}> : () -> ()
    %cst_16 = arith.constant dense<0.000000e+00> : vector<4x8x16xf32>
    %18 = tpu.matmul %17, %5, %cst_16 {dimension_numbers = #tpu.dot_dimension_numbers<[2], [1], [1], [2], [0, 0, 0, 1, 1, 2], [0], [0]>} : vector<4x8x8xbf16>, vector<4x8x16xbf16>, vector<4x8x16xf32> -> vector<4x8x16xf32>
    "tpu.trace_stop"() : () -> ()
    %c0_17 = arith.constant 0 : index
    %c0_18 = arith.constant 0 : index
    %19 = vector.load %arg7[%c0_17, %c0_18] : memref<48x16xf32, #tpu.memory_space<vmem>>, vector<48x16xf32>
    %20 = vector.shape_cast %4 : vector<4x8x16xf32> to vector<32x16xf32>
    %21 = vector.extract_strided_slice %19 {offsets = [0, 0], sizes = [16, 16], strides = [1, 1]} : vector<48x16xf32> to vector<16x16xf32>
    %22 = arith.truncf %20 : vector<32x16xf32> to vector<32x16xbf16>
    %23 = arith.truncf %21 : vector<16x16xf32> to vector<16x16xbf16>
    %cst_19 = arith.constant dense<0.000000e+00> : vector<32x16xf32>
    %24 = tpu.matmul %22, %23, %cst_19 {dimension_numbers = #tpu.dot_dimension_numbers<[1], [0], [0], [1], [0, 0, 1, 1], [], []>} : vector<32x16xbf16>, vector<16x16xbf16>, vector<32x16xf32> -> vector<32x16xf32>
    %25 = vector.shape_cast %15 : vector<4x8x16xf32> to vector<32x16xf32>
    %26 = vector.extract_strided_slice %19 {offsets = [16, 0], sizes = [16, 16], strides = [1, 1]} : vector<48x16xf32> to vector<16x16xf32>
    %27 = arith.truncf %25 : vector<32x16xf32> to vector<32x16xbf16>
    %28 = arith.truncf %26 : vector<16x16xf32> to vector<16x16xbf16>
    %cst_20 = arith.constant dense<0.000000e+00> : vector<32x16xf32>
    %29 = tpu.matmul %27, %28, %cst_20 {dimension_numbers = #tpu.dot_dimension_numbers<[1], [0], [0], [1], [0, 0, 1, 1], [], []>} : vector<32x16xbf16>, vector<16x16xbf16>, vector<32x16xf32> -> vector<32x16xf32>
    %30 = arith.addf %24, %29 : vector<32x16xf32>
    %31 = vector.shape_cast %18 : vector<4x8x16xf32> to vector<32x16xf32>
    %32 = vector.extract_strided_slice %19 {offsets = [32, 0], sizes = [16, 16], strides = [1, 1]} : vector<48x16xf32> to vector<16x16xf32>
    %33 = arith.truncf %31 : vector<32x16xf32> to vector<32x16xbf16>
    %34 = arith.truncf %32 : vector<16x16xf32> to vector<16x16xbf16>
    %cst_21 = arith.constant dense<0.000000e+00> : vector<32x16xf32>
    %35 = tpu.matmul %33, %34, %cst_21 {dimension_numbers = #tpu.dot_dimension_numbers<[1], [0], [0], [1], [0, 0, 1, 1], [], []>} : vector<32x16xbf16>, vector<16x16xbf16>, vector<32x16xf32> -> vector<32x16xf32>
    %36 = arith.addf %30, %35 : vector<32x16xf32>
    %c0_22 = arith.constant 0 : index
    %c0_23 = arith.constant 0 : index
    %37 = vector.load %arg8[%c0_22, %c0_23] : memref<1x16xf32, #tpu.memory_space<vmem>>, vector<1x16xf32>
    %38 = vector.broadcast %37 : vector<1x16xf32> to vector<32x16xf32>
    %39 = arith.addf %36, %38 : vector<32x16xf32>
    %cst_24 = arith.constant 0.000000e+00 : f32
    %40 = vector.broadcast %cst_24 : f32 to vector<32x16xf32>
    %41 = arith.maximumf %39, %40 : vector<32x16xf32>
    %42 = vector.shape_cast %41 : vector<32x16xf32> to vector<4x8x16xf32>
    %cst_25 = arith.constant 1.000000e+00 : f32
    %43 = vector.broadcast %cst_25 : f32 to vector<4x8x1xf32>
    %44 = arith.subf %0, %43 : vector<4x8x1xf32>
    %cst_26 = arith.constant 9.990000e+02 : f32
    %45 = vector.broadcast %cst_26 : f32 to vector<4x8x1xf32>
    %46 = arith.mulf %44, %45 : vector<4x8x1xf32>
    %47 = vector.broadcast %46 : vector<4x8x1xf32> to vector<4x8x16xf32>
    %48 = arith.addf %42, %47 : vector<4x8x16xf32>
    %cst_27 = arith.constant dense<0xFF800000> : vector<4x16xf32>
    %49 = vector.multi_reduction <maximumf>, %48, %cst_27 [1] : vector<4x8x16xf32> to vector<4x16xf32>
    %50 = vector.shape_cast %49 : vector<4x16xf32> to vector<4x1x16xf32>
    %c0_28 = arith.constant 0 : index
    %c0_29 = arith.constant 0 : index
    %c0_30 = arith.constant 0 : index
    %51 = vector.load %arg9[%c0_28, %c0_29, %c0_30] : memref<4x1x16xf32, #tpu.memory_space<vmem>>, vector<4x1x16xf32>
    tpu.vector_store %arg9[%c0_28, %c0_29, %c0_30], %50 {strides = array<i32>} : memref<4x1x16xf32, #tpu.memory_space<vmem>>, vector<4x1x16xf32>,
    return
  }
  func.func @transform_0(%arg0: i32) -> (i32, i32, i32) {
    %c0_i32 = arith.constant 0 : i32
    %c0_i32_0 = arith.constant 0 : i32
    %c0_i32_1 = arith.constant 0 : i32
    return %arg0, %c0_i32, %c0_i32_0 : i32, i32, i32
  }
  func.func @transform_1(%arg0: i32) -> (i32, i32, i32) {
    %c0_i32 = arith.constant 0 : i32
    %c0_i32_0 = arith.constant 0 : i32
    %c0_i32_1 = arith.constant 0 : i32
    return %arg0, %c0_i32, %c0_i32_0 : i32, i32, i32
  }
  func.func @transform_2(%arg0: i32) -> (i32, i32, i32) {
    %c0_i32 = arith.constant 0 : i32
    %c0_i32_0 = arith.constant 0 : i32
    %c0_i32_1 = arith.constant 0 : i32
    return %arg0, %c0_i32, %c0_i32_0 : i32, i32, i32
  }
  func.func @transform_3(%arg0: i32) -> (i32, i32, i32) {
    %c0_i32 = arith.constant 0 : i32
    %c0_i32_0 = arith.constant 0 : i32
    %c0_i32_1 = arith.constant 0 : i32
    return %arg0, %c0_i32, %c0_i32_0 : i32, i32, i32
  }
  func.func @transform_4(%arg0: i32) -> (i32, i32, i32) {
    %c0_i32 = arith.constant 0 : i32
    %c0_i32_0 = arith.constant 0 : i32
    %c0_i32_1 = arith.constant 0 : i32
    return %arg0, %c0_i32, %c0_i32_0 : i32, i32, i32
  }
  func.func @transform_5(%arg0: i32) -> (i32, i32) {
    %c0_i32 = arith.constant 0 : i32
    %c0_i32_0 = arith.constant 0 : i32
    %c0_i32_1 = arith.constant 0 : i32
    return %c0_i32, %c0_i32_0 : i32, i32
  }
  func.func @transform_6(%arg0: i32) -> (i32, i32) {
    %c0_i32 = arith.constant 0 : i32
    %c0_i32_0 = arith.constant 0 : i32
    %c0_i32_1 = arith.constant 0 : i32
    return %c0_i32, %c0_i32_0 : i32, i32
  }
  func.func @transform_7(%arg0: i32) -> (i32, i32) {
    %c0_i32 = arith.constant 0 : i32
    %c0_i32_0 = arith.constant 0 : i32
    %c0_i32_1 = arith.constant 0 : i32
    return %c0_i32, %c0_i32_0 : i32, i32
  }
  func.func @transform_8(%arg0: i32) -> (i32, i32, i32) {
    %c0_i32 = arith.constant 0 : i32
    %c0_i32_0 = arith.constant 0 : i32
    %c0_i32_1 = arith.constant 0 : i32
    return %arg0, %c0_i32, %c0_i32_0 : i32, i32, i32
  }
}

module attributes {stable_mosaic.version = 11 : i64} {
  func.func @_bilstm_kernel(%arg0: i32, %arg1: memref<4x2x16xf32, #tpu.memory_space<vmem>>, %arg2: memref<16x128xf32, #tpu.memory_space<vmem>>, %arg3: memref<1x128xf32, #tpu.memory_space<vmem>>, %arg4: memref<16x64xf32, #tpu.memory_space<vmem>>, %arg5: memref<16x64xf32, #tpu.memory_space<vmem>>, %arg6: memref<2x4x2x16xf32, #tpu.memory_space<vmem>>, %arg7: memref<4x2x128xbf16, #tpu.memory_space<vmem>>) attributes {dimension_semantics = [#tpu.dimension_semantics<parallel>], iteration_bounds = array<i64: 1>, scalar_prefetch = 0 : i64, scratch_operands = 1 : i64, tpu.core_type = #tpu.core_type<tc>, window_params = [{transform_indices = @transform_0, window_bounds = array<i64: 4, 2, 16>}, {pipeline_mode = #tpu.pipeline_mode<synchronous>, transform_indices = @transform_1, window_bounds = array<i64: 16, 128>}, {pipeline_mode = #tpu.pipeline_mode<synchronous>, transform_indices = @transform_2, window_bounds = array<i64: 1, 128>}, {pipeline_mode = #tpu.pipeline_mode<synchronous>, transform_indices = @transform_3, window_bounds = array<i64: 16, 64>}, {pipeline_mode = #tpu.pipeline_mode<synchronous>, transform_indices = @transform_4, window_bounds = array<i64: 16, 64>}, {transform_indices = @transform_5, window_bounds = array<i64: 2, 4, 2, 16>}]} {
    %c0 = arith.constant 0 : index
    %c0_0 = arith.constant 0 : index
    %c0_1 = arith.constant 0 : index
    %0 = vector.load %arg1[%c0, %c0_0, %c0_1] : memref<4x2x16xf32, #tpu.memory_space<vmem>>, vector<4x2x16xf32>
    %1 = vector.shape_cast %0 : vector<4x2x16xf32> to vector<8x16xf32>
    %c0_2 = arith.constant 0 : index
    %c0_3 = arith.constant 0 : index
    %2 = vector.load %arg2[%c0_2, %c0_3] : memref<16x128xf32, #tpu.memory_space<vmem>>, vector<16x128xf32>
    %3 = arith.truncf %1 : vector<8x16xf32> to vector<8x16xbf16>
    %4 = arith.truncf %2 : vector<16x128xf32> to vector<16x128xbf16>
    %cst = arith.constant dense<0.000000e+00> : vector<8x128xf32>
    %5 = tpu.matmul %3, %4, %cst {dimension_numbers = #tpu.dot_dimension_numbers<[1], [0], [0], [1], [0, 0, 1, 1], [], []>} : vector<8x16xbf16>, vector<16x128xbf16>, vector<8x128xf32> -> vector<8x128xf32>
    %c0_4 = arith.constant 0 : index
    %c0_5 = arith.constant 0 : index
    %6 = vector.load %arg3[%c0_4, %c0_5] : memref<1x128xf32, #tpu.memory_space<vmem>>, vector<1x128xf32>
    %7 = vector.broadcast %6 : vector<1x128xf32> to vector<8x128xf32>
    %8 = arith.addf %5, %7 : vector<8x128xf32>
    %9 = vector.shape_cast %8 : vector<8x128xf32> to vector<4x2x128xf32>
    %10 = arith.truncf %9 : vector<4x2x128xf32> to vector<4x2x128xbf16>
    %c0_6 = arith.constant 0 : index
    %c0_7 = arith.constant 0 : index
    %c0_8 = arith.constant 0 : index
    %11 = vector.load %arg7[%c0_6, %c0_7, %c0_8] : memref<4x2x128xbf16, #tpu.memory_space<vmem>>, vector<4x2x128xbf16>
    tpu.vector_store %arg7[%c0_6, %c0_7, %c0_8], %10 {strides = array<i32>} : memref<4x2x128xbf16, #tpu.memory_space<vmem>>, vector<4x2x128xbf16>,
    %c0_9 = arith.constant 0 : index
    %c0_10 = arith.constant 0 : index
    %12 = vector.load %arg4[%c0_9, %c0_10] : memref<16x64xf32, #tpu.memory_space<vmem>>, vector<16x64xf32>
    %13 = arith.truncf %12 : vector<16x64xf32> to vector<16x64xbf16>
    %c0_11 = arith.constant 0 : index
    %c0_12 = arith.constant 0 : index
    %14 = vector.load %arg5[%c0_11, %c0_12] : memref<16x64xf32, #tpu.memory_space<vmem>>, vector<16x64xf32>
    %15 = arith.truncf %14 : vector<16x64xf32> to vector<16x64xbf16>
    %cst_13 = arith.constant 0.000000e+00 : f32
    %16 = vector.broadcast %cst_13 : f32 to vector<2x16xf32>
    %c0_i32 = arith.constant 0 : i32
    %c3_i32 = arith.constant 3 : i32
    %17 = arith.subi %c3_i32, %c0_i32 : i32
    %18 = arith.truncf %16 : vector<2x16xf32> to vector<2x16xbf16>
    %cst_14 = arith.constant dense<0.000000e+00> : vector<2x64xf32>
    %19 = tpu.matmul %18, %13, %cst_14 {dimension_numbers = #tpu.dot_dimension_numbers<[1], [0], [0], [1], [0, 0, 1, 1], [], []>} : vector<2x16xbf16>, vector<16x64xbf16>, vector<2x64xf32> -> vector<2x64xf32>
    %20 = arith.index_cast %c0_i32 : i32 to index
    %c0_15 = arith.constant 0 : index
    %c0_16 = arith.constant 0 : index
    %21 = vector.load %arg7[%20, %c0_15, %c0_16] : memref<4x2x128xbf16, #tpu.memory_space<vmem>>, vector<1x2x128xbf16>
    %22 = vector.shape_cast %21 : vector<1x2x128xbf16> to vector<2x128xbf16>
    %23 = vector.extract_strided_slice %22 {offsets = [0, 0], sizes = [2, 64], strides = [1, 1]} : vector<2x128xbf16> to vector<2x64xbf16>
    %24 = arith.extf %23 : vector<2x64xbf16> to vector<2x64xf32>
    %25 = arith.addf %19, %24 : vector<2x64xf32>
    %26 = arith.truncf %16 : vector<2x16xf32> to vector<2x16xbf16>
    %cst_17 = arith.constant dense<0.000000e+00> : vector<2x64xf32>
    %27 = tpu.matmul %26, %15, %cst_17 {dimension_numbers = #tpu.dot_dimension_numbers<[1], [0], [0], [1], [0, 0, 1, 1], [], []>} : vector<2x16xbf16>, vector<16x64xbf16>, vector<2x64xf32> -> vector<2x64xf32>
    %28 = arith.index_cast %17 : i32 to index
    %c0_18 = arith.constant 0 : index
    %c0_19 = arith.constant 0 : index
    %29 = vector.load %arg7[%28, %c0_18, %c0_19] : memref<4x2x128xbf16, #tpu.memory_space<vmem>>, vector<1x2x128xbf16>
    %30 = vector.shape_cast %29 : vector<1x2x128xbf16> to vector<2x128xbf16>
    %31 = vector.extract_strided_slice %30 {offsets = [0, 64], sizes = [2, 64], strides = [1, 1]} : vector<2x128xbf16> to vector<2x64xbf16>
    %32 = arith.extf %31 : vector<2x64xbf16> to vector<2x64xf32>
    %33 = arith.addf %27, %32 : vector<2x64xf32>
    %34 = vector.extract_strided_slice %25 {offsets = [0, 0], sizes = [2, 16], strides = [1, 1]} : vector<2x64xf32> to vector<2x16xf32>
    %35 = arith.negf %34 : vector<2x16xf32>
    %36 = math.exp %35 : vector<2x16xf32>
    %cst_20 = arith.constant 1.000000e+00 : f32
    %37 = vector.broadcast %cst_20 : f32 to vector<2x16xf32>
    %38 = arith.addf %37, %36 : vector<2x16xf32>
    %39 = arith.divf %37, %38 : vector<2x16xf32>
    %40 = vector.extract_strided_slice %25 {offsets = [0, 16], sizes = [2, 16], strides = [1, 1]} : vector<2x64xf32> to vector<2x16xf32>
    %41 = arith.negf %40 : vector<2x16xf32>
    %42 = math.exp %41 : vector<2x16xf32>
    %cst_21 = arith.constant 1.000000e+00 : f32
    %43 = vector.broadcast %cst_21 : f32 to vector<2x16xf32>
    %44 = arith.addf %43, %42 : vector<2x16xf32>
    %45 = arith.divf %43, %44 : vector<2x16xf32>
    %46 = vector.extract_strided_slice %25 {offsets = [0, 32], sizes = [2, 16], strides = [1, 1]} : vector<2x64xf32> to vector<2x16xf32>
    %47 = math.tanh %46 : vector<2x16xf32>
    %48 = vector.extract_strided_slice %25 {offsets = [0, 48], sizes = [2, 16], strides = [1, 1]} : vector<2x64xf32> to vector<2x16xf32>
    %49 = arith.negf %48 : vector<2x16xf32>
    %50 = math.exp %49 : vector<2x16xf32>
    %cst_22 = arith.constant 1.000000e+00 : f32
    %51 = vector.broadcast %cst_22 : f32 to vector<2x16xf32>
    %52 = arith.addf %51, %50 : vector<2x16xf32>
    %53 = arith.divf %51, %52 : vector<2x16xf32>
    %54 = arith.mulf %45, %16 : vector<2x16xf32>
    %55 = arith.mulf %39, %47 : vector<2x16xf32>
    %56 = arith.addf %54, %55 : vector<2x16xf32>
    %57 = math.tanh %56 : vector<2x16xf32>
    %58 = arith.mulf %53, %57 : vector<2x16xf32>
    %59 = vector.extract_strided_slice %33 {offsets = [0, 0], sizes = [2, 16], strides = [1, 1]} : vector<2x64xf32> to vector<2x16xf32>
    %60 = arith.negf %59 : vector<2x16xf32>
    %61 = math.exp %60 : vector<2x16xf32>
    %cst_23 = arith.constant 1.000000e+00 : f32
    %62 = vector.broadcast %cst_23 : f32 to vector<2x16xf32>
    %63 = arith.addf %62, %61 : vector<2x16xf32>
    %64 = arith.divf %62, %63 : vector<2x16xf32>
    %65 = vector.extract_strided_slice %33 {offsets = [0, 16], sizes = [2, 16], strides = [1, 1]} : vector<2x64xf32> to vector<2x16xf32>
    %66 = arith.negf %65 : vector<2x16xf32>
    %67 = math.exp %66 : vector<2x16xf32>
    %cst_24 = arith.constant 1.000000e+00 : f32
    %68 = vector.broadcast %cst_24 : f32 to vector<2x16xf32>
    %69 = arith.addf %68, %67 : vector<2x16xf32>
    %70 = arith.divf %68, %69 : vector<2x16xf32>
    %71 = vector.extract_strided_slice %33 {offsets = [0, 32], sizes = [2, 16], strides = [1, 1]} : vector<2x64xf32> to vector<2x16xf32>
    %72 = math.tanh %71 : vector<2x16xf32>
    %73 = vector.extract_strided_slice %33 {offsets = [0, 48], sizes = [2, 16], strides = [1, 1]} : vector<2x64xf32> to vector<2x16xf32>
    %74 = arith.negf %73 : vector<2x16xf32>
    %75 = math.exp %74 : vector<2x16xf32>
    %cst_25 = arith.constant 1.000000e+00 : f32
    %76 = vector.broadcast %cst_25 : f32 to vector<2x16xf32>
    %77 = arith.addf %76, %75 : vector<2x16xf32>
    %78 = arith.divf %76, %77 : vector<2x16xf32>
    %79 = arith.mulf %70, %16 : vector<2x16xf32>
    %80 = arith.mulf %64, %72 : vector<2x16xf32>
    %81 = arith.addf %79, %80 : vector<2x16xf32>
    %82 = math.tanh %81 : vector<2x16xf32>
    %83 = arith.mulf %78, %82 : vector<2x16xf32>
    %c0_26 = arith.constant 0 : index
    %84 = arith.index_cast %c0_i32 : i32 to index
    %c0_27 = arith.constant 0 : index
    %c0_28 = arith.constant 0 : index
    %85 = vector.load %arg6[%c0_26, %84, %c0_27, %c0_28] : memref<2x4x2x16xf32, #tpu.memory_space<vmem>>, vector<1x1x2x16xf32>
    %86 = vector.shape_cast %85 : vector<1x1x2x16xf32> to vector<2x16xf32>
    %87 = vector.shape_cast %58 : vector<2x16xf32> to vector<1x1x2x16xf32>
    tpu.vector_store %arg6[%c0_26, %84, %c0_27, %c0_28], %87 {strides = array<i32>} : memref<2x4x2x16xf32, #tpu.memory_space<vmem>>, vector<1x1x2x16xf32>,
    %c1 = arith.constant 1 : index
    %88 = arith.index_cast %17 : i32 to index
    %c0_29 = arith.constant 0 : index
    %c0_30 = arith.constant 0 : index
    %89 = vector.load %arg6[%c1, %88, %c0_29, %c0_30] : memref<2x4x2x16xf32, #tpu.memory_space<vmem>>, vector<1x1x2x16xf32>
    %90 = vector.shape_cast %89 : vector<1x1x2x16xf32> to vector<2x16xf32>
    %91 = vector.shape_cast %83 : vector<2x16xf32> to vector<1x1x2x16xf32>
    tpu.vector_store %arg6[%c1, %88, %c0_29, %c0_30], %91 {strides = array<i32>} : memref<2x4x2x16xf32, #tpu.memory_space<vmem>>, vector<1x1x2x16xf32>,
    %c1_i32 = arith.constant 1 : i32
    %c3_i32_31 = arith.constant 3 : i32
    %92 = arith.subi %c3_i32_31, %c1_i32 : i32
    %93 = arith.truncf %58 : vector<2x16xf32> to vector<2x16xbf16>
    %cst_32 = arith.constant dense<0.000000e+00> : vector<2x64xf32>
    %94 = tpu.matmul %93, %13, %cst_32 {dimension_numbers = #tpu.dot_dimension_numbers<[1], [0], [0], [1], [0, 0, 1, 1], [], []>} : vector<2x16xbf16>, vector<16x64xbf16>, vector<2x64xf32> -> vector<2x64xf32>
    %95 = arith.index_cast %c1_i32 : i32 to index
    %c0_33 = arith.constant 0 : index
    %c0_34 = arith.constant 0 : index
    %96 = vector.load %arg7[%95, %c0_33, %c0_34] : memref<4x2x128xbf16, #tpu.memory_space<vmem>>, vector<1x2x128xbf16>
    %97 = vector.shape_cast %96 : vector<1x2x128xbf16> to vector<2x128xbf16>
    %98 = vector.extract_strided_slice %97 {offsets = [0, 0], sizes = [2, 64], strides = [1, 1]} : vector<2x128xbf16> to vector<2x64xbf16>
    %99 = arith.extf %98 : vector<2x64xbf16> to vector<2x64xf32>
    %100 = arith.addf %94, %99 : vector<2x64xf32>
    %101 = arith.truncf %83 : vector<2x16xf32> to vector<2x16xbf16>
    %cst_35 = arith.constant dense<0.000000e+00> : vector<2x64xf32>
    %102 = tpu.matmul %101, %15, %cst_35 {dimension_numbers = #tpu.dot_dimension_numbers<[1], [0], [0], [1], [0, 0, 1, 1], [], []>} : vector<2x16xbf16>, vector<16x64xbf16>, vector<2x64xf32> -> vector<2x64xf32>
    %103 = arith.index_cast %92 : i32 to index
    %c0_36 = arith.constant 0 : index
    %c0_37 = arith.constant 0 : index
    %104 = vector.load %arg7[%103, %c0_36, %c0_37] : memref<4x2x128xbf16, #tpu.memory_space<vmem>>, vector<1x2x128xbf16>
    %105 = vector.shape_cast %104 : vector<1x2x128xbf16> to vector<2x128xbf16>
    %106 = vector.extract_strided_slice %105 {offsets = [0, 64], sizes = [2, 64], strides = [1, 1]} : vector<2x128xbf16> to vector<2x64xbf16>
    %107 = arith.extf %106 : vector<2x64xbf16> to vector<2x64xf32>
    %108 = arith.addf %102, %107 : vector<2x64xf32>
    %109 = vector.extract_strided_slice %100 {offsets = [0, 0], sizes = [2, 16], strides = [1, 1]} : vector<2x64xf32> to vector<2x16xf32>
    %110 = arith.negf %109 : vector<2x16xf32>
    %111 = math.exp %110 : vector<2x16xf32>
    %cst_38 = arith.constant 1.000000e+00 : f32
    %112 = vector.broadcast %cst_38 : f32 to vector<2x16xf32>
    %113 = arith.addf %112, %111 : vector<2x16xf32>
    %114 = arith.divf %112, %113 : vector<2x16xf32>
    %115 = vector.extract_strided_slice %100 {offsets = [0, 16], sizes = [2, 16], strides = [1, 1]} : vector<2x64xf32> to vector<2x16xf32>
    %116 = arith.negf %115 : vector<2x16xf32>
    %117 = math.exp %116 : vector<2x16xf32>
    %cst_39 = arith.constant 1.000000e+00 : f32
    %118 = vector.broadcast %cst_39 : f32 to vector<2x16xf32>
    %119 = arith.addf %118, %117 : vector<2x16xf32>
    %120 = arith.divf %118, %119 : vector<2x16xf32>
    %121 = vector.extract_strided_slice %100 {offsets = [0, 32], sizes = [2, 16], strides = [1, 1]} : vector<2x64xf32> to vector<2x16xf32>
    %122 = math.tanh %121 : vector<2x16xf32>
    %123 = vector.extract_strided_slice %100 {offsets = [0, 48], sizes = [2, 16], strides = [1, 1]} : vector<2x64xf32> to vector<2x16xf32>
    %124 = arith.negf %123 : vector<2x16xf32>
    %125 = math.exp %124 : vector<2x16xf32>
    %cst_40 = arith.constant 1.000000e+00 : f32
    %126 = vector.broadcast %cst_40 : f32 to vector<2x16xf32>
    %127 = arith.addf %126, %125 : vector<2x16xf32>
    %128 = arith.divf %126, %127 : vector<2x16xf32>
    %129 = arith.mulf %120, %56 : vector<2x16xf32>
    %130 = arith.mulf %114, %122 : vector<2x16xf32>
    %131 = arith.addf %129, %130 : vector<2x16xf32>
    %132 = math.tanh %131 : vector<2x16xf32>
    %133 = arith.mulf %128, %132 : vector<2x16xf32>
    %134 = vector.extract_strided_slice %108 {offsets = [0, 0], sizes = [2, 16], strides = [1, 1]} : vector<2x64xf32> to vector<2x16xf32>
    %135 = arith.negf %134 : vector<2x16xf32>
    %136 = math.exp %135 : vector<2x16xf32>
    %cst_41 = arith.constant 1.000000e+00 : f32
    %137 = vector.broadcast %cst_41 : f32 to vector<2x16xf32>
    %138 = arith.addf %137, %136 : vector<2x16xf32>
    %139 = arith.divf %137, %138 : vector<2x16xf32>
    %140 = vector.extract_strided_slice %108 {offsets = [0, 16], sizes = [2, 16], strides = [1, 1]} : vector<2x64xf32> to vector<2x16xf32>
    %141 = arith.negf %140 : vector<2x16xf32>
    %142 = math.exp %141 : vector<2x16xf32>
    %cst_42 = arith.constant 1.000000e+00 : f32
    %143 = vector.broadcast %cst_42 : f32 to vector<2x16xf32>
    %144 = arith.addf %143, %142 : vector<2x16xf32>
    %145 = arith.divf %143, %144 : vector<2x16xf32>
    %146 = vector.extract_strided_slice %108 {offsets = [0, 32], sizes = [2, 16], strides = [1, 1]} : vector<2x64xf32> to vector<2x16xf32>
    %147 = math.tanh %146 : vector<2x16xf32>
    %148 = vector.extract_strided_slice %108 {offsets = [0, 48], sizes = [2, 16], strides = [1, 1]} : vector<2x64xf32> to vector<2x16xf32>
    %149 = arith.negf %148 : vector<2x16xf32>
    %150 = math.exp %149 : vector<2x16xf32>
    %cst_43 = arith.constant 1.000000e+00 : f32
    %151 = vector.broadcast %cst_43 : f32 to vector<2x16xf32>
    %152 = arith.addf %151, %150 : vector<2x16xf32>
    %153 = arith.divf %151, %152 : vector<2x16xf32>
    %154 = arith.mulf %145, %81 : vector<2x16xf32>
    %155 = arith.mulf %139, %147 : vector<2x16xf32>
    %156 = arith.addf %154, %155 : vector<2x16xf32>
    %157 = math.tanh %156 : vector<2x16xf32>
    %158 = arith.mulf %153, %157 : vector<2x16xf32>
    %c0_44 = arith.constant 0 : index
    %159 = arith.index_cast %c1_i32 : i32 to index
    %c0_45 = arith.constant 0 : index
    %c0_46 = arith.constant 0 : index
    %160 = vector.load %arg6[%c0_44, %159, %c0_45, %c0_46] : memref<2x4x2x16xf32, #tpu.memory_space<vmem>>, vector<1x1x2x16xf32>
    %161 = vector.shape_cast %160 : vector<1x1x2x16xf32> to vector<2x16xf32>
    %162 = vector.shape_cast %133 : vector<2x16xf32> to vector<1x1x2x16xf32>
    tpu.vector_store %arg6[%c0_44, %159, %c0_45, %c0_46], %162 {strides = array<i32>} : memref<2x4x2x16xf32, #tpu.memory_space<vmem>>, vector<1x1x2x16xf32>,
    %c1_47 = arith.constant 1 : index
    %163 = arith.index_cast %92 : i32 to index
    %c0_48 = arith.constant 0 : index
    %c0_49 = arith.constant 0 : index
    %164 = vector.load %arg6[%c1_47, %163, %c0_48, %c0_49] : memref<2x4x2x16xf32, #tpu.memory_space<vmem>>, vector<1x1x2x16xf32>
    %165 = vector.shape_cast %164 : vector<1x1x2x16xf32> to vector<2x16xf32>
    %166 = vector.shape_cast %158 : vector<2x16xf32> to vector<1x1x2x16xf32>
    tpu.vector_store %arg6[%c1_47, %163, %c0_48, %c0_49], %166 {strides = array<i32>} : memref<2x4x2x16xf32, #tpu.memory_space<vmem>>, vector<1x1x2x16xf32>,
    %c2_i32 = arith.constant 2 : i32
    %c3_i32_50 = arith.constant 3 : i32
    %167 = arith.subi %c3_i32_50, %c2_i32 : i32
    %168 = arith.truncf %133 : vector<2x16xf32> to vector<2x16xbf16>
    %cst_51 = arith.constant dense<0.000000e+00> : vector<2x64xf32>
    %169 = tpu.matmul %168, %13, %cst_51 {dimension_numbers = #tpu.dot_dimension_numbers<[1], [0], [0], [1], [0, 0, 1, 1], [], []>} : vector<2x16xbf16>, vector<16x64xbf16>, vector<2x64xf32> -> vector<2x64xf32>
    %170 = arith.index_cast %c2_i32 : i32 to index
    %c0_52 = arith.constant 0 : index
    %c0_53 = arith.constant 0 : index
    %171 = vector.load %arg7[%170, %c0_52, %c0_53] : memref<4x2x128xbf16, #tpu.memory_space<vmem>>, vector<1x2x128xbf16>
    %172 = vector.shape_cast %171 : vector<1x2x128xbf16> to vector<2x128xbf16>
    %173 = vector.extract_strided_slice %172 {offsets = [0, 0], sizes = [2, 64], strides = [1, 1]} : vector<2x128xbf16> to vector<2x64xbf16>
    %174 = arith.extf %173 : vector<2x64xbf16> to vector<2x64xf32>
    %175 = arith.addf %169, %174 : vector<2x64xf32>
    %176 = arith.truncf %158 : vector<2x16xf32> to vector<2x16xbf16>
    %cst_54 = arith.constant dense<0.000000e+00> : vector<2x64xf32>
    %177 = tpu.matmul %176, %15, %cst_54 {dimension_numbers = #tpu.dot_dimension_numbers<[1], [0], [0], [1], [0, 0, 1, 1], [], []>} : vector<2x16xbf16>, vector<16x64xbf16>, vector<2x64xf32> -> vector<2x64xf32>
    %178 = arith.index_cast %167 : i32 to index
    %c0_55 = arith.constant 0 : index
    %c0_56 = arith.constant 0 : index
    %179 = vector.load %arg7[%178, %c0_55, %c0_56] : memref<4x2x128xbf16, #tpu.memory_space<vmem>>, vector<1x2x128xbf16>
    %180 = vector.shape_cast %179 : vector<1x2x128xbf16> to vector<2x128xbf16>
    %181 = vector.extract_strided_slice %180 {offsets = [0, 64], sizes = [2, 64], strides = [1, 1]} : vector<2x128xbf16> to vector<2x64xbf16>
    %182 = arith.extf %181 : vector<2x64xbf16> to vector<2x64xf32>
    %183 = arith.addf %177, %182 : vector<2x64xf32>
    %184 = vector.extract_strided_slice %175 {offsets = [0, 0], sizes = [2, 16], strides = [1, 1]} : vector<2x64xf32> to vector<2x16xf32>
    %185 = arith.negf %184 : vector<2x16xf32>
    %186 = math.exp %185 : vector<2x16xf32>
    %cst_57 = arith.constant 1.000000e+00 : f32
    %187 = vector.broadcast %cst_57 : f32 to vector<2x16xf32>
    %188 = arith.addf %187, %186 : vector<2x16xf32>
    %189 = arith.divf %187, %188 : vector<2x16xf32>
    %190 = vector.extract_strided_slice %175 {offsets = [0, 16], sizes = [2, 16], strides = [1, 1]} : vector<2x64xf32> to vector<2x16xf32>
    %191 = arith.negf %190 : vector<2x16xf32>
    %192 = math.exp %191 : vector<2x16xf32>
    %cst_58 = arith.constant 1.000000e+00 : f32
    %193 = vector.broadcast %cst_58 : f32 to vector<2x16xf32>
    %194 = arith.addf %193, %192 : vector<2x16xf32>
    %195 = arith.divf %193, %194 : vector<2x16xf32>
    %196 = vector.extract_strided_slice %175 {offsets = [0, 32], sizes = [2, 16], strides = [1, 1]} : vector<2x64xf32> to vector<2x16xf32>
    %197 = math.tanh %196 : vector<2x16xf32>
    %198 = vector.extract_strided_slice %175 {offsets = [0, 48], sizes = [2, 16], strides = [1, 1]} : vector<2x64xf32> to vector<2x16xf32>
    %199 = arith.negf %198 : vector<2x16xf32>
    %200 = math.exp %199 : vector<2x16xf32>
    %cst_59 = arith.constant 1.000000e+00 : f32
    %201 = vector.broadcast %cst_59 : f32 to vector<2x16xf32>
    %202 = arith.addf %201, %200 : vector<2x16xf32>
    %203 = arith.divf %201, %202 : vector<2x16xf32>
    %204 = arith.mulf %195, %131 : vector<2x16xf32>
    %205 = arith.mulf %189, %197 : vector<2x16xf32>
    %206 = arith.addf %204, %205 : vector<2x16xf32>
    %207 = math.tanh %206 : vector<2x16xf32>
    %208 = arith.mulf %203, %207 : vector<2x16xf32>
    %209 = vector.extract_strided_slice %183 {offsets = [0, 0], sizes = [2, 16], strides = [1, 1]} : vector<2x64xf32> to vector<2x16xf32>
    %210 = arith.negf %209 : vector<2x16xf32>
    %211 = math.exp %210 : vector<2x16xf32>
    %cst_60 = arith.constant 1.000000e+00 : f32
    %212 = vector.broadcast %cst_60 : f32 to vector<2x16xf32>
    %213 = arith.addf %212, %211 : vector<2x16xf32>
    %214 = arith.divf %212, %213 : vector<2x16xf32>
    %215 = vector.extract_strided_slice %183 {offsets = [0, 16], sizes = [2, 16], strides = [1, 1]} : vector<2x64xf32> to vector<2x16xf32>
    %216 = arith.negf %215 : vector<2x16xf32>
    %217 = math.exp %216 : vector<2x16xf32>
    %cst_61 = arith.constant 1.000000e+00 : f32
    %218 = vector.broadcast %cst_61 : f32 to vector<2x16xf32>
    %219 = arith.addf %218, %217 : vector<2x16xf32>
    %220 = arith.divf %218, %219 : vector<2x16xf32>
    %221 = vector.extract_strided_slice %183 {offsets = [0, 32], sizes = [2, 16], strides = [1, 1]} : vector<2x64xf32> to vector<2x16xf32>
    %222 = math.tanh %221 : vector<2x16xf32>
    %223 = vector.extract_strided_slice %183 {offsets = [0, 48], sizes = [2, 16], strides = [1, 1]} : vector<2x64xf32> to vector<2x16xf32>
    %224 = arith.negf %223 : vector<2x16xf32>
    %225 = math.exp %224 : vector<2x16xf32>
    %cst_62 = arith.constant 1.000000e+00 : f32
    %226 = vector.broadcast %cst_62 : f32 to vector<2x16xf32>
    %227 = arith.addf %226, %225 : vector<2x16xf32>
    %228 = arith.divf %226, %227 : vector<2x16xf32>
    %229 = arith.mulf %220, %156 : vector<2x16xf32>
    %230 = arith.mulf %214, %222 : vector<2x16xf32>
    %231 = arith.addf %229, %230 : vector<2x16xf32>
    %232 = math.tanh %231 : vector<2x16xf32>
    %233 = arith.mulf %228, %232 : vector<2x16xf32>
    %c0_63 = arith.constant 0 : index
    %234 = arith.index_cast %c2_i32 : i32 to index
    %c0_64 = arith.constant 0 : index
    %c0_65 = arith.constant 0 : index
    %235 = vector.load %arg6[%c0_63, %234, %c0_64, %c0_65] : memref<2x4x2x16xf32, #tpu.memory_space<vmem>>, vector<1x1x2x16xf32>
    %236 = vector.shape_cast %235 : vector<1x1x2x16xf32> to vector<2x16xf32>
    %237 = vector.shape_cast %208 : vector<2x16xf32> to vector<1x1x2x16xf32>
    tpu.vector_store %arg6[%c0_63, %234, %c0_64, %c0_65], %237 {strides = array<i32>} : memref<2x4x2x16xf32, #tpu.memory_space<vmem>>, vector<1x1x2x16xf32>,
    %c1_66 = arith.constant 1 : index
    %238 = arith.index_cast %167 : i32 to index
    %c0_67 = arith.constant 0 : index
    %c0_68 = arith.constant 0 : index
    %239 = vector.load %arg6[%c1_66, %238, %c0_67, %c0_68] : memref<2x4x2x16xf32, #tpu.memory_space<vmem>>, vector<1x1x2x16xf32>
    %240 = vector.shape_cast %239 : vector<1x1x2x16xf32> to vector<2x16xf32>
    %241 = vector.shape_cast %233 : vector<2x16xf32> to vector<1x1x2x16xf32>
    tpu.vector_store %arg6[%c1_66, %238, %c0_67, %c0_68], %241 {strides = array<i32>} : memref<2x4x2x16xf32, #tpu.memory_space<vmem>>, vector<1x1x2x16xf32>,
    %c3_i32_69 = arith.constant 3 : i32
    %c3_i32_70 = arith.constant 3 : i32
    %242 = arith.subi %c3_i32_70, %c3_i32_69 : i32
    %243 = arith.truncf %208 : vector<2x16xf32> to vector<2x16xbf16>
    %cst_71 = arith.constant dense<0.000000e+00> : vector<2x64xf32>
    %244 = tpu.matmul %243, %13, %cst_71 {dimension_numbers = #tpu.dot_dimension_numbers<[1], [0], [0], [1], [0, 0, 1, 1], [], []>} : vector<2x16xbf16>, vector<16x64xbf16>, vector<2x64xf32> -> vector<2x64xf32>
    %245 = arith.index_cast %c3_i32_69 : i32 to index
    %c0_72 = arith.constant 0 : index
    %c0_73 = arith.constant 0 : index
    %246 = vector.load %arg7[%245, %c0_72, %c0_73] : memref<4x2x128xbf16, #tpu.memory_space<vmem>>, vector<1x2x128xbf16>
    %247 = vector.shape_cast %246 : vector<1x2x128xbf16> to vector<2x128xbf16>
    %248 = vector.extract_strided_slice %247 {offsets = [0, 0], sizes = [2, 64], strides = [1, 1]} : vector<2x128xbf16> to vector<2x64xbf16>
    %249 = arith.extf %248 : vector<2x64xbf16> to vector<2x64xf32>
    %250 = arith.addf %244, %249 : vector<2x64xf32>
    %251 = arith.truncf %233 : vector<2x16xf32> to vector<2x16xbf16>
    %cst_74 = arith.constant dense<0.000000e+00> : vector<2x64xf32>
    %252 = tpu.matmul %251, %15, %cst_74 {dimension_numbers = #tpu.dot_dimension_numbers<[1], [0], [0], [1], [0, 0, 1, 1], [], []>} : vector<2x16xbf16>, vector<16x64xbf16>, vector<2x64xf32> -> vector<2x64xf32>
    %253 = arith.index_cast %242 : i32 to index
    %c0_75 = arith.constant 0 : index
    %c0_76 = arith.constant 0 : index
    %254 = vector.load %arg7[%253, %c0_75, %c0_76] : memref<4x2x128xbf16, #tpu.memory_space<vmem>>, vector<1x2x128xbf16>
    %255 = vector.shape_cast %254 : vector<1x2x128xbf16> to vector<2x128xbf16>
    %256 = vector.extract_strided_slice %255 {offsets = [0, 64], sizes = [2, 64], strides = [1, 1]} : vector<2x128xbf16> to vector<2x64xbf16>
    %257 = arith.extf %256 : vector<2x64xbf16> to vector<2x64xf32>
    %258 = arith.addf %252, %257 : vector<2x64xf32>
    %259 = vector.extract_strided_slice %250 {offsets = [0, 0], sizes = [2, 16], strides = [1, 1]} : vector<2x64xf32> to vector<2x16xf32>
    %260 = arith.negf %259 : vector<2x16xf32>
    %261 = math.exp %260 : vector<2x16xf32>
    %cst_77 = arith.constant 1.000000e+00 : f32
    %262 = vector.broadcast %cst_77 : f32 to vector<2x16xf32>
    %263 = arith.addf %262, %261 : vector<2x16xf32>
    %264 = arith.divf %262, %263 : vector<2x16xf32>
    %265 = vector.extract_strided_slice %250 {offsets = [0, 16], sizes = [2, 16], strides = [1, 1]} : vector<2x64xf32> to vector<2x16xf32>
    %266 = arith.negf %265 : vector<2x16xf32>
    %267 = math.exp %266 : vector<2x16xf32>
    %cst_78 = arith.constant 1.000000e+00 : f32
    %268 = vector.broadcast %cst_78 : f32 to vector<2x16xf32>
    %269 = arith.addf %268, %267 : vector<2x16xf32>
    %270 = arith.divf %268, %269 : vector<2x16xf32>
    %271 = vector.extract_strided_slice %250 {offsets = [0, 32], sizes = [2, 16], strides = [1, 1]} : vector<2x64xf32> to vector<2x16xf32>
    %272 = math.tanh %271 : vector<2x16xf32>
    %273 = vector.extract_strided_slice %250 {offsets = [0, 48], sizes = [2, 16], strides = [1, 1]} : vector<2x64xf32> to vector<2x16xf32>
    %274 = arith.negf %273 : vector<2x16xf32>
    %275 = math.exp %274 : vector<2x16xf32>
    %cst_79 = arith.constant 1.000000e+00 : f32
    %276 = vector.broadcast %cst_79 : f32 to vector<2x16xf32>
    %277 = arith.addf %276, %275 : vector<2x16xf32>
    %278 = arith.divf %276, %277 : vector<2x16xf32>
    %279 = arith.mulf %270, %206 : vector<2x16xf32>
    %280 = arith.mulf %264, %272 : vector<2x16xf32>
    %281 = arith.addf %279, %280 : vector<2x16xf32>
    %282 = math.tanh %281 : vector<2x16xf32>
    %283 = arith.mulf %278, %282 : vector<2x16xf32>
    %284 = vector.extract_strided_slice %258 {offsets = [0, 0], sizes = [2, 16], strides = [1, 1]} : vector<2x64xf32> to vector<2x16xf32>
    %285 = arith.negf %284 : vector<2x16xf32>
    %286 = math.exp %285 : vector<2x16xf32>
    %cst_80 = arith.constant 1.000000e+00 : f32
    %287 = vector.broadcast %cst_80 : f32 to vector<2x16xf32>
    %288 = arith.addf %287, %286 : vector<2x16xf32>
    %289 = arith.divf %287, %288 : vector<2x16xf32>
    %290 = vector.extract_strided_slice %258 {offsets = [0, 16], sizes = [2, 16], strides = [1, 1]} : vector<2x64xf32> to vector<2x16xf32>
    %291 = arith.negf %290 : vector<2x16xf32>
    %292 = math.exp %291 : vector<2x16xf32>
    %cst_81 = arith.constant 1.000000e+00 : f32
    %293 = vector.broadcast %cst_81 : f32 to vector<2x16xf32>
    %294 = arith.addf %293, %292 : vector<2x16xf32>
    %295 = arith.divf %293, %294 : vector<2x16xf32>
    %296 = vector.extract_strided_slice %258 {offsets = [0, 32], sizes = [2, 16], strides = [1, 1]} : vector<2x64xf32> to vector<2x16xf32>
    %297 = math.tanh %296 : vector<2x16xf32>
    %298 = vector.extract_strided_slice %258 {offsets = [0, 48], sizes = [2, 16], strides = [1, 1]} : vector<2x64xf32> to vector<2x16xf32>
    %299 = arith.negf %298 : vector<2x16xf32>
    %300 = math.exp %299 : vector<2x16xf32>
    %cst_82 = arith.constant 1.000000e+00 : f32
    %301 = vector.broadcast %cst_82 : f32 to vector<2x16xf32>
    %302 = arith.addf %301, %300 : vector<2x16xf32>
    %303 = arith.divf %301, %302 : vector<2x16xf32>
    %304 = arith.mulf %295, %231 : vector<2x16xf32>
    %305 = arith.mulf %289, %297 : vector<2x16xf32>
    %306 = arith.addf %304, %305 : vector<2x16xf32>
    %307 = math.tanh %306 : vector<2x16xf32>
    %308 = arith.mulf %303, %307 : vector<2x16xf32>
    %c0_83 = arith.constant 0 : index
    %309 = arith.index_cast %c3_i32_69 : i32 to index
    %c0_84 = arith.constant 0 : index
    %c0_85 = arith.constant 0 : index
    %310 = vector.load %arg6[%c0_83, %309, %c0_84, %c0_85] : memref<2x4x2x16xf32, #tpu.memory_space<vmem>>, vector<1x1x2x16xf32>
    %311 = vector.shape_cast %310 : vector<1x1x2x16xf32> to vector<2x16xf32>
    %312 = vector.shape_cast %283 : vector<2x16xf32> to vector<1x1x2x16xf32>
    tpu.vector_store %arg6[%c0_83, %309, %c0_84, %c0_85], %312 {strides = array<i32>} : memref<2x4x2x16xf32, #tpu.memory_space<vmem>>, vector<1x1x2x16xf32>,
    %c1_86 = arith.constant 1 : index
    %313 = arith.index_cast %242 : i32 to index
    %c0_87 = arith.constant 0 : index
    %c0_88 = arith.constant 0 : index
    %314 = vector.load %arg6[%c1_86, %313, %c0_87, %c0_88] : memref<2x4x2x16xf32, #tpu.memory_space<vmem>>, vector<1x1x2x16xf32>
    %315 = vector.shape_cast %314 : vector<1x1x2x16xf32> to vector<2x16xf32>
    %316 = vector.shape_cast %308 : vector<2x16xf32> to vector<1x1x2x16xf32>
    tpu.vector_store %arg6[%c1_86, %313, %c0_87, %c0_88], %316 {strides = array<i32>} : memref<2x4x2x16xf32, #tpu.memory_space<vmem>>, vector<1x1x2x16xf32>,
    %c4_i32 = arith.constant 4 : i32
    return
  }
  func.func @transform_0(%arg0: i32) -> (i32, i32, i32) {
    %c0_i32 = arith.constant 0 : i32
    %c0_i32_0 = arith.constant 0 : i32
    %c0_i32_1 = arith.constant 0 : i32
    return %c0_i32, %arg0, %c0_i32_0 : i32, i32, i32
  }
  func.func @transform_1(%arg0: i32) -> (i32, i32) {
    %c0_i32 = arith.constant 0 : i32
    %c0_i32_0 = arith.constant 0 : i32
    %c0_i32_1 = arith.constant 0 : i32
    return %c0_i32, %c0_i32_0 : i32, i32
  }
  func.func @transform_2(%arg0: i32) -> (i32, i32) {
    %c0_i32 = arith.constant 0 : i32
    %c0_i32_0 = arith.constant 0 : i32
    %c0_i32_1 = arith.constant 0 : i32
    return %c0_i32, %c0_i32_0 : i32, i32
  }
  func.func @transform_3(%arg0: i32) -> (i32, i32) {
    %c0_i32 = arith.constant 0 : i32
    %c0_i32_0 = arith.constant 0 : i32
    %c0_i32_1 = arith.constant 0 : i32
    return %c0_i32, %c0_i32_0 : i32, i32
  }
  func.func @transform_4(%arg0: i32) -> (i32, i32) {
    %c0_i32 = arith.constant 0 : i32
    %c0_i32_0 = arith.constant 0 : i32
    %c0_i32_1 = arith.constant 0 : i32
    return %c0_i32, %c0_i32_0 : i32, i32
  }
  func.func @transform_5(%arg0: i32) -> (i32, i32, i32, i32) {
    %c0_i32 = arith.constant 0 : i32
    %c0_i32_0 = arith.constant 0 : i32
    %c0_i32_1 = arith.constant 0 : i32
    %c0_i32_2 = arith.constant 0 : i32
    return %c0_i32, %c0_i32_0, %arg0, %c0_i32_1 : i32, i32, i32, i32
  }
}

module attributes {stable_mosaic.version = 11 : i64} {
  func.func @_att_output_kernel(%arg0: i32, %arg1: memref<1x4x1xf32, #tpu.memory_space<vmem>>, %arg2: memref<1x4x4xf32, #tpu.memory_space<vmem>>, %arg3: memref<1x4x4xf32, #tpu.memory_space<vmem>>, %arg4: memref<1x4x32xf32, #tpu.memory_space<vmem>>, %arg5: memref<1x4x1xf32, #tpu.memory_space<vmem>>, %arg6: memref<1x16xf32, #tpu.memory_space<vmem>>, %arg7: memref<48x16xf32, #tpu.memory_space<vmem>>, %arg8: memref<1x16xf32, #tpu.memory_space<vmem>>, %arg9: memref<1x1x16xf32, #tpu.memory_space<vmem>>) attributes {dimension_semantics = [#tpu.dimension_semantics<parallel>], iteration_bounds = array<i64: 2>, scalar_prefetch = 0 : i64, scratch_operands = 0 : i64, tpu.core_type = #tpu.core_type<tc>, window_params = [{transform_indices = @transform_0, window_bounds = array<i64: 1, 4, 1>}, {transform_indices = @transform_1, window_bounds = array<i64: 1, 4, 4>}, {transform_indices = @transform_2, window_bounds = array<i64: 1, 4, 4>}, {transform_indices = @transform_3, window_bounds = array<i64: 1, 4, 32>}, {transform_indices = @transform_4, window_bounds = array<i64: 1, 4, 1>}, {pipeline_mode = #tpu.pipeline_mode<synchronous>, transform_indices = @transform_5, window_bounds = array<i64: 1, 16>}, {pipeline_mode = #tpu.pipeline_mode<synchronous>, transform_indices = @transform_6, window_bounds = array<i64: 48, 16>}, {pipeline_mode = #tpu.pipeline_mode<synchronous>, transform_indices = @transform_7, window_bounds = array<i64: 1, 16>}, {transform_indices = @transform_8, window_bounds = array<i64: 1, 1, 16>}]} {
    %c0 = arith.constant 0 : index
    %c0_0 = arith.constant 0 : index
    %c0_1 = arith.constant 0 : index
    %0 = vector.load %arg5[%c0, %c0_0, %c0_1] : memref<1x4x1xf32, #tpu.memory_space<vmem>>, vector<1x4x1xf32>
    %c0_2 = arith.constant 0 : index
    %c0_3 = arith.constant 0 : index
    %c0_4 = arith.constant 0 : index
    %1 = vector.load %arg4[%c0_2, %c0_3, %c0_4] : memref<1x4x32xf32, #tpu.memory_space<vmem>>, vector<1x4x32xf32>
    %2 = vector.extract_strided_slice %1 {offsets = [0, 0, 0], sizes = [1, 4, 16], strides = [1, 1, 1]} : vector<1x4x32xf32> to vector<1x4x16xf32>
    %3 = vector.broadcast %0 : vector<1x4x1xf32> to vector<1x4x16xf32>
    %4 = arith.mulf %2, %3 : vector<1x4x16xf32>
    %5 = arith.truncf %4 : vector<1x4x16xf32> to vector<1x4x16xbf16>
    %c0_5 = arith.constant 0 : index
    %c0_6 = arith.constant 0 : index
    %c0_7 = arith.constant 0 : index
    %6 = vector.load %arg1[%c0_5, %c0_6, %c0_7] : memref<1x4x1xf32, #tpu.memory_space<vmem>>, vector<1x4x1xf32>
    %c0_8 = arith.constant 0 : index
    %c0_9 = arith.constant 0 : index
    %7 = vector.load %arg6[%c0_8, %c0_9] : memref<1x16xf32, #tpu.memory_space<vmem>>, vector<1x16xf32>
    %8 = vector.shape_cast %7 : vector<1x16xf32> to vector<1x1x16xf32>
    %9 = vector.broadcast %6 : vector<1x4x1xf32> to vector<1x4x16xf32>
    %10 = vector.broadcast %8 : vector<1x1x16xf32> to vector<1x4x16xf32>
    %11 = arith.mulf %9, %10 : vector<1x4x16xf32>
    %c0_10 = arith.constant 0 : index
    %c0_11 = arith.constant 0 : index
    %c0_12 = arith.constant 0 : index
    %12 = vector.load %arg2[%c0_10, %c0_11, %c0_12] : memref<1x4x4xf32, #tpu.memory_space<vmem>>, vector<1x4x4xf32>
    %13 = arith.truncf %12 : vector<1x4x4xf32> to vector<1x4x4xbf16>
    "tpu.trace_start"() <{level = 10 : i32, message = "bij,bjs->bis"}> : () -> ()
    %cst = arith.constant dense<0.000000e+00> : vector<1x4x16xf32>
    %14 = tpu.matmul %13, %5, %cst {dimension_numbers = #tpu.dot_dimension_numbers<[2], [1], [1], [2], [0, 0, 0, 1, 1, 2], [0], [0]>} : vector<1x4x4xbf16>, vector<1x4x16xbf16>, vector<1x4x16xf32> -> vector<1x4x16xf32>
    "tpu.trace_stop"() : () -> ()
    %15 = arith.addf %11, %14 : vector<1x4x16xf32>
    %c0_13 = arith.constant 0 : index
    %c0_14 = arith.constant 0 : index
    %c0_15 = arith.constant 0 : index
    %16 = vector.load %arg3[%c0_13, %c0_14, %c0_15] : memref<1x4x4xf32, #tpu.memory_space<vmem>>, vector<1x4x4xf32>
    %17 = arith.truncf %16 : vector<1x4x4xf32> to vector<1x4x4xbf16>
    "tpu.trace_start"() <{level = 10 : i32, message = "bij,bjs->bis"}> : () -> ()
    %cst_16 = arith.constant dense<0.000000e+00> : vector<1x4x16xf32>
    %18 = tpu.matmul %17, %5, %cst_16 {dimension_numbers = #tpu.dot_dimension_numbers<[2], [1], [1], [2], [0, 0, 0, 1, 1, 2], [0], [0]>} : vector<1x4x4xbf16>, vector<1x4x16xbf16>, vector<1x4x16xf32> -> vector<1x4x16xf32>
    "tpu.trace_stop"() : () -> ()
    %c0_17 = arith.constant 0 : index
    %c0_18 = arith.constant 0 : index
    %19 = vector.load %arg7[%c0_17, %c0_18] : memref<48x16xf32, #tpu.memory_space<vmem>>, vector<48x16xf32>
    %20 = vector.shape_cast %4 : vector<1x4x16xf32> to vector<4x16xf32>
    %21 = vector.extract_strided_slice %19 {offsets = [0, 0], sizes = [16, 16], strides = [1, 1]} : vector<48x16xf32> to vector<16x16xf32>
    %22 = arith.truncf %20 : vector<4x16xf32> to vector<4x16xbf16>
    %23 = arith.truncf %21 : vector<16x16xf32> to vector<16x16xbf16>
    %cst_19 = arith.constant dense<0.000000e+00> : vector<4x16xf32>
    %24 = tpu.matmul %22, %23, %cst_19 {dimension_numbers = #tpu.dot_dimension_numbers<[1], [0], [0], [1], [0, 0, 1, 1], [], []>} : vector<4x16xbf16>, vector<16x16xbf16>, vector<4x16xf32> -> vector<4x16xf32>
    %25 = vector.shape_cast %15 : vector<1x4x16xf32> to vector<4x16xf32>
    %26 = vector.extract_strided_slice %19 {offsets = [16, 0], sizes = [16, 16], strides = [1, 1]} : vector<48x16xf32> to vector<16x16xf32>
    %27 = arith.truncf %25 : vector<4x16xf32> to vector<4x16xbf16>
    %28 = arith.truncf %26 : vector<16x16xf32> to vector<16x16xbf16>
    %cst_20 = arith.constant dense<0.000000e+00> : vector<4x16xf32>
    %29 = tpu.matmul %27, %28, %cst_20 {dimension_numbers = #tpu.dot_dimension_numbers<[1], [0], [0], [1], [0, 0, 1, 1], [], []>} : vector<4x16xbf16>, vector<16x16xbf16>, vector<4x16xf32> -> vector<4x16xf32>
    %30 = arith.addf %24, %29 : vector<4x16xf32>
    %31 = vector.shape_cast %18 : vector<1x4x16xf32> to vector<4x16xf32>
    %32 = vector.extract_strided_slice %19 {offsets = [32, 0], sizes = [16, 16], strides = [1, 1]} : vector<48x16xf32> to vector<16x16xf32>
    %33 = arith.truncf %31 : vector<4x16xf32> to vector<4x16xbf16>
    %34 = arith.truncf %32 : vector<16x16xf32> to vector<16x16xbf16>
    %cst_21 = arith.constant dense<0.000000e+00> : vector<4x16xf32>
    %35 = tpu.matmul %33, %34, %cst_21 {dimension_numbers = #tpu.dot_dimension_numbers<[1], [0], [0], [1], [0, 0, 1, 1], [], []>} : vector<4x16xbf16>, vector<16x16xbf16>, vector<4x16xf32> -> vector<4x16xf32>
    %36 = arith.addf %30, %35 : vector<4x16xf32>
    %c0_22 = arith.constant 0 : index
    %c0_23 = arith.constant 0 : index
    %37 = vector.load %arg8[%c0_22, %c0_23] : memref<1x16xf32, #tpu.memory_space<vmem>>, vector<1x16xf32>
    %38 = vector.broadcast %37 : vector<1x16xf32> to vector<4x16xf32>
    %39 = arith.addf %36, %38 : vector<4x16xf32>
    %cst_24 = arith.constant 0.000000e+00 : f32
    %40 = vector.broadcast %cst_24 : f32 to vector<4x16xf32>
    %41 = arith.maximumf %39, %40 : vector<4x16xf32>
    %42 = vector.shape_cast %41 : vector<4x16xf32> to vector<1x4x16xf32>
    %cst_25 = arith.constant 1.000000e+00 : f32
    %43 = vector.broadcast %cst_25 : f32 to vector<1x4x1xf32>
    %44 = arith.subf %0, %43 : vector<1x4x1xf32>
    %cst_26 = arith.constant 9.990000e+02 : f32
    %45 = vector.broadcast %cst_26 : f32 to vector<1x4x1xf32>
    %46 = arith.mulf %44, %45 : vector<1x4x1xf32>
    %47 = vector.broadcast %46 : vector<1x4x1xf32> to vector<1x4x16xf32>
    %48 = arith.addf %42, %47 : vector<1x4x16xf32>
    %cst_27 = arith.constant dense<0xFF800000> : vector<1x16xf32>
    %49 = vector.multi_reduction <maximumf>, %48, %cst_27 [1] : vector<1x4x16xf32> to vector<1x16xf32>
    %50 = vector.shape_cast %49 : vector<1x16xf32> to vector<1x1x16xf32>
    %c0_28 = arith.constant 0 : index
    %c0_29 = arith.constant 0 : index
    %c0_30 = arith.constant 0 : index
    %51 = vector.load %arg9[%c0_28, %c0_29, %c0_30] : memref<1x1x16xf32, #tpu.memory_space<vmem>>, vector<1x1x16xf32>
    tpu.vector_store %arg9[%c0_28, %c0_29, %c0_30], %50 {strides = array<i32>} : memref<1x1x16xf32, #tpu.memory_space<vmem>>, vector<1x1x16xf32>,
    return
  }
  func.func @transform_0(%arg0: i32) -> (i32, i32, i32) {
    %c0_i32 = arith.constant 0 : i32
    %c0_i32_0 = arith.constant 0 : i32
    %c0_i32_1 = arith.constant 0 : i32
    return %arg0, %c0_i32, %c0_i32_0 : i32, i32, i32
  }
  func.func @transform_1(%arg0: i32) -> (i32, i32, i32) {
    %c0_i32 = arith.constant 0 : i32
    %c0_i32_0 = arith.constant 0 : i32
    %c0_i32_1 = arith.constant 0 : i32
    return %arg0, %c0_i32, %c0_i32_0 : i32, i32, i32
  }
  func.func @transform_2(%arg0: i32) -> (i32, i32, i32) {
    %c0_i32 = arith.constant 0 : i32
    %c0_i32_0 = arith.constant 0 : i32
    %c0_i32_1 = arith.constant 0 : i32
    return %arg0, %c0_i32, %c0_i32_0 : i32, i32, i32
  }
  func.func @transform_3(%arg0: i32) -> (i32, i32, i32) {
    %c0_i32 = arith.constant 0 : i32
    %c0_i32_0 = arith.constant 0 : i32
    %c0_i32_1 = arith.constant 0 : i32
    return %arg0, %c0_i32, %c0_i32_0 : i32, i32, i32
  }
  func.func @transform_4(%arg0: i32) -> (i32, i32, i32) {
    %c0_i32 = arith.constant 0 : i32
    %c0_i32_0 = arith.constant 0 : i32
    %c0_i32_1 = arith.constant 0 : i32
    return %arg0, %c0_i32, %c0_i32_0 : i32, i32, i32
  }
  func.func @transform_5(%arg0: i32) -> (i32, i32) {
    %c0_i32 = arith.constant 0 : i32
    %c0_i32_0 = arith.constant 0 : i32
    %c0_i32_1 = arith.constant 0 : i32
    return %c0_i32, %c0_i32_0 : i32, i32
  }
  func.func @transform_6(%arg0: i32) -> (i32, i32) {
    %c0_i32 = arith.constant 0 : i32
    %c0_i32_0 = arith.constant 0 : i32
    %c0_i32_1 = arith.constant 0 : i32
    return %c0_i32, %c0_i32_0 : i32, i32
  }
  func.func @transform_7(%arg0: i32) -> (i32, i32) {
    %c0_i32 = arith.constant 0 : i32
    %c0_i32_0 = arith.constant 0 : i32
    %c0_i32_1 = arith.constant 0 : i32
    return %c0_i32, %c0_i32_0 : i32, i32
  }
  func.func @transform_8(%arg0: i32) -> (i32, i32, i32) {
    %c0_i32 = arith.constant 0 : i32
    %c0_i32_0 = arith.constant 0 : i32
    %c0_i32_1 = arith.constant 0 : i32
    return %arg0, %c0_i32, %c0_i32_0 : i32, i32, i32
  }
}

</mosaic_0001>

<bundles_post_ra>
// kernel: custom-call.22
= control target key start
LH: loop header
LB: loop body
LE: loop exit
PB: predicated region body
PF: predicated region fallthrough
CT: control target
= control target key end

     0   :  { %5 = vsyncpa [#allocation3], 0  ;;  %s868_s0 = inlined_call_operand.vmem [shape: f32[8,8,8], index: 0, kind: input, shape index: {}]   ;;  %s869_s1 = inlined_call_operand.vmem [shape: f32[8,8,8], index: 1, kind: output, shape index: {0}]   ;;  %s870_s2 = inlined_call_operand.hbm [shape: s32[8,8], index: 2, kind: output, shape index: {1}]   ;;  %s871_s3 = inlined_call_operand.vmem [shape: s32[8,8], index: 3, kind: output, shape index: {2}]  }
   0x1   :  { %7 = vsyncpa [#allocation3 + $0x1], 0  ;;  %s697_s12 = smov 0   ;;  %s699_s13 = smov 0  }
   0x2   :  { %s701_s14 = smov 0   ;;  %s703_s15 = smov 0  }
   0x3 LB: > { %s718_s16 = sadd.s32 4294967295, %s669_s15   ;;  %s534_s17 = sadd.s32 4294967294, %s669_s15   ;;  %s669_s15 = sphi %s703_s15, %s877_s15   ;;  %s665_s14 = sphi %s701_s14, %s876_s14   ;;  %s661_s13 = sphi %s699_s13, %s875_s13   ;;  %s657_s12 = sphi %s697_s12, %s874_s12  }
   0x4   : > { %s722_s18 = sadd.s32 1, %s669_s15   ;;  %s17_s19 = sshrl.u32 %s669_s15, 3 }
   0x5   : > { %s18_s20 = sshrl.u32 %s722_s18, 3  ;;  %s22_s21 = sadd.s32 1, %s665_s14 }
   0x6   : > { %s19_s22 = ssub.s32 %s17_s19, %s18_s20  ;;  %p32_p0 = scmp.ne.s32.totalorder %s665_s14, %s661_s13 }
   0x7   : > { %p20_p1 = scmp.eq.s32.totalorder %s19_s22, 0  ;;  %p33_p2 = scmp.eq.s32.totalorder %s718_s16, 7 }
   0x8   : > { %p38_p3 = scmp.ne.s32.totalorder %s661_s13, %s657_s12  ;;  %p39_p4 = scmp.eq.s32.totalorder %s534_s17, 7 }
   0x9   : > { %s733_s23 = scalar_select %p20_p1, %s665_s14, %s22_s21  }
   0xa   : > { %p735_p5 = por %p33_p2, %p32_p0  ;;  %p739_p6 = por %p39_p4, %p38_p3 }
   0xb   : > { %p536_p7 = scmp.ge.s32.totalorder %s669_s15, 8 }
   0xc   : > { %s85_s26 = sand.u32 (!%p536_p7), 1, %s669_s15   ;;  %s538_s27 = sshll.u32 (!%p536_p7), %s669_s15, 3 }
   0xd   : > { %83 = sbr.rel (%p536_p7) target bundleno = 20 (0x14), region = 16  ;;  %s537_s28 = sshll.u32 (!%p536_p7), %s85_s26, 3 }
   0xe   : > { %s89_s4 = scalar_lea.vmem (!%p536_p7), %s868_s0, %s538_s27  ;;  %s87_s5 = scalar_lea.vmem (!%p536_p7), [#allocation0], %s537_s28 }
  0x12   : > { %v118_v0 = vld [vmem:[%s89_s4] sm:$0xff] }
  0x13   : > { %119 = vst [vmem:[%s87_s5] sm:$0xff] %v118_v0 }
  0x14 PF: > { %p539_p8 = scmp.ge.s32.totalorder %s669_s15, 1  ;;  %p124_p9 = scmp.lt.s32.totalorder %s669_s15, 9 }
  0x16   : > { %p125_p10 = pnand %p539_p8, %p124_p9 }
  0x18   : > { %128 = sbr.rel (%p125_p10) target bundleno = 430 (0x1ae), region = 54 }
  0x1d   : > { %s131_s6 = sand.u32 1, %s718_s16   ;;  %s146_s7 = sand.u32 1, %s661_s13   ;;  %v164_v1 = vlaneseq  ;;  %v675_v4 = vmov 0  }
  0x1e   : > { %s540_s8 = sshll.u32 %s131_s6, 3  ;;  %s755_s9 = sshll.u32 %s146_s7, 3 }
  0x1f   : > { %v758_v2 = vshrl.u32 %v164_v1, 7  ;;  %s133_s10 = scalar_lea.vmem [#allocation0], %s540_s8  ;;  %s760_s11 = scalar_lea.vmem [#allocation1], %s540_s8 }
  0x20   : > { %v157_v3 = vld [vmem:[%s133_s10] sm:$0xff]  ;;  %s159_s17 = sand.u32 7, %s718_s16   ;;  %s148_s19 = scalar_lea.vmem [#allocation2], %s755_s9 }
  0x21   : > { %158 = vst [vmem:[%s760_s11] sm:$0xff] %v157_v3  ;;  %168 = vst [vmem:[#allocation5] sm:$0xff] %v758_v2  ;;  %s768_s20 = scalar_lea.vmem %s148_s19, %s159_s17 [#allocation2]  ;;  %s154_s21 = scalar_lea.vmem [#allocation4], %s755_s9 }
  0x22   : > { %s773_s22 = scalar_lea.vmem %s154_s21, %s159_s17 [#allocation4]  ;;  %163 = vst [vmem:[%s768_s20] sm:$0x1] %v675_v4  ;;  %s776_s26 = smov 0  }
  0x23 LB: >> { %v783_v7 = vstv %s673_s26  ;;  %s225_s27 = ssub.s32 128, %s673_s26  ;;  %v231_v37 = vand.u32 127, %v164_v1  ;;  %s237_s28 = scalar_lea.vmem %s760_s11, %s673_s26 [#allocation1]  ;;  %s673_s26 = sphi %s776_s26, %s174_s26  }
  0x24   : >> { %vm183_vm0 = vcmp.ge.s32.totalorder %v758_v2, %v783_v7  ;;  %s243_s30 = scalar_lea.vmem [#allocation5], %s673_s26  ;;  %vm263_vm13 = vcmp.gt.s32.totalorder %v758_v2, %v783_v7  ;;  %s174_s26 = sadd.s32 1, %s673_s26  }
  0x25   : >> { %vm255_vm10 = vcmp.gt.s32.totalorder %v231_v37, %v783_v7  ;;  %vm232_vm11 = vcmp.eq.s32.totalorder %v231_v37, %v783_v7  ;;  %p171_p11 = scmp.ge.s32.totalorder %s174_s26, 8  }
  0x26   : >> { %vm267_vm15 = vmand %vm263_vm13, %vm232_vm11  ;;  %s548_s6 = sshll.u32 (%p171_p11), %s718_s16, 3 }
  0x27   : > { %s337_s17 = scalar_lea.vmem (%p171_p11), %s869_s1, %s548_s6 }
  0x28   : >> { %v179_v5 = vld [vmem:[%s760_s11] sm:$0xff]  ;;  %v239_v40 = vld [vmem:[%s237_s28] ss:$0 sm:$0xff] }
  0x29   : >> { %v180_v6 = vand.u32 2147483647, %v179_v5  ;;  %v234_v39 = vld [vmem:[%s768_s20] ss:$0 sm:$0xff] }
  0x2a   : >> { %v245_v41 = vld [vmem:[%s243_s30] ss:$0 sm:$0xff] }
  0x2b   : >> { %vm544_vm1 = vcmp.gt.f32.partialorder %v180_v6, -inf }
  0x2c   : >> { %vm187_vm2 = vmand %vm183_vm0, %vm544_vm1 }
  0x2d   : >> { %v188_v8 = vsel %vm187_vm2, %v758_v2, %v783_v7  ;;  %v189_v9 = vsel %vm187_vm2, %v180_v6, -inf }
  0x2e   : >> { %v190_v10 = vrot.slane %v189_v9, 1  ;;  %v191_v11 = vrot.slane %v188_v8, 1 }
  0x30   : >> { %vm192_vm3 = vcmp.ge.f32.partialorder %v190_v10, %v189_v9  ;;  %v195_v12 = vrot.slane %v190_v10, 1  ;;  %v196_v13 = vrot.slane %v191_v11, 1 }
  0x31   : >> { %v193_v14 = vsel %vm192_vm3, %v190_v10, %v189_v9  ;;  %v194_v15 = vsel %vm192_vm3, %v191_v11, %v188_v8 }
  0x32   : >> { %vm197_vm4 = vcmp.ge.f32.partialorder %v195_v12, %v193_v14  ;;  %v200_v16 = vrot.slane %v195_v12, 1  ;;  %v201_v17 = vrot.slane %v196_v13, 1 }
  0x33   : >> { %v198_v18 = vsel %vm197_vm4, %v195_v12, %v193_v14  ;;  %v199_v19 = vsel %vm197_vm4, %v196_v13, %v194_v15 }
  0x34   : >> { %vm202_vm5 = vcmp.ge.f32.partialorder %v200_v16, %v198_v18  ;;  %v205_v20 = vrot.slane %v200_v16, 1  ;;  %v206_v21 = vrot.slane %v201_v17, 1 }
  0x35   : >> { %v203_v22 = vsel %vm202_vm5, %v200_v16, %v198_v18  ;;  %v204_v23 = vsel %vm202_vm5, %v201_v17, %v199_v19 }
  0x36   : >> { %vm207_vm6 = vcmp.ge.f32.partialorder %v205_v20, %v203_v22  ;;  %v210_v24 = vrot.slane %v205_v20, 1  ;;  %v211_v25 = vrot.slane %v206_v21, 1 }
  0x37   : >> { %v208_v26 = vsel %vm207_vm6, %v205_v20, %v203_v22  ;;  %v209_v27 = vsel %vm207_vm6, %v206_v21, %v204_v23 }
  0x38   : >> { %vm212_vm7 = vcmp.ge.f32.partialorder %v210_v24, %v208_v26  ;;  %v215_v28 = vrot.slane %v210_v24, 1  ;;  %v216_v29 = vrot.slane %v211_v25, 1 }
  0x39   : >> { %v213_v30 = vsel %vm212_vm7, %v210_v24, %v208_v26  ;;  %v214_v31 = vsel %vm212_vm7, %v211_v25, %v209_v27 }
  0x3a   : >> { %vm217_vm8 = vcmp.ge.f32.partialorder %v215_v28, %v213_v30  ;;  %v220_v32 = vrot.slane %v215_v28, 1  ;;  %v221_v33 = vrot.slane %v216_v29, 1 }
  0x3b   : >> { %v218_v34 = vsel %vm217_vm8, %v215_v28, %v213_v30  ;;  %v219_v35 = vsel %vm217_vm8, %v216_v29, %v214_v31 }
  0x3c   : >> { %vm222_vm9 = vcmp.ge.f32.partialorder %v220_v32, %v218_v34 }
  0x3d   : >> { %v224_v36 = vsel %vm222_vm9, %v221_v33, %v219_v35 }
  0x3e   : >> { %226 = vrot.lane.b32.xlu0 %v224_v36, %s225_s27  ;;  %s374_s27 = sshrl.u32 (%p171_p11), %s718_s16, 3 }
  0x3f   : > { %s549_s26 = sshll.u32 (%p171_p11), %s374_s27, 7 }
  0xb0   : >> { %v227_v38 = vpop.permute.xlu0 %226 }
  0xb1   : >> { %553 = vpush %v227_v38 }
  0xe2   : >> { %s554_s29 = spop %553 }
  0xe3   : >> { %v233_v42 = vstv %s554_s29  ;;  %s238_s4 = scalar_lea.vmem %s760_s11, %s554_s29 [#allocation1]  ;;  %s244_s5 = scalar_lea.vmem [#allocation5], %s554_s29 }
  0xe4   : >> { %v240_v43 = vld [vmem:[%s238_s4] ss:$0 sm:$0xff]  ;;  %v235_v45 = vsel %vm232_vm11, %v233_v42, %v234_v39 }
  0xe5   : >> { %v246_v44 = vld [vmem:[%s244_s5] ss:$0 sm:$0xff]  ;;  %241 = vst [vmem:[%s238_s4] sm:$0x1] %v239_v40  ;;  %vm249_vm12 = vcmp.ne.f32.partialorder %v240_v43, 0.0  ;;  %236 = vst [vmem:[%s768_s20] sm:$0x1] %v235_v45  ;;  %v256_v52 = vsel %vm255_vm10, %v240_v43, 0.0 }
  0xe6   : >> { %247 = vst [vmem:[%s244_s5] sm:$0x1] %v245_v41  ;;  %242 = vst [vmem:[%s237_s28] sm:$0x1] %v240_v43  ;;  %s381_s20 = sshll.u32 (%p171_p11), %s148_s19, 4  ;;  %s328_s4 = scalar_lea.sflag (%p171_p11), [#allocation3], %s146_s7  ;;  %s382_s20 = int_to_ptr.vmem [resolvable:$true] %s381_s20 }
  0xe7   : >> { %248 = vst [vmem:[%s243_s30] sm:$0x1] %v246_v44  ;;  %vm250_vm14 = vmand %vm232_vm11, %vm249_vm12  ;;  %s379_s30 = scalar_lea.hbm (%p171_p11), %s870_s2, %s549_s26  ;;  %s605_s5 = scalar_lea.vmem (%p171_p11), %s382_s20, 128 }
  0xe8   : >> { %v251_v46 = vsel %vm250_vm14, %v240_v43, 1.0  ;;  %p606_p12 = scmp.ne.s32.totalorder (%p171_p11), %s382_s20, %s605_s5 }
  0xe9   : >> { %v264_v47 = vsel %vm263_vm13, %v251_v46, 1.0 }
  0xea   : >> { %603 = vrcp.f32 %v264_v47  ;;  %p607_p13 = pnand (%p171_p11), %p606_p12, %p735_p5 }
  0xec   : > { %p608_p0 = pneg (%p171_p11), %p607_p13 }
  0xed   : >> { %v260_v49 = vld [vmem:[%s760_s11] sm:$0xff] }
  0xee   : > { %v274_v56 = vld [vmem:[#allocation5] sm:$0xff] (%p171_p11) }
  0xf7   : >> { %v604_v48 = vpop.eup %603 }
  0xf8   : >> { %v266_v50 = vmul.f32 %v604_v48, %v260_v49 }
  0xfa   : >> { %v268_v51 = vsel %vm267_vm15, %v266_v50, 0.0 }
  0xfb   : >> { %269 = vadd.xlane.f32.xlu0 %v268_v51 }
 0x128   : > { %290 = vxpose.xlu0.b32.start.end [1/1] (short) (narrow) (%p171_p11), %v274_v56, 8 }
 0x184   : >> { %v270_v53 = vpop.xlane.xlu0 %269 }
 0x185   : >> { %v271_v54 = vmul.f32 %v270_v53, %v256_v52  ;;  %173 = sbr.rel (!%p171_p11) target bundleno = 35 (0x23), region = 214 }
 0x187   : >> { %v272_v55 = vsub.f32 %v266_v50, %v271_v54 }
 0x189   : >> { %273 = vst [vmem:[%s760_s11] sm:$0xff] %v272_v55 }
 0x190   : > { %v366_v57 = vld [vmem:[%s760_s11] sm:$0xff]  ;;  %s676_s11 = smov [#allocation2]  }
 0x191   : > { %367 = vst [vmem:[%s337_s17] sm:$0xff] %v366_v57  ;;  %s609_s6 = sshll.u32 %s676_s11, 4  ;;  %s610_s6 = int_to_ptr.vmem [resolvable:$false] %s609_s6 }
 0x192   : > { %s611_s8 = scalar_lea.vmem %s610_s6, 256  ;;  %p612_p1 = scmp.lt.s32.totalorder %s382_s20, %s610_s6 }
 0x193   : > { %p613_p2 = scmp.lt.s32.totalorder %s611_s8, %s605_s5 }
 0x195   : > { %p614_p3 = por %p613_p2, %p612_p1 }
 0x197   : > { %p615_p4 = pnand %p614_p3, %p608_p0 }
 0x199   : > { %618 = shalt.err (!%p615_p4)
}
 0x19a   : > { %s619_s19 = scalar_lea.hbm %s379_s30, 128  ;;  %s623_s17 = scalar_lea.hbm %s870_s2, 128 }
 0x19b   : > { %p620_p7 = scmp.ne.s32.totalorder %s379_s30, %s619_s19  ;;  %p624_p10 = scmp.lt.s32.totalorder %s379_s30, %s870_s2 }
 0x19c   : > { %p625_p11 = scmp.lt.s32.totalorder %s623_s17, %s619_s19 }
 0x19d   : > { %p621_p8 = pnand %p620_p7, %p735_p5 }
 0x19e   : > { %p626_p12 = por %p625_p11, %p624_p10 }
 0x19f   : > { %p622_p9 = pneg %p621_p8 }
 0x1a1   : > { %p627_p13 = pnand %p626_p12, %p622_p9 }
 0x1a3   : > { %630 = shalt.err (!%p627_p13)
}
 0x1a4   : > { %555 = dma.vmem_to_hbm [thread:$0]  (%p735_p5), %s382_s20, 128, %s379_s30, %s328_s4   ;;  %v306_v58 = vpop.trf.xlu0 }
 0x1a5   : > { %322 = vst [vmem:[%s773_s22] sm:$0x1] %v306_v58  ;;  %387 = sbr.rel (!%p735_p5) target bundleno = 430 (0x1ae), region = 104  ;;  %s550_s29 = sshll.u32 (%p735_p5), %s374_s27, 3 }
 0x1a6   : > { %s390_s6 = scalar_lea.vmem (%p735_p5), %s871_s3, %s550_s29 }
 0x1ac   : > { %v419_v59 = vld [vmem:[%s154_s21] sm:$0xff] }
 0x1ad   : > { %420 = vst [vmem:[%s390_s6] sm:$0xff] %v419_v59 }
 0x1ae PF: > { %p561_p0 = scmp.ge.s32.totalorder %s669_s15, 2  ;;  %s436_s22 = sand.u32 1, %s657_s12  }
 0x1af   : > { %s437_s16 = scalar_lea.sflag [#allocation3], %s436_s22 }
 0x1b0   : > { %p558_p5 = pnand %p561_p0, %p739_p6 }
 0x1b2   : > { %p559_p1 = pneg %p558_p5 }
 0x1b4   : > { %652 = dma.done.wait (%p559_p1), %s437_s16, 128  }
 0x1b5   : > { %654 = vsyncadd (%p559_p1), %s437_s16, 4294967168  ;;  %p10_p2 = scmp.ge.s32.totalorder %s722_s18, 10   ;;  %s874_s12 = smov %s661_s13 }
 0x1b6   : > { %s875_s13 = smov %s665_s14  ;;  %s876_s14 = smov %s733_s23 }
 0x1b7   : > { %s877_s15 = smov %s722_s18  ;;  %12 = sbr.rel (!%p10_p2) target bundleno = 3 (0x3), region = 225 }
 0x1bc   :  { %449 = vsyncpa [#allocation3], 1 }
 0x1bd   :  { %451 = vsyncpa [#allocation3 + $0x1], 1 }

// kernel: model_forward.7
= control target key start
LH: loop header
LB: loop body
LE: loop exit
PB: predicated region body
PF: predicated region fallthrough
CT: control target
= control target key end

     0   :  { %s955_s21 = smov 0   ;;  %s1033_s0 = inlined_call_operand.vmem [shape: f32[8,8,32], index: 0, kind: input, shape index: {}]   ;;  %s1034_s1 = inlined_call_operand.vmem [shape: f32[8,8,1], index: 1, kind: input, shape index: {}]   ;;  %s1035_s2 = inlined_call_operand.vmem [shape: f32[16,33], index: 2, kind: input, shape index: {}]   ;;  %s1036_s3 = inlined_call_operand.vmem [shape: f32[1,33], index: 3, kind: input, shape index: {}]   ;;  %s1037_s4 = inlined_call_operand.vmem [shape: f32[16,16], index: 4, kind: input, shape index: {}]   ;;  %s1038_s5 = inlined_call_operand.vmem [shape: f32[8,8,8], index: 5, kind: output, shape index: {0}]   ;;  %s1039_s6 = inlined_call_operand.vmem [shape: f32[8,8,1], index: 6, kind: output, shape index: {1}]  }
   0x1 LB: > { %s802_s22 = sadd.s32 4294967295, %s913_s21   ;;  %p806_p0 = scmp.ge.s32.totalorder %s913_s21, 1  ;;  %s913_s21 = sphi %s955_s21, %s17_s21  }
   0x2   : > { %p227_p1 = scmp.lt.s32.totalorder %s913_s21, 3 }
   0x4   : > { %p228_p2 = pnand %p806_p0, %p227_p1 }
   0x5   : > { %s807_s23 = sshll.u32 (!%p228_p2), %s802_s22, 2  ;;  %s916_s11 = smov (!%p228_p2), 112  }
   0x6   : > { %231 = sbr.rel (%p228_p2) target bundleno = 890 (0x37a), region = 40  ;;  %p268_p3 = scmp.lt.s32.totalorder (!%p228_p2), %s807_s23, 7 }
   0x7   : > { %s918_s18 = smov (!%p228_p2), 96  }
   0xb   : > { %v915_v0 = vmov 0   ;;  %s1041_s23 = smov (!%p268_p3, %s807_s23), 7  ;;  %v324_v5 = vld [vmem:[%s1035_s2] sm:$0xff]  ;;  %v325_v6 = vld [vmem:[%s1035_s2 + $0x8] sm:$0xff]  ;;  %vm342_vm0 = vcmask 130048   ;;  %v917_v36 = vmov 0.0  }
   0xc   : > { %890 = vset.pattern.permute.xlu1 %v915_v0  ;;  %889 = vset.pattern.permute.xlu0 %v915_v0  ;;  %s963_s24 = sshll.u32 %s1041_s23, 3  ;;  %v328_v7 = vpack.c.bf16 %v325_v6, %v324_v5  ;;  %v402_v24 = vld [vmem:[%s1037_s4] sm:$0xff]  ;;  %v403_v25 = vld [vmem:[%s1037_s4 + $0x8] sm:$0xff]  ;;  %vm919_vm1 = vmmov 0   ;;  %vm695_vm2 = vcmask 7168   ;;  %vm666_vm3 = vcmask 64512  }
   0xd   : > { %s277_s27 = scalar_lea.vmem %s1034_s1, %s963_s24  ;;  %s271_s10 = scalar_lea.vmem %s1033_s0, %s963_s24  ;;  %v406_v26 = vpack.c.bf16 %v403_v25, %v402_v24  ;;  %v815_v28 = vld [vmem:[%s1036_s3] ss:$0 sm:$0xff] }
   0xe   : > { %v294_v1 = vld [vmem:[%s277_s27 + $0x10] sm:$0xff]  ;;  %v292_v2 = vld [vmem:[%s277_s27] sm:$0xff]  ;;  %v295_v3 = vld [vmem:[%s277_s27 + $0x18] sm:$0xff]  ;;  %840 = vmatprep.subr.bf16.mxu0 %v328_v7  ;;  %s289_s22 = scalar_lea.vmem %s1039_s6, %s963_s24  ;;  %s283_s26 = scalar_lea.vmem %s1038_s5, %s963_s24 }
   0xf   : > { %312 = vperm.xlu1 %890, %v294_v1   ;;  %302 = vperm.xlu0 %889, %v292_v2   ;;  %v293_v4 = vld [vmem:[%s277_s27 + $0x8] sm:$0xff]  ;;  %v298_v10 = vld [vmem:[%s271_s10 + $0x10] sm:$0xff]  ;;  %v296_v11 = vld [vmem:[%s271_s10] sm:$0xff] }
  0x10   : > { %841 = vmatpush3.bf16.msra.mxu0 %v328_v7  ;;  %v299_v12 = vld [vmem:[%s271_s10 + $0x18] sm:$0xff]  ;;  %v297_v13 = vld [vmem:[%s271_s10 + $0x8] sm:$0xff]  ;;  %846 = vmatprep.subr.bf16.mxu1 %v406_v26 }
  0x11   : > { %847 = vmatpush3.bf16.msra.mxu1 %v406_v26  ;;  %852 = vmatprep.subr.bf16.mxu0 %v917_v36 }
  0x12   : > { %858 = vmatprep.subr.bf16.mxu1 %v917_v36 }
  0x13   : > { %317 = vperm.xlu1 %890, %v295_v3   ;;  %307 = vperm.xlu0 %889, %v293_v4  }
  0x8a   : > { %v313_v8 = vpop.permute.xlu1 %312  ;;  %v303_v9 = vpop.permute.xlu0 %302 }
  0x8b   : > { %v322_v16 = vmul.f32 %v313_v8, %v298_v10  ;;  %v320_v17 = vmul.f32 %v303_v9, %v296_v11 }
  0x8e   : > { %v318_v14 = vpop.permute.xlu1 %317  ;;  %v308_v15 = vpop.permute.xlu0 %307 }
  0x8f   : > { %v323_v18 = vmul.f32 %v318_v14, %v299_v12  ;;  %v321_v19 = vmul.f32 %v308_v15, %v297_v13 }
  0x91   : > { %v327_v20 = vpack.c.bf16 %v323_v18, %v322_v16  ;;  %v326_v21 = vpack.c.bf16 %v321_v19, %v320_v17 }
  0x93   : > { %340 = vrot.lane.b32.xlu1 %v327_v20, %s916_s11  ;;  %338 = vrot.lane.b32.xlu0 %v326_v21, %s916_s11 }
 0x105   : > { %v341_v22 = vpop.permute.xlu1 %340  ;;  %v339_v23 = vpop.permute.xlu0 %338 }
 0x106   : > { %842 = vmatprep.mubr.msk.bf16.mxu0 %vm342_vm0, %v339_v23 }
 0x107   : > { %843 = vmatmul.mubr.msk.bf16.vlgmr.msra.gmra.mxu0 %vm342_vm0, %v341_v22 }
 0x108   : > { %854 = vmatprep.mubr.msk.bf16.mxu0 %vm919_vm1, %v917_v36 }
 0x1c7   : > { %v844_v27 = vpop.f32.mrf.mxu0 }
 0x1c8   : > { %v392_v31 = vadd.f32 %v844_v27, %v815_v28 }
 0x1c9   : > { %v383_v29 = vpop.f32.mrf.mxu0 }
 0x1ca   : > { %v384_v30 = vadd.f32 %v815_v28, %v383_v29  ;;  %v675_v38 = vmul.f32 1.442695, %v392_v31 }
 0x1cb   : > { %v845_v32 = vpop.f32.mrf.mxu0 }
 0x1cc   : > { %v395_v33 = vadd.f32 %v845_v32, %v815_v28  ;;  %891 = vtanh.f32 %v384_v30  ;;  %v671_v37 = vmul.f32 1.442695, %v384_v30 }
 0x1cd   : > { %v386_v34 = vpop.f32.mrf.mxu0  ;;  %893 = vtanh.f32 %v392_v31 }
 0x1ce   : > { %v387_v35 = vadd.f32 %v815_v28, %v386_v34  ;;  %895 = vtanh.f32 %v395_v33  ;;  %v677_v41 = vmul.f32 1.442695, %v395_v33 }
 0x1d0   : > { %897 = vtanh.f32 %v387_v35  ;;  %v673_v39 = vmul.f32 1.442695, %v387_v35 }
 0x1d1   : > { %899 = vpow2.f32 %v671_v37 }
 0x1d2   : > { %901 = vpow2.f32 %v675_v38 }
 0x1d3   : > { %903 = vpow2.f32 %v673_v39 }
 0x1d4   : > { %905 = vpow2.f32 %v677_v41 }
 0x1d9   : > { %v892_v40 = vpop.eup %891 }
 0x1da   : > { %v466_v42 = vpack.c.bf16 %v892_v40, %v892_v40  ;;  %v894_v43 = vpop.eup %893 }
 0x1db   : > { %v896_v44 = vpop.eup %895  ;;  %v468_v47 = vpack.c.bf16 %v894_v43, %v894_v43 }
 0x1dc   : > { %471 = vrot.lane.b32.xlu0 %v466_v42, %s916_s11  ;;  %v405_v49 = vpack.c.bf16 %v896_v44, %v894_v43  ;;  %v469_v50 = vpack.c.bf16 %v896_v44, %v896_v44 }
 0x1dd   : > { %v898_v45 = vpop.eup %897 }
 0x1de   : > { %v467_v46 = vpack.c.bf16 %v898_v45, %v898_v45  ;;  %v404_v48 = vpack.c.bf16 %v898_v45, %v892_v40  ;;  %v900_v51 = vpop.eup %899 }
 0x1df   : > { %v902_v52 = vpop.eup %901 }
 0x1e0   : > { %520 = vrot.lane.b32.xlu1 %v467_v46, %s916_s11  ;;  %569 = vrot.lane.b32.xlu0 %v468_v47, %s916_s11  ;;  %v904_v53 = vpop.eup %903 }
 0x1e1   : > { %848 = vmatprep.mubr.msk.bf16.mxu1 %vm342_vm0, %v404_v48  ;;  %v906_v54 = vpop.eup %905 }
 0x1e2   : > { %849 = vmatmul.mubr.msk.bf16.vlgmr.msra.gmra.mxu1 %vm342_vm0, %v405_v49 }
 0x1e3   : > { %860 = vmatprep.mubr.msk.bf16.mxu1 %vm919_vm1, %v917_v36 }
 0x1e4   : > { %618 = vrot.lane.b32.xlu1 %v469_v50, %s916_s11  ;;  %683 = vrot.lane.b32.xlu0 %v900_v51, %s918_s18 }
 0x1e8   : > { %685 = vrot.lane.b32.xlu1 %v904_v53, %s918_s18  ;;  %687 = vrot.lane.b32.xlu0 %v902_v52, %s918_s18 }
 0x1ec   : > { %689 = vrot.lane.b32.xlu1 %v906_v54, %s918_s18 }
 0x24e   : > { %v472_v55 = vpop.permute.xlu0 %471 }
 0x24f   : > { %v477_v56 = vsel %vm342_vm0, %v472_v55, 0 }
 0x250   : > { %853 = vmatpush3.bf16.xpose.msra.mxu0 %v477_v56 }
 0x251   : > { %864 = vmatprep.subr.bf16.mxu0 %v917_v36 }
 0x252   : > { %v521_v57 = vpop.permute.xlu1 %520  ;;  %v570_v58 = vpop.permute.xlu0 %569 }
 0x253   : > { %v526_v59 = vsel %vm342_vm0, %v521_v57, 0  ;;  %v575_v5 = vsel %vm342_vm0, %v570_v58, 0 }
 0x254   : > { %859 = vmatpush3.bf16.xpose.msra.mxu1 %v526_v59 }
 0x255   : > { %870 = vmatprep.subr.bf16.mxu1 %v917_v36 }
 0x256   : > { %v619_v60 = vpop.permute.xlu1 %618  ;;  %v684_v61 = vpop.permute.xlu0 %683 }
 0x257   : > { %696 = vst.msk [vmem:[%s289_s22] sm:$0xff] %vm695_vm2, %v684_v61  ;;  %v624_v8 = vsel %vm342_vm0, %v619_v60, 0 }
 0x25a   : > { %v686_v62 = vpop.permute.xlu1 %685  ;;  %v688_v63 = vpop.permute.xlu0 %687 }
 0x25b   : > { %697 = vst.msk [vmem:[%s289_s22 + $0x8] sm:$0xff] %vm695_vm2, %v686_v62  ;;  %698 = vst.msk [vmem:[%s289_s22 + $0x10] sm:$0xff] %vm695_vm2, %v688_v63 }
 0x25e   : > { %v690_v0 = vpop.permute.xlu1 %689 }
 0x25f   : > { %699 = vst.msk [vmem:[%s289_s22 + $0x18] sm:$0xff] %vm695_vm2, %v690_v0 }
 0x2a2   : > { %v850_v1 = vpop.f32.mrf.mxu1 }
 0x2a3   : > { %v464_v9 = vpack.c.bf16 %v850_v1, %v850_v1 }
 0x2a4   : > { %v447_v2 = vpop.f32.mrf.mxu1 }
 0x2a5   : > { %v462_v3 = vpack.c.bf16 %v447_v2, %v447_v2 }
 0x2a6   : > { %v851_v4 = vpop.f32.mrf.mxu1 }
 0x2a7   : > { %855 = vmatmul.mubr.msk.bf16.vlgmr.msra.gmra.mxu0 %vm342_vm0, %v462_v3  ;;  %v465_v10 = vpack.c.bf16 %v851_v4, %v851_v4 }
 0x2a8   : > { %865 = vmatpush3.bf16.xpose.msra.mxu0 %v575_v5  ;;  %v450_v6 = vpop.f32.mrf.mxu1  ;;  %866 = vmatprep.mubr.msk.bf16.mxu0 %vm919_vm1, %v917_v36 }
 0x2a9   : > { %v463_v7 = vpack.c.bf16 %v450_v6, %v450_v6 }
 0x2ab   : > { %861 = vmatmul.mubr.msk.bf16.vlgmr.msra.gmra.mxu1 %vm342_vm0, %v463_v7 }
 0x2ac   : > { %871 = vmatpush3.bf16.xpose.msra.mxu1 %v624_v8  ;;  %872 = vmatprep.mubr.msk.bf16.mxu1 %vm919_vm1, %v917_v36 }
 0x2af   : > { %867 = vmatmul.mubr.msk.bf16.vlgmr.msra.gmra.mxu0 %vm342_vm0, %v464_v9 }
 0x2b3   : > { %873 = vmatmul.mubr.msk.bf16.vlgmr.msra.gmra.mxu1 %vm342_vm0, %v465_v10 }
 0x367   : > { %v513_v11 = vpop.f32.mrf.mxu0 }
 0x368   : > { %667 = vst.msk [vmem:[%s283_s26] sm:$0xff] %vm666_vm3, %v513_v11 }
 0x369   : > { %v856_v12 = vpop.f32.mrf.mxu0 }
 0x36b   : > { %v516_v13 = vpop.f32.mrf.mxu0  ;;  %v562_v14 = vpop.f32.mrf.mxu1 }
 0x36c   : > { %668 = vst.msk [vmem:[%s283_s26 + $0x8] sm:$0xff] %vm666_vm3, %v562_v14 }
 0x36d   : > { %v857_v15 = vpop.f32.mrf.mxu0  ;;  %v862_v16 = vpop.f32.mrf.mxu1 }
 0x36f   : > { %v565_v17 = vpop.f32.mrf.mxu1  ;;  %v611_v18 = vpop.f32.mrf.mxu0 }
 0x370   : > { %669 = vst.msk [vmem:[%s283_s26 + $0x10] sm:$0xff] %vm666_vm3, %v611_v18 }
 0x371   : > { %v863_v19 = vpop.f32.mrf.mxu1  ;;  %v868_v20 = vpop.f32.mrf.mxu0 }
 0x373   : > { %v614_v21 = vpop.f32.mrf.mxu0  ;;  %v660_v22 = vpop.f32.mrf.mxu1 }
 0x374   : > { %670 = vst.msk [vmem:[%s283_s26 + $0x18] sm:$0xff] %vm666_vm3, %v660_v22 }
 0x375   : > { %v869_v23 = vpop.f32.mrf.mxu0  ;;  %v874_v24 = vpop.f32.mrf.mxu1 }
 0x377   : > { %v663_v25 = vpop.f32.mrf.mxu1 }
 0x379   : > { %v875_v26 = vpop.f32.mrf.mxu1 }
 0x37a PF: > { %s17_s21 = sadd.s32 1, %s913_s21  }
 0x37b   : > { %p14_p4 = scmp.ge.s32.totalorder %s17_s21, 4  }
 0x37d   :  { %16 = sbr.rel (!%p14_p4) target bundleno = 1 (0x1), region = 85 }

// kernel: custom-call.24
= control target key start
LH: loop header
LB: loop body
LE: loop exit
PB: predicated region body
PF: predicated region fallthrough
CT: control target
= control target key end

     0   :  { %s387_s6 = smov 0   ;;  %s389_s7 = smov 0   ;;  %s445_s0 = inlined_call_operand.vmem [shape: f32[8,1,8,8], index: 0, kind: input, shape index: {}]   ;;  %s446_s1 = inlined_call_operand.vmem [shape: f32[8,1,8,8], index: 1, kind: output, shape index: {}]  }
   0x1   :  { %s391_s8 = smov 0  }
   0x2 LB: > { %s313_s9 = sadd.s32 4294967295, %s374_s8   ;;  %s33_s10 = sadd.s32 1, %s370_s7  ;;  %s374_s8 = sphi %s391_s8, %s7_s8   ;;  %s370_s7 = sphi %s389_s7, %s448_s7   ;;  %s366_s6 = sphi %s387_s6, %s447_s6  }
   0x3   : > { %p35_p0 = scmp.ge.s32.totalorder %s33_s10, 8  ;;  %p315_p1 = scmp.ge.s32.totalorder %s374_s8, 8 }
   0x4   : > { %s49_s11 = sand.u32 (!%p315_p1), 1, %s374_s8   ;;  %s317_s12 = sshll.u32 (!%p315_p1), %s370_s7, 3 }
   0x5   : > { %s450_s10 = smov (%p35_p0, %s33_s10), 0  ;;  %47 = sbr.rel (%p315_p1) target bundleno = 12 (0xc), region = 16 }
   0x6   : > { %s316_s13 = sshll.u32 (!%p315_p1), %s49_s11, 3  ;;  %s56_s16 = scalar_lea.vmem (!%p315_p1), %s445_s0, %s317_s12 }
   0x7   : > { %s51_s17 = scalar_lea.vmem (!%p315_p1), [#allocation0], %s316_s13 }
   0xa   : > { %v85_v0 = vld [vmem:[%s56_s16] sm:$0xff] }
   0xb   : > { %86 = vst [vmem:[%s51_s17] sm:$0xff] %v85_v0 }
   0xc PF: > { %p318_p2 = scmp.ge.s32.totalorder %s374_s8, 1  ;;  %p91_p3 = scmp.lt.s32.totalorder %s374_s8, 9 }
   0xe   : > { %p92_p4 = pnand %p318_p2, %p91_p3 }
  0x10   : > { %95 = sbr.rel (%p92_p4) target bundleno = 1182 (0x49e), region = 54 }
  0x15   : > { %s98_s18 = sand.u32 1, %s313_s9   ;;  %v109_v1 = vlaneseq  ;;  %v376_v10 = vmov -1.0   ;;  %s322_s21 = sshll.u32 %s366_s6, 3 }
  0x16   : > { %s319_s19 = sshll.u32 %s98_s18, 3  ;;  %s220_s24 = scalar_lea.vmem %s446_s1, %s322_s21 }
  0x17   : > { %v414_v2 = vand.u32 127, %v109_v1  ;;  %v113_v3 = vshrl.u32 %v109_v1, 7  ;;  %s100_s20 = scalar_lea.vmem [#allocation0], %s319_s19 }
  0x18   : > { %v116_v4 = vld [vmem:[%s100_s20] sm:$0xff] }
  0x19   : > { %vm111_vm0 = vcmp.lt.s32.totalorder %v414_v2, 8  ;;  %vm115_vm1 = vcmp.eq.s32.totalorder %v113_v3, %v414_v2  ;;  %vm120_vm2 = vcmp.ge.s32.totalorder %v113_v3, %v414_v2  ;;  %vm134_vm4 = vcmp.eq.s32.totalorder %v414_v2, 0 }
  0x1a   : > { %v117_v5 = vsel %vm115_vm1, %v116_v4, 0.0  ;;  %vm121_vm3 = vmand %vm120_vm2, %vm111_vm0  ;;  %vm131_vm5 = vcmp.eq.s32.totalorder %v414_v2, %v113_v3  ;;  %v135_v11 = vsel %vm134_vm4, 1.0, %v376_v10  ;;  %vm142_vm6 = vcmp.eq.s32.totalorder %v414_v2, 1 }
  0x1b   : > { %v122_v6 = vsel %vm121_vm3, %v116_v4, 0.0  ;;  %118 = vadd.xlane.f32.xlu0 %v117_v5  ;;  %v136_v12 = vsel %vm131_vm5, %v135_v11, 0.0  ;;  %vm152_vm7 = vcmp.eq.s32.totalorder %v414_v2, 2  ;;  %vm162_vm8 = vcmp.eq.s32.totalorder %v414_v2, 3 }
  0x1c   : > { %vm172_vm9 = vcmp.eq.s32.totalorder %v414_v2, 4  ;;  %vm182_vm10 = vcmp.eq.s32.totalorder %v414_v2, 5  ;;  %vm192_vm11 = vcmp.eq.s32.totalorder %v414_v2, 6  ;;  %vm202_vm12 = vcmp.eq.s32.totalorder %v414_v2, 7 }
  0xa4   : > { %v419_v7 = vpop.xlane.xlu0 %118 }
  0xa5   : > { %350 = vrcp.f32 %v419_v7  ;;  %vm209_vm13 = vweird.f32 %v419_v7 }
  0xb2   : > { %v351_v8 = vpop.eup %350 }
  0xb3   : > { %v124_v9 = vmul.f32 %v351_v8, %v122_v6 }
  0xb5   : > { %125 = vst [vmem:[#allocation2] sm:$0xff] %v124_v9 }
  0xbc   : > { %v138_v13 = vld [vmem:[#allocation2 + $0x1] ss:$0 sm:$0xff]  ;;  %v148_v16 = vld [vmem:[#allocation2 + $0x2] ss:$0 sm:$0xff]  ;;  %v158_v21 = vld [vmem:[#allocation2 + $0x3] ss:$0 sm:$0xff] }
  0xbd   : > { %v139_v14 = vxor.u32 2147483648, %v138_v13  ;;  %v149_v18 = vxor.u32 2147483648, %v148_v16  ;;  %v159_v23 = vxor.u32 2147483648, %v158_v21  ;;  %v168_v26 = vld [vmem:[#allocation2 + $0x4] ss:$0 sm:$0xff] }
  0xbe   : > { %v169_v28 = vxor.u32 2147483648, %v168_v26  ;;  %v178_v31 = vld [vmem:[#allocation2 + $0x5] ss:$0 sm:$0xff]  ;;  %v188_v36 = vld [vmem:[#allocation2 + $0x6] ss:$0 sm:$0xff] }
  0xbf   : > { %v143_v15 = vmul.f32 %v139_v14, %v136_v12  ;;  %v179_v33 = vxor.u32 2147483648, %v178_v31  ;;  %v189_v38 = vxor.u32 2147483648, %v188_v36  ;;  %v198_v41 = vld [vmem:[#allocation2 + $0x7] ss:$0 sm:$0xff] }
  0xc0   : > { %v199_v43 = vxor.u32 2147483648, %v198_v41 }
  0xc1   : > { %144 = vadd.xlane.f32.xlu0 %v143_v15 }
 0x14a   : > { %v145_v17 = vpop.xlane.xlu0 %144 }
 0x14b   : > { %v146_v19 = vsel %vm142_vm6, %v145_v17, %v136_v12 }
 0x14c   : > { %v153_v20 = vmul.f32 %v149_v18, %v146_v19 }
 0x14e   : > { %154 = vadd.xlane.f32.xlu1 %v153_v20 }
 0x1d7   : > { %v155_v22 = vpop.xlane.xlu1 %154 }
 0x1d8   : > { %v156_v24 = vsel %vm152_vm7, %v155_v22, %v146_v19 }
 0x1d9   : > { %v163_v25 = vmul.f32 %v159_v23, %v156_v24 }
 0x1db   : > { %164 = vadd.xlane.f32.xlu1 %v163_v25 }
 0x264   : > { %v165_v27 = vpop.xlane.xlu1 %164 }
 0x265   : > { %v166_v29 = vsel %vm162_vm8, %v165_v27, %v156_v24 }
 0x266   : > { %v173_v30 = vmul.f32 %v169_v28, %v166_v29 }
 0x268   : > { %174 = vadd.xlane.f32.xlu0 %v173_v30 }
 0x2f1   : > { %v175_v32 = vpop.xlane.xlu0 %174 }
 0x2f2   : > { %v176_v34 = vsel %vm172_vm9, %v175_v32, %v166_v29 }
 0x2f3   : > { %v183_v35 = vmul.f32 %v179_v33, %v176_v34 }
 0x2f5   : > { %184 = vadd.xlane.f32.xlu1 %v183_v35 }
 0x37e   : > { %v185_v37 = vpop.xlane.xlu1 %184 }
 0x37f   : > { %v186_v39 = vsel %vm182_vm10, %v185_v37, %v176_v34 }
 0x380   : > { %v193_v40 = vmul.f32 %v189_v38, %v186_v39 }
 0x382   : > { %194 = vadd.xlane.f32.xlu0 %v193_v40 }
 0x40b   : > { %v195_v42 = vpop.xlane.xlu0 %194 }
 0x40c   : > { %v196_v44 = vsel %vm192_vm11, %v195_v42, %v186_v39 }
 0x40d   : > { %v203_v45 = vmul.f32 %v199_v43, %v196_v44 }
 0x40f   : > { %204 = vadd.xlane.f32.xlu1 %v203_v45 }
 0x498   : > { %v205_v46 = vpop.xlane.xlu1 %204 }
 0x499   : > { %v206_v47 = vsel %vm202_vm12, %v205_v46, %v196_v44 }
 0x49a   : > { %v208_v48 = vmul.f32 %v351_v8, %v206_v47 }
 0x49c   : > { %v210_v49 = vsel %vm209_vm13, %v206_v47, %v208_v48 }
 0x49d   : > { %250 = vst [vmem:[%s220_s24] sm:$0xff] %v210_v49 }
 0x49e PF: > { %s7_s8 = sadd.s32 1, %s374_s8   ;;  %s447_s6 = smov %s370_s7 }
 0x49f   : > { %p4_p5 = scmp.ge.s32.totalorder %s7_s8, 10   ;;  %s448_s7 = smov %s450_s10 }
 0x4a1   :  { %6 = sbr.rel (!%p4_p5) target bundleno = 2 (0x2), region = 125 }

// kernel: custom-call.23
= control target key start
LH: loop header
LB: loop body
LE: loop exit
PB: predicated region body
PF: predicated region fallthrough
CT: control target
= control target key end

     0   :  { %s386_s6 = smov 0   ;;  %s388_s7 = smov 0   ;;  %s444_s0 = inlined_call_operand.vmem [shape: f32[8,1,8,8], index: 0, kind: input, shape index: {}]   ;;  %s445_s1 = inlined_call_operand.vmem [shape: f32[8,1,8,8], index: 1, kind: output, shape index: {}]  }
   0x1   :  { %s390_s8 = smov 0  }
   0x2 LB: > { %s312_s9 = sadd.s32 4294967295, %s373_s8   ;;  %s33_s10 = sadd.s32 1, %s369_s7  ;;  %s373_s8 = sphi %s390_s8, %s7_s8   ;;  %s369_s7 = sphi %s388_s7, %s447_s7   ;;  %s365_s6 = sphi %s386_s6, %s446_s6  }
   0x3   : > { %p35_p0 = scmp.ge.s32.totalorder %s33_s10, 8  ;;  %p314_p1 = scmp.ge.s32.totalorder %s373_s8, 8 }
   0x4   : > { %s49_s11 = sand.u32 (!%p314_p1), 1, %s373_s8   ;;  %s316_s12 = sshll.u32 (!%p314_p1), %s369_s7, 3 }
   0x5   : > { %s449_s10 = smov (%p35_p0, %s33_s10), 0  ;;  %47 = sbr.rel (%p314_p1) target bundleno = 12 (0xc), region = 16 }
   0x6   : > { %s315_s13 = sshll.u32 (!%p314_p1), %s49_s11, 3  ;;  %s56_s16 = scalar_lea.vmem (!%p314_p1), %s444_s0, %s316_s12 }
   0x7   : > { %s51_s17 = scalar_lea.vmem (!%p314_p1), [#allocation0], %s315_s13 }
   0xa   : > { %v85_v0 = vld [vmem:[%s56_s16] sm:$0xff] }
   0xb   : > { %86 = vst [vmem:[%s51_s17] sm:$0xff] %v85_v0 }
   0xc PF: > { %p317_p2 = scmp.ge.s32.totalorder %s373_s8, 1  ;;  %p91_p3 = scmp.lt.s32.totalorder %s373_s8, 9 }
   0xe   : > { %p92_p4 = pnand %p317_p2, %p91_p3 }
  0x10   : > { %95 = sbr.rel (%p92_p4) target bundleno = 1182 (0x49e), region = 54 }
  0x15   : > { %s98_s18 = sand.u32 1, %s312_s9   ;;  %v109_v1 = vlaneseq  ;;  %v375_v10 = vmov -1.0   ;;  %s321_s21 = sshll.u32 %s365_s6, 3 }
  0x16   : > { %s318_s19 = sshll.u32 %s98_s18, 3  ;;  %s219_s24 = scalar_lea.vmem %s445_s1, %s321_s21 }
  0x17   : > { %v413_v2 = vand.u32 127, %v109_v1  ;;  %v113_v3 = vshrl.u32 %v109_v1, 7  ;;  %s100_s20 = scalar_lea.vmem [#allocation0], %s318_s19 }
  0x18   : > { %v116_v4 = vld [vmem:[%s100_s20] sm:$0xff] }
  0x19   : > { %vm111_vm0 = vcmp.lt.s32.totalorder %v413_v2, 8  ;;  %vm115_vm1 = vcmp.eq.s32.totalorder %v113_v3, %v413_v2  ;;  %vm120_vm2 = vcmp.le.s32.totalorder %v113_v3, %v413_v2  ;;  %vm134_vm4 = vcmp.eq.s32.totalorder %v413_v2, 7 }
  0x1a   : > { %v117_v5 = vsel %vm115_vm1, %v116_v4, 0.0  ;;  %vm121_vm3 = vmand %vm120_vm2, %vm111_vm0  ;;  %vm131_vm5 = vcmp.eq.s32.totalorder %v413_v2, %v113_v3  ;;  %v135_v11 = vsel %vm134_vm4, 1.0, %v375_v10  ;;  %vm142_vm6 = vcmp.eq.s32.totalorder %v413_v2, 6 }
  0x1b   : > { %v122_v6 = vsel %vm121_vm3, %v116_v4, 0.0  ;;  %118 = vadd.xlane.f32.xlu0 %v117_v5  ;;  %v136_v12 = vsel %vm131_vm5, %v135_v11, 0.0  ;;  %vm152_vm7 = vcmp.eq.s32.totalorder %v413_v2, 5  ;;  %vm162_vm8 = vcmp.eq.s32.totalorder %v413_v2, 4 }
  0x1c   : > { %vm172_vm9 = vcmp.eq.s32.totalorder %v413_v2, 3  ;;  %vm182_vm10 = vcmp.eq.s32.totalorder %v413_v2, 2  ;;  %vm192_vm11 = vcmp.eq.s32.totalorder %v413_v2, 1  ;;  %vm201_vm12 = vcmp.eq.s32.totalorder %v413_v2, 0 }
  0xa4   : > { %v418_v7 = vpop.xlane.xlu0 %118 }
  0xa5   : > { %349 = vrcp.f32 %v418_v7  ;;  %vm208_vm13 = vweird.f32 %v418_v7 }
  0xb2   : > { %v350_v8 = vpop.eup %349 }
  0xb3   : > { %v124_v9 = vmul.f32 %v350_v8, %v122_v6 }
  0xb5   : > { %125 = vst [vmem:[#allocation2] sm:$0xff] %v124_v9 }
  0xbc   : > { %v138_v13 = vld [vmem:[#allocation2 + $0x6] ss:$0 sm:$0xff]  ;;  %v148_v16 = vld [vmem:[#allocation2 + $0x5] ss:$0 sm:$0xff]  ;;  %v158_v21 = vld [vmem:[#allocation2 + $0x4] ss:$0 sm:$0xff] }
  0xbd   : > { %v139_v14 = vxor.u32 2147483648, %v138_v13  ;;  %v149_v18 = vxor.u32 2147483648, %v148_v16  ;;  %v159_v23 = vxor.u32 2147483648, %v158_v21  ;;  %v168_v26 = vld [vmem:[#allocation2 + $0x3] ss:$0 sm:$0xff] }
  0xbe   : > { %v169_v28 = vxor.u32 2147483648, %v168_v26  ;;  %v178_v31 = vld [vmem:[#allocation2 + $0x2] ss:$0 sm:$0xff]  ;;  %v188_v36 = vld [vmem:[#allocation2 + $0x1] ss:$0 sm:$0xff] }
  0xbf   : > { %v143_v15 = vmul.f32 %v139_v14, %v136_v12  ;;  %v179_v33 = vxor.u32 2147483648, %v178_v31  ;;  %v189_v38 = vxor.u32 2147483648, %v188_v36  ;;  %v197_v41 = vld [vmem:[#allocation2] ss:$0 sm:$0xff] }
  0xc0   : > { %v198_v43 = vxor.u32 2147483648, %v197_v41 }
  0xc1   : > { %144 = vadd.xlane.f32.xlu0 %v143_v15 }
 0x14a   : > { %v145_v17 = vpop.xlane.xlu0 %144 }
 0x14b   : > { %v146_v19 = vsel %vm142_vm6, %v145_v17, %v136_v12 }
 0x14c   : > { %v153_v20 = vmul.f32 %v149_v18, %v146_v19 }
 0x14e   : > { %154 = vadd.xlane.f32.xlu1 %v153_v20 }
 0x1d7   : > { %v155_v22 = vpop.xlane.xlu1 %154 }
 0x1d8   : > { %v156_v24 = vsel %vm152_vm7, %v155_v22, %v146_v19 }
 0x1d9   : > { %v163_v25 = vmul.f32 %v159_v23, %v156_v24 }
 0x1db   : > { %164 = vadd.xlane.f32.xlu1 %v163_v25 }
 0x264   : > { %v165_v27 = vpop.xlane.xlu1 %164 }
 0x265   : > { %v166_v29 = vsel %vm162_vm8, %v165_v27, %v156_v24 }
 0x266   : > { %v173_v30 = vmul.f32 %v169_v28, %v166_v29 }
 0x268   : > { %174 = vadd.xlane.f32.xlu0 %v173_v30 }
 0x2f1   : > { %v175_v32 = vpop.xlane.xlu0 %174 }
 0x2f2   : > { %v176_v34 = vsel %vm172_vm9, %v175_v32, %v166_v29 }
 0x2f3   : > { %v183_v35 = vmul.f32 %v179_v33, %v176_v34 }
 0x2f5   : > { %184 = vadd.xlane.f32.xlu1 %v183_v35 }
 0x37e   : > { %v185_v37 = vpop.xlane.xlu1 %184 }
 0x37f   : > { %v186_v39 = vsel %vm182_vm10, %v185_v37, %v176_v34 }
 0x380   : > { %v193_v40 = vmul.f32 %v189_v38, %v186_v39 }
 0x382   : > { %194 = vadd.xlane.f32.xlu0 %v193_v40 }
 0x40b   : > { %v195_v42 = vpop.xlane.xlu0 %194 }
 0x40c   : > { %v196_v44 = vsel %vm192_vm11, %v195_v42, %v186_v39 }
 0x40d   : > { %v202_v45 = vmul.f32 %v198_v43, %v196_v44 }
 0x40f   : > { %203 = vadd.xlane.f32.xlu1 %v202_v45 }
 0x498   : > { %v204_v46 = vpop.xlane.xlu1 %203 }
 0x499   : > { %v205_v47 = vsel %vm201_vm12, %v204_v46, %v196_v44 }
 0x49a   : > { %v207_v48 = vmul.f32 %v350_v8, %v205_v47 }
 0x49c   : > { %v209_v49 = vsel %vm208_vm13, %v205_v47, %v207_v48 }
 0x49d   : > { %249 = vst [vmem:[%s219_s24] sm:$0xff] %v209_v49 }
 0x49e PF: > { %s7_s8 = sadd.s32 1, %s373_s8   ;;  %s446_s6 = smov %s369_s7 }
 0x49f   : > { %p4_p5 = scmp.ge.s32.totalorder %s7_s8, 10   ;;  %s447_s7 = smov %s449_s10 }
 0x4a1   :  { %6 = sbr.rel (!%p4_p5) target bundleno = 2 (0x2), region = 124 }

// kernel: model_forward.6
= control target key start
LH: loop header
LB: loop body
LE: loop exit
PB: predicated region body
PF: predicated region fallthrough
CT: control target
= control target key end

     0   :  { %v1797_v3 = vmov 0.0   ;;  %vm1798_vm0 = vmmov 0   ;;  %vm46_vm1 = vcmask 261120   ;;  %v1799_v22 = vmov 0   ;;  %s1801_s23 = smov 96   ;;  %s1802_s24 = smov 16   ;;  %s2259_s1 = inlined_call_operand.vmem [shape: f32[32,128], index: 1, kind: input, shape index: {}]   ;;  %s2260_s0 = inlined_call_operand.vmem [shape: f32[8,8,32], index: 0, kind: input, shape index: {}]   ;;  %s2261_s3 = inlined_call_operand.vmem [shape: f32[16,64], index: 3, kind: input, shape index: {}]   ;;  %s2262_s4 = inlined_call_operand.vmem [shape: f32[16,64], index: 4, kind: input, shape index: {}]   ;;  %s2263_s2 = inlined_call_operand.vmem [shape: f32[1,128], index: 2, kind: input, shape index: {}]   ;;  %s2264_s5 = inlined_call_operand.vmem [shape: f32[2,8,8,16], index: 5, kind: output, shape index: {}]  }
   0x1   :  { %v31_v0 = vld [vmem:[%s2259_s1 + $0x10] sm:$0xff]  ;;  %v32_v1 = vld [vmem:[%s2259_s1 + $0x18] sm:$0xff]  ;;  %v29_v2 = vld [vmem:[%s2259_s1] sm:$0xff]  ;;  %1565 = vmatprep.subr.bf16.mxu1 %v1797_v3  ;;  %1567 = vmatprep.mubr.msk.bf16.mxu1 %vm1798_vm0, %v1797_v3  ;;  %s1803_s25 = smov 32   ;;  %s1804_s26 = smov 80   ;;  %vm148_vm2 = vcmask 130048  }
   0x2   :  { %v38_v4 = vpack.c.bf16 %v32_v1, %v31_v0  ;;  %v30_v5 = vld [vmem:[%s2259_s1 + $0x8] sm:$0xff]  ;;  %v21_v6 = vld [vmem:[%s2260_s0] sm:$0xff]  ;;  %v23_v10 = vld [vmem:[%s2260_s0 + $0x10] sm:$0xff] }
   0x3   :  { %v22_v7 = vld [vmem:[%s2260_s0 + $0x8] sm:$0xff]  ;;  %v37_v8 = vpack.c.bf16 %v30_v5, %v29_v2  ;;  %v24_v11 = vld [vmem:[%s2260_s0 + $0x18] sm:$0xff]  ;;  %v140_v12 = vld [vmem:[%s2261_s3] sm:$0xff] }
   0x4   :  { %v33_v9 = vpack.c.bf16 %v22_v7, %v21_v6  ;;  %1553 = vmatprep.subr.bf16.mxu0 %v38_v4  ;;  %v141_v13 = vld [vmem:[%s2261_s3 + $0x8] sm:$0xff]  ;;  %v143_v14 = vld [vmem:[%s2262_s4] sm:$0xff]  ;;  %v34_v19 = vpack.c.bf16 %v24_v11, %v23_v10  ;;  %v27_v23 = vld [vmem:[%s2260_s0 + $0x30] sm:$0xff] }
   0x5   :  { %1554 = vmatpush3.bf16.msra.mxu0 %v38_v4  ;;  %v25_v15 = vld [vmem:[%s2260_s0 + $0x20] sm:$0xff]  ;;  %v26_v16 = vld [vmem:[%s2260_s0 + $0x28] sm:$0xff]  ;;  %v1878_v17 = vpack.c.bf16 %v141_v13, %v140_v12  ;;  %v28_v24 = vld [vmem:[%s2260_s0 + $0x38] sm:$0xff] }
   0x6   :  { %1557 = vmatprep.mubr.msk.bf16.mxu0 %vm46_vm1, %v33_v9  ;;  %1555 = vmatprep.subr.bf16.mxu0 %v37_v8  ;;  %v144_v18 = vld [vmem:[%s2262_s4 + $0x8] sm:$0xff]  ;;  %v35_v21 = vpack.c.bf16 %v26_v16, %v25_v15  ;;  %v36_v25 = vpack.c.bf16 %v28_v24, %v27_v23  ;;  %v1442_v29 = vld [vmem:[%s2263_s2] ss:$0 sm:$0xff]  ;;  %s1800_s2 = smov 64  }
   0x7   :  { %1566 = vmatpush3.bf16.msra.mxu1 %v1878_v17  ;;  %v1884_v20 = vpack.c.bf16 %v144_v18, %v143_v14 }
   0x8   :  { %1571 = vmatprep.subr.bf16.mxu1 %v1797_v3 }
   0x9   :  { %1556 = vmatpush3.bf16.msra.mxu0 %v37_v8 }
   0xa   :  { %1583 = vmatprep.subr.bf16.mxu0 %v1797_v3  ;;  %1568 = vmatmul.mubr.bf16.vlgmr.msra.gmra.mxu1 %v1799_v22 }
   0xb   :  { %1572 = vmatpush3.bf16.msra.mxu1 %v1884_v20  ;;  %1573 = vmatprep.mubr.msk.bf16.mxu1 %vm1798_vm0, %v1797_v3 }
   0xc   :  { %1558 = vmatmul.mubr.msk.bf16.vlgmr.msra.gmra.mxu0 %vm46_vm1, %v34_v19  ;;  %1577 = vmatprep.subr.bf16.mxu1 %v1797_v3 }
   0xd   :  { %1561 = vmatprep.mubr.msk.bf16.mxu0 %vm46_vm1, %v35_v21  ;;  %1584 = vmatpush3.bf16.msra.mxu0 %v1884_v20 }
   0xe   :  { %1595 = vmatprep.subr.bf16.mxu0 %v1797_v3 }
  0x12   :  { %1574 = vmatmul.mubr.bf16.vlgmr.msra.gmra.mxu1 %v1799_v22 }
  0x13   :  { %1578 = vmatpush3.bf16.msra.mxu1 %v1878_v17  ;;  %1579 = vmatprep.mubr.msk.bf16.mxu1 %vm1798_vm0, %v1797_v3 }
  0x14   :  { %1562 = vmatmul.mubr.msk.bf16.gmra.mxu0 %vm46_vm1, %v36_v25  ;;  %1589 = vmatprep.subr.bf16.mxu1 %v1797_v3 }
  0x15   :  { %1585 = vmatprep.mubr.msk.bf16.mxu0 %vm1798_vm0, %v1797_v3 }
  0xca   :  { %v186_v26 = vpop.f32.mrf.mxu1 }
  0xcc   :  { %v1559_v27 = vpop.f32.mrf.mxu0  ;;  %v1569_v28 = vpop.f32.mrf.mxu1 }
  0xcd   :  { %v102_v33 = vadd.f32 %v1559_v27, %v1442_v29 }
  0xce   :  { %v93_v30 = vpop.f32.mrf.mxu0  ;;  %v189_v31 = vpop.f32.mrf.mxu1 }
  0xcf   :  { %v94_v37 = vadd.f32 %v1442_v29, %v93_v30 }
  0xd0   :  { %v1560_v32 = vpop.f32.mrf.mxu0  ;;  %v1570_v35 = vpop.f32.mrf.mxu1 }
  0xd1   :  { %v105_v34 = vadd.f32 %v1560_v32, %v1442_v29 }
  0xd2   :  { %v96_v36 = vpop.f32.mrf.mxu0  ;;  %v233_v40 = vpop.f32.mrf.mxu1 }
  0xd3   :  { %v1500_v38 = vpack.c.bf16 %v105_v34, %v102_v33  ;;  %v97_v39 = vadd.f32 %v1442_v29, %v96_v36 }
  0xd4   :  { %v1563_v41 = vpop.f32.mrf.mxu0  ;;  %v1575_v43 = vpop.f32.mrf.mxu1 }
  0xd5   :  { %1512 = vst [vmem:[#allocation2 + $0x8] sm:$0xff] %v1500_v38   ;;  %v1495_v42 = vpack.c.bf16 %v97_v39, %v94_v37  ;;  %v118_v47 = vadd.f32 %v1563_v41, %v1442_v29 }
  0xd6   :  { %v109_v44 = vpop.f32.mrf.mxu0  ;;  %v236_v45 = vpop.f32.mrf.mxu1 }
  0xd7   :  { %1496 = vst [vmem:[#allocation2] sm:$0xff] %v1495_v42   ;;  %v110_v51 = vadd.f32 %v1442_v29, %v109_v44 }
  0xd8   :  { %v1564_v46 = vpop.f32.mrf.mxu0  ;;  %v1576_v49 = vpop.f32.mrf.mxu1 }
  0xd9   :  { %v121_v48 = vadd.f32 %v1564_v46, %v1442_v29 }
  0xda   :  { %v112_v50 = vpop.f32.mrf.mxu0 }
  0xdb   :  { %v1510_v52 = vpack.c.bf16 %v121_v48, %v118_v47  ;;  %v113_v53 = vadd.f32 %v1442_v29, %v112_v50 }
  0xdd   :  { %1514 = vst [vmem:[#allocation2 + $0x18] sm:$0xff] %v1510_v52   ;;  %v1505_v54 = vpack.c.bf16 %v113_v53, %v110_v51 }
  0xde   :  { %v1912_v55 = vld [vmem:[#allocation2] sm:$0xff]  }
  0xdf   :  { %1513 = vst [vmem:[#allocation2 + $0x10] sm:$0xff] %v1505_v54   ;;  %v147_v56 = vunpack.c.l.bf16 %v1912_v55  ;;  %v301_v32 = vunpack.c.h.bf16 %v1912_v55 }
  0xe1   :  { %v187_v57 = vadd.f32 %v186_v26, %v147_v56 }
  0xe3   :  { %1669 = vtanh.f32 %v187_v57  ;;  %v1447_v61 = vmul.f32 -1.442695, %v187_v57 }
  0xe4   :  { %v193_v58 = vld [vmem:[#allocation2 + $0x18] sm:$0xff]  }
  0xe5   :  { %v194_v59 = vunpack.c.h.bf16 %v193_v58  ;;  %1671 = vpow2.f32 %v1447_v61  ;;  %v351_v26 = vunpack.c.l.bf16 %v193_v58 }
  0xe7   :  { %196 = vrot.lane.b32.xlu0 %v194_v59, %s1800_s2 }
  0xf0   :  { %v1670_v60 = vpop.eup %1669 }
  0xf1   :  { %248 = vrot.lane.b32.xlu0 %v1670_v60, %s1801_s23 }
  0xf2   :  { %v1672_v62 = vpop.eup %1671 }
  0xf3   :  { %v242_v0 = vadd.f32 1.0, %v1672_v62 }
 0x159   :  { %v197_v63 = vpop.permute.xlu0 %196 }
 0x15a   :  { %v234_v1 = vadd.f32 %v233_v40, %v197_v63 }
 0x15c   :  { %1673 = vtanh.f32 %v234_v1  ;;  %v1448_v7 = vmul.f32 -1.442695, %v234_v1 }
 0x15d   :  { %1675 = vrcp.f32 %v242_v0 }
 0x15e   :  { %1677 = vpow2.f32 %v1448_v7 }
 0x163   :  { %v249_v4 = vpop.permute.xlu0 %248 }
 0x169   :  { %v1674_v2 = vpop.eup %1673 }
 0x16a   :  { %272 = vrot.lane.b32.xlu1 %v1674_v2, %s1801_s23  ;;  %v1676_v5 = vpop.eup %1675 }
 0x16b   :  { %v251_v6 = vmul.f32 %v1676_v5, %v249_v4  ;;  %v1678_v8 = vpop.eup %1677  ;;  %v246_v13 = vmul.f32 0.0, %v1676_v5 }
 0x16c   :  { %v266_v9 = vadd.f32 1.0, %v1678_v8 }
 0x16e   :  { %253 = vrot.lane.b32.xlu1 %v251_v6, %s1802_s24  ;;  %1679 = vrcp.f32 %v266_v9  ;;  %v1968_v6 = vld [vmem:[#allocation2 + $0x10] sm:$0xff]  }
 0x16f   :  { %v515_v7 = vunpack.c.h.bf16 %v1968_v6 }
 0x17b   :  { %v1680_v10 = vpop.eup %1679 }
 0x17c   :  { %v270_v18 = vmul.f32 0.0, %v1680_v10 }
 0x1dc   :  { %v273_v11 = vpop.permute.xlu1 %272 }
 0x1dd   :  { %v275_v12 = vmul.f32 %v1680_v10, %v273_v11 }
 0x1df   :  { %277 = vrot.lane.b32.xlu0 %v275_v12, %s1802_s24 }
 0x1e0   :  { %v254_v14 = vpop.permute.xlu1 %253 }
 0x1e1   :  { %v1920_v15 = vadd.f32 %v254_v14, %v246_v13  ;;  %v1988_v13 = vld [vmem:[#allocation2 + $0x8] sm:$0xff]  }
 0x1e2   :  { %v465_v14 = vunpack.c.l.bf16 %v1988_v13 }
 0x1e3   :  { %1681 = vtanh.f32 %v1920_v15 }
 0x1f0   :  { %v1682_v16 = vpop.eup %1681 }
 0x1f1   :  { %259 = vrot.lane.b32.xlu1 %v1682_v16, %s1803_s25 }
 0x251   :  { %v278_v19 = vpop.permute.xlu0 %277 }
 0x252   :  { %v1924_v21 = vadd.f32 %v278_v19, %v270_v18 }
 0x254   :  { %1683 = vtanh.f32 %v1924_v21 }
 0x261   :  { %v1684_v22 = vpop.eup %1683 }
 0x262   :  { %283 = vrot.lane.b32.xlu0 %v1684_v22, %s1803_s25 }
 0x263   :  { %v260_v23 = vpop.permute.xlu1 %259 }
 0x264   :  { %v1928_v24 = vmul.f32 %v1676_v5, %v260_v23 }
 0x266   :  { %v298_v25 = vpack.c.bf16 %v1928_v24, %v1928_v24 }
 0x268   :  { %303 = vrot.lane.b32.xlu1 %v298_v25, %s1804_s26 }
 0x26c   :  { %356 = vrot.lane.b32.xlu1 %v351_v26, %s1800_s2 }
 0x2d4   :  { %v284_v27 = vpop.permute.xlu0 %283 }
 0x2d5   :  { %v1934_v28 = vmul.f32 %v1680_v10, %v284_v27 }
 0x2d7   :  { %v348_v29 = vpack.c.bf16 %v1934_v28, %v1934_v28 }
 0x2d9   :  { %353 = vrot.lane.b32.xlu0 %v348_v29, %s1804_s26 }
 0x2da   :  { %v304_v30 = vpop.permute.xlu1 %303 }
 0x2db   :  { %1580 = vmatmul.mubr.msk.bf16.vlgmr.msra.gmra.mxu1 %vm148_vm2, %v304_v30 }
 0x2dc   :  { %1590 = vmatpush3.bf16.msra.mxu1 %v1878_v17  ;;  %1591 = vmatprep.mubr.msk.bf16.mxu1 %vm1798_vm0, %v1797_v3 }
 0x2dd   :  { %1601 = vmatprep.subr.bf16.mxu1 %v1797_v3 }
 0x2de   :  { %v357_v41 = vpop.permute.xlu1 %356 }
 0x34b   :  { %v354_v31 = vpop.permute.xlu0 %353 }
 0x34c   :  { %1586 = vmatmul.mubr.msk.bf16.vlgmr.msra.gmra.mxu0 %vm148_vm2, %v354_v31 }
 0x34d   :  { %1596 = vmatpush3.bf16.msra.mxu0 %v1884_v20  ;;  %1597 = vmatprep.mubr.msk.bf16.mxu0 %vm1798_vm0, %v1797_v3 }
 0x34e   :  { %1607 = vmatprep.subr.bf16.mxu0 %v1797_v3 }
 0x39b   :  { %v342_v33 = vpop.f32.mrf.mxu1 }
 0x39c   :  { %v343_v34 = vadd.f32 %v342_v33, %v301_v32 }
 0x39d   :  { %v1581_v35 = vpop.f32.mrf.mxu1 }
 0x39e   :  { %1685 = vtanh.f32 %v343_v34  ;;  %v1452_v39 = vmul.f32 -1.442695, %v343_v34 }
 0x39f   :  { %v345_v36 = vpop.f32.mrf.mxu1 }
 0x3a0   :  { %1687 = vpow2.f32 %v1452_v39 }
 0x3a1   :  { %v1582_v37 = vpop.f32.mrf.mxu1 }
 0x3ab   :  { %v1686_v38 = vpop.eup %1685 }
 0x3ac   :  { %411 = vrot.lane.b32.xlu0 %v1686_v38, %s1801_s23 }
 0x3ad   :  { %v1688_v40 = vpop.eup %1687 }
 0x3ae   :  { %v405_v43 = vadd.f32 1.0, %v1688_v40 }
 0x40c   :  { %v396_v42 = vpop.f32.mrf.mxu0 }
 0x40d   :  { %v397_v44 = vadd.f32 %v396_v42, %v357_v41 }
 0x40e   :  { %v1587_v45 = vpop.f32.mrf.mxu0 }
 0x40f   :  { %1689 = vtanh.f32 %v397_v44  ;;  %v1453_v52 = vmul.f32 -1.442695, %v397_v44 }
 0x410   :  { %v399_v46 = vpop.f32.mrf.mxu0  ;;  %1691 = vrcp.f32 %v405_v43 }
 0x411   :  { %1693 = vpow2.f32 %v1453_v52 }
 0x412   :  { %v1588_v47 = vpop.f32.mrf.mxu0 }
 0x41c   :  { %v1690_v48 = vpop.eup %1689 }
 0x41d   :  { %435 = vrot.lane.b32.xlu1 %v1690_v48, %s1801_s23  ;;  %v1692_v49 = vpop.eup %1691 }
 0x41e   :  { %v412_v50 = vpop.permute.xlu0 %411  ;;  %v1694_v53 = vpop.eup %1693  ;;  %v409_v58 = vmul.f32 %v1692_v49, %v1920_v15 }
 0x41f   :  { %v414_v51 = vmul.f32 %v1692_v49, %v412_v50  ;;  %v429_v54 = vadd.f32 1.0, %v1694_v53 }
 0x421   :  { %416 = vrot.lane.b32.xlu0 %v414_v51, %s1802_s24  ;;  %1695 = vrcp.f32 %v429_v54 }
 0x42e   :  { %v1696_v55 = vpop.eup %1695 }
 0x42f   :  { %v433_v62 = vmul.f32 %v1696_v55, %v1924_v21 }
 0x48f   :  { %v436_v56 = vpop.permute.xlu1 %435 }
 0x490   :  { %v438_v57 = vmul.f32 %v1696_v55, %v436_v56 }
 0x492   :  { %440 = vrot.lane.b32.xlu1 %v438_v57, %s1802_s24 }
 0x493   :  { %v417_v59 = vpop.permute.xlu0 %416 }
 0x494   :  { %v1955_v60 = vadd.f32 %v417_v59, %v409_v58 }
 0x496   :  { %1697 = vtanh.f32 %v1955_v60 }
 0x4a3   :  { %v1698_v61 = vpop.eup %1697 }
 0x4a4   :  { %422 = vrot.lane.b32.xlu0 %v1698_v61, %s1803_s25  ;;  %v629_v61 = vunpack.c.h.bf16 %v1988_v13 }
 0x504   :  { %v441_v63 = vpop.permute.xlu1 %440 }
 0x505   :  { %v1960_v0 = vadd.f32 %v441_v63, %v433_v62 }
 0x507   :  { %1699 = vtanh.f32 %v1960_v0 }
 0x514   :  { %v1700_v1 = vpop.eup %1699 }
 0x515   :  { %446 = vrot.lane.b32.xlu1 %v1700_v1, %s1803_s25 }
 0x516   :  { %v423_v2 = vpop.permute.xlu0 %422 }
 0x517   :  { %v1964_v4 = vmul.f32 %v1692_v49, %v423_v2 }
 0x519   :  { %v462_v5 = vpack.c.bf16 %v1964_v4, %v1964_v4 }
 0x51b   :  { %467 = vrot.lane.b32.xlu0 %v462_v5, %s1804_s26 }
 0x51f   :  { %520 = vrot.lane.b32.xlu0 %v515_v7, %s1800_s2 }
 0x587   :  { %v447_v8 = vpop.permute.xlu1 %446 }
 0x588   :  { %v1973_v9 = vmul.f32 %v1696_v55, %v447_v8  ;;  %v679_v55 = vunpack.c.l.bf16 %v1968_v6 }
 0x58a   :  { %v512_v10 = vpack.c.bf16 %v1973_v9, %v1973_v9 }
 0x58c   :  { %517 = vrot.lane.b32.xlu1 %v512_v10, %s1804_s26 }
 0x58d   :  { %v468_v11 = vpop.permute.xlu0 %467 }
 0x58e   :  { %1592 = vmatmul.mubr.msk.bf16.vlgmr.msra.gmra.mxu1 %vm148_vm2, %v468_v11 }
 0x58f   :  { %1602 = vmatpush3.bf16.msra.mxu1 %v1878_v17  ;;  %1603 = vmatprep.mubr.msk.bf16.mxu1 %vm1798_vm0, %v1797_v3 }
 0x590   :  { %1613 = vmatprep.subr.bf16.mxu1 %v1797_v3 }
 0x591   :  { %v521_v26 = vpop.permute.xlu0 %520 }
 0x5fe   :  { %v518_v12 = vpop.permute.xlu1 %517 }
 0x5ff   :  { %1598 = vmatmul.mubr.msk.bf16.vlgmr.msra.gmra.mxu0 %vm148_vm2, %v518_v12 }
 0x600   :  { %1608 = vmatpush3.bf16.msra.mxu0 %v1884_v20  ;;  %1609 = vmatprep.mubr.msk.bf16.mxu0 %vm1798_vm0, %v1797_v3 }
 0x601   :  { %1619 = vmatprep.subr.bf16.mxu0 %v1797_v3 }
 0x64e   :  { %v506_v15 = vpop.f32.mrf.mxu1 }
 0x64f   :  { %v507_v16 = vadd.f32 %v506_v15, %v465_v14 }
 0x650   :  { %v1593_v18 = vpop.f32.mrf.mxu1 }
 0x651   :  { %1701 = vtanh.f32 %v507_v16  ;;  %v1458_v23 = vmul.f32 -1.442695, %v507_v16 }
 0x652   :  { %v509_v19 = vpop.f32.mrf.mxu1 }
 0x653   :  { %1703 = vpow2.f32 %v1458_v23 }
 0x654   :  { %v1594_v21 = vpop.f32.mrf.mxu1 }
 0x65e   :  { %v1702_v22 = vpop.eup %1701 }
 0x65f   :  { %575 = vrot.lane.b32.xlu1 %v1702_v22, %s1801_s23 }
 0x660   :  { %v1704_v25 = vpop.eup %1703 }
 0x661   :  { %v569_v29 = vadd.f32 1.0, %v1704_v25 }
 0x6bf   :  { %v560_v27 = vpop.f32.mrf.mxu0 }
 0x6c0   :  { %v561_v30 = vadd.f32 %v560_v27, %v521_v26 }
 0x6c1   :  { %v1599_v31 = vpop.f32.mrf.mxu0 }
 0x6c2   :  { %1705 = vtanh.f32 %v561_v30  ;;  %v1459_v38 = vmul.f32 -1.442695, %v561_v30 }
 0x6c3   :  { %v563_v32 = vpop.f32.mrf.mxu0  ;;  %1707 = vrcp.f32 %v569_v29 }
 0x6c4   :  { %1709 = vpow2.f32 %v1459_v38 }
 0x6c5   :  { %v1600_v33 = vpop.f32.mrf.mxu0 }
 0x6cf   :  { %v1706_v34 = vpop.eup %1705 }
 0x6d0   :  { %599 = vrot.lane.b32.xlu0 %v1706_v34, %s1801_s23  ;;  %v1708_v35 = vpop.eup %1707 }
 0x6d1   :  { %v576_v36 = vpop.permute.xlu1 %575  ;;  %v1710_v39 = vpop.eup %1709  ;;  %v573_v44 = vmul.f32 %v1708_v35, %v1955_v60 }
 0x6d2   :  { %v578_v37 = vmul.f32 %v1708_v35, %v576_v36  ;;  %v593_v40 = vadd.f32 1.0, %v1710_v39 }
 0x6d4   :  { %580 = vrot.lane.b32.xlu1 %v578_v37, %s1802_s24  ;;  %1711 = vrcp.f32 %v593_v40 }
 0x6e1   :  { %v1712_v41 = vpop.eup %1711 }
 0x6e2   :  { %v597_v48 = vmul.f32 %v1712_v41, %v1960_v0 }
 0x742   :  { %v600_v42 = vpop.permute.xlu0 %599 }
 0x743   :  { %v602_v43 = vmul.f32 %v1712_v41, %v600_v42 }
 0x745   :  { %604 = vrot.lane.b32.xlu0 %v602_v43, %s1802_s24 }
 0x746   :  { %v581_v45 = vpop.permute.xlu1 %580 }
 0x747   :  { %v1996_v46 = vadd.f32 %v581_v45, %v573_v44 }
 0x749   :  { %1713 = vtanh.f32 %v1996_v46 }
 0x756   :  { %v1714_v47 = vpop.eup %1713 }
 0x757   :  { %586 = vrot.lane.b32.xlu1 %v1714_v47, %s1803_s25 }
 0x7b7   :  { %v605_v49 = vpop.permute.xlu0 %604 }
 0x7b8   :  { %v2001_v50 = vadd.f32 %v605_v49, %v597_v48 }
 0x7ba   :  { %1715 = vtanh.f32 %v2001_v50 }
 0x7c7   :  { %v1716_v51 = vpop.eup %1715 }
 0x7c8   :  { %610 = vrot.lane.b32.xlu0 %v1716_v51, %s1803_s25 }
 0x7c9   :  { %v587_v52 = vpop.permute.xlu1 %586 }
 0x7ca   :  { %v2005_v53 = vmul.f32 %v1708_v35, %v587_v52 }
 0x7cc   :  { %v626_v54 = vpack.c.bf16 %v2005_v53, %v2005_v53 }
 0x7ce   :  { %631 = vrot.lane.b32.xlu1 %v626_v54, %s1804_s26 }
 0x7d2   :  { %684 = vrot.lane.b32.xlu1 %v679_v55, %s1800_s2 }
 0x83a   :  { %v611_v56 = vpop.permute.xlu0 %610 }
 0x83b   :  { %v2012_v57 = vmul.f32 %v1712_v41, %v611_v56  ;;  %v840_v41 = vld [vmem:[#allocation2 + $0xc] sm:$0xff]  }
 0x83c   :  { %v841_v42 = vunpack.c.l.bf16 %v840_v41  ;;  %v792_v48 = vunpack.c.h.bf16 %v840_v41 }
 0x83d   :  { %v676_v58 = vpack.c.bf16 %v2012_v57, %v2012_v57 }
 0x83f   :  { %681 = vrot.lane.b32.xlu0 %v676_v58, %s1804_s26 }
 0x840   :  { %v632_v59 = vpop.permute.xlu1 %631 }
 0x841   :  { %1604 = vmatmul.mubr.msk.bf16.vlgmr.msra.gmra.mxu1 %vm148_vm2, %v632_v59 }
 0x842   :  { %1614 = vmatpush3.bf16.msra.mxu1 %v1878_v17  ;;  %1615 = vmatprep.mubr.msk.bf16.mxu1 %vm1798_vm0, %v1797_v3 }
 0x843   :  { %1625 = vmatprep.subr.bf16.mxu1 %v1797_v3 }
 0x844   :  { %v685_v8 = vpop.permute.xlu1 %684 }
 0x8b1   :  { %v682_v60 = vpop.permute.xlu0 %681 }
 0x8b2   :  { %1610 = vmatmul.mubr.msk.bf16.vlgmr.msra.gmra.mxu0 %vm148_vm2, %v682_v60 }
 0x8b3   :  { %1620 = vmatpush3.bf16.msra.mxu0 %v1884_v20  ;;  %1621 = vmatprep.mubr.msk.bf16.mxu0 %vm1798_vm0, %v1797_v3 }
 0x8b4   :  { %1631 = vmatprep.subr.bf16.mxu0 %v1797_v3 }
 0x901   :  { %v670_v62 = vpop.f32.mrf.mxu1 }
 0x902   :  { %v671_v63 = vadd.f32 %v670_v62, %v629_v61 }
 0x903   :  { %v1605_v0 = vpop.f32.mrf.mxu1 }
 0x904   :  { %1717 = vtanh.f32 %v671_v63  ;;  %v1464_v6 = vmul.f32 -1.442695, %v671_v63 }
 0x905   :  { %v673_v1 = vpop.f32.mrf.mxu1 }
 0x906   :  { %1719 = vpow2.f32 %v1464_v6 }
 0x907   :  { %v1606_v2 = vpop.f32.mrf.mxu1 }
 0x911   :  { %v1718_v5 = vpop.eup %1717 }
 0x912   :  { %739 = vrot.lane.b32.xlu0 %v1718_v5, %s1801_s23 }
 0x913   :  { %v1720_v7 = vpop.eup %1719 }
 0x914   :  { %v733_v11 = vadd.f32 1.0, %v1720_v7 }
 0x972   :  { %v724_v10 = vpop.f32.mrf.mxu0 }
 0x973   :  { %v725_v12 = vadd.f32 %v724_v10, %v685_v8 }
 0x974   :  { %v1611_v14 = vpop.f32.mrf.mxu0 }
 0x975   :  { %1721 = vtanh.f32 %v725_v12  ;;  %v1465_v22 = vmul.f32 -1.442695, %v725_v12 }
 0x976   :  { %v727_v15 = vpop.f32.mrf.mxu0  ;;  %1723 = vrcp.f32 %v733_v11 }
 0x977   :  { %1725 = vpow2.f32 %v1465_v22 }
 0x978   :  { %v1612_v13 = vpop.f32.mrf.mxu0 }
 0x982   :  { %v1722_v16 = vpop.eup %1721 }
 0x983   :  { %763 = vrot.lane.b32.xlu1 %v1722_v16, %s1801_s23  ;;  %v1724_v18 = vpop.eup %1723 }
 0x984   :  { %v740_v19 = vpop.permute.xlu0 %739  ;;  %v1726_v23 = vpop.eup %1725  ;;  %v737_v30 = vmul.f32 %v1724_v18, %v1996_v46 }
 0x985   :  { %v742_v21 = vmul.f32 %v1724_v18, %v740_v19  ;;  %v757_v25 = vadd.f32 1.0, %v1726_v23 }
 0x987   :  { %744 = vrot.lane.b32.xlu0 %v742_v21, %s1802_s24  ;;  %1727 = vrcp.f32 %v757_v25 }
 0x994   :  { %v1728_v26 = vpop.eup %1727 }
 0x995   :  { %v761_v34 = vmul.f32 %v1728_v26, %v2001_v50 }
 0x9f5   :  { %v764_v27 = vpop.permute.xlu1 %763 }
 0x9f6   :  { %v766_v29 = vmul.f32 %v1728_v26, %v764_v27 }
 0x9f8   :  { %768 = vrot.lane.b32.xlu1 %v766_v29, %s1802_s24 }
 0x9f9   :  { %v745_v31 = vpop.permute.xlu0 %744 }
 0x9fa   :  { %v2033_v32 = vadd.f32 %v745_v31, %v737_v30  ;;  %v2081_v30 = vld [vmem:[#allocation2 + $0x4] sm:$0xff]  }
 0x9fb   :  { %v1003_v31 = vunpack.c.h.bf16 %v2081_v30 }
 0x9fc   :  { %1729 = vtanh.f32 %v2033_v32 }
 0xa09   :  { %v1730_v33 = vpop.eup %1729 }
 0xa0a   :  { %750 = vrot.lane.b32.xlu0 %v1730_v33, %s1803_s25 }
 0xa6a   :  { %v769_v35 = vpop.permute.xlu1 %768 }
 0xa6b   :  { %v2038_v36 = vadd.f32 %v769_v35, %v761_v34 }
 0xa6d   :  { %1731 = vtanh.f32 %v2038_v36 }
 0xa7a   :  { %v1732_v37 = vpop.eup %1731 }
 0xa7b   :  { %774 = vrot.lane.b32.xlu1 %v1732_v37, %s1803_s25  ;;  %v2101_v37 = vld [vmem:[#allocation2 + $0x14] sm:$0xff]  }
 0xa7c   :  { %v751_v38 = vpop.permute.xlu0 %750 }
 0xa7d   :  { %v2042_v39 = vmul.f32 %v1724_v18, %v751_v38  ;;  %v954_v38 = vunpack.c.l.bf16 %v2101_v37 }
 0xa7f   :  { %v790_v40 = vpack.c.bf16 %v2042_v39, %v2042_v39 }
 0xa81   :  { %794 = vrot.lane.b32.xlu0 %v790_v40, %s1804_s26 }
 0xa85   :  { %846 = vrot.lane.b32.xlu0 %v841_v42, %s1800_s2 }
 0xaed   :  { %v775_v43 = vpop.permute.xlu1 %774 }
 0xaee   :  { %v2048_v44 = vmul.f32 %v1728_v26, %v775_v43 }
 0xaf0   :  { %v839_v45 = vpack.c.bf16 %v2048_v44, %v2048_v44 }
 0xaf2   :  { %843 = vrot.lane.b32.xlu1 %v839_v45, %s1804_s26 }
 0xaf3   :  { %v795_v46 = vpop.permute.xlu0 %794 }
 0xaf4   :  { %1616 = vmatmul.mubr.msk.bf16.vlgmr.msra.gmra.mxu1 %vm148_vm2, %v795_v46 }
 0xaf5   :  { %1626 = vmatpush3.bf16.msra.mxu1 %v1878_v17  ;;  %1627 = vmatprep.mubr.msk.bf16.mxu1 %vm1798_vm0, %v1797_v3 }
 0xaf6   :  { %1637 = vmatprep.subr.bf16.mxu1 %v1797_v3 }
 0xaf7   :  { %v847_v59 = vpop.permute.xlu0 %846 }
 0xb64   :  { %v844_v47 = vpop.permute.xlu1 %843 }
 0xb65   :  { %1622 = vmatmul.mubr.msk.bf16.vlgmr.msra.gmra.mxu0 %vm148_vm2, %v844_v47 }
 0xb66   :  { %1632 = vmatpush3.bf16.msra.mxu0 %v1884_v20  ;;  %1633 = vmatprep.mubr.msk.bf16.mxu0 %vm1798_vm0, %v1797_v3 }
 0xb67   :  { %1643 = vmatprep.subr.bf16.mxu0 %v1797_v3 }
 0xbb4   :  { %v833_v49 = vpop.f32.mrf.mxu1 }
 0xbb5   :  { %v834_v50 = vadd.f32 %v833_v49, %v792_v48 }
 0xbb6   :  { %v1617_v51 = vpop.f32.mrf.mxu1 }
 0xbb7   :  { %1733 = vtanh.f32 %v834_v50  ;;  %v1470_v56 = vmul.f32 -1.442695, %v834_v50 }
 0xbb8   :  { %v836_v52 = vpop.f32.mrf.mxu1 }
 0xbb9   :  { %1735 = vpow2.f32 %v1470_v56 }
 0xbba   :  { %v1618_v54 = vpop.f32.mrf.mxu1 }
 0xbc4   :  { %v1734_v55 = vpop.eup %1733 }
 0xbc5   :  { %901 = vrot.lane.b32.xlu1 %v1734_v55, %s1801_s23 }
 0xbc6   :  { %v1736_v58 = vpop.eup %1735 }
 0xbc7   :  { %v895_v61 = vadd.f32 1.0, %v1736_v58 }
 0xc25   :  { %v886_v60 = vpop.f32.mrf.mxu0 }
 0xc26   :  { %v887_v62 = vadd.f32 %v886_v60, %v847_v59 }
 0xc27   :  { %v1623_v63 = vpop.f32.mrf.mxu0 }
 0xc28   :  { %1737 = vtanh.f32 %v887_v62  ;;  %v1471_v8 = vmul.f32 -1.442695, %v887_v62 }
 0xc29   :  { %v889_v0 = vpop.f32.mrf.mxu0  ;;  %1739 = vrcp.f32 %v895_v61 }
 0xc2a   :  { %1741 = vpow2.f32 %v1471_v8 }
 0xc2b   :  { %v1624_v1 = vpop.f32.mrf.mxu0 }
 0xc35   :  { %v1738_v2 = vpop.eup %1737 }
 0xc36   :  { %925 = vrot.lane.b32.xlu0 %v1738_v2, %s1801_s23  ;;  %v1740_v5 = vpop.eup %1739 }
 0xc37   :  { %v902_v6 = vpop.permute.xlu1 %901  ;;  %v1742_v10 = vpop.eup %1741  ;;  %v899_v13 = vmul.f32 %v1740_v5, %v2033_v32 }
 0xc38   :  { %v904_v7 = vmul.f32 %v1740_v5, %v902_v6  ;;  %v919_v11 = vadd.f32 1.0, %v1742_v10 }
 0xc3a   :  { %906 = vrot.lane.b32.xlu1 %v904_v7, %s1802_s24  ;;  %1743 = vrcp.f32 %v919_v11 }
 0xc47   :  { %v1744_v12 = vpop.eup %1743 }
 0xc48   :  { %v923_v21 = vmul.f32 %v1744_v12, %v2038_v36 }
 0xca8   :  { %v926_v14 = vpop.permute.xlu0 %925 }
 0xca9   :  { %v928_v15 = vmul.f32 %v1744_v12, %v926_v14 }
 0xcab   :  { %930 = vrot.lane.b32.xlu0 %v928_v15, %s1802_s24 }
 0xcac   :  { %v907_v16 = vpop.permute.xlu1 %906 }
 0xcad   :  { %v2068_v18 = vadd.f32 %v907_v16, %v899_v13 }
 0xcaf   :  { %1745 = vtanh.f32 %v2068_v18 }
 0xcbc   :  { %v1746_v19 = vpop.eup %1745 }
 0xcbd   :  { %912 = vrot.lane.b32.xlu1 %v1746_v19, %s1803_s25  ;;  %v1165_v19 = vunpack.c.l.bf16 %v2081_v30 }
 0xd1d   :  { %v931_v22 = vpop.permute.xlu0 %930 }
 0xd1e   :  { %v2073_v23 = vadd.f32 %v931_v22, %v923_v21 }
 0xd20   :  { %1747 = vtanh.f32 %v2073_v23 }
 0xd2d   :  { %v1748_v25 = vpop.eup %1747 }
 0xd2e   :  { %936 = vrot.lane.b32.xlu0 %v1748_v25, %s1803_s25 }
 0xd2f   :  { %v913_v26 = vpop.permute.xlu1 %912 }
 0xd30   :  { %v2077_v27 = vmul.f32 %v1740_v5, %v913_v26 }
 0xd32   :  { %v952_v29 = vpack.c.bf16 %v2077_v27, %v2077_v27 }
 0xd34   :  { %956 = vrot.lane.b32.xlu1 %v952_v29, %s1804_s26  ;;  %v1116_v29 = vunpack.c.h.bf16 %v2101_v37 }
 0xd38   :  { %1008 = vrot.lane.b32.xlu1 %v1003_v31, %s1800_s2 }
 0xda0   :  { %v937_v32 = vpop.permute.xlu0 %936 }
 0xda1   :  { %v2086_v33 = vmul.f32 %v1744_v12, %v937_v32 }
 0xda3   :  { %v1001_v34 = vpack.c.bf16 %v2086_v33, %v2086_v33 }
 0xda5   :  { %1005 = vrot.lane.b32.xlu0 %v1001_v34, %s1804_s26 }
 0xda6   :  { %v957_v35 = vpop.permute.xlu1 %956 }
 0xda7   :  { %1628 = vmatmul.mubr.msk.bf16.vlgmr.msra.gmra.mxu1 %vm148_vm2, %v957_v35 }
 0xda8   :  { %1638 = vmatpush3.bf16.msra.mxu1 %v1878_v17  ;;  %1639 = vmatprep.mubr.msk.bf16.mxu1 %vm1798_vm0, %v1797_v3 }
 0xda9   :  { %1649 = vmatprep.subr.bf16.mxu1 %v1797_v3 }
 0xdaa   :  { %v1009_v49 = vpop.permute.xlu1 %1008 }
 0xe17   :  { %v1006_v36 = vpop.permute.xlu0 %1005 }
 0xe18   :  { %1634 = vmatmul.mubr.msk.bf16.vlgmr.msra.gmra.mxu0 %vm148_vm2, %v1006_v36 }
 0xe19   :  { %1644 = vmatpush3.bf16.msra.mxu0 %v1884_v20  ;;  %1645 = vmatprep.mubr.msk.bf16.mxu0 %vm1798_vm0, %v1797_v3 }
 0xe1a   :  { %1655 = vmatprep.subr.bf16.mxu0 %v1797_v3 }
 0xe67   :  { %v995_v40 = vpop.f32.mrf.mxu1 }
 0xe68   :  { %v996_v41 = vadd.f32 %v995_v40, %v954_v38 }
 0xe69   :  { %v1629_v42 = vpop.f32.mrf.mxu1 }
 0xe6a   :  { %1749 = vtanh.f32 %v996_v41  ;;  %v1476_v47 = vmul.f32 -1.442695, %v996_v41 }
 0xe6b   :  { %v998_v43 = vpop.f32.mrf.mxu1 }
 0xe6c   :  { %1751 = vpow2.f32 %v1476_v47 }
 0xe6d   :  { %v1630_v45 = vpop.f32.mrf.mxu1 }
 0xe77   :  { %v1750_v46 = vpop.eup %1749 }
 0xe78   :  { %1063 = vrot.lane.b32.xlu0 %v1750_v46, %s1801_s23 }
 0xe79   :  { %v1752_v48 = vpop.eup %1751 }
 0xe7a   :  { %v1057_v51 = vadd.f32 1.0, %v1752_v48 }
 0xed8   :  { %v1048_v50 = vpop.f32.mrf.mxu0 }
 0xed9   :  { %v1049_v52 = vadd.f32 %v1048_v50, %v1009_v49 }
 0xeda   :  { %v1635_v54 = vpop.f32.mrf.mxu0 }
 0xedb   :  { %1753 = vtanh.f32 %v1049_v52  ;;  %v1477_v62 = vmul.f32 -1.442695, %v1049_v52 }
 0xedc   :  { %v1051_v55 = vpop.f32.mrf.mxu0  ;;  %1755 = vrcp.f32 %v1057_v51 }
 0xedd   :  { %1757 = vpow2.f32 %v1477_v62 }
 0xede   :  { %v1636_v56 = vpop.f32.mrf.mxu0 }
 0xee8   :  { %v1754_v58 = vpop.eup %1753 }
 0xee9   :  { %1087 = vrot.lane.b32.xlu1 %v1754_v58, %s1801_s23  ;;  %v1756_v59 = vpop.eup %1755 }
 0xeea   :  { %v1064_v60 = vpop.permute.xlu0 %1063  ;;  %v1758_v63 = vpop.eup %1757  ;;  %v1061_v6 = vmul.f32 %v1756_v59, %v2068_v18 }
 0xeeb   :  { %v1066_v61 = vmul.f32 %v1756_v59, %v1064_v60  ;;  %v1081_v0 = vadd.f32 1.0, %v1758_v63 }
 0xeed   :  { %1068 = vrot.lane.b32.xlu0 %v1066_v61, %s1802_s24  ;;  %1759 = vrcp.f32 %v1081_v0 }
 0xefa   :  { %v1760_v1 = vpop.eup %1759 }
 0xefb   :  { %v1085_v11 = vmul.f32 %v1760_v1, %v2073_v23 }
 0xf5b   :  { %v1088_v2 = vpop.permute.xlu1 %1087 }
 0xf5c   :  { %v1090_v5 = vmul.f32 %v1760_v1, %v1088_v2 }
 0xf5e   :  { %1092 = vrot.lane.b32.xlu1 %v1090_v5, %s1802_s24 }
 0xf5f   :  { %v1069_v7 = vpop.permute.xlu0 %1068 }
 0xf60   :  { %v2109_v8 = vadd.f32 %v1069_v7, %v1061_v6  ;;  %v1326_v6 = vld [vmem:[#allocation2] ss:$28 sps:$4 sm:$0xff]  }
 0xf61   :  { %v1327_v7 = vunpack.c.l.bf16 %v1326_v6 }
 0xf62   :  { %1761 = vtanh.f32 %v2109_v8 }
 0xf6f   :  { %v1762_v10 = vpop.eup %1761 }
 0xf70   :  { %1074 = vrot.lane.b32.xlu0 %v1762_v10, %s1803_s25 }
 0xfd0   :  { %v1093_v12 = vpop.permute.xlu1 %1092 }
 0xfd1   :  { %v2114_v14 = vadd.f32 %v1093_v12, %v1085_v11 }
 0xfd3   :  { %1763 = vtanh.f32 %v2114_v14 }
 0xfe0   :  { %v1764_v15 = vpop.eup %1763 }
 0xfe1   :  { %1098 = vrot.lane.b32.xlu1 %v1764_v15, %s1803_s25  ;;  %v1278_v15 = vunpack.c.h.bf16 %v1326_v6 }
 0xfe2   :  { %v1075_v13 = vpop.permute.xlu0 %1074 }
 0xfe3   :  { %v2118_v16 = vmul.f32 %v1756_v59, %v1075_v13 }
 0xfe5   :  { %v1114_v18 = vpack.c.bf16 %v2118_v16, %v2118_v16 }
 0xfe7   :  { %1118 = vrot.lane.b32.xlu0 %v1114_v18, %s1804_s26 }
 0xfeb   :  { %1170 = vrot.lane.b32.xlu0 %v1165_v19, %s1800_s2 }
0x1053   :  { %v1099_v21 = vpop.permute.xlu1 %1098 }
0x1054   :  { %v2125_v22 = vmul.f32 %v1760_v1, %v1099_v21 }
0x1056   :  { %v1163_v23 = vpack.c.bf16 %v2125_v22, %v2125_v22 }
0x1058   :  { %1167 = vrot.lane.b32.xlu1 %v1163_v23, %s1804_s26 }
0x1059   :  { %v1119_v25 = vpop.permute.xlu0 %1118 }
0x105a   :  { %1640 = vmatmul.mubr.msk.bf16.vlgmr.msra.gmra.mxu1 %vm148_vm2, %v1119_v25 }
0x105b   :  { %1650 = vmatpush3.bf16.msra.mxu1 %v1878_v17  ;;  %1651 = vmatprep.mubr.msk.bf16.mxu1 %vm1798_vm0, %v1797_v3 }
0x105d   :  { %v1171_v40 = vpop.permute.xlu0 %1170 }
0x10ca   :  { %v1168_v26 = vpop.permute.xlu1 %1167 }
0x10cb   :  { %1646 = vmatmul.mubr.msk.bf16.vlgmr.msra.gmra.mxu0 %vm148_vm2, %v1168_v26 }
0x10cc   :  { %1656 = vmatpush3.bf16.msra.mxu0 %v1884_v20  ;;  %1657 = vmatprep.mubr.msk.bf16.mxu0 %vm1798_vm0, %v1797_v3 }
0x111a   :  { %v1157_v30 = vpop.f32.mrf.mxu1 }
0x111b   :  { %v1158_v31 = vadd.f32 %v1157_v30, %v1116_v29 }
0x111c   :  { %v1641_v32 = vpop.f32.mrf.mxu1 }
0x111d   :  { %1765 = vtanh.f32 %v1158_v31  ;;  %v1482_v36 = vmul.f32 -1.442695, %v1158_v31 }
0x111e   :  { %v1160_v34 = vpop.f32.mrf.mxu1 }
0x111f   :  { %1767 = vpow2.f32 %v1482_v36 }
0x1120   :  { %v1642_v35 = vpop.f32.mrf.mxu1 }
0x112a   :  { %v1766_v17 = vpop.eup %1765 }
0x112b   :  { %1225 = vrot.lane.b32.xlu1 %v1766_v17, %s1801_s23 }
0x112c   :  { %v1768_v38 = vpop.eup %1767 }
0x112d   :  { %v1219_v20 = vadd.f32 1.0, %v1768_v38 }
0x118b   :  { %v1210_v41 = vpop.f32.mrf.mxu0 }
0x118c   :  { %v1211_v42 = vadd.f32 %v1210_v41, %v1171_v40 }
0x118d   :  { %v1647_v43 = vpop.f32.mrf.mxu0 }
0x118e   :  { %1769 = vtanh.f32 %v1211_v42  ;;  %v1483_v49 = vmul.f32 -1.442695, %v1211_v42 }
0x118f   :  { %v1213_v3 = vpop.f32.mrf.mxu0  ;;  %1771 = vrcp.f32 %v1219_v20 }
0x1190   :  { %1773 = vpow2.f32 %v1483_v49 }
0x1191   :  { %v1648_v37 = vpop.f32.mrf.mxu0 }
0x119b   :  { %v1770_v45 = vpop.eup %1769 }
0x119c   :  { %1249 = vrot.lane.b32.xlu0 %v1770_v45, %s1801_s23  ;;  %v1772_v46 = vpop.eup %1771 }
0x119d   :  { %v1226_v47 = vpop.permute.xlu1 %1225  ;;  %v1774_v50 = vpop.eup %1773  ;;  %v1223_v56 = vmul.f32 %v1772_v46, %v2109_v8 }
0x119e   :  { %v1228_v48 = vmul.f32 %v1772_v46, %v1226_v47  ;;  %v1243_v51 = vadd.f32 1.0, %v1774_v50 }
0x11a0   :  { %1230 = vrot.lane.b32.xlu1 %v1228_v48, %s1802_s24  ;;  %1775 = vrcp.f32 %v1243_v51 }
0x11ad   :  { %v1776_v52 = vpop.eup %1775 }
0x11ae   :  { %v1247_v61 = vmul.f32 %v1776_v52, %v2114_v14 }
0x120e   :  { %v1250_v54 = vpop.permute.xlu0 %1249 }
0x120f   :  { %v1252_v55 = vmul.f32 %v1776_v52, %v1250_v54 }
0x1211   :  { %1254 = vrot.lane.b32.xlu0 %v1252_v55, %s1802_s24 }
0x1212   :  { %v1231_v58 = vpop.permute.xlu1 %1230 }
0x1213   :  { %v1233_v59 = vadd.f32 %v1231_v58, %v1223_v56 }
0x1215   :  { %1777 = vtanh.f32 %v1233_v59 }
0x1222   :  { %v1778_v60 = vpop.eup %1777 }
0x1223   :  { %1236 = vrot.lane.b32.xlu1 %v1778_v60, %s1803_s25 }
0x1283   :  { %v1255_v62 = vpop.permute.xlu0 %1254 }
0x1284   :  { %v2146_v63 = vadd.f32 %v1255_v62, %v1247_v61 }
0x1286   :  { %1779 = vtanh.f32 %v2146_v63 }
0x1293   :  { %v1780_v0 = vpop.eup %1779 }
0x1294   :  { %1260 = vrot.lane.b32.xlu0 %v1780_v0, %s1803_s25 }
0x1295   :  { %v1237_v1 = vpop.permute.xlu1 %1236 }
0x1296   :  { %v1239_v2 = vmul.f32 %v1772_v46, %v1237_v1 }
0x1298   :  { %v1276_v5 = vpack.c.bf16 %v1239_v2, %v1239_v2 }
0x129a   :  { %1280 = vrot.lane.b32.xlu1 %v1276_v5, %s1804_s26 }
0x129e   :  { %1332 = vrot.lane.b32.xlu1 %v1327_v7, %s1800_s2 }
0x1306   :  { %v1261_v8 = vpop.permute.xlu0 %1260 }
0x1307   :  { %v2152_v10 = vmul.f32 %v1776_v52, %v1261_v8 }
0x1309   :  { %v1325_v11 = vpack.c.bf16 %v2152_v10, %v2152_v10 }
0x130b   :  { %1329 = vrot.lane.b32.xlu0 %v1325_v11, %s1804_s26 }
0x130c   :  { %v1281_v12 = vpop.permute.xlu1 %1280 }
0x130d   :  { %1652 = vmatmul.mubr.msk.bf16.vlgmr.msra.gmra.mxu1 %vm148_vm2, %v1281_v12 }
0x1310   :  { %v1333_v30 = vpop.permute.xlu1 %1332 }
0x137d   :  { %v1330_v14 = vpop.permute.xlu0 %1329 }
0x137e   :  { %1658 = vmatmul.mubr.msk.bf16.vlgmr.msra.gmra.mxu0 %vm148_vm2, %v1330_v14 }
0x13cd   :  { %v1319_v13 = vpop.f32.mrf.mxu1 }
0x13ce   :  { %v1320_v18 = vadd.f32 %v1319_v13, %v1278_v15 }
0x13cf   :  { %v1653_v19 = vpop.f32.mrf.mxu1 }
0x13d0   :  { %1781 = vtanh.f32 %v1320_v18  ;;  %v1488_v26 = vmul.f32 -1.442695, %v1320_v18 }
0x13d1   :  { %v1322_v21 = vpop.f32.mrf.mxu1 }
0x13d2   :  { %1783 = vpow2.f32 %v1488_v26 }
0x13d3   :  { %v1654_v23 = vpop.f32.mrf.mxu1 }
0x13dd   :  { %v1782_v25 = vpop.eup %1781 }
0x13de   :  { %1387 = vrot.lane.b32.xlu0 %v1782_v25, %s1801_s23 }
0x13df   :  { %v1784_v29 = vpop.eup %1783 }
0x13e0   :  { %v1381_v32 = vadd.f32 1.0, %v1784_v29 }
0x143e   :  { %v1372_v31 = vpop.f32.mrf.mxu0 }
0x143f   :  { %v1373_v34 = vadd.f32 %v1372_v31, %v1333_v30 }
0x1440   :  { %v1659_v35 = vpop.f32.mrf.mxu0 }
0x1441   :  { %1785 = vtanh.f32 %v1373_v34  ;;  %v1489_v42 = vmul.f32 -1.442695, %v1373_v34 }
0x1442   :  { %v1375_v17 = vpop.f32.mrf.mxu0  ;;  %1787 = vrcp.f32 %v1381_v32 }
0x1443   :  { %1789 = vpow2.f32 %v1489_v42 }
0x1444   :  { %v1660_v36 = vpop.f32.mrf.mxu0 }
0x144e   :  { %v1786_v38 = vpop.eup %1785 }
0x144f   :  { %1411 = vrot.lane.b32.xlu1 %v1786_v38, %s1801_s23  ;;  %v1788_v40 = vpop.eup %1787 }
0x1450   :  { %v1388_v41 = vpop.permute.xlu0 %1387  ;;  %v1790_v43 = vpop.eup %1789  ;;  %v1385_v47 = vmul.f32 %v1788_v40, %v1233_v59 }
0x1451   :  { %v1390_v20 = vmul.f32 %v1788_v40, %v1388_v41  ;;  %v1405_v3 = vadd.f32 1.0, %v1790_v43 }
0x1453   :  { %1392 = vrot.lane.b32.xlu0 %v1390_v20, %s1802_s24  ;;  %1791 = vrcp.f32 %v1405_v3 }
0x1460   :  { %v1792_v37 = vpop.eup %1791 }
0x1461   :  { %v1409_v51 = vmul.f32 %v1792_v37, %v2146_v63 }
0x14c1   :  { %v1412_v45 = vpop.permute.xlu1 %1411 }
0x14c2   :  { %v1414_v46 = vmul.f32 %v1792_v37, %v1412_v45 }
0x14c4   :  { %1416 = vrot.lane.b32.xlu1 %v1414_v46, %s1802_s24 }
0x14c5   :  { %v1393_v48 = vpop.permute.xlu0 %1392 }
0x14c6   :  { %v1395_v49 = vadd.f32 %v1393_v48, %v1385_v47 }
0x14c8   :  { %1793 = vtanh.f32 %v1395_v49 }
0x14d5   :  { %v1794_v50 = vpop.eup %1793 }
0x14d6   :  { %1398 = vrot.lane.b32.xlu0 %v1794_v50, %s1803_s25 }
0x14da   :  { %288 = vrot.lane.b32.xlu0 %v1928_v24, %s1804_s26 }
0x14de   :  { %451 = vrot.lane.b32.xlu0 %v1964_v4, %s1804_s26 }
0x14e2   :  { %615 = vrot.lane.b32.xlu0 %v2005_v53, %s1804_s26 }
0x14e6   :  { %779 = vrot.lane.b32.xlu0 %v2042_v39, %s1804_s26 }
0x14ea   :  { %941 = vrot.lane.b32.xlu0 %v2077_v27, %s1804_s26 }
0x14ee   :  { %1103 = vrot.lane.b32.xlu0 %v2118_v16, %s1804_s26 }
0x14f2   :  { %1265 = vrot.lane.b32.xlu0 %v1239_v2, %s1804_s26 }
0x1536   :  { %v1417_v24 = vpop.permute.xlu1 %1416 }
0x1537   :  { %v1419_v52 = vadd.f32 %v1417_v24, %v1409_v51 }
0x1539   :  { %1795 = vtanh.f32 %v1419_v52 }
0x1546   :  { %v1796_v4 = vpop.eup %1795 }
0x1547   :  { %1422 = vrot.lane.b32.xlu1 %v1796_v4, %s1803_s25 }
0x1548   :  { %v1399_v53 = vpop.permute.xlu0 %1398 }
0x1549   :  { %v1401_v54 = vmul.f32 %v1788_v40, %v1399_v53 }
0x154b   :  { %1427 = vrot.lane.b32.xlu0 %v1401_v54, %s1804_s26  ;;  %293 = vrot.lane.b32.xlu1 %v1934_v28, %s1804_s26 }
0x154c   :  { %v289_v39 = vpop.permute.xlu0 %288 }
0x154d   :  { %291 = vst.msk [vmem:[%s2264_s5] sm:$0xff] %vm148_vm2, %v289_v39 }
0x154f   :  { %457 = vrot.lane.b32.xlu1 %v1973_v9, %s1804_s26 }
0x1550   :  { %v452_v27 = vpop.permute.xlu0 %451 }
0x1551   :  { %1454 = vst.msk [vmem:[%s2264_s5 + $0x8] sm:$0xff] %vm148_vm2, %v452_v27 }
0x1553   :  { %621 = vrot.lane.b32.xlu1 %v2012_v57, %s1804_s26 }
0x1554   :  { %v616_v16 = vpop.permute.xlu0 %615 }
0x1555   :  { %1460 = vst.msk [vmem:[%s2264_s5 + $0x10] sm:$0xff] %vm148_vm2, %v616_v16 }
0x1557   :  { %785 = vrot.lane.b32.xlu1 %v2048_v44, %s1804_s26 }
0x1558   :  { %v780_v28 = vpop.permute.xlu0 %779 }
0x1559   :  { %1466 = vst.msk [vmem:[%s2264_s5 + $0x18] sm:$0xff] %vm148_vm2, %v780_v28 }
0x155b   :  { %947 = vrot.lane.b32.xlu1 %v2086_v33, %s1804_s26 }
0x155c   :  { %v942_v9 = vpop.permute.xlu0 %941 }
0x155d   :  { %1472 = vst.msk [vmem:[%s2264_s5 + $0x20] sm:$0xff] %vm148_vm2, %v942_v9 }
0x155f   :  { %1109 = vrot.lane.b32.xlu1 %v2125_v22, %s1804_s26 }
0x1560   :  { %v1104_v57 = vpop.permute.xlu0 %1103 }
0x1561   :  { %1478 = vst.msk [vmem:[%s2264_s5 + $0x28] sm:$0xff] %vm148_vm2, %v1104_v57 }
0x1563   :  { %1271 = vrot.lane.b32.xlu1 %v2152_v10, %s1804_s26 }
0x1564   :  { %v1266_v44 = vpop.permute.xlu0 %1265 }
0x1565   :  { %1484 = vst.msk [vmem:[%s2264_s5 + $0x30] sm:$0xff] %vm148_vm2, %v1266_v44 }
0x15b9   :  { %v1423_v33 = vpop.permute.xlu1 %1422 }
0x15ba   :  { %v1425_v55 = vmul.f32 %v1792_v37, %v1423_v33 }
0x15bc   :  { %1433 = vrot.lane.b32.xlu1 %v1425_v55, %s1804_s26 }
0x15bd   :  { %v1428_v22 = vpop.permute.xlu0 %1427  ;;  %v294_v56 = vpop.permute.xlu1 %293 }
0x15be   :  { %1490 = vst.msk [vmem:[%s2264_s5 + $0x38] sm:$0xff] %vm148_vm2, %v1428_v22  ;;  %1449 = vst.msk [vmem:[%s2264_s5 + $0x78] sm:$0xff] %vm148_vm2, %v294_v56 }
0x15c1   :  { %v458_v58 = vpop.permute.xlu1 %457 }
0x15c2   :  { %1455 = vst.msk [vmem:[%s2264_s5 + $0x70] sm:$0xff] %vm148_vm2, %v458_v58 }
0x15c5   :  { %v622_v59 = vpop.permute.xlu1 %621 }
0x15c6   :  { %1461 = vst.msk [vmem:[%s2264_s5 + $0x68] sm:$0xff] %vm148_vm2, %v622_v59 }
0x15c9   :  { %v786_v60 = vpop.permute.xlu1 %785 }
0x15ca   :  { %1467 = vst.msk [vmem:[%s2264_s5 + $0x60] sm:$0xff] %vm148_vm2, %v786_v60 }
0x15cd   :  { %v948_v61 = vpop.permute.xlu1 %947 }
0x15ce   :  { %1473 = vst.msk [vmem:[%s2264_s5 + $0x58] sm:$0xff] %vm148_vm2, %v948_v61 }
0x15d1   :  { %v1110_v62 = vpop.permute.xlu1 %1109 }
0x15d2   :  { %1479 = vst.msk [vmem:[%s2264_s5 + $0x50] sm:$0xff] %vm148_vm2, %v1110_v62 }
0x15d5   :  { %v1272_v63 = vpop.permute.xlu1 %1271 }
0x15d6   :  { %1485 = vst.msk [vmem:[%s2264_s5 + $0x48] sm:$0xff] %vm148_vm2, %v1272_v63 }
0x162e   :  { %v1434_v0 = vpop.permute.xlu1 %1433 }
0x162f   :  { %1491 = vst.msk [vmem:[%s2264_s5 + $0x40] sm:$0xff] %vm148_vm2, %v1434_v0 }

// kernel: model_forward.10
= control target key start
LH: loop header
LB: loop body
LE: loop exit
PB: predicated region body
PF: predicated region fallthrough
CT: control target
= control target key end

     0   :  { %s651_s21 = smov 0   ;;  %s702_s0 = inlined_call_operand.vmem [shape: f32[2,4,32], index: 0, kind: input, shape index: {}]   ;;  %s703_s1 = inlined_call_operand.vmem [shape: f32[2,4,1], index: 1, kind: input, shape index: {}]   ;;  %s704_s2 = inlined_call_operand.vmem [shape: f32[16,33], index: 2, kind: input, shape index: {}]   ;;  %s705_s3 = inlined_call_operand.vmem [shape: f32[1,33], index: 3, kind: input, shape index: {}]   ;;  %s706_s4 = inlined_call_operand.vmem [shape: f32[16,16], index: 4, kind: input, shape index: {}]   ;;  %s707_s5 = inlined_call_operand.vmem [shape: f32[2,4,4], index: 5, kind: output, shape index: {0}]   ;;  %s708_s6 = inlined_call_operand.vmem [shape: f32[2,4,1], index: 6, kind: output, shape index: {1}]  }
   0x1 LB: > { %s546_s22 = sadd.s32 4294967295, %s609_s21   ;;  %p550_p0 = scmp.ge.s32.totalorder %s609_s21, 1  ;;  %s609_s21 = sphi %s651_s21, %s17_s21  }
   0x2   : > { %p223_p1 = scmp.lt.s32.totalorder %s609_s21, 3 }
   0x4   : > { %p224_p2 = pnand %p550_p0, %p223_p1 }
   0x5   : > { %p259_p3 = scmp.lt.s32.totalorder (!%p224_p2), %s546_s22, 1  ;;  %s614_s10 = smov (!%p224_p2), 112  }
   0x6   : > { %227 = sbr.rel (%p224_p2) target bundleno = 863 (0x35f), region = 40  ;;  %s615_s17 = smov (!%p224_p2), 96  }
   0xb   : > { %v611_v0 = vmov 0   ;;  %s710_s22 = smov (!%p259_p3, %s546_s22), 1  ;;  %v284_v2 = vld [vmem:[%s704_s2] sm:$0xff]  ;;  %v285_v3 = vld [vmem:[%s704_s2 + $0x8] sm:$0xff]  ;;  %v612_v4 = vmov 0.0   ;;  %vm613_vm0 = vmmov 0  }
   0xc   : > { %598 = vset.pattern.permute.xlu0 %v611_v0  ;;  %s659_s23 = sshll.u32 %s710_s22, 2  ;;  %567 = vmatprep.subr.bf16.mxu0 %v612_v4  ;;  %v287_v5 = vpack.c.bf16 %v285_v3, %v284_v2  ;;  %vm298_vm1 = vcmask 130048   ;;  %v343_v11 = vld [vmem:[%s706_s4] sm:$0xff]  ;;  %v344_v12 = vld [vmem:[%s706_s4 + $0x8] sm:$0xff]  ;;  %vm448_vm2 = vcmask 3072   ;;  %vm440_vm3 = vcmask 27648  }
   0xd   : > { %s266_s26 = scalar_lea.vmem %s703_s1, %s659_s23  ;;  %569 = vmatprep.mubr.msk.bf16.mxu0 %vm613_vm0, %v612_v4  ;;  %573 = vmatprep.subr.bf16.mxu1 %v612_v4  ;;  %s262_s9 = scalar_lea.vmem %s702_s0, %s659_s23  ;;  %v346_v13 = vpack.c.bf16 %v344_v12, %v343_v11  ;;  %v555_v14 = vld [vmem:[%s705_s3] ss:$0 sm:$0xff] }
   0xe   : > { %v276_v1 = vld [vmem:[%s266_s26] sm:$0xf]  ;;  %575 = vmatprep.mubr.msk.bf16.mxu1 %vm613_vm0, %v612_v4  ;;  %568 = vmatpush3.bf16.msra.mxu0 %v287_v5  ;;  %s274_s20 = scalar_lea.vmem %s708_s6, %s659_s23  ;;  %s270_s25 = scalar_lea.vmem %s707_s5, %s659_s23 }
   0xf   : > { %280 = vperm.xlu0 %598, %v276_v1   ;;  %579 = vmatprep.subr.bf16.mxu0 %v612_v4  ;;  %v277_v6 = vld [vmem:[%s262_s9] sm:$0xf] }
  0x10   : > { %574 = vmatpush3.bf16.msra.mxu1 %v346_v13 }
  0x8a   : > { %v281_v7 = vpop.permute.xlu0 %280 }
  0x8b   : > { %v283_v8 = vmul.f32 %v281_v7, %v277_v6 }
  0x8d   : > { %v286_v9 = vpack.c.bf16 %v283_v8, %v283_v8 }
  0x8f   : > { %296 = vrot.lane.b32.xlu0 %v286_v9, %s614_s10 }
 0x101   : > { %v297_v10 = vpop.permute.xlu0 %296 }
 0x102   : > { %570 = vmatmul.mubr.msk.bf16.vlgmr.msra.gmra.mxu0 %vm298_vm1, %v297_v10 }
 0x103   : > { %581 = vmatprep.mubr.msk.bf16.mxu0 %vm613_vm0, %v612_v4 }
 0x1c2   : > { %v336_v15 = vpop.f32.mrf.mxu0 }
 0x1c3   : > { %v337_v16 = vadd.f32 %v555_v14, %v336_v15 }
 0x1c4   : > { %v571_v17 = vpop.f32.mrf.mxu0 }
 0x1c5   : > { %599 = vtanh.f32 %v337_v16  ;;  %v442_v19 = vmul.f32 1.442695, %v337_v16 }
 0x1c6   : > { %v339_v18 = vpop.f32.mrf.mxu0 }
 0x1c7   : > { %601 = vpow2.f32 %v442_v19 }
 0x1c8   : > { %v572_v20 = vpop.f32.mrf.mxu0 }
 0x1d2   : > { %v600_v21 = vpop.eup %599 }
 0x1d3   : > { %v345_v22 = vpack.c.bf16 %v600_v21, %v600_v21 }
 0x1d4   : > { %v602_v23 = vpop.eup %601 }
 0x1d5   : > { %392 = vrot.lane.b32.xlu1 %v345_v22, %s614_s10  ;;  %576 = vmatmul.mubr.msk.bf16.vlgmr.msra.gmra.mxu1 %vm298_vm1, %v345_v22 }
 0x1d9   : > { %445 = vrot.lane.b32.xlu1 %v602_v23, %s615_s17 }
 0x247   : > { %v393_v24 = vpop.permute.xlu1 %392 }
 0x248   : > { %v398_v25 = vsel %vm298_vm1, %v393_v24, 0 }
 0x249   : > { %580 = vmatpush3.bf16.xpose.msra.mxu0 %v398_v25 }
 0x24b   : > { %v446_v26 = vpop.permute.xlu1 %445 }
 0x24c   : > { %449 = vst.msk [vmem:[%s274_s20] sm:$0xf] %vm448_vm2, %v446_v26 }
 0x295   : > { %v384_v27 = vpop.f32.mrf.mxu1 }
 0x296   : > { %v390_v28 = vpack.c.bf16 %v384_v27, %v384_v27 }
 0x297   : > { %v577_v29 = vpop.f32.mrf.mxu1 }
 0x298   : > { %582 = vmatmul.mubr.msk.bf16.vlgmr.msra.gmra.mxu0 %vm298_vm1, %v390_v28 }
 0x299   : > { %v387_v30 = vpop.f32.mrf.mxu1 }
 0x29b   : > { %v578_v31 = vpop.f32.mrf.mxu1 }
 0x358   : > { %v434_v32 = vpop.f32.mrf.mxu0 }
 0x359   : > { %441 = vst.msk [vmem:[%s270_s25] sm:$0xf] %vm440_vm3, %v434_v32 }
 0x35a   : > { %v583_v33 = vpop.f32.mrf.mxu0 }
 0x35c   : > { %v437_v34 = vpop.f32.mrf.mxu0 }
 0x35e   : > { %v584_v35 = vpop.f32.mrf.mxu0 }
 0x35f PF: > { %s17_s21 = sadd.s32 1, %s609_s21  }
 0x360   : > { %p14_p4 = scmp.ge.s32.totalorder %s17_s21, 4  }
 0x362   :  { %16 = sbr.rel (!%p14_p4) target bundleno = 1 (0x1), region = 85 }

// kernel: custom-call.25
= control target key start
LH: loop header
LB: loop body
LE: loop exit
PB: predicated region body
PF: predicated region fallthrough
CT: control target
= control target key end

     0   :  { %5 = vsyncpa [#allocation6], 0  ;;  %s909_s0 = inlined_call_operand.vmem [shape: f32[2,4,4], index: 0, kind: input, shape index: {}]   ;;  %s910_s1 = inlined_call_operand.vmem [shape: f32[2,4,4], index: 1, kind: output, shape index: {0}]   ;;  %s911_s2 = inlined_call_operand.hbm [shape: s32[2,4], index: 2, kind: output, shape index: {1}]   ;;  %s912_s3 = inlined_call_operand.vmem [shape: s32[2,4], index: 3, kind: output, shape index: {2}]  }
   0x1   :  { %7 = vsyncpa [#allocation6 + $0x1], 0  ;;  %s726_s12 = smov 0   ;;  %s728_s13 = smov 0  }
   0x2   :  { %s730_s14 = smov 0   ;;  %s732_s15 = smov 0  }
   0x3 LB: > { %s747_s16 = sadd.s32 4294967295, %s698_s15   ;;  %s563_s17 = sadd.s32 4294967294, %s698_s15   ;;  %s698_s15 = sphi %s732_s15, %s920_s15   ;;  %s694_s14 = sphi %s730_s14, %s919_s14   ;;  %s690_s13 = sphi %s728_s13, %s918_s13   ;;  %s686_s12 = sphi %s726_s12, %s917_s12  }
   0x4   : > { %s751_s18 = sadd.s32 1, %s698_s15   ;;  %s17_s19 = sshrl.u32 %s698_s15, 3 }
   0x5   : > { %s18_s20 = sshrl.u32 %s751_s18, 3  ;;  %s22_s21 = sadd.s32 1, %s694_s14 }
   0x6   : > { %s19_s22 = ssub.s32 %s17_s19, %s18_s20  ;;  %p32_p0 = scmp.ne.s32.totalorder %s694_s14, %s690_s13 }
   0x7   : > { %p20_p1 = scmp.eq.s32.totalorder %s19_s22, 0  ;;  %p33_p2 = scmp.eq.s32.totalorder %s747_s16, 1 }
   0x8   : > { %p38_p3 = scmp.ne.s32.totalorder %s690_s13, %s686_s12  ;;  %p39_p4 = scmp.eq.s32.totalorder %s563_s17, 1 }
   0x9   : > { %s762_s23 = scalar_select %p20_p1, %s694_s14, %s22_s21  }
   0xa   : > { %p764_p5 = por %p33_p2, %p32_p0  ;;  %p768_p6 = por %p39_p4, %p38_p3 }
   0xb   : > { %p565_p7 = scmp.ge.s32.totalorder %s698_s15, 2 }
   0xc   : > { %s85_s26 = sand.u32 (!%p565_p7), 1, %s698_s15   ;;  %s567_s27 = sshll.u32 (!%p565_p7), %s698_s15, 2 }
   0xd   : > { %83 = sbr.rel (%p565_p7) target bundleno = 20 (0x14), region = 16  ;;  %s566_s28 = sshll.u32 (!%p565_p7), %s85_s26, 2 }
   0xe   : > { %s89_s4 = scalar_lea.vmem (!%p565_p7), %s909_s0, %s567_s27  ;;  %s87_s5 = scalar_lea.vmem (!%p565_p7), [#allocation1], %s566_s28 }
  0x12   : > { %v106_v0 = vld [vmem:[%s89_s4] sm:$0xf] }
  0x13   : > { %107 = vst [vmem:[%s87_s5] sm:$0xf] %v106_v0 }
  0x14 PF: > { %p568_p8 = scmp.ge.s32.totalorder %s698_s15, 1  ;;  %p124_p9 = scmp.lt.s32.totalorder %s698_s15, 3 }
  0x16   : > { %p125_p10 = pnand %p568_p8, %p124_p9 }
  0x18   : > { %128 = sbr.rel (%p125_p10) target bundleno = 446 (0x1be), region = 50 }
  0x1d   : > { %s135_s6 = sand.u32 1, %s747_s16   ;;  %s146_s7 = sand.u32 1, %s690_s13   ;;  %v169_v1 = vlaneseq  ;;  %v704_v4 = vmov 0  }
  0x1e   : > { %s784_s8 = sshll.u32 %s135_s6, 2  ;;  %s788_s9 = sshll.u32 %s146_s7, 1 }
  0x1f   : > { %v791_v2 = vshrl.u32 %v169_v1, 7  ;;  %s137_s10 = scalar_lea.vmem [#allocation1], %s784_s8  ;;  %s164_s11 = sand.u32 7, %s747_s16  }
  0x20   : > { %v158_v3 = vld [vmem:[%s137_s10] sm:$0xf]  ;;  %s796_s17 = scalar_lea.vmem [#allocation4], %s164_s11  ;;  %s141_s19 = scalar_lea.vmem [#allocation3], %s784_s8 }
  0x21   : > { %159 = vst [vmem:[#allocation0] sm:$0xf] %v158_v3  ;;  %173 = vst [vmem:[#allocation9] sm:$0xff] %v791_v2  ;;  %s148_s20 = scalar_lea.vmem [#allocation5], %s788_s9  ;;  %s154_s21 = scalar_lea.vmem [#allocation8], %s788_s9 }
  0x22   : > { %168 = vst [vmem:[%s796_s17] sm:$0x1] %v704_v4  ;;  %s802_s22 = scalar_lea.vmem [#allocation7], %s164_s11  ;;  %s804_s26 = smov 0  }
  0x28   : > { %v162_v5 = vld [vmem:[#allocation0] sm:$0xff] }
  0x29   : > { %163 = vst [vmem:[#allocation2] sm:$0xff] %v162_v5 }
  0x2a LB: >> { %vm189_vm0 = vcmp.lt.s32.totalorder %v791_v2, 4  ;;  %v811_v8 = vstv %s702_s26  ;;  %s230_s27 = ssub.s32 128, %s702_s26  ;;  %v236_v38 = vand.u32 127, %v169_v1  ;;  %v239_v40 = vld [vmem:[%s796_s17] ss:$0 sm:$0xff]  ;;  %s242_s28 = scalar_lea.vmem [#allocation2], %s702_s26  ;;  %s702_s26 = sphi %s804_s26, %s179_s26  }
  0x2b   : >> { %vm188_vm1 = vcmp.ge.s32.totalorder %v791_v2, %v811_v8  ;;  %s248_s30 = scalar_lea.vmem [#allocation9], %s702_s26  ;;  %vm268_vm15 = vcmp.gt.s32.totalorder %v791_v2, %v811_v8  ;;  %s179_s26 = sadd.s32 1, %s702_s26  }
  0x2c   : >> { %vm190_vm3 = vmand %vm188_vm1, %vm189_vm0  ;;  %vm260_vm12 = vcmp.gt.s32.totalorder %v236_v38, %v811_v8  ;;  %vm237_vm13 = vcmp.eq.s32.totalorder %v236_v38, %v811_v8  ;;  %v250_v42 = vld [vmem:[%s248_s30] ss:$0 sm:$0xff]  ;;  %p176_p11 = scmp.ge.s32.totalorder %s179_s26, 4  }
  0x2d   : >> { %vm272_vm1 = vmand %vm268_vm15, %vm237_vm13  ;;  %s913_s6 = sshrl.u32 (%p176_p11), %s747_s16, 3  ;;  %s577_s10 = sshll.u32 (%p176_p11), %s747_s16, 2 }
  0x2e   : > { %s578_s11 = sshll.u32 (%p176_p11), %s913_s6, 5 }
  0x30   : >> { %v184_v6 = vld [vmem:[#allocation2] sm:$0xff]  ;;  %v244_v41 = vld [vmem:[%s242_s28] ss:$0 sm:$0xff] }
  0x31   : >> { %v185_v7 = vand.u32 2147483647, %v184_v6 }
  0x33   : >> { %vm573_vm2 = vcmp.gt.f32.partialorder %v185_v7, -inf }
  0x34   : >> { %vm192_vm4 = vmand %vm190_vm3, %vm573_vm2 }
  0x35   : >> { %v193_v9 = vsel %vm192_vm4, %v791_v2, %v811_v8  ;;  %v194_v10 = vsel %vm192_vm4, %v185_v7, -inf }
  0x36   : >> { %v195_v11 = vrot.slane %v194_v10, 1  ;;  %v196_v12 = vrot.slane %v193_v9, 1 }
  0x38   : >> { %vm197_vm5 = vcmp.ge.f32.partialorder %v195_v11, %v194_v10  ;;  %v200_v13 = vrot.slane %v195_v11, 1  ;;  %v201_v14 = vrot.slane %v196_v12, 1 }
  0x39   : >> { %v198_v15 = vsel %vm197_vm5, %v195_v11, %v194_v10  ;;  %v199_v16 = vsel %vm197_vm5, %v196_v12, %v193_v9 }
  0x3a   : >> { %vm202_vm6 = vcmp.ge.f32.partialorder %v200_v13, %v198_v15  ;;  %v205_v17 = vrot.slane %v200_v13, 1  ;;  %v206_v18 = vrot.slane %v201_v14, 1 }
  0x3b   : >> { %v203_v19 = vsel %vm202_vm6, %v200_v13, %v198_v15  ;;  %v204_v20 = vsel %vm202_vm6, %v201_v14, %v199_v16 }
  0x3c   : >> { %vm207_vm7 = vcmp.ge.f32.partialorder %v205_v17, %v203_v19  ;;  %v210_v21 = vrot.slane %v205_v17, 1  ;;  %v211_v22 = vrot.slane %v206_v18, 1 }
  0x3d   : >> { %v208_v23 = vsel %vm207_vm7, %v205_v17, %v203_v19  ;;  %v209_v24 = vsel %vm207_vm7, %v206_v18, %v204_v20 }
  0x3e   : >> { %vm212_vm8 = vcmp.ge.f32.partialorder %v210_v21, %v208_v23  ;;  %v215_v25 = vrot.slane %v210_v21, 1  ;;  %v216_v26 = vrot.slane %v211_v22, 1 }
  0x3f   : >> { %v213_v27 = vsel %vm212_vm8, %v210_v21, %v208_v23  ;;  %v214_v28 = vsel %vm212_vm8, %v211_v22, %v209_v24 }
  0x40   : >> { %vm217_vm9 = vcmp.ge.f32.partialorder %v215_v25, %v213_v27  ;;  %v220_v29 = vrot.slane %v215_v25, 1  ;;  %v221_v30 = vrot.slane %v216_v26, 1 }
  0x41   : >> { %v218_v31 = vsel %vm217_vm9, %v215_v25, %v213_v27  ;;  %v219_v32 = vsel %vm217_vm9, %v216_v26, %v214_v28 }
  0x42   : >> { %vm222_vm10 = vcmp.ge.f32.partialorder %v220_v29, %v218_v31  ;;  %v225_v33 = vrot.slane %v220_v29, 1  ;;  %v226_v34 = vrot.slane %v221_v30, 1 }
  0x43   : >> { %v223_v35 = vsel %vm222_vm10, %v220_v29, %v218_v31  ;;  %v224_v36 = vsel %vm222_vm10, %v221_v30, %v219_v32 }
  0x44   : >> { %vm227_vm11 = vcmp.ge.f32.partialorder %v225_v33, %v223_v35 }
  0x45   : >> { %v229_v37 = vsel %vm227_vm11, %v226_v34, %v224_v36 }
  0x46   : >> { %231 = vrot.lane.b32.xlu0 %v229_v37, %s230_s27  ;;  %s849_s27 = scalar_lea.vmem (%p176_p11), %s910_s1, %s577_s10 }
  0xb8   : >> { %v232_v39 = vpop.permute.xlu0 %231 }
  0xb9   : >> { %582 = vpush %v232_v39 }
  0xea   : >> { %s583_s29 = spop %582 }
  0xeb   : >> { %v238_v43 = vstv %s583_s29  ;;  %s243_s4 = scalar_lea.vmem [#allocation2], %s583_s29  ;;  %s249_s5 = scalar_lea.vmem [#allocation9], %s583_s29 }
  0xec   : >> { %v245_v44 = vld [vmem:[%s243_s4] ss:$0 sm:$0xff]  ;;  %v240_v46 = vsel %vm237_vm13, %v238_v43, %v239_v40 }
  0xed   : >> { %v251_v45 = vld [vmem:[%s249_s5] ss:$0 sm:$0xff]  ;;  %246 = vst [vmem:[%s243_s4] sm:$0x1] %v244_v41  ;;  %vm254_vm14 = vcmp.ne.f32.partialorder %v245_v44, 0.0  ;;  %241 = vst [vmem:[%s796_s17] sm:$0x1] %v240_v46  ;;  %v261_v53 = vsel %vm260_vm12, %v245_v44, 0.0 }
  0xee   : >> { %252 = vst [vmem:[%s249_s5] sm:$0x1] %v250_v42  ;;  %247 = vst [vmem:[%s242_s28] sm:$0x1] %v245_v44  ;;  %s410_s4 = sshll.u32 (%p176_p11), %s148_s20, 4  ;;  %s357_s5 = scalar_lea.sflag (%p176_p11), [#allocation6], %s146_s7  ;;  %s411_s4 = int_to_ptr.vmem [resolvable:$true] %s410_s4 }
  0xef   : >> { %253 = vst [vmem:[%s248_s30] sm:$0x1] %v251_v45  ;;  %vm255_vm0 = vmand %vm237_vm13, %vm254_vm14  ;;  %s854_s30 = scalar_lea.hbm (%p176_p11), %s911_s2, %s578_s11  ;;  %s634_s6 = scalar_lea.vmem (%p176_p11), %s411_s4, 32 }
  0xf0   : >> { %v256_v47 = vsel %vm255_vm0, %v245_v44, 1.0  ;;  %p635_p12 = scmp.ne.s32.totalorder (%p176_p11), %s411_s4, %s634_s6  ;;  %s705_s17 = smov (%p176_p11), [#allocation5]  }
  0xf1   : >> { %v269_v48 = vsel %vm268_vm15, %v256_v47, 1.0  ;;  %s638_s10 = sshll.u32 (%p176_p11), %s705_s17, 4  ;;  %s639_s10 = int_to_ptr.vmem [resolvable:$false] %s638_s10 }
  0xf2   : >> { %632 = vrcp.f32 %v269_v48  ;;  %p636_p13 = pnand (%p176_p11), %p635_p12, %p764_p5  ;;  %s640_s26 = scalar_lea.vmem (%p176_p11), %s639_s10, 64 }
  0xf3   : > { %p641_p1 = scmp.lt.s32.totalorder (%p176_p11), %s411_s4, %s639_s10  ;;  %p642_p2 = scmp.lt.s32.totalorder (%p176_p11), %s640_s26, %s634_s6 }
  0xf4   : > { %v340_v59 = vld [vmem:[#allocation4] sm:$0x3] (%p176_p11)  ;;  %p637_p0 = pneg (%p176_p11), %p636_p13 }
  0xf5   : >> { %v265_v50 = vld [vmem:[#allocation2] sm:$0xff]  ;;  %343 = vst [vmem:[%s148_s20] sm:$0x3] (%p176_p11), %v340_v59  ;;  %p643_p3 = por (%p176_p11), %p642_p2, %p641_p1 }
  0xf6   : > { %v279_v57 = vld [vmem:[#allocation9] sm:$0xff] (%p176_p11) }
  0xf7   : > { %p644_p4 = pnand (%p176_p11), %p643_p3, %p637_p0 }
  0xff   : >> { %v633_v49 = vpop.eup %632 }
 0x100   : >> { %v271_v51 = vmul.f32 %v633_v49, %v265_v50 }
 0x102   : >> { %v273_v52 = vsel %vm272_vm1, %v271_v51, 0.0 }
 0x103   : >> { %274 = vadd.xlane.f32.xlu0 %v273_v52 }
 0x130   : > { %295 = vxpose.xlu0.b32.start.end [1/1] (short) (narrow) (%p176_p11), %v279_v57, 8 }
 0x18c   : >> { %v275_v54 = vpop.xlane.xlu0 %274 }
 0x18d   : >> { %v276_v55 = vmul.f32 %v275_v54, %v261_v53  ;;  %178 = sbr.rel (!%p176_p11) target bundleno = 42 (0x2a), region = 202 }
 0x18f   : >> { %v277_v56 = vsub.f32 %v271_v51, %v276_v55 }
 0x191   : >> { %278 = vst [vmem:[#allocation2] sm:$0xff] %v277_v56 }
 0x198   : > { %v332_v58 = vld [vmem:[#allocation2] sm:$0xf] }
 0x199   : > { %335 = vst [vmem:[%s141_s19] sm:$0xf] %v332_v58 }
 0x1a0   : > { %v383_v60 = vld [vmem:[%s141_s19] sm:$0xf] }
 0x1a1   : > { %647 = shalt.err (!%p644_p4)
}
 0x1a2   : > { %s648_s8 = scalar_lea.hbm %s854_s30, 32  ;;  %s652_s20 = scalar_lea.hbm %s911_s2, 32 }
 0x1a3   : > { %p649_p8 = scmp.ne.s32.totalorder %s854_s30, %s648_s8  ;;  %p653_p11 = scmp.lt.s32.totalorder %s854_s30, %s911_s2 }
 0x1a4   : > { %p654_p12 = scmp.lt.s32.totalorder %s652_s20, %s648_s8 }
 0x1a5   : > { %p650_p9 = pnand %p649_p8, %p764_p5 }
 0x1a6   : > { %p655_p13 = por %p654_p12, %p653_p11 }
 0x1a7   : > { %p651_p10 = pneg %p650_p9 }
 0x1a9   : > { %p656_p0 = pnand %p655_p13, %p651_p10 }
 0x1ab   : > { %659 = shalt.err (!%p656_p0)
}
 0x1ac   : > { %584 = dma.vmem_to_hbm [thread:$0]  (%p764_p5), %s411_s4, 32, %s854_s30, %s357_s5   ;;  %384 = vst [vmem:[%s849_s27] sm:$0xf] %v383_v60  ;;  %v311_v61 = vpop.trf.xlu0 }
 0x1ad   : > { %327 = vst [vmem:[%s802_s22] sm:$0x1] %v311_v61  ;;  %s916_s6 = sshrl.u32 (%p764_p5), %s747_s16, 3 }
 0x1ae   : > { %s579_s29 = sshll.u32 (%p764_p5), %s916_s6, 1 }
 0x1af   : > { %s419_s26 = scalar_lea.vmem (%p764_p5), %s912_s3, %s579_s29 }
 0x1b1   : > { %416 = sbr.rel (!%p764_p5) target bundleno = 446 (0x1be), region = 96 }
 0x1b4   : > { %v348_v62 = vld [vmem:[#allocation7] sm:$0x3] }
 0x1b5   : > { %351 = vst [vmem:[%s154_s21] sm:$0x3] %v348_v62 }
 0x1bc   : > { %v436_v63 = vld [vmem:[%s154_s21] sm:$0x3] }
 0x1bd   : > { %437 = vst [vmem:[%s419_s26] sm:$0x3] %v436_v63 }
 0x1be PF: > { %s465_s22 = sand.u32 1, %s686_s12   ;;  %p587_p5 = pnand %p565_p7, %p768_p6 }
 0x1bf   : > { %s466_s16 = scalar_lea.sflag [#allocation6], %s465_s22 }
 0x1c0   : > { %p588_p1 = pneg %p587_p5 }
 0x1c2   : > { %681 = dma.done.wait (%p588_p1), %s466_s16, 32  }
 0x1c3   : > { %683 = vsyncadd (%p588_p1), %s466_s16, 4294967264  ;;  %p10_p2 = scmp.ge.s32.totalorder %s751_s18, 4   ;;  %s917_s12 = smov %s690_s13 }
 0x1c4   : > { %s918_s13 = smov %s694_s14  ;;  %s919_s14 = smov %s762_s23 }
 0x1c5   : > { %s920_s15 = smov %s751_s18  ;;  %12 = sbr.rel (!%p10_p2) target bundleno = 3 (0x3), region = 213 }
 0x1ca   :  { %478 = vsyncpa [#allocation6], 1 }
 0x1cb   :  { %480 = vsyncpa [#allocation6 + $0x1], 1 }

// kernel: custom-call.27
= control target key start
LH: loop header
LB: loop body
LE: loop exit
PB: predicated region body
PF: predicated region fallthrough
CT: control target
= control target key end

     0   :  { %s360_s6 = smov 0   ;;  %s362_s7 = smov 0   ;;  %s407_s0 = inlined_call_operand.vmem [shape: f32[2,1,4,4], index: 0, kind: input, shape index: {}]   ;;  %s408_s1 = inlined_call_operand.vmem [shape: f32[2,1,4,4], index: 1, kind: output, shape index: {}]  }
   0x1   :  { %s364_s8 = smov 0  }
   0x2 LB: > { %s286_s9 = sadd.s32 4294967295, %s347_s8   ;;  %s33_s10 = sadd.s32 1, %s343_s7  ;;  %s347_s8 = sphi %s364_s8, %s7_s8   ;;  %s343_s7 = sphi %s362_s7, %s410_s7   ;;  %s339_s6 = sphi %s360_s6, %s409_s6  }
   0x3   : > { %p35_p0 = scmp.ge.s32.totalorder %s33_s10, 2  ;;  %p288_p1 = scmp.ge.s32.totalorder %s347_s8, 2 }
   0x4   : > { %s49_s11 = sand.u32 (!%p288_p1), 1, %s347_s8   ;;  %s290_s12 = sshll.u32 (!%p288_p1), %s343_s7, 2 }
   0x5   : > { %s412_s10 = smov (%p35_p0, %s33_s10), 0  ;;  %47 = sbr.rel (%p288_p1) target bundleno = 12 (0xc), region = 16 }
   0x6   : > { %s289_s13 = sshll.u32 (!%p288_p1), %s49_s11, 2  ;;  %s56_s16 = scalar_lea.vmem (!%p288_p1), %s407_s0, %s290_s12 }
   0x7   : > { %s51_s17 = scalar_lea.vmem (!%p288_p1), [#allocation1], %s289_s13 }
   0xa   : > { %v73_v0 = vld [vmem:[%s56_s16] sm:$0xf] }
   0xb   : > { %74 = vst [vmem:[%s51_s17] sm:$0xf] %v73_v0 }
   0xc PF: > { %p291_p2 = scmp.ge.s32.totalorder %s347_s8, 1  ;;  %p91_p3 = scmp.lt.s32.totalorder %s347_s8, 3 }
   0xe   : > { %p92_p4 = pnand %p291_p2, %p91_p3 }
  0x10   : > { %95 = sbr.rel (%p92_p4) target bundleno = 641 (0x281), region = 50 }
  0x15   : > { %s387_s18 = sand.u32 1, %s286_s9   ;;  %v114_v1 = vlaneseq  ;;  %v349_v11 = vmov -1.0   ;;  %s295_s22 = sshll.u32 %s339_s6, 2 }
  0x16   : > { %s292_s19 = sshll.u32 %s387_s18, 2  ;;  %s193_s25 = scalar_lea.vmem %s408_s1, %s295_s22 }
  0x17   : > { %s104_s20 = scalar_lea.vmem [#allocation1], %s292_s19  ;;  %v115_v3 = vand.u32 127, %v114_v1  ;;  %v118_v4 = vshrl.u32 %v114_v1, 7  ;;  %s108_s21 = scalar_lea.vmem [#allocation3], %s292_s19 }
  0x18   : > { %v112_v2 = vld [vmem:[%s104_s20] sm:$0xf] }
  0x19   : > { %113 = vst [vmem:[#allocation0] sm:$0xf] %v112_v2  ;;  %vm116_vm0 = vcmp.lt.s32.totalorder %v115_v3, 4  ;;  %vm125_vm1 = vcmp.ge.s32.totalorder %v118_v4, %v115_v3  ;;  %vm120_vm2 = vcmp.eq.s32.totalorder %v118_v4, %v115_v3  ;;  %vm139_vm4 = vcmp.eq.s32.totalorder %v115_v3, 0 }
  0x1a   : > { %vm126_vm3 = vmand %vm125_vm1, %vm116_vm0  ;;  %vm136_vm5 = vcmp.eq.s32.totalorder %v115_v3, %v118_v4  ;;  %v140_v12 = vsel %vm139_vm4, 1.0, %v349_v11  ;;  %vm147_vm6 = vcmp.eq.s32.totalorder %v115_v3, 1  ;;  %vm157_vm7 = vcmp.eq.s32.totalorder %v115_v3, 2 }
  0x1b   : > { %v141_v13 = vsel %vm136_vm5, %v140_v12, 0.0  ;;  %vm167_vm8 = vcmp.eq.s32.totalorder %v115_v3, 3 }
  0x20   : > { %v121_v5 = vld [vmem:[#allocation0] sm:$0xff] }
  0x21   : > { %v122_v6 = vsel %vm120_vm2, %v121_v5, 0.0  ;;  %v127_v7 = vsel %vm126_vm3, %v121_v5, 0.0 }
  0x22   : > { %123 = vadd.xlane.f32.xlu0 %v122_v6 }
  0xab   : > { %v124_v8 = vpop.xlane.xlu0 %123 }
  0xac   : > { %323 = vrcp.f32 %v124_v8  ;;  %vm174_vm9 = vweird.f32 %v124_v8 }
  0xb9   : > { %v324_v9 = vpop.eup %323 }
  0xba   : > { %v129_v10 = vmul.f32 %v324_v9, %v127_v7 }
  0xbc   : > { %130 = vst [vmem:[#allocation4] sm:$0xff] %v129_v10 }
  0xc3   : > { %v143_v14 = vld [vmem:[#allocation4 + $0x1] ss:$0 sm:$0xff]  ;;  %v153_v17 = vld [vmem:[#allocation4 + $0x2] ss:$0 sm:$0xff]  ;;  %v163_v22 = vld [vmem:[#allocation4 + $0x3] ss:$0 sm:$0xff] }
  0xc4   : > { %v144_v15 = vxor.u32 2147483648, %v143_v14  ;;  %v154_v19 = vxor.u32 2147483648, %v153_v17  ;;  %v164_v24 = vxor.u32 2147483648, %v163_v22 }
  0xc6   : > { %v148_v16 = vmul.f32 %v144_v15, %v141_v13 }
  0xc8   : > { %149 = vadd.xlane.f32.xlu0 %v148_v16 }
 0x151   : > { %v150_v18 = vpop.xlane.xlu0 %149 }
 0x152   : > { %v151_v20 = vsel %vm147_vm6, %v150_v18, %v141_v13 }
 0x153   : > { %v158_v21 = vmul.f32 %v154_v19, %v151_v20 }
 0x155   : > { %159 = vadd.xlane.f32.xlu1 %v158_v21 }
 0x1de   : > { %v160_v23 = vpop.xlane.xlu1 %159 }
 0x1df   : > { %v161_v25 = vsel %vm157_vm7, %v160_v23, %v151_v20 }
 0x1e0   : > { %v168_v26 = vmul.f32 %v164_v24, %v161_v25 }
 0x1e2   : > { %169 = vadd.xlane.f32.xlu1 %v168_v26 }
 0x26b   : > { %v170_v27 = vpop.xlane.xlu1 %169 }
 0x26c   : > { %v171_v28 = vsel %vm167_vm8, %v170_v27, %v161_v25 }
 0x26d   : > { %v173_v29 = vmul.f32 %v324_v9, %v171_v28 }
 0x26f   : > { %v175_v30 = vsel %vm174_vm9, %v171_v28, %v173_v29 }
 0x270   : > { %176 = vst [vmem:[#allocation2] sm:$0xff] %v175_v30 }
 0x277   : > { %v181_v31 = vld [vmem:[#allocation2] sm:$0xf] }
 0x278   : > { %184 = vst [vmem:[%s108_s21] sm:$0xf] %v181_v31 }
 0x27f   : > { %v210_v32 = vld [vmem:[%s108_s21] sm:$0xf] }
 0x280   : > { %211 = vst [vmem:[%s193_s25] sm:$0xf] %v210_v32 }
 0x281 PF: > { %s7_s8 = sadd.s32 1, %s347_s8   ;;  %s409_s6 = smov %s343_s7 }
 0x282   : > { %p4_p5 = scmp.ge.s32.totalorder %s7_s8, 4   ;;  %s410_s7 = smov %s412_s10 }
 0x284   :  { %6 = sbr.rel (!%p4_p5) target bundleno = 2 (0x2), region = 113 }

// kernel: model_forward.8
= control target key start
LH: loop header
LB: loop body
LE: loop exit
PB: predicated region body
PF: predicated region fallthrough
CT: control target
= control target key end

     0   :  { %s1406_s27 = smov 0   ;;  %s1537_s0 = inlined_call_operand.vmem [shape: f32[8,8,1], index: 0, kind: input, shape index: {}]   ;;  %s1538_s1 = inlined_call_operand.vmem [shape: f32[8,8,8], index: 1, kind: input, shape index: {}]   ;;  %s1539_s2 = inlined_call_operand.vmem [shape: f32[8,8,8], index: 2, kind: input, shape index: {}]   ;;  %s1540_s3 = inlined_call_operand.vmem [shape: f32[8,8,32], index: 3, kind: input, shape index: {}]   ;;  %s1541_s4 = inlined_call_operand.vmem [shape: f32[8,8,1], index: 4, kind: input, shape index: {}]   ;;  %s1542_s5 = inlined_call_operand.vmem [shape: f32[1,16], index: 5, kind: input, shape index: {}]   ;;  %s1543_s6 = inlined_call_operand.vmem [shape: f32[48,16], index: 6, kind: input, shape index: {}]   ;;  %s1544_s7 = inlined_call_operand.vmem [shape: f32[1,16], index: 7, kind: input, shape index: {}]   ;;  %s1545_s8 = inlined_call_operand.vmem [shape: f32[8,1,16], index: 8, kind: output, shape index: {}]  }
   0x1 LB: > { %s1208_s28 = sadd.s32 4294967295, %s1356_s27   ;;  %p1212_p0 = scmp.ge.s32.totalorder %s1356_s27, 1  ;;  %s1356_s27 = sphi %s1406_s27, %s18_s27  }
   0x2   : > { %p307_p1 = scmp.lt.s32.totalorder %s1356_s27, 3 }
   0x4   : > { %p308_p2 = pnand %p1212_p0, %p307_p1 }
   0x5   : > { %s1213_s29 = sshll.u32 (!%p308_p2), %s1208_s28, 2 }
   0x6   : > { %311 = sbr.rel (%p308_p2) target bundleno = 591 (0x24f), region = 52  ;;  %p361_p3 = scmp.lt.s32.totalorder (!%p308_p2), %s1213_s29, 7 }
   0xb   : > { %v1358_v0 = vmov 0   ;;  %s1547_s29 = smov (!%p361_p3, %s1213_s29), 7  ;;  %v1359_v5 = vmov 0.0   ;;  %vm1360_vm0 = vmmov 0   ;;  %vm479_vm1 = vcmask 1043456   ;;  %v845_v49 = vld [vmem:[%s1543_s6] sm:$0xff] }
   0xc   : > { %1349 = vset.pattern.permute.xlu1 %v1358_v0  ;;  %1348 = vset.pattern.permute.xlu0 %v1358_v0  ;;  %s1417_s30 = sshll.u32 %s1547_s29, 3  ;;  %vm475_vm2 = vcmask 64512   ;;  %v846_v50 = vld [vmem:[%s1543_s6 + $0x8] sm:$0xff]  ;;  %vm857_vm3 = vcmask 130048   ;;  %v847_v59 = vld [vmem:[%s1543_s6 + $0x10] sm:$0xff]  ;;  %v848_v60 = vld [vmem:[%s1543_s6 + $0x18] sm:$0xff]  ;;  %s393_s22 = scalar_lea.vmem %s1545_s8, %s1547_s29 }
   0xd   : > { %s388_s11 = scalar_lea.vmem %s1541_s4, %s1417_s30  ;;  %1271 = vmatprep.subr.bf16.mxu0 %v1359_v5  ;;  %1277 = vmatprep.subr.bf16.mxu1 %v1359_v5  ;;  %s364_s14 = scalar_lea.vmem %s1537_s0, %s1417_s30  ;;  %v853_v53 = vpack.c.bf16 %v846_v50, %v845_v49  ;;  %v856_v61 = vpack.c.bf16 %v848_v60, %v847_v59  ;;  %v849_v62 = vld [vmem:[%s1543_s6 + $0x20] sm:$0xff]  ;;  %v850_v63 = vld [vmem:[%s1543_s6 + $0x28] sm:$0xff]  ;;  %vm1105_vm4 = vcmask 122880  }
   0xe   : > { %v398_v1 = vld [vmem:[%s388_s11 + $0x10] sm:$0xff]  ;;  %v396_v2 = vld [vmem:[%s388_s11] sm:$0xff]  ;;  %v399_v3 = vld [vmem:[%s388_s11 + $0x18] sm:$0xff]  ;;  %1273 = vmatprep.mubr.msk.bf16.mxu0 %vm1360_vm0, %v1359_v5  ;;  %1279 = vmatprep.mubr.msk.bf16.mxu1 %vm1360_vm0, %v1359_v5  ;;  %s382_s17 = scalar_lea.vmem %s1540_s3, %s1417_s30  ;;  %s1441_s20 = scalar_lea.vmem %s1538_s1, %s1417_s30  ;;  %v970_v0 = vpack.c.bf16 %v850_v63, %v849_v62 }
   0xf   : > { %416 = vperm.xlu1 %1349, %v398_v1   ;;  %406 = vperm.xlu0 %1348, %v396_v2   ;;  %v397_v4 = vld [vmem:[%s388_s11 + $0x8] sm:$0xff]  ;;  %v432_v7 = vld [vmem:[%s364_s14] sm:$0xff]  ;;  %v1240_v8 = vadd.f32 -1.0, %v396_v2  ;;  %v435_v10 = vld [vmem:[%s364_s14 + $0x18] sm:$0xff]  ;;  %v1242_v12 = vadd.f32 -1.0, %v398_v1  ;;  %v1243_v14 = vadd.f32 -1.0, %v399_v3  ;;  %s376_s23 = scalar_lea.vmem %s1539_s2, %s1417_s30 }
  0x10   : > { %v433_v6 = vld [vmem:[%s364_s14 + $0x8] sm:$0xff]  ;;  %v1241_v9 = vadd.f32 -1.0, %v397_v4  ;;  %v434_v11 = vld [vmem:[%s364_s14 + $0x10] sm:$0xff]  ;;  %v400_v19 = vld [vmem:[%s382_s17] sm:$0xff] }
  0x11   : > { %v1049_v13 = vmul.f32 999.0, %v1240_v8  ;;  %v1051_v16 = vmul.f32 999.0, %v1242_v12  ;;  %v1052_v17 = vmul.f32 999.0, %v1243_v14  ;;  %v402_v18 = vld [vmem:[%s382_s17 + $0x10] sm:$0xff]  ;;  %v403_v24 = vld [vmem:[%s382_s17 + $0x18] sm:$0xff]  ;;  %v401_v25 = vld [vmem:[%s382_s17 + $0x8] sm:$0xff] }
  0x12   : > { %v1050_v15 = vmul.f32 999.0, %v1241_v9  ;;  %v467_v26 = vld [vmem:[%s1441_s20] sm:$0xff]  ;;  %v468_v35 = vld [vmem:[%s1441_s20 + $0x8] sm:$0xff]  ;;  %v469_v41 = vld [vmem:[%s1441_s20 + $0x10] sm:$0xff] }
  0x13   : > { %421 = vperm.xlu1 %1349, %v399_v3   ;;  %411 = vperm.xlu0 %1348, %v397_v4   ;;  %v471_v34 = vpack.c.bf16 %v467_v26, %v467_v26  ;;  %v472_v40 = vpack.c.bf16 %v468_v35, %v468_v35  ;;  %v473_v43 = vpack.c.bf16 %v469_v41, %v469_v41  ;;  %v470_v44 = vld [vmem:[%s1441_s20 + $0x18] sm:$0xff]  ;;  %v665_v46 = vld [vmem:[%s376_s23] sm:$0xff]  ;;  %v666_v48 = vld [vmem:[%s376_s23 + $0x8] sm:$0xff] }
  0x14   : > { %v474_v45 = vpack.c.bf16 %v470_v44, %v470_v44  ;;  %v669_v47 = vpack.c.bf16 %v665_v46, %v665_v46  ;;  %v670_v51 = vpack.c.bf16 %v666_v48, %v666_v48  ;;  %v667_v52 = vld [vmem:[%s376_s23 + $0x10] sm:$0xff]  ;;  %v668_v55 = vld [vmem:[%s376_s23 + $0x18] sm:$0xff]  ;;  %v1224_v2 = vld [vmem:[%s1542_s5] ss:$0 sm:$0xff] }
  0x15   : > { %v671_v54 = vpack.c.bf16 %v667_v52, %v667_v52  ;;  %v672_v56 = vpack.c.bf16 %v668_v55, %v668_v55  ;;  %v1239_v60 = vld [vmem:[%s1544_s7] ss:$0 sm:$0xff] }
  0x17   : > { %444 = vperm.xlu1 %1349, %v433_v6   ;;  %439 = vperm.xlu0 %1348, %v432_v7  }
  0x1b   : > { %454 = vperm.xlu1 %1349, %v435_v10   ;;  %449 = vperm.xlu0 %1348, %v434_v11  }
  0x1f   : > { %1060 = vperm.xlu1 %1349, %v1050_v15   ;;  %1055 = vperm.xlu0 %1348, %v1049_v13  }
  0x23   : > { %1070 = vperm.xlu1 %1349, %v1052_v17   ;;  %1065 = vperm.xlu0 %1348, %v1051_v16  }
  0x8a   : > { %v417_v20 = vpop.permute.xlu1 %416  ;;  %v407_v21 = vpop.permute.xlu0 %406 }
  0x8b   : > { %v1443_v22 = vmul.f32 %v417_v20, %v402_v18  ;;  %v1445_v23 = vmul.f32 %v407_v21, %v400_v19 }
  0x8d   : > { %v430_v27 = vpack.c.bf16 %v1443_v22, %v1443_v22  ;;  %v428_v28 = vpack.c.bf16 %v1445_v23, %v1445_v23 }
  0x8e   : > { %v422_v29 = vpop.permute.xlu1 %421  ;;  %v412_v30 = vpop.permute.xlu0 %411 }
  0x8f   : > { %v1452_v31 = vmul.f32 %v422_v29, %v403_v24  ;;  %v425_v32 = vmul.f32 %v412_v30, %v401_v25  ;;  %v481_v33 = vsel %vm479_vm1, %v428_v28, 0  ;;  %v573_v38 = vsel %vm479_vm1, %v430_v27, 0 }
  0x90   : > { %1272 = vmatpush3.bf16.msra.mxu0 %v481_v33 }
  0x91   : > { %v431_v36 = vpack.c.bf16 %v1452_v31, %v1452_v31  ;;  %1283 = vmatprep.subr.bf16.mxu0 %v1359_v5  ;;  %v429_v37 = vpack.c.bf16 %v425_v32, %v425_v32  ;;  %v851_v57 = vpack.c.bf16 %v425_v32, %v1445_v23  ;;  %v852_v58 = vpack.c.bf16 %v1452_v31, %v1443_v22 }
  0x92   : > { %v445_v1 = vpop.permute.xlu1 %444  ;;  %v440_v3 = vpop.permute.xlu0 %439 }
  0x93   : > { %1274 = vmatmul.mubr.msk.bf16.vlgmr.msra.gmra.mxu0 %vm475_vm2, %v471_v34  ;;  %v527_v39 = vsel %vm479_vm1, %v429_v37, 0  ;;  %v619_v42 = vsel %vm479_vm1, %v431_v36, 0  ;;  %v464_v6 = vmul.f32 %v1224_v2, %v445_v1  ;;  %v463_v7 = vmul.f32 %v1224_v2, %v440_v3 }
  0x94   : > { %1278 = vmatpush3.bf16.msra.mxu1 %v527_v39  ;;  %1284 = vmatpush3.bf16.msra.mxu0 %v573_v38 }
  0x95   : > { %1289 = vmatprep.subr.bf16.mxu1 %v1359_v5  ;;  %1285 = vmatprep.mubr.msk.bf16.mxu0 %vm1360_vm0, %v1359_v5 }
  0x96   : > { %1295 = vmatprep.subr.bf16.mxu0 %v1359_v5  ;;  %v455_v14 = vpop.permute.xlu1 %454  ;;  %v450_v15 = vpop.permute.xlu0 %449 }
  0x97   : > { %1280 = vmatmul.mubr.msk.bf16.vlgmr.msra.gmra.mxu1 %vm475_vm2, %v472_v40  ;;  %v466_v21 = vmul.f32 %v1224_v2, %v455_v14  ;;  %v465_v22 = vmul.f32 %v1224_v2, %v450_v15 }
  0x98   : > { %1290 = vmatpush3.bf16.msra.mxu1 %v619_v42  ;;  %1291 = vmatprep.mubr.msk.bf16.mxu1 %vm1360_vm0, %v1359_v5 }
  0x99   : > { %1301 = vmatprep.subr.bf16.mxu1 %v1359_v5 }
  0x9b   : > { %1286 = vmatmul.mubr.msk.bf16.vlgmr.msra.gmra.mxu0 %vm475_vm2, %v473_v43 }
  0x9c   : > { %1296 = vmatpush3.bf16.msra.mxu0 %v481_v33  ;;  %1297 = vmatprep.mubr.msk.bf16.mxu0 %vm1360_vm0, %v1359_v5 }
  0x9d   : > { %1307 = vmatprep.subr.bf16.mxu0 %v1359_v5 }
  0x9f   : > { %1292 = vmatmul.mubr.msk.bf16.vlgmr.msra.gmra.mxu1 %vm475_vm2, %v474_v45 }
  0xa0   : > { %1302 = vmatpush3.bf16.msra.mxu1 %v527_v39  ;;  %1303 = vmatprep.mubr.msk.bf16.mxu1 %vm1360_vm0, %v1359_v5 }
  0xa1   : > { %1313 = vmatprep.subr.bf16.mxu1 %v1359_v5 }
  0xa3   : > { %1298 = vmatmul.mubr.msk.bf16.vlgmr.msra.gmra.mxu0 %vm475_vm2, %v669_v47 }
  0xa4   : > { %1308 = vmatpush3.bf16.msra.mxu0 %v573_v38  ;;  %1309 = vmatprep.mubr.msk.bf16.mxu0 %vm1360_vm0, %v1359_v5 }
  0xa5   : > { %1319 = vmatprep.subr.bf16.mxu0 %v856_v61 }
  0xa7   : > { %1304 = vmatmul.mubr.msk.bf16.vlgmr.msra.gmra.mxu1 %vm475_vm2, %v670_v51 }
  0xa8   : > { %1314 = vmatpush3.bf16.msra.mxu1 %v619_v42  ;;  %1315 = vmatprep.mubr.msk.bf16.mxu1 %vm1360_vm0, %v1359_v5 }
  0xa9   : > { %1325 = vmatprep.subr.bf16.mxu1 %v853_v53 }
  0xab   : > { %1310 = vmatmul.mubr.msk.bf16.vlgmr.msra.gmra.mxu0 %vm475_vm2, %v671_v54 }
  0xac   : > { %1320 = vmatpush3.bf16.msra.mxu0 %v856_v61 }
  0xad   : > { %1331 = vmatprep.subr.bf16.mxu0 %v970_v0 }
  0xaf   : > { %1316 = vmatmul.mubr.msk.bf16.vlgmr.msra.gmra.mxu1 %vm475_vm2, %v672_v56  ;;  %v1056_v56 = vpop.permute.xlu0 %1055 }
  0xb0   : > { %1327 = vmatprep.mubr.msk.bf16.mxu1 %vm857_vm3, %v851_v57  ;;  %1326 = vmatpush3.bf16.msra.mxu1 %v853_v53 }
  0xb7   : > { %1328 = vmatmul.mubr.msk.bf16.vlgmr.msra.gmra.mxu1 %vm857_vm3, %v852_v58 }
 0x153   : > { %v517_v4 = vpop.f32.mrf.mxu0 }
 0x154   : > { %v661_v10 = vadd.f32 %v517_v4, %v463_v7 }
 0x155   : > { %v1275_v5 = vpop.f32.mrf.mxu0 }
 0x157   : > { %v520_v8 = vpop.f32.mrf.mxu0  ;;  %v563_v9 = vpop.f32.mrf.mxu1 }
 0x158   : > { %v662_v11 = vadd.f32 %v563_v9, %v464_v6 }
 0x159   : > { %v1276_v12 = vpop.f32.mrf.mxu0  ;;  %v1281_v13 = vpop.f32.mrf.mxu1 }
 0x15a   : > { %v854_v16 = vpack.c.bf16 %v662_v11, %v661_v10  ;;  %v1066_v10 = vpop.permute.xlu0 %1065 }
 0x15b   : > { %v566_v17 = vpop.f32.mrf.mxu1  ;;  %v609_v18 = vpop.f32.mrf.mxu0 }
 0x15c   : > { %1321 = vmatprep.mubr.msk.bf16.mxu0 %vm857_vm3, %v854_v16  ;;  %v663_v25 = vadd.f32 %v609_v18, %v465_v22 }
 0x15d   : > { %v1282_v19 = vpop.f32.mrf.mxu1  ;;  %v1287_v20 = vpop.f32.mrf.mxu0 }
 0x15f   : > { %v612_v23 = vpop.f32.mrf.mxu0  ;;  %v655_v24 = vpop.f32.mrf.mxu1 }
 0x160   : > { %v664_v26 = vadd.f32 %v655_v24, %v466_v21 }
 0x161   : > { %v1288_v27 = vpop.f32.mrf.mxu0  ;;  %v1293_v28 = vpop.f32.mrf.mxu1 }
 0x162   : > { %v855_v29 = vpack.c.bf16 %v664_v26, %v663_v25 }
 0x163   : > { %v658_v30 = vpop.f32.mrf.mxu1  ;;  %v710_v31 = vpop.f32.mrf.mxu0 }
 0x164   : > { %1322 = vmatmul.mubr.msk.bf16.vlgmr.msra.gmra.mxu0 %vm857_vm3, %v855_v29 }
 0x165   : > { %v1294_v32 = vpop.f32.mrf.mxu1  ;;  %v1299_v33 = vpop.f32.mrf.mxu0  ;;  %1332 = vmatpush3.bf16.msra.mxu0 %v970_v0 }
 0x166   : > { %v1061_v0 = vpop.permute.xlu1 %1060 }
 0x167   : > { %v713_v34 = vpop.f32.mrf.mxu0  ;;  %v753_v35 = vpop.f32.mrf.mxu1 }
 0x168   : > { %v968_v36 = vpack.c.bf16 %v753_v35, %v710_v31 }
 0x169   : > { %v1300_v37 = vpop.f32.mrf.mxu0  ;;  %v1305_v38 = vpop.f32.mrf.mxu1 }
 0x16a   : > { %1333 = vmatprep.mubr.msk.bf16.mxu0 %vm857_vm3, %v968_v36  ;;  %v1071_v20 = vpop.permute.xlu1 %1070 }
 0x16b   : > { %v756_v39 = vpop.f32.mrf.mxu1  ;;  %v796_v40 = vpop.f32.mrf.mxu0 }
 0x16d   : > { %v1306_v41 = vpop.f32.mrf.mxu1  ;;  %v1311_v42 = vpop.f32.mrf.mxu0 }
 0x16f   : > { %v799_v43 = vpop.f32.mrf.mxu0  ;;  %v839_v44 = vpop.f32.mrf.mxu1 }
 0x170   : > { %v969_v45 = vpack.c.bf16 %v839_v44, %v796_v40 }
 0x171   : > { %v1312_v46 = vpop.f32.mrf.mxu0  ;;  %v1317_v47 = vpop.f32.mrf.mxu1 }
 0x172   : > { %1334 = vmatmul.mubr.msk.bf16.vlgmr.msra.gmra.mxu0 %vm857_vm3, %v969_v45 }
 0x173   : > { %v842_v48 = vpop.f32.mrf.mxu1 }
 0x175   : > { %v1318_v49 = vpop.f32.mrf.mxu1 }
 0x177   : > { %v1329_v52 = vpop.f32.mrf.mxu1 }
 0x179   : > { %v953_v54 = vpop.f32.mrf.mxu1 }
 0x17b   : > { %v1330_v58 = vpop.f32.mrf.mxu1 }
 0x17d   : > { %v956_v4 = vpop.f32.mrf.mxu1 }
 0x224   : > { %v1323_v50 = vpop.f32.mrf.mxu0 }
 0x225   : > { %v962_v57 = vadd.f32 %v1329_v52, %v1323_v50 }
 0x226   : > { %v898_v51 = vpop.f32.mrf.mxu0 }
 0x227   : > { %v954_v61 = vadd.f32 %v953_v54, %v898_v51 }
 0x228   : > { %v1324_v53 = vpop.f32.mrf.mxu0 }
 0x229   : > { %v965_v1 = vadd.f32 %v1330_v58, %v1324_v53 }
 0x22a   : > { %v901_v55 = vpop.f32.mrf.mxu0 }
 0x22b   : > { %v957_v6 = vadd.f32 %v956_v4, %v901_v55 }
 0x232   : > { %v1335_v59 = vpop.f32.mrf.mxu0 }
 0x233   : > { %v1028_v62 = vadd.f32 %v1335_v59, %v962_v57 }
 0x234   : > { %v1011_v63 = vpop.f32.mrf.mxu0 }
 0x235   : > { %v1039_v2 = vadd.f32 %v1239_v60, %v1028_v62  ;;  %v1026_v3 = vadd.f32 %v1011_v63, %v954_v61 }
 0x236   : > { %v1336_v5 = vpop.f32.mrf.mxu0 }
 0x237   : > { %v1043_v7 = vmax.f32 %v1039_v2, 0.0  ;;  %v1037_v8 = vadd.f32 %v1239_v60, %v1026_v3  ;;  %v1029_v9 = vadd.f32 %v1336_v5, %v965_v1 }
 0x238   : > { %v1014_v11 = vpop.f32.mrf.mxu0 }
 0x239   : > { %v1075_v12 = vadd.f32 %v1066_v10, %v1043_v7  ;;  %v1041_v13 = vmax.f32 %v1037_v8, 0.0  ;;  %v1040_v14 = vadd.f32 %v1239_v60, %v1029_v9  ;;  %v1027_v15 = vadd.f32 %v1014_v11, %v957_v6 }
 0x23b   : > { %v1091_v16 = vsel %vm857_vm3, %v1075_v12, -inf  ;;  %v1073_v17 = vadd.f32 %v1056_v56, %v1041_v13  ;;  %v1044_v18 = vmax.f32 %v1040_v14, 0.0  ;;  %v1038_v19 = vadd.f32 %v1239_v60, %v1027_v15 }
 0x23c   : > { %v1092_v21 = vrot.slane %v1091_v16, 4 }
 0x23d   : > { %v1077_v22 = vsel %vm857_vm3, %v1073_v17, -inf  ;;  %v1076_v23 = vadd.f32 %v1071_v20, %v1044_v18  ;;  %v1042_v24 = vmax.f32 %v1038_v19, 0.0 }
 0x23e   : > { %v1093_v25 = vmax.f32 %v1091_v16, %v1092_v21  ;;  %v1078_v26 = vrot.slane %v1077_v22, 4 }
 0x23f   : > { %v1098_v27 = vsel %vm857_vm3, %v1076_v23, -inf  ;;  %v1074_v28 = vadd.f32 %v1061_v0, %v1042_v24 }
 0x240   : > { %v1079_v29 = vmax.f32 %v1077_v22, %v1078_v26  ;;  %v1099_v30 = vrot.slane %v1098_v27, 4  ;;  %v1094_v31 = vrot.slane %v1093_v25, 2 }
 0x241   : > { %v1084_v32 = vsel %vm857_vm3, %v1074_v28, -inf }
 0x242   : > { %v1080_v33 = vrot.slane %v1079_v29, 2  ;;  %v1100_v34 = vmax.f32 %v1098_v27, %v1099_v30  ;;  %v1085_v35 = vrot.slane %v1084_v32, 4  ;;  %v1095_v39 = vmax.f32 %v1093_v25, %v1094_v31 }
 0x244   : > { %v1081_v36 = vmax.f32 %v1079_v29, %v1080_v33  ;;  %v1101_v37 = vrot.slane %v1100_v34, 2  ;;  %v1086_v38 = vmax.f32 %v1084_v32, %v1085_v35  ;;  %v1096_v45 = vrot.slane %v1095_v39, 1 }
 0x246   : > { %v1082_v40 = vrot.slane %v1081_v36, 1  ;;  %v1102_v41 = vmax.f32 %v1100_v34, %v1101_v37  ;;  %v1087_v42 = vrot.slane %v1086_v38, 2  ;;  %v1097_v49 = vmax.f32 %v1095_v39, %v1096_v45 }
 0x248   : > { %v1083_v43 = vmax.f32 %v1081_v36, %v1082_v40  ;;  %v1088_v44 = vmax.f32 %v1086_v38, %v1087_v42  ;;  %v1103_v46 = vrot.slane %v1102_v41, 1  ;;  %1108 = vst.msk [vmem:[%s393_s22 + $0x2] sm:$0x1] %vm1105_vm4, %v1097_v49 }
 0x24a   : > { %1106 = vst.msk [vmem:[%s393_s22] sm:$0x1] %vm1105_vm4, %v1083_v43  ;;  %v1089_v47 = vrot.slane %v1088_v44, 1  ;;  %v1104_v50 = vmax.f32 %v1102_v41, %v1103_v46 }
 0x24c   : > { %v1090_v48 = vmax.f32 %v1088_v44, %v1089_v47  ;;  %1109 = vst.msk [vmem:[%s393_s22 + $0x3] sm:$0x1] %vm1105_vm4, %v1104_v50 }
 0x24e   : > { %1107 = vst.msk [vmem:[%s393_s22 + $0x1] sm:$0x1] %vm1105_vm4, %v1090_v48 }
 0x24f PF: > { %s18_s27 = sadd.s32 1, %s1356_s27  }
 0x250   : > { %p15_p4 = scmp.ge.s32.totalorder %s18_s27, 4  }
 0x252   :  { %17 = sbr.rel (!%p15_p4) target bundleno = 1 (0x1), region = 94 }

// kernel: custom-call.26
= control target key start
LH: loop header
LB: loop body
LE: loop exit
PB: predicated region body
PF: predicated region fallthrough
CT: control target
= control target key end

     0   :  { %s359_s6 = smov 0   ;;  %s361_s7 = smov 0   ;;  %s406_s0 = inlined_call_operand.vmem [shape: f32[2,1,4,4], index: 0, kind: input, shape index: {}]   ;;  %s407_s1 = inlined_call_operand.vmem [shape: f32[2,1,4,4], index: 1, kind: output, shape index: {}]  }
   0x1   :  { %s363_s8 = smov 0  }
   0x2 LB: > { %s285_s9 = sadd.s32 4294967295, %s346_s8   ;;  %s33_s10 = sadd.s32 1, %s342_s7  ;;  %s346_s8 = sphi %s363_s8, %s7_s8   ;;  %s342_s7 = sphi %s361_s7, %s409_s7   ;;  %s338_s6 = sphi %s359_s6, %s408_s6  }
   0x3   : > { %p35_p0 = scmp.ge.s32.totalorder %s33_s10, 2  ;;  %p287_p1 = scmp.ge.s32.totalorder %s346_s8, 2 }
   0x4   : > { %s49_s11 = sand.u32 (!%p287_p1), 1, %s346_s8   ;;  %s289_s12 = sshll.u32 (!%p287_p1), %s342_s7, 2 }
   0x5   : > { %s411_s10 = smov (%p35_p0, %s33_s10), 0  ;;  %47 = sbr.rel (%p287_p1) target bundleno = 12 (0xc), region = 16 }
   0x6   : > { %s288_s13 = sshll.u32 (!%p287_p1), %s49_s11, 2  ;;  %s56_s16 = scalar_lea.vmem (!%p287_p1), %s406_s0, %s289_s12 }
   0x7   : > { %s51_s17 = scalar_lea.vmem (!%p287_p1), [#allocation1], %s288_s13 }
   0xa   : > { %v73_v0 = vld [vmem:[%s56_s16] sm:$0xf] }
   0xb   : > { %74 = vst [vmem:[%s51_s17] sm:$0xf] %v73_v0 }
   0xc PF: > { %p290_p2 = scmp.ge.s32.totalorder %s346_s8, 1  ;;  %p91_p3 = scmp.lt.s32.totalorder %s346_s8, 3 }
   0xe   : > { %p92_p4 = pnand %p290_p2, %p91_p3 }
  0x10   : > { %95 = sbr.rel (%p92_p4) target bundleno = 641 (0x281), region = 50 }
  0x15   : > { %s386_s18 = sand.u32 1, %s285_s9   ;;  %v114_v1 = vlaneseq  ;;  %v348_v11 = vmov -1.0   ;;  %s294_s22 = sshll.u32 %s338_s6, 2 }
  0x16   : > { %s291_s19 = sshll.u32 %s386_s18, 2  ;;  %s192_s25 = scalar_lea.vmem %s407_s1, %s294_s22 }
  0x17   : > { %s104_s20 = scalar_lea.vmem [#allocation1], %s291_s19  ;;  %v115_v3 = vand.u32 127, %v114_v1  ;;  %v118_v4 = vshrl.u32 %v114_v1, 7  ;;  %s108_s21 = scalar_lea.vmem [#allocation3], %s291_s19 }
  0x18   : > { %v112_v2 = vld [vmem:[%s104_s20] sm:$0xf] }
  0x19   : > { %113 = vst [vmem:[#allocation0] sm:$0xf] %v112_v2  ;;  %vm116_vm0 = vcmp.lt.s32.totalorder %v115_v3, 4  ;;  %vm125_vm1 = vcmp.le.s32.totalorder %v118_v4, %v115_v3  ;;  %vm120_vm2 = vcmp.eq.s32.totalorder %v118_v4, %v115_v3  ;;  %vm139_vm4 = vcmp.eq.s32.totalorder %v115_v3, 3 }
  0x1a   : > { %vm126_vm3 = vmand %vm125_vm1, %vm116_vm0  ;;  %vm136_vm5 = vcmp.eq.s32.totalorder %v115_v3, %v118_v4  ;;  %v140_v12 = vsel %vm139_vm4, 1.0, %v348_v11  ;;  %vm147_vm6 = vcmp.eq.s32.totalorder %v115_v3, 2  ;;  %vm157_vm7 = vcmp.eq.s32.totalorder %v115_v3, 1 }
  0x1b   : > { %v141_v13 = vsel %vm136_vm5, %v140_v12, 0.0  ;;  %vm166_vm8 = vcmp.eq.s32.totalorder %v115_v3, 0 }
  0x20   : > { %v121_v5 = vld [vmem:[#allocation0] sm:$0xff] }
  0x21   : > { %v122_v6 = vsel %vm120_vm2, %v121_v5, 0.0  ;;  %v127_v7 = vsel %vm126_vm3, %v121_v5, 0.0 }
  0x22   : > { %123 = vadd.xlane.f32.xlu0 %v122_v6 }
  0xab   : > { %v124_v8 = vpop.xlane.xlu0 %123 }
  0xac   : > { %322 = vrcp.f32 %v124_v8  ;;  %vm173_vm9 = vweird.f32 %v124_v8 }
  0xb9   : > { %v323_v9 = vpop.eup %322 }
  0xba   : > { %v129_v10 = vmul.f32 %v323_v9, %v127_v7 }
  0xbc   : > { %130 = vst [vmem:[#allocation4] sm:$0xff] %v129_v10 }
  0xc3   : > { %v143_v14 = vld [vmem:[#allocation4 + $0x2] ss:$0 sm:$0xff]  ;;  %v153_v17 = vld [vmem:[#allocation4 + $0x1] ss:$0 sm:$0xff]  ;;  %v162_v22 = vld [vmem:[#allocation4] ss:$0 sm:$0xff] }
  0xc4   : > { %v144_v15 = vxor.u32 2147483648, %v143_v14  ;;  %v154_v19 = vxor.u32 2147483648, %v153_v17  ;;  %v163_v24 = vxor.u32 2147483648, %v162_v22 }
  0xc6   : > { %v148_v16 = vmul.f32 %v144_v15, %v141_v13 }
  0xc8   : > { %149 = vadd.xlane.f32.xlu0 %v148_v16 }
 0x151   : > { %v150_v18 = vpop.xlane.xlu0 %149 }
 0x152   : > { %v151_v20 = vsel %vm147_vm6, %v150_v18, %v141_v13 }
 0x153   : > { %v158_v21 = vmul.f32 %v154_v19, %v151_v20 }
 0x155   : > { %159 = vadd.xlane.f32.xlu1 %v158_v21 }
 0x1de   : > { %v160_v23 = vpop.xlane.xlu1 %159 }
 0x1df   : > { %v161_v25 = vsel %vm157_vm7, %v160_v23, %v151_v20 }
 0x1e0   : > { %v167_v26 = vmul.f32 %v163_v24, %v161_v25 }
 0x1e2   : > { %168 = vadd.xlane.f32.xlu1 %v167_v26 }
 0x26b   : > { %v169_v27 = vpop.xlane.xlu1 %168 }
 0x26c   : > { %v170_v28 = vsel %vm166_vm8, %v169_v27, %v161_v25 }
 0x26d   : > { %v172_v29 = vmul.f32 %v323_v9, %v170_v28 }
 0x26f   : > { %v174_v30 = vsel %vm173_vm9, %v170_v28, %v172_v29 }
 0x270   : > { %175 = vst [vmem:[#allocation2] sm:$0xff] %v174_v30 }
 0x277   : > { %v180_v31 = vld [vmem:[#allocation2] sm:$0xf] }
 0x278   : > { %183 = vst [vmem:[%s108_s21] sm:$0xf] %v180_v31 }
 0x27f   : > { %v209_v32 = vld [vmem:[%s108_s21] sm:$0xf] }
 0x280   : > { %210 = vst [vmem:[%s192_s25] sm:$0xf] %v209_v32 }
 0x281 PF: > { %s7_s8 = sadd.s32 1, %s346_s8   ;;  %s408_s6 = smov %s342_s7 }
 0x282   : > { %p4_p5 = scmp.ge.s32.totalorder %s7_s8, 4   ;;  %s409_s7 = smov %s411_s10 }
 0x284   :  { %6 = sbr.rel (!%p4_p5) target bundleno = 2 (0x2), region = 112 }

// kernel: model_forward.9
= control target key start
LH: loop header
LB: loop body
LE: loop exit
PB: predicated region body
PF: predicated region fallthrough
CT: control target
= control target key end

     0   :  { %v36_v0 = vlaneseq  ;;  %v978_v1 = vmov 0.0   ;;  %vm979_vm0 = vmmov 0   ;;  %v980_v5 = vmov 1983009808   ;;  %s983_s11 = smov 96   ;;  %s984_s12 = smov 16   ;;  %s1229_s1 = inlined_call_operand.vmem [shape: f32[16,128], index: 1, kind: input, shape index: {}]   ;;  %s1230_s0 = inlined_call_operand.vmem [shape: f32[4,2,16], index: 0, kind: input, shape index: {}]   ;;  %s1231_s3 = inlined_call_operand.vmem [shape: f32[16,64], index: 3, kind: input, shape index: {}]   ;;  %s1232_s4 = inlined_call_operand.vmem [shape: f32[16,64], index: 4, kind: input, shape index: {}]   ;;  %s1233_s2 = inlined_call_operand.vmem [shape: f32[1,128], index: 2, kind: input, shape index: {}]   ;;  %s1234_s5 = inlined_call_operand.vmem [shape: f32[2,4,2,16], index: 5, kind: output, shape index: {}]  }
   0x1   :  { %851 = vmatprep.subr.bf16.mxu0 %v978_v1  ;;  %v25_v2 = vld [vmem:[%s1229_s1] sm:$0xff]  ;;  %v26_v3 = vld [vmem:[%s1229_s1 + $0x8] sm:$0xff]  ;;  %853 = vmatprep.mubr.msk.bf16.mxu0 %vm979_vm0, %v978_v1  ;;  %v34_v6 = vunpack.c.l.s4 %v980_v5  ;;  %v981_v24 = vmov 0   ;;  %vm58_vm1 = vcmask 130048   ;;  %s985_s13 = smov 32   ;;  %s986_s14 = smov 80  }
   0x2   :  { %v21_v4 = vld [vmem:[%s1230_s0] sm:$0x3]  ;;  %v50_v7 = vpack.c.bf16 %v26_v3, %v25_v2  ;;  %v22_v8 = vld [vmem:[%s1230_s0 + $0x2] sm:$0x3]  ;;  %v23_v9 = vld [vmem:[%s1230_s0 + $0x4] sm:$0x3]  ;;  %857 = vmatprep.subr.bf16.mxu1 %v978_v1  ;;  %859 = vmatprep.mubr.msk.bf16.mxu1 %vm979_vm0, %v978_v1 }
   0x3   :  { %v24_v10 = vld [vmem:[%s1230_s0 + $0x6] sm:$0x3]  ;;  %v31_v11 = vcombine.low %v21_v4, %v22_v8  ;;  %v35_v13 = vunpack.c.0.s8 %v34_v6  ;;  %v37_v14 = vshrl.u32 %v36_v0, 7  ;;  %v133_v16 = vld [vmem:[%s1231_s3 + $0x8] sm:$0xff]  ;;  %v810_v28 = vld [vmem:[%s1233_s2] ss:$0 sm:$0xff] }
   0x4   :  { %v32_v12 = vcombine.low %v23_v9, %v24_v10  ;;  %v132_v15 = vld [vmem:[%s1231_s3] sm:$0xff]  ;;  %852 = vmatpush3.bf16.msra.mxu0 %v50_v7  ;;  %v136_v22 = vld [vmem:[%s1232_s4 + $0x8] sm:$0xff]  ;;  %s982_s2 = smov 64   ;;  %vm289_vm2 = vcmask 123904  }
   0x5   :  { %v1047_v17 = vpack.c.bf16 %v133_v16, %v132_v15  ;;  %v1049_v18 = vsub.s32 %v35_v13, %v37_v14  ;;  %863 = vmatprep.subr.bf16.mxu0 %v978_v1  ;;  %v135_v21 = vld [vmem:[%s1232_s4] sm:$0xff] }
   0x6   :  { %v1062_v25 = vpack.c.bf16 %v136_v22, %v135_v21 }
   0x7   :  { %858 = vmatpush3.bf16.msra.mxu1 %v1047_v17  ;;  %v39_v19 = vrot.slane %v31_v11, %v1049_v18  ;;  %v46_v20 = vrot.slane %v32_v12, %v1049_v18 }
   0x8   :  { %869 = vmatprep.subr.bf16.mxu1 %v978_v1 }
   0x9   :  { %v47_v23 = vcombine.low %v39_v19, %v46_v20 }
   0xa   :  { %860 = vmatmul.mubr.bf16.vlgmr.msra.gmra.mxu1 %v981_v24 }
   0xb   :  { %870 = vmatpush3.bf16.msra.mxu1 %v1047_v17  ;;  %871 = vmatprep.mubr.msk.bf16.mxu1 %vm979_vm0, %v978_v1  ;;  %v49_v26 = vpack.c.bf16 %v47_v23, %v47_v23 }
   0xc   :  { %881 = vmatprep.subr.bf16.mxu1 %v978_v1 }
   0xd   :  { %854 = vmatmul.mubr.msk.bf16.vlgmr.msra.gmra.mxu0 %vm58_vm1, %v49_v26 }
   0xe   :  { %864 = vmatpush3.bf16.msra.mxu0 %v1062_v25  ;;  %865 = vmatprep.mubr.msk.bf16.mxu0 %vm979_vm0, %v978_v1 }
   0xf   :  { %875 = vmatprep.subr.bf16.mxu0 %v978_v1 }
  0x15   :  { %866 = vmatmul.mubr.bf16.vlgmr.msra.gmra.mxu0 %v981_v24 }
  0x16   :  { %876 = vmatpush3.bf16.msra.mxu0 %v1062_v25  ;;  %877 = vmatprep.mubr.msk.bf16.mxu0 %vm979_vm0, %v978_v1 }
  0x17   :  { %887 = vmatprep.subr.bf16.mxu0 %v978_v1 }
  0xca   :  { %v177_v27 = vpop.f32.mrf.mxu1 }
  0xcc   :  { %v861_v29 = vpop.f32.mrf.mxu1 }
  0xcd   :  { %v96_v30 = vpop.f32.mrf.mxu0 }
  0xce   :  { %v180_v31 = vpop.f32.mrf.mxu1  ;;  %v97_v32 = vadd.f32 %v810_v28, %v96_v30 }
  0xcf   :  { %v855_v33 = vpop.f32.mrf.mxu0 }
  0xd0   :  { %v862_v34 = vpop.f32.mrf.mxu1  ;;  %v103_v35 = vcombine.high %v97_v32, %v97_v32  ;;  %v110_v36 = vrot.slane %v97_v32, %v1049_v18 }
  0xd1   :  { %v99_v37 = vpop.f32.mrf.mxu0 }
  0xd2   :  { %v117_v38 = vrot.slane %v103_v35, %v1049_v18  ;;  %v118_v39 = vcombine.high %v110_v36, %v110_v36  ;;  %v124_v40 = vpack.c.bf16 %v110_v36, %v110_v36 }
  0xd3   :  { %v856_v41 = vpop.f32.mrf.mxu0 }
  0xd4   :  { %v119_v42 = vcombine.high %v117_v38, %v117_v38  ;;  %v125_v43 = vpack.c.bf16 %v118_v39, %v118_v39  ;;  %v126_v44 = vpack.c.bf16 %v117_v38, %v117_v38  ;;  %128 = vst [vmem:[#allocation2] sm:$0x1] %v124_v40 }
  0xd5   :  { %v231_v45 = vpop.f32.mrf.mxu0 }
  0xd6   :  { %v127_v46 = vpack.c.bf16 %v119_v42, %v119_v42  ;;  %129 = vst [vmem:[#allocation2 + $0x1] sm:$0x1] %v125_v43  ;;  %130 = vst [vmem:[#allocation2 + $0x2] sm:$0x1] %v126_v44 }
  0xd7   :  { %v867_v47 = vpop.f32.mrf.mxu0 }
  0xd8   :  { %131 = vst [vmem:[#allocation2 + $0x3] sm:$0x1] %v127_v46 }
  0xd9   :  { %v234_v48 = vpop.f32.mrf.mxu0 }
  0xdb   :  { %v138_v49 = vld [vmem:[#allocation2] sm:$0x1]  ;;  %v868_v50 = vpop.f32.mrf.mxu0 }
  0xdc   :  { %v139_v51 = vunpack.c.l.bf16 %v138_v49 }
  0xdd   :  { %v349_v20 = vld [vmem:[#allocation2 + $0x2] sm:$0x1]  ;;  %v299_v31 = vld [vmem:[#allocation2 + $0x1] sm:$0x1] }
  0xde   :  { %v178_v52 = vadd.f32 %v177_v27, %v139_v51  ;;  %v350_v23 = vunpack.c.l.bf16 %v349_v20  ;;  %v300_v32 = vunpack.c.l.bf16 %v299_v31 }
  0xdf   :  { %v184_v53 = vld [vmem:[#allocation2 + $0x3] sm:$0x1] }
  0xe0   :  { %914 = vtanh.f32 %v178_v52  ;;  %v185_v54 = vunpack.c.l.bf16 %v184_v53  ;;  %v812_v57 = vmul.f32 -1.442695, %v178_v52  ;;  %v361_v24 = vrot.slane %v350_v23, %v1049_v18 }
  0xe2   :  { %v193_v55 = vrot.slane %v185_v54, %v1049_v18  ;;  %916 = vpow2.f32 %v812_v57 }
  0xe4   :  { %194 = vrot.lane.b32.xlu0 %v193_v55, %s982_s2 }
  0xed   :  { %v915_v56 = vpop.eup %914 }
  0xee   :  { %246 = vrot.lane.b32.xlu0 %v915_v56, %s983_s11 }
  0xef   :  { %v917_v58 = vpop.eup %916 }
  0xf0   :  { %v240_v60 = vadd.f32 1.0, %v917_v58 }
 0x156   :  { %v195_v59 = vpop.permute.xlu0 %194 }
 0x157   :  { %v232_v61 = vadd.f32 %v231_v45, %v195_v59 }
 0x159   :  { %918 = vtanh.f32 %v232_v61  ;;  %v813_v3 = vmul.f32 -1.442695, %v232_v61 }
 0x15a   :  { %920 = vrcp.f32 %v240_v60 }
 0x15b   :  { %922 = vpow2.f32 %v813_v3 }
 0x160   :  { %v247_v63 = vpop.permute.xlu0 %246 }
 0x166   :  { %v919_v62 = vpop.eup %918 }
 0x167   :  { %270 = vrot.lane.b32.xlu1 %v919_v62, %s983_s11  ;;  %v921_v0 = vpop.eup %920 }
 0x168   :  { %v249_v2 = vmul.f32 %v921_v0, %v247_v63  ;;  %v923_v4 = vpop.eup %922  ;;  %v244_v9 = vmul.f32 0.0, %v921_v0 }
 0x169   :  { %v264_v5 = vadd.f32 1.0, %v923_v4  ;;  %v518_v4 = vld [vmem:[#allocation2 + $0x1] sm:$0x1] }
 0x16b   :  { %251 = vrot.lane.b32.xlu1 %v249_v2, %s984_s12  ;;  %924 = vrcp.f32 %v264_v5 }
 0x178   :  { %v925_v6 = vpop.eup %924 }
 0x179   :  { %v268_v13 = vmul.f32 0.0, %v925_v6 }
 0x1d9   :  { %v271_v7 = vpop.permute.xlu1 %270 }
 0x1da   :  { %v273_v8 = vmul.f32 %v925_v6, %v271_v7  ;;  %v519_v7 = vunpack.c.l.bf16 %v518_v4 }
 0x1dc   :  { %275 = vrot.lane.b32.xlu0 %v273_v8, %s984_s12  ;;  %v530_v8 = vrot.slane %v519_v7, %v1049_v18 }
 0x1dd   :  { %v252_v10 = vpop.permute.xlu1 %251 }
 0x1de   :  { %v1088_v11 = vadd.f32 %v252_v10, %v244_v9 }
 0x1e0   :  { %926 = vtanh.f32 %v1088_v11 }
 0x1ed   :  { %v927_v12 = vpop.eup %926 }
 0x1ee   :  { %257 = vrot.lane.b32.xlu1 %v927_v12, %s985_s13 }
 0x24e   :  { %v276_v14 = vpop.permute.xlu0 %275 }
 0x24f   :  { %v1092_v15 = vadd.f32 %v276_v14, %v268_v13  ;;  %v469_v14 = vld [vmem:[#allocation2 + $0x2] sm:$0x1] }
 0x251   :  { %928 = vtanh.f32 %v1092_v15 }
 0x25e   :  { %v929_v16 = vpop.eup %928 }
 0x25f   :  { %281 = vrot.lane.b32.xlu0 %v929_v16, %s985_s13 }
 0x260   :  { %v258_v19 = vpop.permute.xlu1 %257 }
 0x261   :  { %v1096_v21 = vmul.f32 %v921_v0, %v258_v19 }
 0x263   :  { %v297_v22 = vpack.c.bf16 %v1096_v21, %v1096_v21 }
 0x265   :  { %302 = vrot.lane.b32.xlu1 %v297_v22, %s986_s14 }
 0x269   :  { %362 = vrot.lane.b32.xlu1 %v361_v24, %s982_s2 }
 0x2d1   :  { %v282_v26 = vpop.permute.xlu0 %281 }
 0x2d2   :  { %v1103_v27 = vmul.f32 %v925_v6, %v282_v26 }
 0x2d4   :  { %v347_v28 = vpack.c.bf16 %v1103_v27, %v1103_v27 }
 0x2d6   :  { %352 = vrot.lane.b32.xlu0 %v347_v28, %s986_s14 }
 0x2d7   :  { %v303_v29 = vpop.permute.xlu1 %302 }
 0x2d8   :  { %872 = vmatmul.mubr.msk.bf16.vlgmr.msra.gmra.mxu1 %vm58_vm1, %v303_v29 }
 0x2d9   :  { %882 = vmatpush3.bf16.msra.mxu1 %v1047_v17  ;;  %883 = vmatprep.mubr.msk.bf16.mxu1 %vm979_vm0, %v978_v1 }
 0x2da   :  { %893 = vmatprep.subr.bf16.mxu1 %v978_v1 }
 0x2db   :  { %v363_v41 = vpop.permute.xlu1 %362 }
 0x348   :  { %v353_v30 = vpop.permute.xlu0 %352 }
 0x349   :  { %878 = vmatmul.mubr.msk.bf16.vlgmr.msra.gmra.mxu0 %vm58_vm1, %v353_v30 }
 0x34a   :  { %888 = vmatpush3.bf16.msra.mxu0 %v1062_v25  ;;  %889 = vmatprep.mubr.msk.bf16.mxu0 %vm979_vm0, %v978_v1 }
 0x34b   :  { %899 = vmatprep.subr.bf16.mxu0 %v978_v1 }
 0x398   :  { %v341_v33 = vpop.f32.mrf.mxu1 }
 0x399   :  { %v342_v34 = vadd.f32 %v341_v33, %v300_v32 }
 0x39a   :  { %v873_v35 = vpop.f32.mrf.mxu1 }
 0x39b   :  { %930 = vtanh.f32 %v342_v34  ;;  %v817_v39 = vmul.f32 -1.442695, %v342_v34 }
 0x39c   :  { %v344_v36 = vpop.f32.mrf.mxu1 }
 0x39d   :  { %932 = vpow2.f32 %v817_v39 }
 0x39e   :  { %v874_v37 = vpop.f32.mrf.mxu1 }
 0x3a8   :  { %v931_v38 = vpop.eup %930 }
 0x3a9   :  { %417 = vrot.lane.b32.xlu0 %v931_v38, %s983_s11 }
 0x3aa   :  { %v933_v40 = vpop.eup %932 }
 0x3ab   :  { %v411_v43 = vadd.f32 1.0, %v933_v40 }
 0x409   :  { %v402_v42 = vpop.f32.mrf.mxu0 }
 0x40a   :  { %v403_v44 = vadd.f32 %v402_v42, %v363_v41 }
 0x40b   :  { %v879_v45 = vpop.f32.mrf.mxu0 }
 0x40c   :  { %934 = vtanh.f32 %v403_v44  ;;  %v818_v52 = vmul.f32 -1.442695, %v403_v44 }
 0x40d   :  { %v405_v46 = vpop.f32.mrf.mxu0  ;;  %936 = vrcp.f32 %v411_v43 }
 0x40e   :  { %938 = vpow2.f32 %v818_v52  ;;  %v687_v52 = vld [vmem:[#allocation2] sm:$0x1] }
 0x40f   :  { %v880_v47 = vpop.f32.mrf.mxu0 }
 0x419   :  { %v935_v48 = vpop.eup %934 }
 0x41a   :  { %441 = vrot.lane.b32.xlu1 %v935_v48, %s983_s11  ;;  %v937_v49 = vpop.eup %936 }
 0x41b   :  { %v418_v50 = vpop.permute.xlu0 %417  ;;  %v939_v53 = vpop.eup %938  ;;  %v415_v58 = vmul.f32 %v937_v49, %v1088_v11 }
 0x41c   :  { %v420_v51 = vmul.f32 %v937_v49, %v418_v50  ;;  %v435_v54 = vadd.f32 1.0, %v939_v53 }
 0x41e   :  { %422 = vrot.lane.b32.xlu0 %v420_v51, %s984_s12  ;;  %940 = vrcp.f32 %v435_v54 }
 0x42b   :  { %v941_v55 = vpop.eup %940 }
 0x42c   :  { %v439_v62 = vmul.f32 %v941_v55, %v1092_v15  ;;  %v470_v15 = vunpack.c.l.bf16 %v469_v14 }
 0x48c   :  { %v442_v56 = vpop.permute.xlu1 %441 }
 0x48d   :  { %v444_v57 = vmul.f32 %v941_v55, %v442_v56 }
 0x48f   :  { %446 = vrot.lane.b32.xlu1 %v444_v57, %s984_s12 }
 0x490   :  { %v423_v59 = vpop.permute.xlu0 %422 }
 0x491   :  { %v1123_v60 = vadd.f32 %v423_v59, %v415_v58 }
 0x493   :  { %942 = vtanh.f32 %v1123_v60 }
 0x4a0   :  { %v943_v61 = vpop.eup %942 }
 0x4a1   :  { %428 = vrot.lane.b32.xlu0 %v943_v61, %s985_s13 }
 0x501   :  { %v447_v63 = vpop.permute.xlu1 %446 }
 0x502   :  { %v1128_v0 = vadd.f32 %v447_v63, %v439_v62  ;;  %v638_v62 = vld [vmem:[#allocation2 + $0x3] sm:$0x1] }
 0x503   :  { %v639_v63 = vunpack.c.l.bf16 %v638_v62 }
 0x504   :  { %944 = vtanh.f32 %v1128_v0 }
 0x511   :  { %v945_v2 = vpop.eup %944 }
 0x512   :  { %452 = vrot.lane.b32.xlu1 %v945_v2, %s985_s13 }
 0x513   :  { %v429_v3 = vpop.permute.xlu0 %428 }
 0x514   :  { %v1132_v5 = vmul.f32 %v937_v49, %v429_v3 }
 0x516   :  { %v468_v6 = vpack.c.bf16 %v1132_v5, %v1132_v5 }
 0x518   :  { %472 = vrot.lane.b32.xlu0 %v468_v6, %s986_s14 }
 0x51c   :  { %531 = vrot.lane.b32.xlu0 %v530_v8, %s982_s2 }
 0x584   :  { %v453_v9 = vpop.permute.xlu1 %452 }
 0x585   :  { %v1139_v10 = vmul.f32 %v941_v55, %v453_v9  ;;  %v688_v55 = vunpack.c.l.bf16 %v687_v52 }
 0x587   :  { %v517_v11 = vpack.c.bf16 %v1139_v10, %v1139_v10  ;;  %v699_v56 = vrot.slane %v688_v55, %v1049_v18 }
 0x589   :  { %521 = vrot.lane.b32.xlu1 %v517_v11, %s986_s14 }
 0x58a   :  { %v473_v12 = vpop.permute.xlu0 %472 }
 0x58b   :  { %884 = vmatmul.mubr.msk.bf16.vlgmr.msra.gmra.mxu1 %vm58_vm1, %v473_v12 }
 0x58c   :  { %894 = vmatpush3.bf16.msra.mxu1 %v1047_v17  ;;  %895 = vmatprep.mubr.msk.bf16.mxu1 %vm979_vm0, %v978_v1 }
 0x58e   :  { %v532_v28 = vpop.permute.xlu0 %531 }
 0x5fb   :  { %v522_v13 = vpop.permute.xlu1 %521 }
 0x5fc   :  { %890 = vmatmul.mubr.msk.bf16.vlgmr.msra.gmra.mxu0 %vm58_vm1, %v522_v13 }
 0x5fd   :  { %900 = vmatpush3.bf16.msra.mxu0 %v1062_v25  ;;  %901 = vmatprep.mubr.msk.bf16.mxu0 %vm979_vm0, %v978_v1 }
 0x64b   :  { %v511_v16 = vpop.f32.mrf.mxu1 }
 0x64c   :  { %v512_v19 = vadd.f32 %v511_v16, %v470_v15 }
 0x64d   :  { %v885_v20 = vpop.f32.mrf.mxu1 }
 0x64e   :  { %946 = vtanh.f32 %v512_v19  ;;  %v823_v24 = vmul.f32 -1.442695, %v512_v19 }
 0x64f   :  { %v514_v22 = vpop.f32.mrf.mxu1 }
 0x650   :  { %948 = vpow2.f32 %v823_v24 }
 0x651   :  { %v886_v23 = vpop.f32.mrf.mxu1 }
 0x65b   :  { %v947_v17 = vpop.eup %946 }
 0x65c   :  { %586 = vrot.lane.b32.xlu1 %v947_v17, %s983_s11 }
 0x65d   :  { %v949_v26 = vpop.eup %948 }
 0x65e   :  { %v580_v25 = vadd.f32 1.0, %v949_v26 }
 0x6bc   :  { %v571_v29 = vpop.f32.mrf.mxu0 }
 0x6bd   :  { %v572_v30 = vadd.f32 %v571_v29, %v532_v28 }
 0x6be   :  { %v891_v31 = vpop.f32.mrf.mxu0 }
 0x6bf   :  { %950 = vtanh.f32 %v572_v30  ;;  %v824_v37 = vmul.f32 -1.442695, %v572_v30 }
 0x6c0   :  { %v574_v1 = vpop.f32.mrf.mxu0  ;;  %952 = vrcp.f32 %v580_v25 }
 0x6c1   :  { %954 = vpow2.f32 %v824_v37 }
 0x6c2   :  { %v892_v32 = vpop.f32.mrf.mxu0 }
 0x6cc   :  { %v951_v33 = vpop.eup %950 }
 0x6cd   :  { %610 = vrot.lane.b32.xlu0 %v951_v33, %s983_s11  ;;  %v953_v34 = vpop.eup %952 }
 0x6ce   :  { %v587_v35 = vpop.permute.xlu1 %586  ;;  %v955_v38 = vpop.eup %954  ;;  %v584_v43 = vmul.f32 %v953_v34, %v1123_v60 }
 0x6cf   :  { %v589_v36 = vmul.f32 %v953_v34, %v587_v35  ;;  %v604_v39 = vadd.f32 1.0, %v955_v38 }
 0x6d1   :  { %591 = vrot.lane.b32.xlu1 %v589_v36, %s984_s12  ;;  %956 = vrcp.f32 %v604_v39 }
 0x6de   :  { %v957_v40 = vpop.eup %956 }
 0x6df   :  { %v608_v47 = vmul.f32 %v957_v40, %v1128_v0 }
 0x73f   :  { %v611_v41 = vpop.permute.xlu0 %610 }
 0x740   :  { %v613_v42 = vmul.f32 %v957_v40, %v611_v41 }
 0x742   :  { %615 = vrot.lane.b32.xlu0 %v613_v42, %s984_s12 }
 0x743   :  { %v592_v44 = vpop.permute.xlu1 %591 }
 0x744   :  { %v1157_v45 = vadd.f32 %v592_v44, %v584_v43 }
 0x746   :  { %958 = vtanh.f32 %v1157_v45 }
 0x753   :  { %v959_v46 = vpop.eup %958 }
 0x754   :  { %597 = vrot.lane.b32.xlu1 %v959_v46, %s985_s13 }
 0x7b4   :  { %v616_v48 = vpop.permute.xlu0 %615 }
 0x7b5   :  { %v1162_v49 = vadd.f32 %v616_v48, %v608_v47 }
 0x7b7   :  { %960 = vtanh.f32 %v1162_v49 }
 0x7c4   :  { %v961_v50 = vpop.eup %960 }
 0x7c5   :  { %621 = vrot.lane.b32.xlu0 %v961_v50, %s985_s13 }
 0x7c6   :  { %v598_v51 = vpop.permute.xlu1 %597 }
 0x7c7   :  { %v600_v53 = vmul.f32 %v953_v34, %v598_v51 }
 0x7c9   :  { %v637_v54 = vpack.c.bf16 %v600_v53, %v600_v53 }
 0x7cb   :  { %641 = vrot.lane.b32.xlu1 %v637_v54, %s986_s14 }
 0x7cf   :  { %700 = vrot.lane.b32.xlu1 %v699_v56, %s982_s2 }
 0x837   :  { %v622_v57 = vpop.permute.xlu0 %621 }
 0x838   :  { %v1169_v58 = vmul.f32 %v957_v40, %v622_v57 }
 0x83a   :  { %v686_v59 = vpack.c.bf16 %v1169_v58, %v1169_v58 }
 0x83c   :  { %690 = vrot.lane.b32.xlu0 %v686_v59, %s986_s14 }
 0x83d   :  { %v642_v60 = vpop.permute.xlu1 %641 }
 0x83e   :  { %896 = vmatmul.mubr.msk.bf16.vlgmr.msra.gmra.mxu1 %vm58_vm1, %v642_v60 }
 0x841   :  { %v701_v9 = vpop.permute.xlu1 %700 }
 0x8ae   :  { %v691_v61 = vpop.permute.xlu0 %690 }
 0x8af   :  { %902 = vmatmul.mubr.msk.bf16.vlgmr.msra.gmra.mxu0 %vm58_vm1, %v691_v61 }
 0x8fe   :  { %v680_v0 = vpop.f32.mrf.mxu1 }
 0x8ff   :  { %v681_v18 = vadd.f32 %v680_v0, %v639_v63 }
 0x900   :  { %v897_v2 = vpop.f32.mrf.mxu1 }
 0x901   :  { %962 = vtanh.f32 %v681_v18  ;;  %v829_v7 = vmul.f32 -1.442695, %v681_v18 }
 0x902   :  { %v683_v3 = vpop.f32.mrf.mxu1 }
 0x903   :  { %964 = vpow2.f32 %v829_v7 }
 0x904   :  { %v898_v4 = vpop.f32.mrf.mxu1 }
 0x90e   :  { %v963_v6 = vpop.eup %962 }
 0x90f   :  { %755 = vrot.lane.b32.xlu0 %v963_v6, %s983_s11 }
 0x910   :  { %v965_v8 = vpop.eup %964 }
 0x911   :  { %v749_v12 = vadd.f32 1.0, %v965_v8 }
 0x96f   :  { %v740_v11 = vpop.f32.mrf.mxu0 }
 0x970   :  { %v741_v13 = vadd.f32 %v740_v11, %v701_v9 }
 0x971   :  { %v903_v14 = vpop.f32.mrf.mxu0 }
 0x972   :  { %966 = vtanh.f32 %v741_v13  ;;  %v830_v17 = vmul.f32 -1.442695, %v741_v13 }
 0x973   :  { %v743_v15 = vpop.f32.mrf.mxu0  ;;  %968 = vrcp.f32 %v749_v12 }
 0x974   :  { %970 = vpow2.f32 %v830_v17 }
 0x975   :  { %v904_v16 = vpop.f32.mrf.mxu0 }
 0x97f   :  { %v967_v19 = vpop.eup %966 }
 0x980   :  { %779 = vrot.lane.b32.xlu1 %v967_v19, %s983_s11  ;;  %v969_v20 = vpop.eup %968 }
 0x981   :  { %v756_v22 = vpop.permute.xlu0 %755  ;;  %v971_v24 = vpop.eup %970  ;;  %v753_v30 = vmul.f32 %v969_v20, %v1157_v45 }
 0x982   :  { %v758_v23 = vmul.f32 %v969_v20, %v756_v22  ;;  %v773_v26 = vadd.f32 1.0, %v971_v24 }
 0x984   :  { %760 = vrot.lane.b32.xlu0 %v758_v23, %s984_s12  ;;  %972 = vrcp.f32 %v773_v26 }
 0x991   :  { %v973_v28 = vpop.eup %972 }
 0x992   :  { %v777_v33 = vmul.f32 %v973_v28, %v1162_v49 }
 0x9f2   :  { %v780_v29 = vpop.permute.xlu1 %779 }
 0x9f3   :  { %v782_v25 = vmul.f32 %v973_v28, %v780_v29 }
 0x9f5   :  { %784 = vrot.lane.b32.xlu1 %v782_v25, %s984_s12 }
 0x9f6   :  { %v761_v31 = vpop.permute.xlu0 %760 }
 0x9f7   :  { %v763_v1 = vadd.f32 %v761_v31, %v753_v30 }
 0x9f9   :  { %974 = vtanh.f32 %v763_v1 }
 0xa06   :  { %v975_v32 = vpop.eup %974 }
 0xa07   :  { %766 = vrot.lane.b32.xlu0 %v975_v32, %s985_s13 }
 0xa0b   :  { %286 = vrot.lane.b32.xlu0 %v1096_v21, %s986_s14 }
 0xa0f   :  { %457 = vrot.lane.b32.xlu0 %v1132_v5, %s986_s14 }
 0xa13   :  { %626 = vrot.lane.b32.xlu0 %v600_v53, %s986_s14 }
 0xa67   :  { %v785_v34 = vpop.permute.xlu1 %784 }
 0xa68   :  { %v787_v35 = vadd.f32 %v785_v34, %v777_v33 }
 0xa6a   :  { %976 = vtanh.f32 %v787_v35 }
 0xa77   :  { %v977_v36 = vpop.eup %976 }
 0xa78   :  { %790 = vrot.lane.b32.xlu1 %v977_v36, %s985_s13 }
 0xa79   :  { %v767_v37 = vpop.permute.xlu0 %766 }
 0xa7a   :  { %v769_v38 = vmul.f32 %v969_v20, %v767_v37 }
 0xa7c   :  { %795 = vrot.lane.b32.xlu0 %v769_v38, %s986_s14  ;;  %292 = vrot.lane.b32.xlu1 %v1103_v27, %s986_s14 }
 0xa7d   :  { %v287_v21 = vpop.permute.xlu0 %286 }
 0xa7e   :  { %290 = vst.msk [vmem:[%s1234_s5] sm:$0x3] %vm289_vm2, %v287_v21 }
 0xa80   :  { %463 = vrot.lane.b32.xlu1 %v1139_v10, %s986_s14 }
 0xa81   :  { %v458_v5 = vpop.permute.xlu0 %457 }
 0xa82   :  { %819 = vst.msk [vmem:[%s1234_s5 + $0x2] sm:$0x3] %vm289_vm2, %v458_v5 }
 0xa84   :  { %632 = vrot.lane.b32.xlu1 %v1169_v58, %s986_s14 }
 0xa85   :  { %v627_v39 = vpop.permute.xlu0 %626 }
 0xa86   :  { %825 = vst.msk [vmem:[%s1234_s5 + $0x4] sm:$0x3] %vm289_vm2, %v627_v39 }
 0xaea   :  { %v791_v27 = vpop.permute.xlu1 %790 }
 0xaeb   :  { %v793_v40 = vmul.f32 %v973_v28, %v791_v27 }
 0xaed   :  { %801 = vrot.lane.b32.xlu1 %v793_v40, %s986_s14 }
 0xaee   :  { %v796_v10 = vpop.permute.xlu0 %795  ;;  %v293_v41 = vpop.permute.xlu1 %292 }
 0xaef   :  { %831 = vst.msk [vmem:[%s1234_s5 + $0x6] sm:$0x3] %vm289_vm2, %v796_v10  ;;  %814 = vst.msk [vmem:[%s1234_s5 + $0xe] sm:$0x3] %vm289_vm2, %v293_v41 }
 0xaf2   :  { %v464_v42 = vpop.permute.xlu1 %463 }
 0xaf3   :  { %820 = vst.msk [vmem:[%s1234_s5 + $0xc] sm:$0x3] %vm289_vm2, %v464_v42 }
 0xaf6   :  { %v633_v43 = vpop.permute.xlu1 %632 }
 0xaf7   :  { %826 = vst.msk [vmem:[%s1234_s5 + $0xa] sm:$0x3] %vm289_vm2, %v633_v43 }
 0xb5f   :  { %v802_v44 = vpop.permute.xlu1 %801 }
 0xb60   :  { %832 = vst.msk [vmem:[%s1234_s5 + $0x8] sm:$0x3] %vm289_vm2, %v802_v44 }

// kernel: model_forward.11
= control target key start
LH: loop header
LB: loop body
LE: loop exit
PB: predicated region body
PF: predicated region fallthrough
CT: control target
= control target key end

     0   :  { %s879_s27 = smov 0   ;;  %s944_s0 = inlined_call_operand.vmem [shape: f32[2,4,1], index: 0, kind: input, shape index: {}]   ;;  %s945_s1 = inlined_call_operand.vmem [shape: f32[2,4,4], index: 1, kind: input, shape index: {}]   ;;  %s946_s2 = inlined_call_operand.vmem [shape: f32[2,4,4], index: 2, kind: input, shape index: {}]   ;;  %s947_s3 = inlined_call_operand.vmem [shape: f32[2,4,32], index: 3, kind: input, shape index: {}]   ;;  %s948_s4 = inlined_call_operand.vmem [shape: f32[2,4,1], index: 4, kind: input, shape index: {}]   ;;  %s949_s5 = inlined_call_operand.vmem [shape: f32[1,16], index: 5, kind: input, shape index: {}]   ;;  %s950_s6 = inlined_call_operand.vmem [shape: f32[48,16], index: 6, kind: input, shape index: {}]   ;;  %s951_s7 = inlined_call_operand.vmem [shape: f32[1,16], index: 7, kind: input, shape index: {}]   ;;  %s952_s8 = inlined_call_operand.vmem [shape: f32[2,1,16], index: 8, kind: output, shape index: {}]  }
   0x1 LB: > { %s750_s28 = sadd.s32 4294967295, %s829_s27   ;;  %p754_p0 = scmp.ge.s32.totalorder %s829_s27, 1  ;;  %s829_s27 = sphi %s879_s27, %s18_s27  }
   0x2   : > { %p297_p1 = scmp.lt.s32.totalorder %s829_s27, 3 }
   0x4   : > { %p298_p2 = pnand %p754_p0, %p297_p1 }
   0x5   : > { %p344_p3 = scmp.lt.s32.totalorder (!%p298_p2), %s750_s28, 1 }
   0x6   : > { %301 = sbr.rel (%p298_p2) target bundleno = 567 (0x237), region = 52 }
   0xb   : > { %v831_v0 = vmov 0   ;;  %s954_s28 = smov (!%p344_p3, %s750_s28), 1  ;;  %v832_v2 = vmov 0.0   ;;  %vm833_vm0 = vmmov 0   ;;  %vm397_vm1 = vcmask 1041408   ;;  %v487_v10 = vld [vmem:[%s950_s6] sm:$0xff] }
   0xc   : > { %821 = vset.pattern.permute.xlu0 %v831_v0  ;;  %822 = vset.pattern.permute.xlu1 %v831_v0  ;;  %s755_s29 = sshll.u32 %s954_s28, 2  ;;  %v488_v11 = vld [vmem:[%s950_s6 + $0x8] sm:$0xff]  ;;  %v489_v12 = vld [vmem:[%s950_s6 + $0x10] sm:$0xff]  ;;  %v490_v13 = vld [vmem:[%s950_s6 + $0x18] sm:$0xff]  ;;  %vm393_vm2 = vcmask 31744   ;;  %vm496_vm3 = vcmask 130048   ;;  %s366_s21 = scalar_lea.vmem %s952_s8, %s954_s28 }
   0xd   : > { %s363_s10 = scalar_lea.vmem %s948_s4, %s755_s29  ;;  %s347_s13 = scalar_lea.vmem %s944_s0, %s755_s29  ;;  %780 = vmatprep.subr.bf16.mxu0 %v832_v2  ;;  %786 = vmatprep.subr.bf16.mxu1 %v832_v2  ;;  %v493_v17 = vpack.c.bf16 %v488_v11, %v487_v10  ;;  %v495_v18 = vpack.c.bf16 %v490_v13, %v489_v12  ;;  %v760_v21 = vld [vmem:[%s949_s5] ss:$0 sm:$0xff]  ;;  %v492_v25 = vld [vmem:[%s950_s6 + $0x28] sm:$0xff]  ;;  %vm645_vm4 = vcmask 125952   ;;  %vm653_vm5 = vcmask 122880  }
   0xe   : > { %v368_v1 = vld [vmem:[%s363_s10] sm:$0xf]  ;;  %782 = vmatprep.mubr.msk.bf16.mxu0 %vm833_vm0, %v832_v2  ;;  %788 = vmatprep.mubr.msk.bf16.mxu1 %vm833_vm0, %v832_v2  ;;  %s359_s16 = scalar_lea.vmem %s947_s3, %s755_s29  ;;  %s351_s19 = scalar_lea.vmem %s945_s1, %s755_s29 }
   0xf   : > { %372 = vperm.xlu0 %821, %v368_v1   ;;  %v377_v3 = vld [vmem:[%s347_s13] sm:$0xf]  ;;  %s355_s22 = scalar_lea.vmem %s946_s2, %s755_s29  ;;  %v767_v19 = vadd.f32 -1.0, %v368_v1 }
  0x10   : > { %v369_v4 = vld [vmem:[%s359_s16] sm:$0xf] }
  0x11   : > { %v391_v7 = vld [vmem:[%s351_s19] sm:$0xf]  ;;  %v638_v20 = vmul.f32 999.0, %v767_v19 }
  0x12   : > { %v442_v8 = vld [vmem:[%s355_s22] sm:$0xf]  ;;  %v392_v15 = vpack.c.bf16 %v391_v7, %v391_v7 }
  0x13   : > { %381 = vperm.xlu0 %821, %v377_v3   ;;  %v443_v16 = vpack.c.bf16 %v442_v8, %v442_v8  ;;  %641 = vperm.xlu1 %822, %v638_v20   ;;  %v491_v24 = vld [vmem:[%s950_s6 + $0x20] sm:$0xff] }
  0x14   : > { %v583_v31 = vpack.c.bf16 %v492_v25, %v491_v24  ;;  %v766_v48 = vld [vmem:[%s951_s7] ss:$0 sm:$0xff] }
  0x8a   : > { %v373_v5 = vpop.permute.xlu0 %372 }
  0x8b   : > { %v375_v6 = vmul.f32 %v373_v5, %v369_v4 }
  0x8d   : > { %v376_v9 = vpack.c.bf16 %v375_v6, %v375_v6 }
  0x8e   : > { %v382_v22 = vpop.permute.xlu0 %381  ;;  %v642_v53 = vpop.permute.xlu1 %641 }
  0x8f   : > { %v399_v14 = vsel %vm397_vm1, %v376_v9, 0  ;;  %v390_v23 = vmul.f32 %v760_v21, %v382_v22 }
  0x90   : > { %781 = vmatpush3.bf16.msra.mxu0 %v399_v14  ;;  %787 = vmatpush3.bf16.msra.mxu1 %v399_v14 }
  0x91   : > { %798 = vmatprep.subr.bf16.mxu1 %v832_v2  ;;  %792 = vmatprep.subr.bf16.mxu0 %v832_v2 }
  0x93   : > { %783 = vmatmul.mubr.msk.bf16.vlgmr.msra.gmra.mxu0 %vm393_vm2, %v392_v15  ;;  %789 = vmatmul.mubr.msk.bf16.vlgmr.msra.gmra.mxu1 %vm393_vm2, %v443_v16 }
  0x94   : > { %799 = vmatpush3.bf16.msra.mxu1 %v493_v17  ;;  %800 = vmatprep.mubr.msk.bf16.mxu1 %vm833_vm0, %v832_v2 }
  0x95   : > { %793 = vmatpush3.bf16.msra.mxu0 %v495_v18  ;;  %794 = vmatprep.mubr.msk.bf16.mxu0 %vm833_vm0, %v832_v2 }
  0x96   : > { %804 = vmatprep.subr.bf16.mxu0 %v832_v2 }
  0x9b   : > { %801 = vmatmul.mubr.msk.bf16.vlgmr.msra.gmra.mxu1 %vm496_vm3, %v376_v9 }
 0x153   : > { %v435_v26 = vpop.f32.mrf.mxu0  ;;  %v481_v27 = vpop.f32.mrf.mxu1 }
 0x154   : > { %v441_v28 = vadd.f32 %v435_v26, %v390_v23  ;;  %v582_v38 = vpack.c.bf16 %v481_v27, %v481_v27 }
 0x155   : > { %v784_v29 = vpop.f32.mrf.mxu0  ;;  %v790_v30 = vpop.f32.mrf.mxu1 }
 0x156   : > { %v494_v32 = vpack.c.bf16 %v441_v28, %v441_v28 }
 0x157   : > { %v438_v33 = vpop.f32.mrf.mxu0  ;;  %v484_v34 = vpop.f32.mrf.mxu1 }
 0x158   : > { %795 = vmatmul.mubr.msk.bf16.vlgmr.msra.gmra.mxu0 %vm496_vm3, %v494_v32 }
 0x159   : > { %805 = vmatpush3.bf16.msra.mxu0 %v583_v31  ;;  %v785_v35 = vpop.f32.mrf.mxu0  ;;  %v791_v36 = vpop.f32.mrf.mxu1  ;;  %806 = vmatprep.mubr.msk.bf16.mxu0 %vm833_vm0, %v832_v2 }
 0x15b   : > { %v576_v37 = vpop.f32.mrf.mxu1 }
 0x15d   : > { %v802_v39 = vpop.f32.mrf.mxu1 }
 0x15f   : > { %v579_v40 = vpop.f32.mrf.mxu1 }
 0x160   : > { %807 = vmatmul.mubr.msk.bf16.vlgmr.msra.gmra.mxu0 %vm496_vm3, %v582_v38 }
 0x161   : > { %v803_v41 = vpop.f32.mrf.mxu1 }
 0x218   : > { %v534_v42 = vpop.f32.mrf.mxu0 }
 0x219   : > { %v577_v46 = vadd.f32 %v576_v37, %v534_v42 }
 0x21a   : > { %v796_v43 = vpop.f32.mrf.mxu0 }
 0x21c   : > { %v537_v44 = vpop.f32.mrf.mxu0 }
 0x21e   : > { %v797_v45 = vpop.f32.mrf.mxu0 }
 0x220   : > { %v621_v47 = vpop.f32.mrf.mxu0 }
 0x221   : > { %v627_v49 = vadd.f32 %v621_v47, %v577_v46 }
 0x222   : > { %v808_v50 = vpop.f32.mrf.mxu0 }
 0x223   : > { %v635_v51 = vadd.f32 %v766_v48, %v627_v49 }
 0x224   : > { %v624_v52 = vpop.f32.mrf.mxu0 }
 0x225   : > { %v636_v54 = vmax.f32 %v635_v51, 0.0 }
 0x226   : > { %v809_v55 = vpop.f32.mrf.mxu0 }
 0x227   : > { %v644_v56 = vadd.f32 %v642_v53, %v636_v54 }
 0x229   : > { %v646_v57 = vsel %vm645_vm4, %v644_v56, -inf }
 0x22a   : > { %v647_v58 = vrot.slane %v646_v57, 4 }
 0x22c   : > { %v648_v59 = vmax.f32 %v646_v57, %v647_v58 }
 0x22e   : > { %v649_v60 = vrot.slane %v648_v59, 2 }
 0x230   : > { %v650_v61 = vmax.f32 %v648_v59, %v649_v60 }
 0x232   : > { %v651_v62 = vrot.slane %v650_v61, 1 }
 0x234   : > { %v652_v63 = vmax.f32 %v650_v61, %v651_v62 }
 0x236   : > { %654 = vst.msk [vmem:[%s366_s21] sm:$0x1] %vm653_vm5, %v652_v63 }
 0x237 PF: > { %s18_s27 = sadd.s32 1, %s829_s27  }
 0x238   : > { %p15_p4 = scmp.ge.s32.totalorder %s18_s27, 4  }
 0x23a   :  { %17 = sbr.rel (!%p15_p4) target bundleno = 1 (0x1), region = 94 }

</bundles_post_ra>
